<compile_context>
chip_gen: v7x
topology: tpu7x:2x2x1
jax: 0.10.0
libtpu: 0.0.40
codegen_flags: <defaults>
</compile_context>

<pallas_src>
import functools

import jax
import jax.numpy as jnp
from jax.experimental import pallas as pl
from jax.experimental.pallas import tpu as pltpu


# ---------------------------------------------------------------------------
# Fully fused forward kernel (one grid step = one batch element)
# ---------------------------------------------------------------------------

def _disc_kernel(x_ref, a11_ref, wsc1_ref, a1s_ref, wscs_ref, a2s_ref,
                 b1s_ref, bouts_ref, pools_ref, w8_ref, b8_ref,
                 y_ref, pad_ref, *, widths, mxu_dtype):
    """VMEM refs:
       x_ref    : (IMG, IMG*3)        lane-flattened NHWC input image (f32)
       a11_ref  : (3, IMG*3, L1)      block-1 banded conv1 weights (bf16)
       wsc1_ref : (IMG*3, L2)         block-1 shortcut, column-pool folded (bf16)
       a1s_ref  : (6, 3, L2, L1)      blocks 2-7 banded conv1 weights (bf16)
       wscs_ref : (6, L2, L2)         blocks 2-7 folded shortcuts (bf16)
       a2s_ref  : (7, 3, L1, L2)      all blocks: conv2 weights, column-pool folded
       b1s_ref  : (7, 1, L1)          conv1 biases tiled along width (f32)
       bouts_ref: (7, 1, L2)          conv2 + shortcut biases, post-pool (f32)
       pools_ref: (3, IMG/2, IMG)     f32 row-pool matrices: S@U, S, S@D (0.5 bands)
       w8_ref   : (1, ndf)            SNLinear weight row (f32)
       b8_ref   : (1, 1)              SNLinear bias (f32)
       y_ref    : (1, 1)              per-image logit
       pad_ref  : (IMG+16, IMG*3)     f32 zero-halo scratch for the banded conv1
       with L1 = IMG*ndf/64 and L2 = IMG*ndf/128 (256 / 128 here).
    """
    f32 = jnp.float32
    P0 = 8  # sublane-aligned row at which the conv1 operand is stored in pad_ref

    def band_conv1(h0, taps):
        # out[i] = h0[i-1] @ T0 + h0[i] @ T1 + h0[i+1] @ T2 with zero row padding.
        # h0 is stored once (aligned); the shifted operands are overlapping loads
        # of the same scratch — no concatenate copies, no extra vector stores.
        H, L = h0.shape
        zero_row = jnp.zeros((1, L), f32)
        pad_ref[P0 - 1:P0, 0:L] = zero_row
        pad_ref[P0 + H:P0 + H + 1, 0:L] = zero_row
        pad_ref[P0:P0 + H, 0:L] = h0
        acc = jnp.dot(pad_ref[P0 - 1:P0 - 1 + H, 0:L].astype(mxu_dtype), taps[0],
                      preferred_element_type=f32)
        acc = acc + jnp.dot(pad_ref[P0:P0 + H, 0:L].astype(mxu_dtype), taps[1],
                            preferred_element_type=f32)
        acc = acc + jnp.dot(pad_ref[P0 + 1:P0 + 1 + H, 0:L].astype(mxu_dtype), taps[2],
                            preferred_element_type=f32)
        return acc

    h = x_ref[...].astype(f32)                       # (IMG, IMG*3)
    for bi, w in enumerate(widths):                  # unrolled: static shapes per block
        H, Hh = w, w // 2
        x_blk = h                                    # raw block input (shortcut path)
        if bi == 0:                                  # DBlockOptimized: no pre-activation
            h0 = x_blk
            taps = [a11_ref[k] for k in range(3)]
            wsc = wsc1_ref[...]
        else:                                        # DBlock: pre-activation ReLU
            h0 = jnp.maximum(x_blk, 0.0)
            taps = [a1s_ref[bi - 1, k] for k in range(3)]
            wsc = wscs_ref[bi - 1]

        # conv1 -> bias -> ReLU                                         (H, L1)
        h1 = jnp.maximum(band_conv1(h0, taps) + b1s_ref[bi], 0.0)
        h1b = h1.astype(mxu_dtype)
        # conv2 tap products (2x2 column-pool already folded into a2)   (H, L2)
        p0 = jnp.dot(h1b, a2s_ref[bi, 0], preferred_element_type=f32)
        p1 = jnp.dot(h1b, a2s_ref[bi, 1], preferred_element_type=f32)
        p2 = jnp.dot(h1b, a2s_ref[bi, 2], preferred_element_type=f32)
        # shortcut: 1x1 conv of the raw input with the column pool folded in
        sc = jnp.dot(x_blk.astype(mxu_dtype), wsc, preferred_element_type=f32)
        # 2x2 row pool, all in f32: conv2's ±1 row shifts are folded into the
        # precomputed S@U / S@D matrices, so the residual sum never drops to bf16.
        s_u = pools_ref[0, 0:Hh, 0:H]
        s_c = pools_ref[1, 0:Hh, 0:H]
        s_d = pools_ref[2, 0:Hh, 0:H]
        out = jnp.dot(s_u, p0, preferred_element_type=f32)
        out = out + jnp.dot(s_c, p1 + sc, preferred_element_type=f32)
        out = out + jnp.dot(s_d, p2, preferred_element_type=f32)
        h = out + bouts_ref[bi]                      # (Hh, L2) f32

    # Head fused into the same kernel: ReLU -> sum over spatial -> SNLinear.
    feat = jnp.maximum(h, 0.0)
    feat = jnp.sum(feat, axis=0, keepdims=True)      # spatial is 1x1 after 7 blocks
    # TODO(synk): if the final spatial width were > 1 a per-channel width-group sum
    # would also be needed here; with 7 stride-2 blocks from 128px it is exactly 1x1.
    logit = jnp.sum(feat * w8_ref[...], axis=1, keepdims=True) + b8_ref[...]
    y_ref[...] = logit.astype(y_ref.dtype)


# ---------------------------------------------------------------------------
# Forward pass (one pallas_call for the whole network)
# ---------------------------------------------------------------------------

def discriminator_forward(x_nchw, packed):
    n, c, h_img, w_img = x_nchw.shape
    assert h_img == w_img and h_img >= 128, "7 stride-2 blocks need >=128px input"
    # NCHW -> lane-flattened NHWC (N, H, W*C); one tiny XLA transpose at entry.
    x = jnp.transpose(x_nchw, (0, 2, 3, 1)).reshape(n, h_img, w_img * c)
    x = x.astype(jnp.float32)

    widths = tuple(h_img >> i for i in range(7))     # 128, 64, ..., 2
    args = [x,
            packed["a1_1"], packed["wsc_1"],
            packed["a1s"], packed["wscs"],
            packed["a2s"], packed["b1s"], packed["bouts"],
            packed["pools"], packed["l8_w"], packed["l8_b"]]

    in_specs = [pl.BlockSpec((None, h_img, w_img * c), lambda i: (i, 0, 0))]
    for a in args[1:]:
        in_specs.append(pl.BlockSpec(a.shape, lambda i, nd=a.ndim: (0,) * nd))

    kern = functools.partial(_disc_kernel, widths=widths, mxu_dtype=jnp.bfloat16)
    y = pl.pallas_call(
        kern,
        grid=(n,),
        in_specs=in_specs,
        out_specs=pl.BlockSpec((None, 1, 1), lambda i: (i, 0, 0)),
        out_shape=jax.ShapeDtypeStruct((n, 1, 1), jnp.float32),
        scratch_shapes=[pltpu.VMEM((h_img + 16, w_img * c), jnp.float32)],
        compiler_params=pltpu.CompilerParams(
            dimension_semantics=("parallel",),        # v7x: one image per TensorCore
            vmem_limit_bytes=32 * 1024 * 1024),
    )(*args)
    return y.reshape(n, 1)


# ---------------------------------------------------------------------------
# One-time weight packing (banded matrices, pool/shortcut folding)
# ---------------------------------------------------------------------------

def _band_matrices(w, width):
    """(3, 3, Cin, Cout) HWIO conv weight -> (3, W*Cin, W*Cout) banded matrices."""
    _, _, cin, cout = w.shape
    jin = jnp.arange(width)[:, None]
    jout = jnp.arange(width)[None, :]
    dx = jin - jout + 1                                   # tap index, valid in [0, 3)
    valid = ((dx >= 0) & (dx < 3)).astype(w.dtype)
    taps = w[:, jnp.clip(dx, 0, 2)]                       # (3, W, W, Cin, Cout)
    taps = taps * valid[None, :, :, None, None]
    return jnp.transpose(taps, (0, 1, 3, 2, 4)).reshape(3, width * cin, width * cout)


def _pool_pairs(width):
    j = jnp.arange(width)[:, None]
    j2 = jnp.arange(width // 2)[None, :]
    return jnp.where(j // 2 == j2, 0.5, 0.0).astype(jnp.float32)   # (W, W/2)


def _pool_mats(h_max):
    """Row-pool matrices with conv2's row shifts folded in: S@U, S, S@D.
    All smaller blocks use the top-left (H/2, H) corner of these matrices."""
    hh = h_max // 2
    r = jnp.arange(hh)[:, None]
    c = jnp.arange(h_max)[None, :]
    s_u = (c == 2 * r - 1) | (c == 2 * r)
    s_c = (c == 2 * r) | (c == 2 * r + 1)
    s_d = (c == 2 * r + 1) | (c == 2 * r + 2)
    return jnp.stack([s_u, s_c, s_d]).astype(jnp.float32) * 0.5    # (3, H/2, H)


def pack_block(raw, width, mxu_dtype=jnp.bfloat16):
    """Fold the 2x2 column pool and 1x1 shortcut into pre-packed matrices."""
    w1, b1 = raw["w1"], raw["b1"]
    w2, b2 = raw["w2"], raw["b2"]
    wsc, bsc = raw["wsc"], raw["bsc"]
    cout = w2.shape[3]
    half = width // 2

    a1 = _band_matrices(w1, width)                                # (3, W*Cin, W*Cout)
    m2 = _band_matrices(w2, width)                                # (3, W*Cout, W*Cout)
    pj = _pool_pairs(width)                                       # (W, W/2)
    p_out = jnp.einsum("jk,cd->jckd", pj, jnp.eye(cout, dtype=jnp.float32))
    p_out = p_out.reshape(width * cout, half * cout)
    a2 = jnp.einsum("dkl,lm->dkm", m2, p_out)                     # column-pool folded
    wsc_f = jnp.einsum("jk,io->jiko", pj, wsc).reshape(width * wsc.shape[0],
                                                       half * cout)
    return {
        "a1": a1.astype(mxu_dtype),
        "b1": jnp.tile(b1.astype(jnp.float32), (1, width)),       # (1, W*Cout)
        "a2": a2.astype(mxu_dtype),
        "wsc": wsc_f.astype(mxu_dtype),
        "bout": jnp.tile((b2 + bsc).astype(jnp.float32), (1, half)),
    }


def pack_params(raw, image_size, mxu_dtype=jnp.bfloat16):
    blocks = []
    width = image_size
    for i in range(7):
        blocks.append(pack_block(raw[f"block{i + 1}"], width, mxu_dtype))
        width //= 2
    # Blocks 2-7 all share the same packed shapes (W halves while C doubles),
    # so they stack into single constant inputs for the fused kernel.
    return {
        "a1_1": blocks[0]["a1"],                                  # (3, IMG*3, L1)
        "wsc_1": blocks[0]["wsc"],                                # (IMG*3, L2)
        "a1s": jnp.stack([b["a1"] for b in blocks[1:]]),          # (6, 3, L2, L1)
        "wscs": jnp.stack([b["wsc"] for b in blocks[1:]]),        # (6, L2, L2)
        "a2s": jnp.stack([b["a2"] for b in blocks]),              # (7, 3, L1, L2)
        "b1s": jnp.stack([b["b1"] for b in blocks]),              # (7, 1, L1)
        "bouts": jnp.stack([b["bout"] for b in blocks]),          # (7, 1, L2)
        "pools": _pool_mats(image_size),                          # (3, IMG/2, IMG)
        "l8_w": raw["l8_w"].astype(jnp.float32),                  # (1, ndf)
        "l8_b": raw["l8_b"].astype(jnp.float32),                  # (1, 1)
    }


# ---------------------------------------------------------------------------
# Deterministic parameter construction (synthetic, spectral-normalized)
# ---------------------------------------------------------------------------

def _xavier_uniform(key, shape, gain, fan_in, fan_out):
    a = gain * (6.0 / (fan_in + fan_out)) ** 0.5
    return jax.random.uniform(key, shape, jnp.float32, -a, a)


def _sigma_max(w2d, iters=30):
    u = jnp.ones((w2d.shape[0],), jnp.float32)
    v = jnp.ones((w2d.shape[1],), jnp.float32)
    for _ in range(iters):
        v = w2d.T @ u
        v = v / (jnp.linalg.norm(v) + 1e-12)
        u = w2d @ v
        u = u / (jnp.linalg.norm(u) + 1e-12)
    return jnp.dot(u, w2d @ v)


def _sn_conv(key, kh, kw, cin, cout, gain):
    wkey, bkey = jax.random.split(key)
    w = _xavier_uniform(wkey, (kh, kw, cin, cout), gain,
                        fan_in=cin * kh * kw, fan_out=cout * kh * kw)
    w2d = jnp.transpose(w, (3, 2, 0, 1)).reshape(cout, -1)
    w = w / _sigma_max(w2d)
    b = jax.random.uniform(bkey, (1, cout), jnp.float32, -0.01, 0.01)
    return w, b


def _block_params(key, cin, cout):
    k1, k2, k3 = jax.random.split(key, 3)
    w1, b1 = _sn_conv(k1, 3, 3, cin, cout, gain=2.0 ** 0.5)
    w2, b2 = _sn_conv(k2, 3, 3, cout, cout, gain=2.0 ** 0.5)
    wsc, bsc = _sn_conv(k3, 1, 1, cin, cout, gain=1.0)
    return {"w1": w1, "b1": b1, "w2": w2, "b2": b2,
            "wsc": wsc[0, 0], "bsc": bsc}          # 1x1 conv weight as (Cin, Cout)


def init_params(key, ndf):
    chans = [3, ndf >> 6, ndf >> 5, ndf >> 4, ndf >> 3, ndf >> 2, ndf >> 1, ndf]
    keys = jax.random.split(key, 9)
    params = {}
    for i in range(7):
        params[f"block{i + 1}"] = _block_params(keys[i], chans[i], chans[i + 1])
    # SNLinear(ndf, 1): xavier(gain=1), spectral-normalized, used as sum(h * w) + b.
    w8 = _xavier_uniform(keys[7], (1, ndf), 1.0, fan_in=ndf, fan_out=1)
    w8 = w8 / _sigma_max(w8)
    params["l8_w"] = w8                            # (1, ndf)
    params["l8_b"] = jnp.zeros((1, 1), jnp.float32)
    return params


# ---------------------------------------------------------------------------

if __name__ == "__main__":
    NDF = 128                         # channels: 3 -> 2 -> 4 -> ... -> 128
    IMG = 128                         # spatial: 128 -> 64 -> ... -> 1 after 7 blocks
    key = jax.random.PRNGKey(0)
    pkey, xkey = jax.random.split(key)
    raw = init_params(pkey, NDF)
    packed = pack_params(raw, IMG)    # one-time weight packing (banded matrices)

    x = jax.random.normal(xkey, (2, 3, IMG, IMG), jnp.float32)

    fwd = jax.jit(discriminator_forward)
    y = jax.block_until_ready(fwd(x, packed))
    assert y.shape == (2, 1), y.shape
    assert bool(jnp.all(jnp.isfinite(y)))
    print("KERNEL_OK")
</pallas_src>

<mosaic_0001>
module attributes {stable_mosaic.version = 11 : i64} {
  func.func @_disc_kernel(%arg0: i32, %arg1: memref<1x128x384xf32, #tpu.memory_space<vmem>>, %arg2: memref<3x384x256xbf16, #tpu.memory_space<vmem>>, %arg3: memref<384x128xbf16, #tpu.memory_space<vmem>>, %arg4: memref<6x3x128x256xbf16, #tpu.memory_space<vmem>>, %arg5: memref<6x128x128xbf16, #tpu.memory_space<vmem>>, %arg6: memref<7x3x256x128xbf16, #tpu.memory_space<vmem>>, %arg7: memref<7x1x256xf32, #tpu.memory_space<vmem>>, %arg8: memref<7x1x128xf32, #tpu.memory_space<vmem>>, %arg9: memref<3x64x128xf32, #tpu.memory_space<vmem>>, %arg10: memref<1x128xf32, #tpu.memory_space<vmem>>, %arg11: memref<1x1xf32, #tpu.memory_space<vmem>>, %arg12: memref<1x1x1xf32, #tpu.memory_space<vmem>>, %arg13: memref<144x384xf32, #tpu.memory_space<vmem>>) attributes {dimension_semantics = [#tpu.dimension_semantics<parallel>], iteration_bounds = array<i64: 2>, scalar_prefetch = 0 : i64, scratch_operands = 1 : i64, tpu.core_type = #tpu.core_type<tc>, window_params = [{transform_indices = @transform_0, window_bounds = array<i64: 1, 128, 384>}, {pipeline_mode = #tpu.pipeline_mode<synchronous>, transform_indices = @transform_1, window_bounds = array<i64: 3, 384, 256>}, {pipeline_mode = #tpu.pipeline_mode<synchronous>, transform_indices = @transform_2, window_bounds = array<i64: 384, 128>}, {pipeline_mode = #tpu.pipeline_mode<synchronous>, transform_indices = @transform_3, window_bounds = array<i64: 6, 3, 128, 256>}, {pipeline_mode = #tpu.pipeline_mode<synchronous>, transform_indices = @transform_4, window_bounds = array<i64: 6, 128, 128>}, {pipeline_mode = #tpu.pipeline_mode<synchronous>, transform_indices = @transform_5, window_bounds = array<i64: 7, 3, 256, 128>}, {pipeline_mode = #tpu.pipeline_mode<synchronous>, transform_indices = @transform_6, window_bounds = array<i64: 7, 1, 256>}, {pipeline_mode = #tpu.pipeline_mode<synchronous>, transform_indices = @transform_7, window_bounds = array<i64: 7, 1, 128>}, {pipeline_mode = #tpu.pipeline_mode<synchronous>, transform_indices = @transform_8, window_bounds = array<i64: 3, 64, 128>}, {pipeline_mode = #tpu.pipeline_mode<synchronous>, transform_indices = @transform_9, window_bounds = array<i64: 1, 128>}, {pipeline_mode = #tpu.pipeline_mode<synchronous>, transform_indices = @transform_10, window_bounds = array<i64: 1, 1>}, {transform_indices = @transform_11, window_bounds = array<i64: 1, 1, 1>}]} {
    %c0 = arith.constant 0 : index
    %c0_0 = arith.constant 0 : index
    %c0_1 = arith.constant 0 : index
    %0 = vector.load %arg1[%c0, %c0_0, %c0_1] : memref<1x128x384xf32, #tpu.memory_space<vmem>>, vector<1x128x384xf32>
    %1 = vector.shape_cast %0 : vector<1x128x384xf32> to vector<128x384xf32>
    %c0_2 = arith.constant 0 : index
    %c0_3 = arith.constant 0 : index
    %c0_4 = arith.constant 0 : index
    %2 = vector.load %arg2[%c0_2, %c0_3, %c0_4] : memref<3x384x256xbf16, #tpu.memory_space<vmem>>, vector<1x384x256xbf16>
    %3 = vector.shape_cast %2 : vector<1x384x256xbf16> to vector<384x256xbf16>
    %c1 = arith.constant 1 : index
    %c0_5 = arith.constant 0 : index
    %c0_6 = arith.constant 0 : index
    %4 = vector.load %arg2[%c1, %c0_5, %c0_6] : memref<3x384x256xbf16, #tpu.memory_space<vmem>>, vector<1x384x256xbf16>
    %5 = vector.shape_cast %4 : vector<1x384x256xbf16> to vector<384x256xbf16>
    %c2 = arith.constant 2 : index
    %c0_7 = arith.constant 0 : index
    %c0_8 = arith.constant 0 : index
    %6 = vector.load %arg2[%c2, %c0_7, %c0_8] : memref<3x384x256xbf16, #tpu.memory_space<vmem>>, vector<1x384x256xbf16>
    %7 = vector.shape_cast %6 : vector<1x384x256xbf16> to vector<384x256xbf16>
    %c0_9 = arith.constant 0 : index
    %c0_10 = arith.constant 0 : index
    %8 = vector.load %arg3[%c0_9, %c0_10] : memref<384x128xbf16, #tpu.memory_space<vmem>>, vector<384x128xbf16>
    %cst = arith.constant 0.000000e+00 : f32
    %9 = vector.broadcast %cst : f32 to vector<1x384xf32>
    %c7 = arith.constant 7 : index
    %c0_11 = arith.constant 0 : index
    %10 = vector.load %arg13[%c7, %c0_11] : memref<144x384xf32, #tpu.memory_space<vmem>>, vector<1x384xf32>
    tpu.vector_store %arg13[%c7, %c0_11], %9 {strides = array<i32>} : memref<144x384xf32, #tpu.memory_space<vmem>>, vector<1x384xf32>,
    %c136 = arith.constant 136 : index
    %c0_12 = arith.constant 0 : index
    %11 = vector.load %arg13[%c136, %c0_12] : memref<144x384xf32, #tpu.memory_space<vmem>>, vector<1x384xf32>
    tpu.vector_store %arg13[%c136, %c0_12], %9 {strides = array<i32>} : memref<144x384xf32, #tpu.memory_space<vmem>>, vector<1x384xf32>,
    %c8 = arith.constant 8 : index
    %c0_13 = arith.constant 0 : index
    %12 = vector.load %arg13[%c8, %c0_13] : memref<144x384xf32, #tpu.memory_space<vmem>>, vector<128x384xf32>
    tpu.vector_store %arg13[%c8, %c0_13], %1 {strides = array<i32>} : memref<144x384xf32, #tpu.memory_space<vmem>>, vector<128x384xf32>,
    %c7_14 = arith.constant 7 : index
    %c0_15 = arith.constant 0 : index
    %13 = vector.load %arg13[%c7_14, %c0_15] : memref<144x384xf32, #tpu.memory_space<vmem>>, vector<128x384xf32>
    %14 = arith.truncf %13 : vector<128x384xf32> to vector<128x384xbf16>
    %cst_16 = arith.constant dense<0.000000e+00> : vector<128x256xf32>
    %15 = tpu.matmul %14, %3, %cst_16 {dimension_numbers = #tpu.dot_dimension_numbers<[1], [0], [0], [1], [0, 0, 1, 1], [], []>} : vector<128x384xbf16>, vector<384x256xbf16>, vector<128x256xf32> -> vector<128x256xf32>
    %c8_17 = arith.constant 8 : index
    %c0_18 = arith.constant 0 : index
    %16 = vector.load %arg13[%c8_17, %c0_18] : memref<144x384xf32, #tpu.memory_space<vmem>>, vector<128x384xf32>
    %17 = arith.truncf %16 : vector<128x384xf32> to vector<128x384xbf16>
    %cst_19 = arith.constant dense<0.000000e+00> : vector<128x256xf32>
    %18 = tpu.matmul %17, %5, %cst_19 {dimension_numbers = #tpu.dot_dimension_numbers<[1], [0], [0], [1], [0, 0, 1, 1], [], []>} : vector<128x384xbf16>, vector<384x256xbf16>, vector<128x256xf32> -> vector<128x256xf32>
    %19 = arith.addf %15, %18 : vector<128x256xf32>
    %c9 = arith.constant 9 : index
    %c0_20 = arith.constant 0 : index
    %20 = vector.load %arg13[%c9, %c0_20] : memref<144x384xf32, #tpu.memory_space<vmem>>, vector<128x384xf32>
    %21 = arith.truncf %20 : vector<128x384xf32> to vector<128x384xbf16>
    %cst_21 = arith.constant dense<0.000000e+00> : vector<128x256xf32>
    %22 = tpu.matmul %21, %7, %cst_21 {dimension_numbers = #tpu.dot_dimension_numbers<[1], [0], [0], [1], [0, 0, 1, 1], [], []>} : vector<128x384xbf16>, vector<384x256xbf16>, vector<128x256xf32> -> vector<128x256xf32>
    %23 = arith.addf %19, %22 : vector<128x256xf32>
    %c0_22 = arith.constant 0 : index
    %c0_23 = arith.constant 0 : index
    %c0_24 = arith.constant 0 : index
    %24 = vector.load %arg7[%c0_22, %c0_23, %c0_24] : memref<7x1x256xf32, #tpu.memory_space<vmem>>, vector<1x1x256xf32>
    %25 = vector.shape_cast %24 : vector<1x1x256xf32> to vector<1x256xf32>
    %26 = vector.broadcast %25 : vector<1x256xf32> to vector<128x256xf32>
    %27 = arith.addf %23, %26 : vector<128x256xf32>
    %cst_25 = arith.constant 0.000000e+00 : f32
    %28 = vector.broadcast %cst_25 : f32 to vector<128x256xf32>
    %29 = arith.maximumf %27, %28 : vector<128x256xf32>
    %30 = arith.truncf %29 : vector<128x256xf32> to vector<128x256xbf16>
    %c0_26 = arith.constant 0 : index
    %c0_27 = arith.constant 0 : index
    %c0_28 = arith.constant 0 : index
    %c0_29 = arith.constant 0 : index
    %31 = vector.load %arg6[%c0_26, %c0_27, %c0_28, %c0_29] : memref<7x3x256x128xbf16, #tpu.memory_space<vmem>>, vector<1x1x256x128xbf16>
    %32 = vector.shape_cast %31 : vector<1x1x256x128xbf16> to vector<256x128xbf16>
    %cst_30 = arith.constant dense<0.000000e+00> : vector<128x128xf32>
    %33 = tpu.matmul %30, %32, %cst_30 {dimension_numbers = #tpu.dot_dimension_numbers<[1], [0], [0], [1], [0, 0, 1, 1], [], []>} : vector<128x256xbf16>, vector<256x128xbf16>, vector<128x128xf32> -> vector<128x128xf32>
    %c0_31 = arith.constant 0 : index
    %c1_32 = arith.constant 1 : index
    %c0_33 = arith.constant 0 : index
    %c0_34 = arith.constant 0 : index
    %34 = vector.load %arg6[%c0_31, %c1_32, %c0_33, %c0_34] : memref<7x3x256x128xbf16, #tpu.memory_space<vmem>>, vector<1x1x256x128xbf16>
    %35 = vector.shape_cast %34 : vector<1x1x256x128xbf16> to vector<256x128xbf16>
    %cst_35 = arith.constant dense<0.000000e+00> : vector<128x128xf32>
    %36 = tpu.matmul %30, %35, %cst_35 {dimension_numbers = #tpu.dot_dimension_numbers<[1], [0], [0], [1], [0, 0, 1, 1], [], []>} : vector<128x256xbf16>, vector<256x128xbf16>, vector<128x128xf32> -> vector<128x128xf32>
    %c0_36 = arith.constant 0 : index
    %c2_37 = arith.constant 2 : index
    %c0_38 = arith.constant 0 : index
    %c0_39 = arith.constant 0 : index
    %37 = vector.load %arg6[%c0_36, %c2_37, %c0_38, %c0_39] : memref<7x3x256x128xbf16, #tpu.memory_space<vmem>>, vector<1x1x256x128xbf16>
    %38 = vector.shape_cast %37 : vector<1x1x256x128xbf16> to vector<256x128xbf16>
    %cst_40 = arith.constant dense<0.000000e+00> : vector<128x128xf32>
    %39 = tpu.matmul %30, %38, %cst_40 {dimension_numbers = #tpu.dot_dimension_numbers<[1], [0], [0], [1], [0, 0, 1, 1], [], []>} : vector<128x256xbf16>, vector<256x128xbf16>, vector<128x128xf32> -> vector<128x128xf32>
    %40 = arith.truncf %1 : vector<128x384xf32> to vector<128x384xbf16>
    %cst_41 = arith.constant dense<0.000000e+00> : vector<128x128xf32>
    %41 = tpu.matmul %40, %8, %cst_41 {dimension_numbers = #tpu.dot_dimension_numbers<[1], [0], [0], [1], [0, 0, 1, 1], [], []>} : vector<128x384xbf16>, vector<384x128xbf16>, vector<128x128xf32> -> vector<128x128xf32>
    %c0_42 = arith.constant 0 : index
    %c0_43 = arith.constant 0 : index
    %c0_44 = arith.constant 0 : index
    %42 = vector.load %arg9[%c0_42, %c0_43, %c0_44] : memref<3x64x128xf32, #tpu.memory_space<vmem>>, vector<1x64x128xf32>
    %43 = vector.shape_cast %42 : vector<1x64x128xf32> to vector<64x128xf32>
    %c1_45 = arith.constant 1 : index
    %c0_46 = arith.constant 0 : index
    %c0_47 = arith.constant 0 : index
    %44 = vector.load %arg9[%c1_45, %c0_46, %c0_47] : memref<3x64x128xf32, #tpu.memory_space<vmem>>, vector<1x64x128xf32>
    %45 = vector.shape_cast %44 : vector<1x64x128xf32> to vector<64x128xf32>
    %c2_48 = arith.constant 2 : index
    %c0_49 = arith.constant 0 : index
    %c0_50 = arith.constant 0 : index
    %46 = vector.load %arg9[%c2_48, %c0_49, %c0_50] : memref<3x64x128xf32, #tpu.memory_space<vmem>>, vector<1x64x128xf32>
    %47 = vector.shape_cast %46 : vector<1x64x128xf32> to vector<64x128xf32>
    %cst_51 = arith.constant dense<0.000000e+00> : vector<64x128xf32>
    %48 = tpu.matmul %43, %33, %cst_51 {dimension_numbers = #tpu.dot_dimension_numbers<[1], [0], [0], [1], [0, 0, 1, 1], [], []>} : vector<64x128xf32>, vector<128x128xf32>, vector<64x128xf32> -> vector<64x128xf32>
    %49 = arith.addf %36, %41 : vector<128x128xf32>
    %cst_52 = arith.constant dense<0.000000e+00> : vector<64x128xf32>
    %50 = tpu.matmul %45, %49, %cst_52 {dimension_numbers = #tpu.dot_dimension_numbers<[1], [0], [0], [1], [0, 0, 1, 1], [], []>} : vector<64x128xf32>, vector<128x128xf32>, vector<64x128xf32> -> vector<64x128xf32>
    %51 = arith.addf %48, %50 : vector<64x128xf32>
    %cst_53 = arith.constant dense<0.000000e+00> : vector<64x128xf32>
    %52 = tpu.matmul %47, %39, %cst_53 {dimension_numbers = #tpu.dot_dimension_numbers<[1], [0], [0], [1], [0, 0, 1, 1], [], []>} : vector<64x128xf32>, vector<128x128xf32>, vector<64x128xf32> -> vector<64x128xf32>
    %53 = arith.addf %51, %52 : vector<64x128xf32>
    %c0_54 = arith.constant 0 : index
    %c0_55 = arith.constant 0 : index
    %c0_56 = arith.constant 0 : index
    %54 = vector.load %arg8[%c0_54, %c0_55, %c0_56] : memref<7x1x128xf32, #tpu.memory_space<vmem>>, vector<1x1x128xf32>
    %55 = vector.shape_cast %54 : vector<1x1x128xf32> to vector<1x128xf32>
    %56 = vector.broadcast %55 : vector<1x128xf32> to vector<64x128xf32>
    %57 = arith.addf %53, %56 : vector<64x128xf32>
    %cst_57 = arith.constant 0.000000e+00 : f32
    %58 = vector.broadcast %cst_57 : f32 to vector<64x128xf32>
    %59 = arith.maximumf %57, %58 : vector<64x128xf32>
    %c0_58 = arith.constant 0 : index
    %c0_59 = arith.constant 0 : index
    %c0_60 = arith.constant 0 : index
    %c0_61 = arith.constant 0 : index
    %60 = vector.load %arg4[%c0_58, %c0_59, %c0_60, %c0_61] : memref<6x3x128x256xbf16, #tpu.memory_space<vmem>>, vector<1x1x128x256xbf16>
    %61 = vector.shape_cast %60 : vector<1x1x128x256xbf16> to vector<128x256xbf16>
    %c0_62 = arith.constant 0 : index
    %c1_63 = arith.constant 1 : index
    %c0_64 = arith.constant 0 : index
    %c0_65 = arith.constant 0 : index
    %62 = vector.load %arg4[%c0_62, %c1_63, %c0_64, %c0_65] : memref<6x3x128x256xbf16, #tpu.memory_space<vmem>>, vector<1x1x128x256xbf16>
    %63 = vector.shape_cast %62 : vector<1x1x128x256xbf16> to vector<128x256xbf16>
    %c0_66 = arith.constant 0 : index
    %c2_67 = arith.constant 2 : index
    %c0_68 = arith.constant 0 : index
    %c0_69 = arith.constant 0 : index
    %64 = vector.load %arg4[%c0_66, %c2_67, %c0_68, %c0_69] : memref<6x3x128x256xbf16, #tpu.memory_space<vmem>>, vector<1x1x128x256xbf16>
    %65 = vector.shape_cast %64 : vector<1x1x128x256xbf16> to vector<128x256xbf16>
    %c0_70 = arith.constant 0 : index
    %c0_71 = arith.constant 0 : index
    %c0_72 = arith.constant 0 : index
    %66 = vector.load %arg5[%c0_70, %c0_71, %c0_72] : memref<6x128x128xbf16, #tpu.memory_space<vmem>>, vector<1x128x128xbf16>
    %67 = vector.shape_cast %66 : vector<1x128x128xbf16> to vector<128x128xbf16>
    %cst_73 = arith.constant 0.000000e+00 : f32
    %68 = vector.broadcast %cst_73 : f32 to vector<1x128xf32>
    %c7_74 = arith.constant 7 : index
    %c0_75 = arith.constant 0 : index
    %69 = vector.load %arg13[%c7_74, %c0_75] : memref<144x384xf32, #tpu.memory_space<vmem>>, vector<1x128xf32>
    tpu.vector_store %arg13[%c7_74, %c0_75], %68 {strides = array<i32>} : memref<144x384xf32, #tpu.memory_space<vmem>>, vector<1x128xf32>,
    %c72 = arith.constant 72 : index
    %c0_76 = arith.constant 0 : index
    %70 = vector.load %arg13[%c72, %c0_76] : memref<144x384xf32, #tpu.memory_space<vmem>>, vector<1x128xf32>
    tpu.vector_store %arg13[%c72, %c0_76], %68 {strides = array<i32>} : memref<144x384xf32, #tpu.memory_space<vmem>>, vector<1x128xf32>,
    %c8_77 = arith.constant 8 : index
    %c0_78 = arith.constant 0 : index
    %71 = vector.load %arg13[%c8_77, %c0_78] : memref<144x384xf32, #tpu.memory_space<vmem>>, vector<64x128xf32>
    tpu.vector_store %arg13[%c8_77, %c0_78], %59 {strides = array<i32>} : memref<144x384xf32, #tpu.memory_space<vmem>>, vector<64x128xf32>,
    %c7_79 = arith.constant 7 : index
    %c0_80 = arith.constant 0 : index
    %72 = vector.load %arg13[%c7_79, %c0_80] : memref<144x384xf32, #tpu.memory_space<vmem>>, vector<64x128xf32>
    %73 = arith.truncf %72 : vector<64x128xf32> to vector<64x128xbf16>
    %cst_81 = arith.constant dense<0.000000e+00> : vector<64x256xf32>
    %74 = tpu.matmul %73, %61, %cst_81 {dimension_numbers = #tpu.dot_dimension_numbers<[1], [0], [0], [1], [0, 0, 1, 1], [], []>} : vector<64x128xbf16>, vector<128x256xbf16>, vector<64x256xf32> -> vector<64x256xf32>
    %c8_82 = arith.constant 8 : index
    %c0_83 = arith.constant 0 : index
    %75 = vector.load %arg13[%c8_82, %c0_83] : memref<144x384xf32, #tpu.memory_space<vmem>>, vector<64x128xf32>
    %76 = arith.truncf %75 : vector<64x128xf32> to vector<64x128xbf16>
    %cst_84 = arith.constant dense<0.000000e+00> : vector<64x256xf32>
    %77 = tpu.matmul %76, %63, %cst_84 {dimension_numbers = #tpu.dot_dimension_numbers<[1], [0], [0], [1], [0, 0, 1, 1], [], []>} : vector<64x128xbf16>, vector<128x256xbf16>, vector<64x256xf32> -> vector<64x256xf32>
    %78 = arith.addf %74, %77 : vector<64x256xf32>
    %c9_85 = arith.constant 9 : index
    %c0_86 = arith.constant 0 : index
    %79 = vector.load %arg13[%c9_85, %c0_86] : memref<144x384xf32, #tpu.memory_space<vmem>>, vector<64x128xf32>
    %80 = arith.truncf %79 : vector<64x128xf32> to vector<64x128xbf16>
    %cst_87 = arith.constant dense<0.000000e+00> : vector<64x256xf32>
    %81 = tpu.matmul %80, %65, %cst_87 {dimension_numbers = #tpu.dot_dimension_numbers<[1], [0], [0], [1], [0, 0, 1, 1], [], []>} : vector<64x128xbf16>, vector<128x256xbf16>, vector<64x256xf32> -> vector<64x256xf32>
    %82 = arith.addf %78, %81 : vector<64x256xf32>
    %c1_88 = arith.constant 1 : index
    %c0_89 = arith.constant 0 : index
    %c0_90 = arith.constant 0 : index
    %83 = vector.load %arg7[%c1_88, %c0_89, %c0_90] : memref<7x1x256xf32, #tpu.memory_space<vmem>>, vector<1x1x256xf32>
    %84 = vector.shape_cast %83 : vector<1x1x256xf32> to vector<1x256xf32>
    %85 = vector.broadcast %84 : vector<1x256xf32> to vector<64x256xf32>
    %86 = arith.addf %82, %85 : vector<64x256xf32>
    %cst_91 = arith.constant 0.000000e+00 : f32
    %87 = vector.broadcast %cst_91 : f32 to vector<64x256xf32>
    %88 = arith.maximumf %86, %87 : vector<64x256xf32>
    %89 = arith.truncf %88 : vector<64x256xf32> to vector<64x256xbf16>
    %c1_92 = arith.constant 1 : index
    %c0_93 = arith.constant 0 : index
    %c0_94 = arith.constant 0 : index
    %c0_95 = arith.constant 0 : index
    %90 = vector.load %arg6[%c1_92, %c0_93, %c0_94, %c0_95] : memref<7x3x256x128xbf16, #tpu.memory_space<vmem>>, vector<1x1x256x128xbf16>
    %91 = vector.shape_cast %90 : vector<1x1x256x128xbf16> to vector<256x128xbf16>
    %cst_96 = arith.constant dense<0.000000e+00> : vector<64x128xf32>
    %92 = tpu.matmul %89, %91, %cst_96 {dimension_numbers = #tpu.dot_dimension_numbers<[1], [0], [0], [1], [0, 0, 1, 1], [], []>} : vector<64x256xbf16>, vector<256x128xbf16>, vector<64x128xf32> -> vector<64x128xf32>
    %c1_97 = arith.constant 1 : index
    %c1_98 = arith.constant 1 : index
    %c0_99 = arith.constant 0 : index
    %c0_100 = arith.constant 0 : index
    %93 = vector.load %arg6[%c1_97, %c1_98, %c0_99, %c0_100] : memref<7x3x256x128xbf16, #tpu.memory_space<vmem>>, vector<1x1x256x128xbf16>
    %94 = vector.shape_cast %93 : vector<1x1x256x128xbf16> to vector<256x128xbf16>
    %cst_101 = arith.constant dense<0.000000e+00> : vector<64x128xf32>
    %95 = tpu.matmul %89, %94, %cst_101 {dimension_numbers = #tpu.dot_dimension_numbers<[1], [0], [0], [1], [0, 0, 1, 1], [], []>} : vector<64x256xbf16>, vector<256x128xbf16>, vector<64x128xf32> -> vector<64x128xf32>
    %c1_102 = arith.constant 1 : index
    %c2_103 = arith.constant 2 : index
    %c0_104 = arith.constant 0 : index
    %c0_105 = arith.constant 0 : index
    %96 = vector.load %arg6[%c1_102, %c2_103, %c0_104, %c0_105] : memref<7x3x256x128xbf16, #tpu.memory_space<vmem>>, vector<1x1x256x128xbf16>
    %97 = vector.shape_cast %96 : vector<1x1x256x128xbf16> to vector<256x128xbf16>
    %cst_106 = arith.constant dense<0.000000e+00> : vector<64x128xf32>
    %98 = tpu.matmul %89, %97, %cst_106 {dimension_numbers = #tpu.dot_dimension_numbers<[1], [0], [0], [1], [0, 0, 1, 1], [], []>} : vector<64x256xbf16>, vector<256x128xbf16>, vector<64x128xf32> -> vector<64x128xf32>
    %99 = arith.truncf %57 : vector<64x128xf32> to vector<64x128xbf16>
    %cst_107 = arith.constant dense<0.000000e+00> : vector<64x128xf32>
    %100 = tpu.matmul %99, %67, %cst_107 {dimension_numbers = #tpu.dot_dimension_numbers<[1], [0], [0], [1], [0, 0, 1, 1], [], []>} : vector<64x128xbf16>, vector<128x128xbf16>, vector<64x128xf32> -> vector<64x128xf32>
    %c0_108 = arith.constant 0 : index
    %c0_109 = arith.constant 0 : index
    %c0_110 = arith.constant 0 : index
    %101 = vector.load %arg9[%c0_108, %c0_109, %c0_110] : memref<3x64x128xf32, #tpu.memory_space<vmem>>, vector<1x32x64xf32>
    %102 = vector.shape_cast %101 : vector<1x32x64xf32> to vector<32x64xf32>
    %c1_111 = arith.constant 1 : index
    %c0_112 = arith.constant 0 : index
    %c0_113 = arith.constant 0 : index
    %103 = vector.load %arg9[%c1_111, %c0_112, %c0_113] : memref<3x64x128xf32, #tpu.memory_space<vmem>>, vector<1x32x64xf32>
    %104 = vector.shape_cast %103 : vector<1x32x64xf32> to vector<32x64xf32>
    %c2_114 = arith.constant 2 : index
    %c0_115 = arith.constant 0 : index
    %c0_116 = arith.constant 0 : index
    %105 = vector.load %arg9[%c2_114, %c0_115, %c0_116] : memref<3x64x128xf32, #tpu.memory_space<vmem>>, vector<1x32x64xf32>
    %106 = vector.shape_cast %105 : vector<1x32x64xf32> to vector<32x64xf32>
    %cst_117 = arith.constant dense<0.000000e+00> : vector<32x128xf32>
    %107 = tpu.matmul %102, %92, %cst_117 {dimension_numbers = #tpu.dot_dimension_numbers<[1], [0], [0], [1], [0, 0, 1, 1], [], []>} : vector<32x64xf32>, vector<64x128xf32>, vector<32x128xf32> -> vector<32x128xf32>
    %108 = arith.addf %95, %100 : vector<64x128xf32>
    %cst_118 = arith.constant dense<0.000000e+00> : vector<32x128xf32>
    %109 = tpu.matmul %104, %108, %cst_118 {dimension_numbers = #tpu.dot_dimension_numbers<[1], [0], [0], [1], [0, 0, 1, 1], [], []>} : vector<32x64xf32>, vector<64x128xf32>, vector<32x128xf32> -> vector<32x128xf32>
    %110 = arith.addf %107, %109 : vector<32x128xf32>
    %cst_119 = arith.constant dense<0.000000e+00> : vector<32x128xf32>
    %111 = tpu.matmul %106, %98, %cst_119 {dimension_numbers = #tpu.dot_dimension_numbers<[1], [0], [0], [1], [0, 0, 1, 1], [], []>} : vector<32x64xf32>, vector<64x128xf32>, vector<32x128xf32> -> vector<32x128xf32>
    %112 = arith.addf %110, %111 : vector<32x128xf32>
    %c1_120 = arith.constant 1 : index
    %c0_121 = arith.constant 0 : index
    %c0_122 = arith.constant 0 : index
    %113 = vector.load %arg8[%c1_120, %c0_121, %c0_122] : memref<7x1x128xf32, #tpu.memory_space<vmem>>, vector<1x1x128xf32>
    %114 = vector.shape_cast %113 : vector<1x1x128xf32> to vector<1x128xf32>
    %115 = vector.broadcast %114 : vector<1x128xf32> to vector<32x128xf32>
    %116 = arith.addf %112, %115 : vector<32x128xf32>
    %cst_123 = arith.constant 0.000000e+00 : f32
    %117 = vector.broadcast %cst_123 : f32 to vector<32x128xf32>
    %118 = arith.maximumf %116, %117 : vector<32x128xf32>
    %c1_124 = arith.constant 1 : index
    %c0_125 = arith.constant 0 : index
    %c0_126 = arith.constant 0 : index
    %c0_127 = arith.constant 0 : index
    %119 = vector.load %arg4[%c1_124, %c0_125, %c0_126, %c0_127] : memref<6x3x128x256xbf16, #tpu.memory_space<vmem>>, vector<1x1x128x256xbf16>
    %120 = vector.shape_cast %119 : vector<1x1x128x256xbf16> to vector<128x256xbf16>
    %c1_128 = arith.constant 1 : index
    %c1_129 = arith.constant 1 : index
    %c0_130 = arith.constant 0 : index
    %c0_131 = arith.constant 0 : index
    %121 = vector.load %arg4[%c1_128, %c1_129, %c0_130, %c0_131] : memref<6x3x128x256xbf16, #tpu.memory_space<vmem>>, vector<1x1x128x256xbf16>
    %122 = vector.shape_cast %121 : vector<1x1x128x256xbf16> to vector<128x256xbf16>
    %c1_132 = arith.constant 1 : index
    %c2_133 = arith.constant 2 : index
    %c0_134 = arith.constant 0 : index
    %c0_135 = arith.constant 0 : index
    %123 = vector.load %arg4[%c1_132, %c2_133, %c0_134, %c0_135] : memref<6x3x128x256xbf16, #tpu.memory_space<vmem>>, vector<1x1x128x256xbf16>
    %124 = vector.shape_cast %123 : vector<1x1x128x256xbf16> to vector<128x256xbf16>
    %c1_136 = arith.constant 1 : index
    %c0_137 = arith.constant 0 : index
    %c0_138 = arith.constant 0 : index
    %125 = vector.load %arg5[%c1_136, %c0_137, %c0_138] : memref<6x128x128xbf16, #tpu.memory_space<vmem>>, vector<1x128x128xbf16>
    %126 = vector.shape_cast %125 : vector<1x128x128xbf16> to vector<128x128xbf16>
    %cst_139 = arith.constant 0.000000e+00 : f32
    %127 = vector.broadcast %cst_139 : f32 to vector<1x128xf32>
    %c7_140 = arith.constant 7 : index
    %c0_141 = arith.constant 0 : index
    %128 = vector.load %arg13[%c7_140, %c0_141] : memref<144x384xf32, #tpu.memory_space<vmem>>, vector<1x128xf32>
    tpu.vector_store %arg13[%c7_140, %c0_141], %127 {strides = array<i32>} : memref<144x384xf32, #tpu.memory_space<vmem>>, vector<1x128xf32>,
    %c40 = arith.constant 40 : index
    %c0_142 = arith.constant 0 : index
    %129 = vector.load %arg13[%c40, %c0_142] : memref<144x384xf32, #tpu.memory_space<vmem>>, vector<1x128xf32>
    tpu.vector_store %arg13[%c40, %c0_142], %127 {strides = array<i32>} : memref<144x384xf32, #tpu.memory_space<vmem>>, vector<1x128xf32>,
    %c8_143 = arith.constant 8 : index
    %c0_144 = arith.constant 0 : index
    %130 = vector.load %arg13[%c8_143, %c0_144] : memref<144x384xf32, #tpu.memory_space<vmem>>, vector<32x128xf32>
    tpu.vector_store %arg13[%c8_143, %c0_144], %118 {strides = array<i32>} : memref<144x384xf32, #tpu.memory_space<vmem>>, vector<32x128xf32>,
    %c7_145 = arith.constant 7 : index
    %c0_146 = arith.constant 0 : index
    %131 = vector.load %arg13[%c7_145, %c0_146] : memref<144x384xf32, #tpu.memory_space<vmem>>, vector<32x128xf32>
    %132 = arith.truncf %131 : vector<32x128xf32> to vector<32x128xbf16>
    %cst_147 = arith.constant dense<0.000000e+00> : vector<32x256xf32>
    %133 = tpu.matmul %132, %120, %cst_147 {dimension_numbers = #tpu.dot_dimension_numbers<[1], [0], [0], [1], [0, 0, 1, 1], [], []>} : vector<32x128xbf16>, vector<128x256xbf16>, vector<32x256xf32> -> vector<32x256xf32>
    %c8_148 = arith.constant 8 : index
    %c0_149 = arith.constant 0 : index
    %134 = vector.load %arg13[%c8_148, %c0_149] : memref<144x384xf32, #tpu.memory_space<vmem>>, vector<32x128xf32>
    %135 = arith.truncf %134 : vector<32x128xf32> to vector<32x128xbf16>
    %cst_150 = arith.constant dense<0.000000e+00> : vector<32x256xf32>
    %136 = tpu.matmul %135, %122, %cst_150 {dimension_numbers = #tpu.dot_dimension_numbers<[1], [0], [0], [1], [0, 0, 1, 1], [], []>} : vector<32x128xbf16>, vector<128x256xbf16>, vector<32x256xf32> -> vector<32x256xf32>
    %137 = arith.addf %133, %136 : vector<32x256xf32>
    %c9_151 = arith.constant 9 : index
    %c0_152 = arith.constant 0 : index
    %138 = vector.load %arg13[%c9_151, %c0_152] : memref<144x384xf32, #tpu.memory_space<vmem>>, vector<32x128xf32>
    %139 = arith.truncf %138 : vector<32x128xf32> to vector<32x128xbf16>
    %cst_153 = arith.constant dense<0.000000e+00> : vector<32x256xf32>
    %140 = tpu.matmul %139, %124, %cst_153 {dimension_numbers = #tpu.dot_dimension_numbers<[1], [0], [0], [1], [0, 0, 1, 1], [], []>} : vector<32x128xbf16>, vector<128x256xbf16>, vector<32x256xf32> -> vector<32x256xf32>
    %141 = arith.addf %137, %140 : vector<32x256xf32>
    %c2_154 = arith.constant 2 : index
    %c0_155 = arith.constant 0 : index
    %c0_156 = arith.constant 0 : index
    %142 = vector.load %arg7[%c2_154, %c0_155, %c0_156] : memref<7x1x256xf32, #tpu.memory_space<vmem>>, vector<1x1x256xf32>
    %143 = vector.shape_cast %142 : vector<1x1x256xf32> to vector<1x256xf32>
    %144 = vector.broadcast %143 : vector<1x256xf32> to vector<32x256xf32>
    %145 = arith.addf %141, %144 : vector<32x256xf32>
    %cst_157 = arith.constant 0.000000e+00 : f32
    %146 = vector.broadcast %cst_157 : f32 to vector<32x256xf32>
    %147 = arith.maximumf %145, %146 : vector<32x256xf32>
    %148 = arith.truncf %147 : vector<32x256xf32> to vector<32x256xbf16>
    %c2_158 = arith.constant 2 : index
    %c0_159 = arith.constant 0 : index
    %c0_160 = arith.constant 0 : index
    %c0_161 = arith.constant 0 : index
    %149 = vector.load %arg6[%c2_158, %c0_159, %c0_160, %c0_161] : memref<7x3x256x128xbf16, #tpu.memory_space<vmem>>, vector<1x1x256x128xbf16>
    %150 = vector.shape_cast %149 : vector<1x1x256x128xbf16> to vector<256x128xbf16>
    %cst_162 = arith.constant dense<0.000000e+00> : vector<32x128xf32>
    %151 = tpu.matmul %148, %150, %cst_162 {dimension_numbers = #tpu.dot_dimension_numbers<[1], [0], [0], [1], [0, 0, 1, 1], [], []>} : vector<32x256xbf16>, vector<256x128xbf16>, vector<32x128xf32> -> vector<32x128xf32>
    %c2_163 = arith.constant 2 : index
    %c1_164 = arith.constant 1 : index
    %c0_165 = arith.constant 0 : index
    %c0_166 = arith.constant 0 : index
    %152 = vector.load %arg6[%c2_163, %c1_164, %c0_165, %c0_166] : memref<7x3x256x128xbf16, #tpu.memory_space<vmem>>, vector<1x1x256x128xbf16>
    %153 = vector.shape_cast %152 : vector<1x1x256x128xbf16> to vector<256x128xbf16>
    %cst_167 = arith.constant dense<0.000000e+00> : vector<32x128xf32>
    %154 = tpu.matmul %148, %153, %cst_167 {dimension_numbers = #tpu.dot_dimension_numbers<[1], [0], [0], [1], [0, 0, 1, 1], [], []>} : vector<32x256xbf16>, vector<256x128xbf16>, vector<32x128xf32> -> vector<32x128xf32>
    %c2_168 = arith.constant 2 : index
    %c2_169 = arith.constant 2 : index
    %c0_170 = arith.constant 0 : index
    %c0_171 = arith.constant 0 : index
    %155 = vector.load %arg6[%c2_168, %c2_169, %c0_170, %c0_171] : memref<7x3x256x128xbf16, #tpu.memory_space<vmem>>, vector<1x1x256x128xbf16>
    %156 = vector.shape_cast %155 : vector<1x1x256x128xbf16> to vector<256x128xbf16>
    %cst_172 = arith.constant dense<0.000000e+00> : vector<32x128xf32>
    %157 = tpu.matmul %148, %156, %cst_172 {dimension_numbers = #tpu.dot_dimension_numbers<[1], [0], [0], [1], [0, 0, 1, 1], [], []>} : vector<32x256xbf16>, vector<256x128xbf16>, vector<32x128xf32> -> vector<32x128xf32>
    %158 = arith.truncf %116 : vector<32x128xf32> to vector<32x128xbf16>
    %cst_173 = arith.constant dense<0.000000e+00> : vector<32x128xf32>
    %159 = tpu.matmul %158, %126, %cst_173 {dimension_numbers = #tpu.dot_dimension_numbers<[1], [0], [0], [1], [0, 0, 1, 1], [], []>} : vector<32x128xbf16>, vector<128x128xbf16>, vector<32x128xf32> -> vector<32x128xf32>
    %c0_174 = arith.constant 0 : index
    %c0_175 = arith.constant 0 : index
    %c0_176 = arith.constant 0 : index
    %160 = vector.load %arg9[%c0_174, %c0_175, %c0_176] : memref<3x64x128xf32, #tpu.memory_space<vmem>>, vector<1x16x32xf32>
    %161 = vector.shape_cast %160 : vector<1x16x32xf32> to vector<16x32xf32>
    %c1_177 = arith.constant 1 : index
    %c0_178 = arith.constant 0 : index
    %c0_179 = arith.constant 0 : index
    %162 = vector.load %arg9[%c1_177, %c0_178, %c0_179] : memref<3x64x128xf32, #tpu.memory_space<vmem>>, vector<1x16x32xf32>
    %163 = vector.shape_cast %162 : vector<1x16x32xf32> to vector<16x32xf32>
    %c2_180 = arith.constant 2 : index
    %c0_181 = arith.constant 0 : index
    %c0_182 = arith.constant 0 : index
    %164 = vector.load %arg9[%c2_180, %c0_181, %c0_182] : memref<3x64x128xf32, #tpu.memory_space<vmem>>, vector<1x16x32xf32>
    %165 = vector.shape_cast %164 : vector<1x16x32xf32> to vector<16x32xf32>
    %cst_183 = arith.constant dense<0.000000e+00> : vector<16x128xf32>
    %166 = tpu.matmul %161, %151, %cst_183 {dimension_numbers = #tpu.dot_dimension_numbers<[1], [0], [0], [1], [0, 0, 1, 1], [], []>} : vector<16x32xf32>, vector<32x128xf32>, vector<16x128xf32> -> vector<16x128xf32>
    %167 = arith.addf %154, %159 : vector<32x128xf32>
    %cst_184 = arith.constant dense<0.000000e+00> : vector<16x128xf32>
    %168 = tpu.matmul %163, %167, %cst_184 {dimension_numbers = #tpu.dot_dimension_numbers<[1], [0], [0], [1], [0, 0, 1, 1], [], []>} : vector<16x32xf32>, vector<32x128xf32>, vector<16x128xf32> -> vector<16x128xf32>
    %169 = arith.addf %166, %168 : vector<16x128xf32>
    %cst_185 = arith.constant dense<0.000000e+00> : vector<16x128xf32>
    %170 = tpu.matmul %165, %157, %cst_185 {dimension_numbers = #tpu.dot_dimension_numbers<[1], [0], [0], [1], [0, 0, 1, 1], [], []>} : vector<16x32xf32>, vector<32x128xf32>, vector<16x128xf32> -> vector<16x128xf32>
    %171 = arith.addf %169, %170 : vector<16x128xf32>
    %c2_186 = arith.constant 2 : index
    %c0_187 = arith.constant 0 : index
    %c0_188 = arith.constant 0 : index
    %172 = vector.load %arg8[%c2_186, %c0_187, %c0_188] : memref<7x1x128xf32, #tpu.memory_space<vmem>>, vector<1x1x128xf32>
    %173 = vector.shape_cast %172 : vector<1x1x128xf32> to vector<1x128xf32>
    %174 = vector.broadcast %173 : vector<1x128xf32> to vector<16x128xf32>
    %175 = arith.addf %171, %174 : vector<16x128xf32>
    %cst_189 = arith.constant 0.000000e+00 : f32
    %176 = vector.broadcast %cst_189 : f32 to vector<16x128xf32>
    %177 = arith.maximumf %175, %176 : vector<16x128xf32>
    %c2_190 = arith.constant 2 : index
    %c0_191 = arith.constant 0 : index
    %c0_192 = arith.constant 0 : index
    %c0_193 = arith.constant 0 : index
    %178 = vector.load %arg4[%c2_190, %c0_191, %c0_192, %c0_193] : memref<6x3x128x256xbf16, #tpu.memory_space<vmem>>, vector<1x1x128x256xbf16>
    %179 = vector.shape_cast %178 : vector<1x1x128x256xbf16> to vector<128x256xbf16>
    %c2_194 = arith.constant 2 : index
    %c1_195 = arith.constant 1 : index
    %c0_196 = arith.constant 0 : index
    %c0_197 = arith.constant 0 : index
    %180 = vector.load %arg4[%c2_194, %c1_195, %c0_196, %c0_197] : memref<6x3x128x256xbf16, #tpu.memory_space<vmem>>, vector<1x1x128x256xbf16>
    %181 = vector.shape_cast %180 : vector<1x1x128x256xbf16> to vector<128x256xbf16>
    %c2_198 = arith.constant 2 : index
    %c2_199 = arith.constant 2 : index
    %c0_200 = arith.constant 0 : index
    %c0_201 = arith.constant 0 : index
    %182 = vector.load %arg4[%c2_198, %c2_199, %c0_200, %c0_201] : memref<6x3x128x256xbf16, #tpu.memory_space<vmem>>, vector<1x1x128x256xbf16>
    %183 = vector.shape_cast %182 : vector<1x1x128x256xbf16> to vector<128x256xbf16>
    %c2_202 = arith.constant 2 : index
    %c0_203 = arith.constant 0 : index
    %c0_204 = arith.constant 0 : index
    %184 = vector.load %arg5[%c2_202, %c0_203, %c0_204] : memref<6x128x128xbf16, #tpu.memory_space<vmem>>, vector<1x128x128xbf16>
    %185 = vector.shape_cast %184 : vector<1x128x128xbf16> to vector<128x128xbf16>
    %cst_205 = arith.constant 0.000000e+00 : f32
    %186 = vector.broadcast %cst_205 : f32 to vector<1x128xf32>
    %c7_206 = arith.constant 7 : index
    %c0_207 = arith.constant 0 : index
    %187 = vector.load %arg13[%c7_206, %c0_207] : memref<144x384xf32, #tpu.memory_space<vmem>>, vector<1x128xf32>
    tpu.vector_store %arg13[%c7_206, %c0_207], %186 {strides = array<i32>} : memref<144x384xf32, #tpu.memory_space<vmem>>, vector<1x128xf32>,
    %c24 = arith.constant 24 : index
    %c0_208 = arith.constant 0 : index
    %188 = vector.load %arg13[%c24, %c0_208] : memref<144x384xf32, #tpu.memory_space<vmem>>, vector<1x128xf32>
    tpu.vector_store %arg13[%c24, %c0_208], %186 {strides = array<i32>} : memref<144x384xf32, #tpu.memory_space<vmem>>, vector<1x128xf32>,
    %c8_209 = arith.constant 8 : index
    %c0_210 = arith.constant 0 : index
    %189 = vector.load %arg13[%c8_209, %c0_210] : memref<144x384xf32, #tpu.memory_space<vmem>>, vector<16x128xf32>
    tpu.vector_store %arg13[%c8_209, %c0_210], %177 {strides = array<i32>} : memref<144x384xf32, #tpu.memory_space<vmem>>, vector<16x128xf32>,
    %c7_211 = arith.constant 7 : index
    %c0_212 = arith.constant 0 : index
    %190 = vector.load %arg13[%c7_211, %c0_212] : memref<144x384xf32, #tpu.memory_space<vmem>>, vector<16x128xf32>
    %191 = arith.truncf %190 : vector<16x128xf32> to vector<16x128xbf16>
    %cst_213 = arith.constant dense<0.000000e+00> : vector<16x256xf32>
    %192 = tpu.matmul %191, %179, %cst_213 {dimension_numbers = #tpu.dot_dimension_numbers<[1], [0], [0], [1], [0, 0, 1, 1], [], []>} : vector<16x128xbf16>, vector<128x256xbf16>, vector<16x256xf32> -> vector<16x256xf32>
    %c8_214 = arith.constant 8 : index
    %c0_215 = arith.constant 0 : index
    %193 = vector.load %arg13[%c8_214, %c0_215] : memref<144x384xf32, #tpu.memory_space<vmem>>, vector<16x128xf32>
    %194 = arith.truncf %193 : vector<16x128xf32> to vector<16x128xbf16>
    %cst_216 = arith.constant dense<0.000000e+00> : vector<16x256xf32>
    %195 = tpu.matmul %194, %181, %cst_216 {dimension_numbers = #tpu.dot_dimension_numbers<[1], [0], [0], [1], [0, 0, 1, 1], [], []>} : vector<16x128xbf16>, vector<128x256xbf16>, vector<16x256xf32> -> vector<16x256xf32>
    %196 = arith.addf %192, %195 : vector<16x256xf32>
    %c9_217 = arith.constant 9 : index
    %c0_218 = arith.constant 0 : index
    %197 = vector.load %arg13[%c9_217, %c0_218] : memref<144x384xf32, #tpu.memory_space<vmem>>, vector<16x128xf32>
    %198 = arith.truncf %197 : vector<16x128xf32> to vector<16x128xbf16>
    %cst_219 = arith.constant dense<0.000000e+00> : vector<16x256xf32>
    %199 = tpu.matmul %198, %183, %cst_219 {dimension_numbers = #tpu.dot_dimension_numbers<[1], [0], [0], [1], [0, 0, 1, 1], [], []>} : vector<16x128xbf16>, vector<128x256xbf16>, vector<16x256xf32> -> vector<16x256xf32>
    %200 = arith.addf %196, %199 : vector<16x256xf32>
    %c3 = arith.constant 3 : index
    %c0_220 = arith.constant 0 : index
    %c0_221 = arith.constant 0 : index
    %201 = vector.load %arg7[%c3, %c0_220, %c0_221] : memref<7x1x256xf32, #tpu.memory_space<vmem>>, vector<1x1x256xf32>
    %202 = vector.shape_cast %201 : vector<1x1x256xf32> to vector<1x256xf32>
    %203 = vector.broadcast %202 : vector<1x256xf32> to vector<16x256xf32>
    %204 = arith.addf %200, %203 : vector<16x256xf32>
    %cst_222 = arith.constant 0.000000e+00 : f32
    %205 = vector.broadcast %cst_222 : f32 to vector<16x256xf32>
    %206 = arith.maximumf %204, %205 : vector<16x256xf32>
    %207 = arith.truncf %206 : vector<16x256xf32> to vector<16x256xbf16>
    %c3_223 = arith.constant 3 : index
    %c0_224 = arith.constant 0 : index
    %c0_225 = arith.constant 0 : index
    %c0_226 = arith.constant 0 : index
    %208 = vector.load %arg6[%c3_223, %c0_224, %c0_225, %c0_226] : memref<7x3x256x128xbf16, #tpu.memory_space<vmem>>, vector<1x1x256x128xbf16>
    %209 = vector.shape_cast %208 : vector<1x1x256x128xbf16> to vector<256x128xbf16>
    %cst_227 = arith.constant dense<0.000000e+00> : vector<16x128xf32>
    %210 = tpu.matmul %207, %209, %cst_227 {dimension_numbers = #tpu.dot_dimension_numbers<[1], [0], [0], [1], [0, 0, 1, 1], [], []>} : vector<16x256xbf16>, vector<256x128xbf16>, vector<16x128xf32> -> vector<16x128xf32>
    %c3_228 = arith.constant 3 : index
    %c1_229 = arith.constant 1 : index
    %c0_230 = arith.constant 0 : index
    %c0_231 = arith.constant 0 : index
    %211 = vector.load %arg6[%c3_228, %c1_229, %c0_230, %c0_231] : memref<7x3x256x128xbf16, #tpu.memory_space<vmem>>, vector<1x1x256x128xbf16>
    %212 = vector.shape_cast %211 : vector<1x1x256x128xbf16> to vector<256x128xbf16>
    %cst_232 = arith.constant dense<0.000000e+00> : vector<16x128xf32>
    %213 = tpu.matmul %207, %212, %cst_232 {dimension_numbers = #tpu.dot_dimension_numbers<[1], [0], [0], [1], [0, 0, 1, 1], [], []>} : vector<16x256xbf16>, vector<256x128xbf16>, vector<16x128xf32> -> vector<16x128xf32>
    %c3_233 = arith.constant 3 : index
    %c2_234 = arith.constant 2 : index
    %c0_235 = arith.constant 0 : index
    %c0_236 = arith.constant 0 : index
    %214 = vector.load %arg6[%c3_233, %c2_234, %c0_235, %c0_236] : memref<7x3x256x128xbf16, #tpu.memory_space<vmem>>, vector<1x1x256x128xbf16>
    %215 = vector.shape_cast %214 : vector<1x1x256x128xbf16> to vector<256x128xbf16>
    %cst_237 = arith.constant dense<0.000000e+00> : vector<16x128xf32>
    %216 = tpu.matmul %207, %215, %cst_237 {dimension_numbers = #tpu.dot_dimension_numbers<[1], [0], [0], [1], [0, 0, 1, 1], [], []>} : vector<16x256xbf16>, vector<256x128xbf16>, vector<16x128xf32> -> vector<16x128xf32>
    %217 = arith.truncf %175 : vector<16x128xf32> to vector<16x128xbf16>
    %cst_238 = arith.constant dense<0.000000e+00> : vector<16x128xf32>
    %218 = tpu.matmul %217, %185, %cst_238 {dimension_numbers = #tpu.dot_dimension_numbers<[1], [0], [0], [1], [0, 0, 1, 1], [], []>} : vector<16x128xbf16>, vector<128x128xbf16>, vector<16x128xf32> -> vector<16x128xf32>
    %c0_239 = arith.constant 0 : index
    %c0_240 = arith.constant 0 : index
    %c0_241 = arith.constant 0 : index
    %219 = vector.load %arg9[%c0_239, %c0_240, %c0_241] : memref<3x64x128xf32, #tpu.memory_space<vmem>>, vector<1x8x16xf32>
    %220 = vector.shape_cast %219 : vector<1x8x16xf32> to vector<8x16xf32>
    %c1_242 = arith.constant 1 : index
    %c0_243 = arith.constant 0 : index
    %c0_244 = arith.constant 0 : index
    %221 = vector.load %arg9[%c1_242, %c0_243, %c0_244] : memref<3x64x128xf32, #tpu.memory_space<vmem>>, vector<1x8x16xf32>
    %222 = vector.shape_cast %221 : vector<1x8x16xf32> to vector<8x16xf32>
    %c2_245 = arith.constant 2 : index
    %c0_246 = arith.constant 0 : index
    %c0_247 = arith.constant 0 : index
    %223 = vector.load %arg9[%c2_245, %c0_246, %c0_247] : memref<3x64x128xf32, #tpu.memory_space<vmem>>, vector<1x8x16xf32>
    %224 = vector.shape_cast %223 : vector<1x8x16xf32> to vector<8x16xf32>
    %cst_248 = arith.constant dense<0.000000e+00> : vector<8x128xf32>
    %225 = tpu.matmul %220, %210, %cst_248 {dimension_numbers = #tpu.dot_dimension_numbers<[1], [0], [0], [1], [0, 0, 1, 1], [], []>} : vector<8x16xf32>, vector<16x128xf32>, vector<8x128xf32> -> vector<8x128xf32>
    %226 = arith.addf %213, %218 : vector<16x128xf32>
    %cst_249 = arith.constant dense<0.000000e+00> : vector<8x128xf32>
    %227 = tpu.matmul %222, %226, %cst_249 {dimension_numbers = #tpu.dot_dimension_numbers<[1], [0], [0], [1], [0, 0, 1, 1], [], []>} : vector<8x16xf32>, vector<16x128xf32>, vector<8x128xf32> -> vector<8x128xf32>
    %228 = arith.addf %225, %227 : vector<8x128xf32>
    %cst_250 = arith.constant dense<0.000000e+00> : vector<8x128xf32>
    %229 = tpu.matmul %224, %216, %cst_250 {dimension_numbers = #tpu.dot_dimension_numbers<[1], [0], [0], [1], [0, 0, 1, 1], [], []>} : vector<8x16xf32>, vector<16x128xf32>, vector<8x128xf32> -> vector<8x128xf32>
    %230 = arith.addf %228, %229 : vector<8x128xf32>
    %c3_251 = arith.constant 3 : index
    %c0_252 = arith.constant 0 : index
    %c0_253 = arith.constant 0 : index
    %231 = vector.load %arg8[%c3_251, %c0_252, %c0_253] : memref<7x1x128xf32, #tpu.memory_space<vmem>>, vector<1x1x128xf32>
    %232 = vector.shape_cast %231 : vector<1x1x128xf32> to vector<1x128xf32>
    %233 = vector.broadcast %232 : vector<1x128xf32> to vector<8x128xf32>
    %234 = arith.addf %230, %233 : vector<8x128xf32>
    %cst_254 = arith.constant 0.000000e+00 : f32
    %235 = vector.broadcast %cst_254 : f32 to vector<8x128xf32>
    %236 = arith.maximumf %234, %235 : vector<8x128xf32>
    %c3_255 = arith.constant 3 : index
    %c0_256 = arith.constant 0 : index
    %c0_257 = arith.constant 0 : index
    %c0_258 = arith.constant 0 : index
    %237 = vector.load %arg4[%c3_255, %c0_256, %c0_257, %c0_258] : memref<6x3x128x256xbf16, #tpu.memory_space<vmem>>, vector<1x1x128x256xbf16>
    %238 = vector.shape_cast %237 : vector<1x1x128x256xbf16> to vector<128x256xbf16>
    %c3_259 = arith.constant 3 : index
    %c1_260 = arith.constant 1 : index
    %c0_261 = arith.constant 0 : index
    %c0_262 = arith.constant 0 : index
    %239 = vector.load %arg4[%c3_259, %c1_260, %c0_261, %c0_262] : memref<6x3x128x256xbf16, #tpu.memory_space<vmem>>, vector<1x1x128x256xbf16>
    %240 = vector.shape_cast %239 : vector<1x1x128x256xbf16> to vector<128x256xbf16>
    %c3_263 = arith.constant 3 : index
    %c2_264 = arith.constant 2 : index
    %c0_265 = arith.constant 0 : index
    %c0_266 = arith.constant 0 : index
    %241 = vector.load %arg4[%c3_263, %c2_264, %c0_265, %c0_266] : memref<6x3x128x256xbf16, #tpu.memory_space<vmem>>, vector<1x1x128x256xbf16>
    %242 = vector.shape_cast %241 : vector<1x1x128x256xbf16> to vector<128x256xbf16>
    %c3_267 = arith.constant 3 : index
    %c0_268 = arith.constant 0 : index
    %c0_269 = arith.constant 0 : index
    %243 = vector.load %arg5[%c3_267, %c0_268, %c0_269] : memref<6x128x128xbf16, #tpu.memory_space<vmem>>, vector<1x128x128xbf16>
    %244 = vector.shape_cast %243 : vector<1x128x128xbf16> to vector<128x128xbf16>
    %cst_270 = arith.constant 0.000000e+00 : f32
    %245 = vector.broadcast %cst_270 : f32 to vector<1x128xf32>
    %c7_271 = arith.constant 7 : index
    %c0_272 = arith.constant 0 : index
    %246 = vector.load %arg13[%c7_271, %c0_272] : memref<144x384xf32, #tpu.memory_space<vmem>>, vector<1x128xf32>
    tpu.vector_store %arg13[%c7_271, %c0_272], %245 {strides = array<i32>} : memref<144x384xf32, #tpu.memory_space<vmem>>, vector<1x128xf32>,
    %c16 = arith.constant 16 : index
    %c0_273 = arith.constant 0 : index
    %247 = vector.load %arg13[%c16, %c0_273] : memref<144x384xf32, #tpu.memory_space<vmem>>, vector<1x128xf32>
    tpu.vector_store %arg13[%c16, %c0_273], %245 {strides = array<i32>} : memref<144x384xf32, #tpu.memory_space<vmem>>, vector<1x128xf32>,
    %c8_274 = arith.constant 8 : index
    %c0_275 = arith.constant 0 : index
    %248 = vector.load %arg13[%c8_274, %c0_275] : memref<144x384xf32, #tpu.memory_space<vmem>>, vector<8x128xf32>
    tpu.vector_store %arg13[%c8_274, %c0_275], %236 {strides = array<i32>} : memref<144x384xf32, #tpu.memory_space<vmem>>, vector<8x128xf32>,
    %c7_276 = arith.constant 7 : index
    %c0_277 = arith.constant 0 : index
    %249 = vector.load %arg13[%c7_276, %c0_277] : memref<144x384xf32, #tpu.memory_space<vmem>>, vector<8x128xf32>
    %250 = arith.truncf %249 : vector<8x128xf32> to vector<8x128xbf16>
    %cst_278 = arith.constant dense<0.000000e+00> : vector<8x256xf32>
    %251 = tpu.matmul %250, %238, %cst_278 {dimension_numbers = #tpu.dot_dimension_numbers<[1], [0], [0], [1], [0, 0, 1, 1], [], []>} : vector<8x128xbf16>, vector<128x256xbf16>, vector<8x256xf32> -> vector<8x256xf32>
    %c8_279 = arith.constant 8 : index
    %c0_280 = arith.constant 0 : index
    %252 = vector.load %arg13[%c8_279, %c0_280] : memref<144x384xf32, #tpu.memory_space<vmem>>, vector<8x128xf32>
    %253 = arith.truncf %252 : vector<8x128xf32> to vector<8x128xbf16>
    %cst_281 = arith.constant dense<0.000000e+00> : vector<8x256xf32>
    %254 = tpu.matmul %253, %240, %cst_281 {dimension_numbers = #tpu.dot_dimension_numbers<[1], [0], [0], [1], [0, 0, 1, 1], [], []>} : vector<8x128xbf16>, vector<128x256xbf16>, vector<8x256xf32> -> vector<8x256xf32>
    %255 = arith.addf %251, %254 : vector<8x256xf32>
    %c9_282 = arith.constant 9 : index
    %c0_283 = arith.constant 0 : index
    %256 = vector.load %arg13[%c9_282, %c0_283] : memref<144x384xf32, #tpu.memory_space<vmem>>, vector<8x128xf32>
    %257 = arith.truncf %256 : vector<8x128xf32> to vector<8x128xbf16>
    %cst_284 = arith.constant dense<0.000000e+00> : vector<8x256xf32>
    %258 = tpu.matmul %257, %242, %cst_284 {dimension_numbers = #tpu.dot_dimension_numbers<[1], [0], [0], [1], [0, 0, 1, 1], [], []>} : vector<8x128xbf16>, vector<128x256xbf16>, vector<8x256xf32> -> vector<8x256xf32>
    %259 = arith.addf %255, %258 : vector<8x256xf32>
    %c4 = arith.constant 4 : index
    %c0_285 = arith.constant 0 : index
    %c0_286 = arith.constant 0 : index
    %260 = vector.load %arg7[%c4, %c0_285, %c0_286] : memref<7x1x256xf32, #tpu.memory_space<vmem>>, vector<1x1x256xf32>
    %261 = vector.shape_cast %260 : vector<1x1x256xf32> to vector<1x256xf32>
    %262 = vector.broadcast %261 : vector<1x256xf32> to vector<8x256xf32>
    %263 = arith.addf %259, %262 : vector<8x256xf32>
    %cst_287 = arith.constant 0.000000e+00 : f32
    %264 = vector.broadcast %cst_287 : f32 to vector<8x256xf32>
    %265 = arith.maximumf %263, %264 : vector<8x256xf32>
    %266 = arith.truncf %265 : vector<8x256xf32> to vector<8x256xbf16>
    %c4_288 = arith.constant 4 : index
    %c0_289 = arith.constant 0 : index
    %c0_290 = arith.constant 0 : index
    %c0_291 = arith.constant 0 : index
    %267 = vector.load %arg6[%c4_288, %c0_289, %c0_290, %c0_291] : memref<7x3x256x128xbf16, #tpu.memory_space<vmem>>, vector<1x1x256x128xbf16>
    %268 = vector.shape_cast %267 : vector<1x1x256x128xbf16> to vector<256x128xbf16>
    %cst_292 = arith.constant dense<0.000000e+00> : vector<8x128xf32>
    %269 = tpu.matmul %266, %268, %cst_292 {dimension_numbers = #tpu.dot_dimension_numbers<[1], [0], [0], [1], [0, 0, 1, 1], [], []>} : vector<8x256xbf16>, vector<256x128xbf16>, vector<8x128xf32> -> vector<8x128xf32>
    %c4_293 = arith.constant 4 : index
    %c1_294 = arith.constant 1 : index
    %c0_295 = arith.constant 0 : index
    %c0_296 = arith.constant 0 : index
    %270 = vector.load %arg6[%c4_293, %c1_294, %c0_295, %c0_296] : memref<7x3x256x128xbf16, #tpu.memory_space<vmem>>, vector<1x1x256x128xbf16>
    %271 = vector.shape_cast %270 : vector<1x1x256x128xbf16> to vector<256x128xbf16>
    %cst_297 = arith.constant dense<0.000000e+00> : vector<8x128xf32>
    %272 = tpu.matmul %266, %271, %cst_297 {dimension_numbers = #tpu.dot_dimension_numbers<[1], [0], [0], [1], [0, 0, 1, 1], [], []>} : vector<8x256xbf16>, vector<256x128xbf16>, vector<8x128xf32> -> vector<8x128xf32>
    %c4_298 = arith.constant 4 : index
    %c2_299 = arith.constant 2 : index
    %c0_300 = arith.constant 0 : index
    %c0_301 = arith.constant 0 : index
    %273 = vector.load %arg6[%c4_298, %c2_299, %c0_300, %c0_301] : memref<7x3x256x128xbf16, #tpu.memory_space<vmem>>, vector<1x1x256x128xbf16>
    %274 = vector.shape_cast %273 : vector<1x1x256x128xbf16> to vector<256x128xbf16>
    %cst_302 = arith.constant dense<0.000000e+00> : vector<8x128xf32>
    %275 = tpu.matmul %266, %274, %cst_302 {dimension_numbers = #tpu.dot_dimension_numbers<[1], [0], [0], [1], [0, 0, 1, 1], [], []>} : vector<8x256xbf16>, vector<256x128xbf16>, vector<8x128xf32> -> vector<8x128xf32>
    %276 = arith.truncf %234 : vector<8x128xf32> to vector<8x128xbf16>
    %cst_303 = arith.constant dense<0.000000e+00> : vector<8x128xf32>
    %277 = tpu.matmul %276, %244, %cst_303 {dimension_numbers = #tpu.dot_dimension_numbers<[1], [0], [0], [1], [0, 0, 1, 1], [], []>} : vector<8x128xbf16>, vector<128x128xbf16>, vector<8x128xf32> -> vector<8x128xf32>
    %c0_304 = arith.constant 0 : index
    %c0_305 = arith.constant 0 : index
    %c0_306 = arith.constant 0 : index
    %278 = vector.load %arg9[%c0_304, %c0_305, %c0_306] : memref<3x64x128xf32, #tpu.memory_space<vmem>>, vector<1x4x8xf32>
    %279 = vector.shape_cast %278 : vector<1x4x8xf32> to vector<4x8xf32>
    %c1_307 = arith.constant 1 : index
    %c0_308 = arith.constant 0 : index
    %c0_309 = arith.constant 0 : index
    %280 = vector.load %arg9[%c1_307, %c0_308, %c0_309] : memref<3x64x128xf32, #tpu.memory_space<vmem>>, vector<1x4x8xf32>
    %281 = vector.shape_cast %280 : vector<1x4x8xf32> to vector<4x8xf32>
    %c2_310 = arith.constant 2 : index
    %c0_311 = arith.constant 0 : index
    %c0_312 = arith.constant 0 : index
    %282 = vector.load %arg9[%c2_310, %c0_311, %c0_312] : memref<3x64x128xf32, #tpu.memory_space<vmem>>, vector<1x4x8xf32>
    %283 = vector.shape_cast %282 : vector<1x4x8xf32> to vector<4x8xf32>
    %cst_313 = arith.constant dense<0.000000e+00> : vector<4x128xf32>
    %284 = tpu.matmul %279, %269, %cst_313 {dimension_numbers = #tpu.dot_dimension_numbers<[1], [0], [0], [1], [0, 0, 1, 1], [], []>} : vector<4x8xf32>, vector<8x128xf32>, vector<4x128xf32> -> vector<4x128xf32>
    %285 = arith.addf %272, %277 : vector<8x128xf32>
    %cst_314 = arith.constant dense<0.000000e+00> : vector<4x128xf32>
    %286 = tpu.matmul %281, %285, %cst_314 {dimension_numbers = #tpu.dot_dimension_numbers<[1], [0], [0], [1], [0, 0, 1, 1], [], []>} : vector<4x8xf32>, vector<8x128xf32>, vector<4x128xf32> -> vector<4x128xf32>
    %287 = arith.addf %284, %286 : vector<4x128xf32>
    %cst_315 = arith.constant dense<0.000000e+00> : vector<4x128xf32>
    %288 = tpu.matmul %283, %275, %cst_315 {dimension_numbers = #tpu.dot_dimension_numbers<[1], [0], [0], [1], [0, 0, 1, 1], [], []>} : vector<4x8xf32>, vector<8x128xf32>, vector<4x128xf32> -> vector<4x128xf32>
    %289 = arith.addf %287, %288 : vector<4x128xf32>
    %c4_316 = arith.constant 4 : index
    %c0_317 = arith.constant 0 : index
    %c0_318 = arith.constant 0 : index
    %290 = vector.load %arg8[%c4_316, %c0_317, %c0_318] : memref<7x1x128xf32, #tpu.memory_space<vmem>>, vector<1x1x128xf32>
    %291 = vector.shape_cast %290 : vector<1x1x128xf32> to vector<1x128xf32>
    %292 = vector.broadcast %291 : vector<1x128xf32> to vector<4x128xf32>
    %293 = arith.addf %289, %292 : vector<4x128xf32>
    %cst_319 = arith.constant 0.000000e+00 : f32
    %294 = vector.broadcast %cst_319 : f32 to vector<4x128xf32>
    %295 = arith.maximumf %293, %294 : vector<4x128xf32>
    %c4_320 = arith.constant 4 : index
    %c0_321 = arith.constant 0 : index
    %c0_322 = arith.constant 0 : index
    %c0_323 = arith.constant 0 : index
    %296 = vector.load %arg4[%c4_320, %c0_321, %c0_322, %c0_323] : memref<6x3x128x256xbf16, #tpu.memory_space<vmem>>, vector<1x1x128x256xbf16>
    %297 = vector.shape_cast %296 : vector<1x1x128x256xbf16> to vector<128x256xbf16>
    %c4_324 = arith.constant 4 : index
    %c1_325 = arith.constant 1 : index
    %c0_326 = arith.constant 0 : index
    %c0_327 = arith.constant 0 : index
    %298 = vector.load %arg4[%c4_324, %c1_325, %c0_326, %c0_327] : memref<6x3x128x256xbf16, #tpu.memory_space<vmem>>, vector<1x1x128x256xbf16>
    %299 = vector.shape_cast %298 : vector<1x1x128x256xbf16> to vector<128x256xbf16>
    %c4_328 = arith.constant 4 : index
    %c2_329 = arith.constant 2 : index
    %c0_330 = arith.constant 0 : index
    %c0_331 = arith.constant 0 : index
    %300 = vector.load %arg4[%c4_328, %c2_329, %c0_330, %c0_331] : memref<6x3x128x256xbf16, #tpu.memory_space<vmem>>, vector<1x1x128x256xbf16>
    %301 = vector.shape_cast %300 : vector<1x1x128x256xbf16> to vector<128x256xbf16>
    %c4_332 = arith.constant 4 : index
    %c0_333 = arith.constant 0 : index
    %c0_334 = arith.constant 0 : index
    %302 = vector.load %arg5[%c4_332, %c0_333, %c0_334] : memref<6x128x128xbf16, #tpu.memory_space<vmem>>, vector<1x128x128xbf16>
    %303 = vector.shape_cast %302 : vector<1x128x128xbf16> to vector<128x128xbf16>
    %cst_335 = arith.constant 0.000000e+00 : f32
    %304 = vector.broadcast %cst_335 : f32 to vector<1x128xf32>
    %c7_336 = arith.constant 7 : index
    %c0_337 = arith.constant 0 : index
    %305 = vector.load %arg13[%c7_336, %c0_337] : memref<144x384xf32, #tpu.memory_space<vmem>>, vector<1x128xf32>
    tpu.vector_store %arg13[%c7_336, %c0_337], %304 {strides = array<i32>} : memref<144x384xf32, #tpu.memory_space<vmem>>, vector<1x128xf32>,
    %c12 = arith.constant 12 : index
    %c0_338 = arith.constant 0 : index
    %306 = vector.load %arg13[%c12, %c0_338] : memref<144x384xf32, #tpu.memory_space<vmem>>, vector<1x128xf32>
    tpu.vector_store %arg13[%c12, %c0_338], %304 {strides = array<i32>} : memref<144x384xf32, #tpu.memory_space<vmem>>, vector<1x128xf32>,
    %c8_339 = arith.constant 8 : index
    %c0_340 = arith.constant 0 : index
    %307 = vector.load %arg13[%c8_339, %c0_340] : memref<144x384xf32, #tpu.memory_space<vmem>>, vector<4x128xf32>
    tpu.vector_store %arg13[%c8_339, %c0_340], %295 {strides = array<i32>} : memref<144x384xf32, #tpu.memory_space<vmem>>, vector<4x128xf32>,
    %c7_341 = arith.constant 7 : index
    %c0_342 = arith.constant 0 : index
    %308 = vector.load %arg13[%c7_341, %c0_342] : memref<144x384xf32, #tpu.memory_space<vmem>>, vector<4x128xf32>
    %309 = arith.truncf %308 : vector<4x128xf32> to vector<4x128xbf16>
    %cst_343 = arith.constant dense<0.000000e+00> : vector<4x256xf32>
    %310 = tpu.matmul %309, %297, %cst_343 {dimension_numbers = #tpu.dot_dimension_numbers<[1], [0], [0], [1], [0, 0, 1, 1], [], []>} : vector<4x128xbf16>, vector<128x256xbf16>, vector<4x256xf32> -> vector<4x256xf32>
    %c8_344 = arith.constant 8 : index
    %c0_345 = arith.constant 0 : index
    %311 = vector.load %arg13[%c8_344, %c0_345] : memref<144x384xf32, #tpu.memory_space<vmem>>, vector<4x128xf32>
    %312 = arith.truncf %311 : vector<4x128xf32> to vector<4x128xbf16>
    %cst_346 = arith.constant dense<0.000000e+00> : vector<4x256xf32>
    %313 = tpu.matmul %312, %299, %cst_346 {dimension_numbers = #tpu.dot_dimension_numbers<[1], [0], [0], [1], [0, 0, 1, 1], [], []>} : vector<4x128xbf16>, vector<128x256xbf16>, vector<4x256xf32> -> vector<4x256xf32>
    %314 = arith.addf %310, %313 : vector<4x256xf32>
    %c9_347 = arith.constant 9 : index
    %c0_348 = arith.constant 0 : index
    %315 = vector.load %arg13[%c9_347, %c0_348] : memref<144x384xf32, #tpu.memory_space<vmem>>, vector<4x128xf32>
    %316 = arith.truncf %315 : vector<4x128xf32> to vector<4x128xbf16>
    %cst_349 = arith.constant dense<0.000000e+00> : vector<4x256xf32>
    %317 = tpu.matmul %316, %301, %cst_349 {dimension_numbers = #tpu.dot_dimension_numbers<[1], [0], [0], [1], [0, 0, 1, 1], [], []>} : vector<4x128xbf16>, vector<128x256xbf16>, vector<4x256xf32> -> vector<4x256xf32>
    %318 = arith.addf %314, %317 : vector<4x256xf32>
    %c5 = arith.constant 5 : index
    %c0_350 = arith.constant 0 : index
    %c0_351 = arith.constant 0 : index
    %319 = vector.load %arg7[%c5, %c0_350, %c0_351] : memref<7x1x256xf32, #tpu.memory_space<vmem>>, vector<1x1x256xf32>
    %320 = vector.shape_cast %319 : vector<1x1x256xf32> to vector<1x256xf32>
    %321 = vector.broadcast %320 : vector<1x256xf32> to vector<4x256xf32>
    %322 = arith.addf %318, %321 : vector<4x256xf32>
    %cst_352 = arith.constant 0.000000e+00 : f32
    %323 = vector.broadcast %cst_352 : f32 to vector<4x256xf32>
    %324 = arith.maximumf %322, %323 : vector<4x256xf32>
    %325 = arith.truncf %324 : vector<4x256xf32> to vector<4x256xbf16>
    %c5_353 = arith.constant 5 : index
    %c0_354 = arith.constant 0 : index
    %c0_355 = arith.constant 0 : index
    %c0_356 = arith.constant 0 : index
    %326 = vector.load %arg6[%c5_353, %c0_354, %c0_355, %c0_356] : memref<7x3x256x128xbf16, #tpu.memory_space<vmem>>, vector<1x1x256x128xbf16>
    %327 = vector.shape_cast %326 : vector<1x1x256x128xbf16> to vector<256x128xbf16>
    %cst_357 = arith.constant dense<0.000000e+00> : vector<4x128xf32>
    %328 = tpu.matmul %325, %327, %cst_357 {dimension_numbers = #tpu.dot_dimension_numbers<[1], [0], [0], [1], [0, 0, 1, 1], [], []>} : vector<4x256xbf16>, vector<256x128xbf16>, vector<4x128xf32> -> vector<4x128xf32>
    %c5_358 = arith.constant 5 : index
    %c1_359 = arith.constant 1 : index
    %c0_360 = arith.constant 0 : index
    %c0_361 = arith.constant 0 : index
    %329 = vector.load %arg6[%c5_358, %c1_359, %c0_360, %c0_361] : memref<7x3x256x128xbf16, #tpu.memory_space<vmem>>, vector<1x1x256x128xbf16>
    %330 = vector.shape_cast %329 : vector<1x1x256x128xbf16> to vector<256x128xbf16>
    %cst_362 = arith.constant dense<0.000000e+00> : vector<4x128xf32>
    %331 = tpu.matmul %325, %330, %cst_362 {dimension_numbers = #tpu.dot_dimension_numbers<[1], [0], [0], [1], [0, 0, 1, 1], [], []>} : vector<4x256xbf16>, vector<256x128xbf16>, vector<4x128xf32> -> vector<4x128xf32>
    %c5_363 = arith.constant 5 : index
    %c2_364 = arith.constant 2 : index
    %c0_365 = arith.constant 0 : index
    %c0_366 = arith.constant 0 : index
    %332 = vector.load %arg6[%c5_363, %c2_364, %c0_365, %c0_366] : memref<7x3x256x128xbf16, #tpu.memory_space<vmem>>, vector<1x1x256x128xbf16>
    %333 = vector.shape_cast %332 : vector<1x1x256x128xbf16> to vector<256x128xbf16>
    %cst_367 = arith.constant dense<0.000000e+00> : vector<4x128xf32>
    %334 = tpu.matmul %325, %333, %cst_367 {dimension_numbers = #tpu.dot_dimension_numbers<[1], [0], [0], [1], [0, 0, 1, 1], [], []>} : vector<4x256xbf16>, vector<256x128xbf16>, vector<4x128xf32> -> vector<4x128xf32>
    %335 = arith.truncf %293 : vector<4x128xf32> to vector<4x128xbf16>
    %cst_368 = arith.constant dense<0.000000e+00> : vector<4x128xf32>
    %336 = tpu.matmul %335, %303, %cst_368 {dimension_numbers = #tpu.dot_dimension_numbers<[1], [0], [0], [1], [0, 0, 1, 1], [], []>} : vector<4x128xbf16>, vector<128x128xbf16>, vector<4x128xf32> -> vector<4x128xf32>
    %c0_369 = arith.constant 0 : index
    %c0_370 = arith.constant 0 : index
    %c0_371 = arith.constant 0 : index
    %337 = vector.load %arg9[%c0_369, %c0_370, %c0_371] : memref<3x64x128xf32, #tpu.memory_space<vmem>>, vector<1x2x4xf32>
    %338 = vector.shape_cast %337 : vector<1x2x4xf32> to vector<2x4xf32>
    %c1_372 = arith.constant 1 : index
    %c0_373 = arith.constant 0 : index
    %c0_374 = arith.constant 0 : index
    %339 = vector.load %arg9[%c1_372, %c0_373, %c0_374] : memref<3x64x128xf32, #tpu.memory_space<vmem>>, vector<1x2x4xf32>
    %340 = vector.shape_cast %339 : vector<1x2x4xf32> to vector<2x4xf32>
    %c2_375 = arith.constant 2 : index
    %c0_376 = arith.constant 0 : index
    %c0_377 = arith.constant 0 : index
    %341 = vector.load %arg9[%c2_375, %c0_376, %c0_377] : memref<3x64x128xf32, #tpu.memory_space<vmem>>, vector<1x2x4xf32>
    %342 = vector.shape_cast %341 : vector<1x2x4xf32> to vector<2x4xf32>
    %cst_378 = arith.constant dense<0.000000e+00> : vector<2x128xf32>
    %343 = tpu.matmul %338, %328, %cst_378 {dimension_numbers = #tpu.dot_dimension_numbers<[1], [0], [0], [1], [0, 0, 1, 1], [], []>} : vector<2x4xf32>, vector<4x128xf32>, vector<2x128xf32> -> vector<2x128xf32>
    %344 = arith.addf %331, %336 : vector<4x128xf32>
    %cst_379 = arith.constant dense<0.000000e+00> : vector<2x128xf32>
    %345 = tpu.matmul %340, %344, %cst_379 {dimension_numbers = #tpu.dot_dimension_numbers<[1], [0], [0], [1], [0, 0, 1, 1], [], []>} : vector<2x4xf32>, vector<4x128xf32>, vector<2x128xf32> -> vector<2x128xf32>
    %346 = arith.addf %343, %345 : vector<2x128xf32>
    %cst_380 = arith.constant dense<0.000000e+00> : vector<2x128xf32>
    %347 = tpu.matmul %342, %334, %cst_380 {dimension_numbers = #tpu.dot_dimension_numbers<[1], [0], [0], [1], [0, 0, 1, 1], [], []>} : vector<2x4xf32>, vector<4x128xf32>, vector<2x128xf32> -> vector<2x128xf32>
    %348 = arith.addf %346, %347 : vector<2x128xf32>
    %c5_381 = arith.constant 5 : index
    %c0_382 = arith.constant 0 : index
    %c0_383 = arith.constant 0 : index
    %349 = vector.load %arg8[%c5_381, %c0_382, %c0_383] : memref<7x1x128xf32, #tpu.memory_space<vmem>>, vector<1x1x128xf32>
    %350 = vector.shape_cast %349 : vector<1x1x128xf32> to vector<1x128xf32>
    %351 = vector.broadcast %350 : vector<1x128xf32> to vector<2x128xf32>
    %352 = arith.addf %348, %351 : vector<2x128xf32>
    %cst_384 = arith.constant 0.000000e+00 : f32
    %353 = vector.broadcast %cst_384 : f32 to vector<2x128xf32>
    %354 = arith.maximumf %352, %353 : vector<2x128xf32>
    %c5_385 = arith.constant 5 : index
    %c0_386 = arith.constant 0 : index
    %c0_387 = arith.constant 0 : index
    %c0_388 = arith.constant 0 : index
    %355 = vector.load %arg4[%c5_385, %c0_386, %c0_387, %c0_388] : memref<6x3x128x256xbf16, #tpu.memory_space<vmem>>, vector<1x1x128x256xbf16>
    %356 = vector.shape_cast %355 : vector<1x1x128x256xbf16> to vector<128x256xbf16>
    %c5_389 = arith.constant 5 : index
    %c1_390 = arith.constant 1 : index
    %c0_391 = arith.constant 0 : index
    %c0_392 = arith.constant 0 : index
    %357 = vector.load %arg4[%c5_389, %c1_390, %c0_391, %c0_392] : memref<6x3x128x256xbf16, #tpu.memory_space<vmem>>, vector<1x1x128x256xbf16>
    %358 = vector.shape_cast %357 : vector<1x1x128x256xbf16> to vector<128x256xbf16>
    %c5_393 = arith.constant 5 : index
    %c2_394 = arith.constant 2 : index
    %c0_395 = arith.constant 0 : index
    %c0_396 = arith.constant 0 : index
    %359 = vector.load %arg4[%c5_393, %c2_394, %c0_395, %c0_396] : memref<6x3x128x256xbf16, #tpu.memory_space<vmem>>, vector<1x1x128x256xbf16>
    %360 = vector.shape_cast %359 : vector<1x1x128x256xbf16> to vector<128x256xbf16>
    %c5_397 = arith.constant 5 : index
    %c0_398 = arith.constant 0 : index
    %c0_399 = arith.constant 0 : index
    %361 = vector.load %arg5[%c5_397, %c0_398, %c0_399] : memref<6x128x128xbf16, #tpu.memory_space<vmem>>, vector<1x128x128xbf16>
    %362 = vector.shape_cast %361 : vector<1x128x128xbf16> to vector<128x128xbf16>
    %cst_400 = arith.constant 0.000000e+00 : f32
    %363 = vector.broadcast %cst_400 : f32 to vector<1x128xf32>
    %c7_401 = arith.constant 7 : index
    %c0_402 = arith.constant 0 : index
    %364 = vector.load %arg13[%c7_401, %c0_402] : memref<144x384xf32, #tpu.memory_space<vmem>>, vector<1x128xf32>
    tpu.vector_store %arg13[%c7_401, %c0_402], %363 {strides = array<i32>} : memref<144x384xf32, #tpu.memory_space<vmem>>, vector<1x128xf32>,
    %c10 = arith.constant 10 : index
    %c0_403 = arith.constant 0 : index
    %365 = vector.load %arg13[%c10, %c0_403] : memref<144x384xf32, #tpu.memory_space<vmem>>, vector<1x128xf32>
    tpu.vector_store %arg13[%c10, %c0_403], %363 {strides = array<i32>} : memref<144x384xf32, #tpu.memory_space<vmem>>, vector<1x128xf32>,
    %c8_404 = arith.constant 8 : index
    %c0_405 = arith.constant 0 : index
    %366 = vector.load %arg13[%c8_404, %c0_405] : memref<144x384xf32, #tpu.memory_space<vmem>>, vector<2x128xf32>
    tpu.vector_store %arg13[%c8_404, %c0_405], %354 {strides = array<i32>} : memref<144x384xf32, #tpu.memory_space<vmem>>, vector<2x128xf32>,
    %c7_406 = arith.constant 7 : index
    %c0_407 = arith.constant 0 : index
    %367 = vector.load %arg13[%c7_406, %c0_407] : memref<144x384xf32, #tpu.memory_space<vmem>>, vector<2x128xf32>
    %368 = arith.truncf %367 : vector<2x128xf32> to vector<2x128xbf16>
    %cst_408 = arith.constant dense<0.000000e+00> : vector<2x256xf32>
    %369 = tpu.matmul %368, %356, %cst_408 {dimension_numbers = #tpu.dot_dimension_numbers<[1], [0], [0], [1], [0, 0, 1, 1], [], []>} : vector<2x128xbf16>, vector<128x256xbf16>, vector<2x256xf32> -> vector<2x256xf32>
    %c8_409 = arith.constant 8 : index
    %c0_410 = arith.constant 0 : index
    %370 = vector.load %arg13[%c8_409, %c0_410] : memref<144x384xf32, #tpu.memory_space<vmem>>, vector<2x128xf32>
    %371 = arith.truncf %370 : vector<2x128xf32> to vector<2x128xbf16>
    %cst_411 = arith.constant dense<0.000000e+00> : vector<2x256xf32>
    %372 = tpu.matmul %371, %358, %cst_411 {dimension_numbers = #tpu.dot_dimension_numbers<[1], [0], [0], [1], [0, 0, 1, 1], [], []>} : vector<2x128xbf16>, vector<128x256xbf16>, vector<2x256xf32> -> vector<2x256xf32>
    %373 = arith.addf %369, %372 : vector<2x256xf32>
    %c9_412 = arith.constant 9 : index
    %c0_413 = arith.constant 0 : index
    %374 = vector.load %arg13[%c9_412, %c0_413] : memref<144x384xf32, #tpu.memory_space<vmem>>, vector<2x128xf32>
    %375 = arith.truncf %374 : vector<2x128xf32> to vector<2x128xbf16>
    %cst_414 = arith.constant dense<0.000000e+00> : vector<2x256xf32>
    %376 = tpu.matmul %375, %360, %cst_414 {dimension_numbers = #tpu.dot_dimension_numbers<[1], [0], [0], [1], [0, 0, 1, 1], [], []>} : vector<2x128xbf16>, vector<128x256xbf16>, vector<2x256xf32> -> vector<2x256xf32>
    %377 = arith.addf %373, %376 : vector<2x256xf32>
    %c6 = arith.constant 6 : index
    %c0_415 = arith.constant 0 : index
    %c0_416 = arith.constant 0 : index
    %378 = vector.load %arg7[%c6, %c0_415, %c0_416] : memref<7x1x256xf32, #tpu.memory_space<vmem>>, vector<1x1x256xf32>
    %379 = vector.shape_cast %378 : vector<1x1x256xf32> to vector<1x256xf32>
    %380 = vector.broadcast %379 : vector<1x256xf32> to vector<2x256xf32>
    %381 = arith.addf %377, %380 : vector<2x256xf32>
    %cst_417 = arith.constant 0.000000e+00 : f32
    %382 = vector.broadcast %cst_417 : f32 to vector<2x256xf32>
    %383 = arith.maximumf %381, %382 : vector<2x256xf32>
    %384 = arith.truncf %383 : vector<2x256xf32> to vector<2x256xbf16>
    %c6_418 = arith.constant 6 : index
    %c0_419 = arith.constant 0 : index
    %c0_420 = arith.constant 0 : index
    %c0_421 = arith.constant 0 : index
    %385 = vector.load %arg6[%c6_418, %c0_419, %c0_420, %c0_421] : memref<7x3x256x128xbf16, #tpu.memory_space<vmem>>, vector<1x1x256x128xbf16>
    %386 = vector.shape_cast %385 : vector<1x1x256x128xbf16> to vector<256x128xbf16>
    %cst_422 = arith.constant dense<0.000000e+00> : vector<2x128xf32>
    %387 = tpu.matmul %384, %386, %cst_422 {dimension_numbers = #tpu.dot_dimension_numbers<[1], [0], [0], [1], [0, 0, 1, 1], [], []>} : vector<2x256xbf16>, vector<256x128xbf16>, vector<2x128xf32> -> vector<2x128xf32>
    %c6_423 = arith.constant 6 : index
    %c1_424 = arith.constant 1 : index
    %c0_425 = arith.constant 0 : index
    %c0_426 = arith.constant 0 : index
    %388 = vector.load %arg6[%c6_423, %c1_424, %c0_425, %c0_426] : memref<7x3x256x128xbf16, #tpu.memory_space<vmem>>, vector<1x1x256x128xbf16>
    %389 = vector.shape_cast %388 : vector<1x1x256x128xbf16> to vector<256x128xbf16>
    %cst_427 = arith.constant dense<0.000000e+00> : vector<2x128xf32>
    %390 = tpu.matmul %384, %389, %cst_427 {dimension_numbers = #tpu.dot_dimension_numbers<[1], [0], [0], [1], [0, 0, 1, 1], [], []>} : vector<2x256xbf16>, vector<256x128xbf16>, vector<2x128xf32> -> vector<2x128xf32>
    %c6_428 = arith.constant 6 : index
    %c2_429 = arith.constant 2 : index
    %c0_430 = arith.constant 0 : index
    %c0_431 = arith.constant 0 : index
    %391 = vector.load %arg6[%c6_428, %c2_429, %c0_430, %c0_431] : memref<7x3x256x128xbf16, #tpu.memory_space<vmem>>, vector<1x1x256x128xbf16>
    %392 = vector.shape_cast %391 : vector<1x1x256x128xbf16> to vector<256x128xbf16>
    %cst_432 = arith.constant dense<0.000000e+00> : vector<2x128xf32>
    %393 = tpu.matmul %384, %392, %cst_432 {dimension_numbers = #tpu.dot_dimension_numbers<[1], [0], [0], [1], [0, 0, 1, 1], [], []>} : vector<2x256xbf16>, vector<256x128xbf16>, vector<2x128xf32> -> vector<2x128xf32>
    %394 = arith.truncf %352 : vector<2x128xf32> to vector<2x128xbf16>
    %cst_433 = arith.constant dense<0.000000e+00> : vector<2x128xf32>
    %395 = tpu.matmul %394, %362, %cst_433 {dimension_numbers = #tpu.dot_dimension_numbers<[1], [0], [0], [1], [0, 0, 1, 1], [], []>} : vector<2x128xbf16>, vector<128x128xbf16>, vector<2x128xf32> -> vector<2x128xf32>
    %c0_434 = arith.constant 0 : index
    %c0_435 = arith.constant 0 : index
    %c0_436 = arith.constant 0 : index
    %396 = vector.load %arg9[%c0_434, %c0_435, %c0_436] : memref<3x64x128xf32, #tpu.memory_space<vmem>>, vector<1x1x2xf32>
    %397 = vector.shape_cast %396 : vector<1x1x2xf32> to vector<1x2xf32>
    %c1_437 = arith.constant 1 : index
    %c0_438 = arith.constant 0 : index
    %c0_439 = arith.constant 0 : index
    %398 = vector.load %arg9[%c1_437, %c0_438, %c0_439] : memref<3x64x128xf32, #tpu.memory_space<vmem>>, vector<1x1x2xf32>
    %399 = vector.shape_cast %398 : vector<1x1x2xf32> to vector<1x2xf32>
    %c2_440 = arith.constant 2 : index
    %c0_441 = arith.constant 0 : index
    %c0_442 = arith.constant 0 : index
    %400 = vector.load %arg9[%c2_440, %c0_441, %c0_442] : memref<3x64x128xf32, #tpu.memory_space<vmem>>, vector<1x1x2xf32>
    %401 = vector.shape_cast %400 : vector<1x1x2xf32> to vector<1x2xf32>
    %cst_443 = arith.constant dense<0.000000e+00> : vector<1x128xf32>
    %402 = tpu.matmul %397, %387, %cst_443 {dimension_numbers = #tpu.dot_dimension_numbers<[1], [0], [0], [1], [0, 0, 1, 1], [], []>} : vector<1x2xf32>, vector<2x128xf32>, vector<1x128xf32> -> vector<1x128xf32>
    %403 = arith.addf %390, %395 : vector<2x128xf32>
    %cst_444 = arith.constant dense<0.000000e+00> : vector<1x128xf32>
    %404 = tpu.matmul %399, %403, %cst_444 {dimension_numbers = #tpu.dot_dimension_numbers<[1], [0], [0], [1], [0, 0, 1, 1], [], []>} : vector<1x2xf32>, vector<2x128xf32>, vector<1x128xf32> -> vector<1x128xf32>
    %405 = arith.addf %402, %404 : vector<1x128xf32>
    %cst_445 = arith.constant dense<0.000000e+00> : vector<1x128xf32>
    %406 = tpu.matmul %401, %393, %cst_445 {dimension_numbers = #tpu.dot_dimension_numbers<[1], [0], [0], [1], [0, 0, 1, 1], [], []>} : vector<1x2xf32>, vector<2x128xf32>, vector<1x128xf32> -> vector<1x128xf32>
    %407 = arith.addf %405, %406 : vector<1x128xf32>
    %c6_446 = arith.constant 6 : index
    %c0_447 = arith.constant 0 : index
    %c0_448 = arith.constant 0 : index
    %408 = vector.load %arg8[%c6_446, %c0_447, %c0_448] : memref<7x1x128xf32, #tpu.memory_space<vmem>>, vector<1x1x128xf32>
    %409 = vector.shape_cast %408 : vector<1x1x128xf32> to vector<1x128xf32>
    %410 = arith.addf %407, %409 : vector<1x128xf32>
    %cst_449 = arith.constant 0.000000e+00 : f32
    %411 = vector.broadcast %cst_449 : f32 to vector<1x128xf32>
    %412 = arith.maximumf %410, %411 : vector<1x128xf32>
    %cst_450 = arith.constant dense<0.000000e+00> : vector<128xf32>
    %413 = vector.multi_reduction <add>, %412, %cst_450 [0] : vector<1x128xf32> to vector<128xf32>
    %414 = vector.shape_cast %413 : vector<128xf32> to vector<1x128xf32>
    %c0_451 = arith.constant 0 : index
    %c0_452 = arith.constant 0 : index
    %415 = vector.load %arg10[%c0_451, %c0_452] : memref<1x128xf32, #tpu.memory_space<vmem>>, vector<1x128xf32>
    %416 = arith.mulf %414, %415 : vector<1x128xf32>
    %cst_453 = arith.constant dense<0.000000e+00> : vector<1xf32>
    %417 = vector.multi_reduction <add>, %416, %cst_453 [1] : vector<1x128xf32> to vector<1xf32>
    %418 = vector.shape_cast %417 : vector<1xf32> to vector<1x1xf32>
    %c0_454 = arith.constant 0 : index
    %c0_455 = arith.constant 0 : index
    %419 = vector.load %arg11[%c0_454, %c0_455] : memref<1x1xf32, #tpu.memory_space<vmem>>, vector<1x1xf32>
    %420 = arith.addf %418, %419 : vector<1x1xf32>
    %c0_456 = arith.constant 0 : index
    %c0_457 = arith.constant 0 : index
    %c0_458 = arith.constant 0 : index
    %421 = vector.load %arg12[%c0_456, %c0_457, %c0_458] : memref<1x1x1xf32, #tpu.memory_space<vmem>>, vector<1x1x1xf32>
    %422 = vector.shape_cast %421 : vector<1x1x1xf32> to vector<1x1xf32>
    %423 = vector.shape_cast %420 : vector<1x1xf32> to vector<1x1x1xf32>
    tpu.vector_store %arg12[%c0_456, %c0_457, %c0_458], %423 {strides = array<i32>} : memref<1x1x1xf32, #tpu.memory_space<vmem>>, vector<1x1x1xf32>,
    return
  }
  func.func @transform_0(%arg0: i32) -> (i32, i32, i32) {
    %c0_i32 = arith.constant 0 : i32
    %c0_i32_0 = arith.constant 0 : i32
    %c0_i32_1 = arith.constant 0 : i32
    return %arg0, %c0_i32, %c0_i32_0 : i32, i32, i32
  }
  func.func @transform_1(%arg0: i32) -> (i32, i32, i32) {
    %c0_i32 = arith.constant 0 : i32
    %c0_i32_0 = arith.constant 0 : i32
    %c0_i32_1 = arith.constant 0 : i32
    %c0_i32_2 = arith.constant 0 : i32
    return %c0_i32, %c0_i32_0, %c0_i32_1 : i32, i32, i32
  }
  func.func @transform_2(%arg0: i32) -> (i32, i32) {
    %c0_i32 = arith.constant 0 : i32
    %c0_i32_0 = arith.constant 0 : i32
    %c0_i32_1 = arith.constant 0 : i32
    return %c0_i32, %c0_i32_0 : i32, i32
  }
  func.func @transform_3(%arg0: i32) -> (i32, i32, i32, i32) {
    %c0_i32 = arith.constant 0 : i32
    %c0_i32_0 = arith.constant 0 : i32
    %c0_i32_1 = arith.constant 0 : i32
    %c0_i32_2 = arith.constant 0 : i32
    %c0_i32_3 = arith.constant 0 : i32
    return %c0_i32, %c0_i32_0, %c0_i32_1, %c0_i32_2 : i32, i32, i32, i32
  }
  func.func @transform_4(%arg0: i32) -> (i32, i32, i32) {
    %c0_i32 = arith.constant 0 : i32
    %c0_i32_0 = arith.constant 0 : i32
    %c0_i32_1 = arith.constant 0 : i32
    %c0_i32_2 = arith.constant 0 : i32
    return %c0_i32, %c0_i32_0, %c0_i32_1 : i32, i32, i32
  }
  func.func @transform_5(%arg0: i32) -> (i32, i32, i32, i32) {
    %c0_i32 = arith.constant 0 : i32
    %c0_i32_0 = arith.constant 0 : i32
    %c0_i32_1 = arith.constant 0 : i32
    %c0_i32_2 = arith.constant 0 : i32
    %c0_i32_3 = arith.constant 0 : i32
    return %c0_i32, %c0_i32_0, %c0_i32_1, %c0_i32_2 : i32, i32, i32, i32
  }
  func.func @transform_6(%arg0: i32) -> (i32, i32, i32) {
    %c0_i32 = arith.constant 0 : i32
    %c0_i32_0 = arith.constant 0 : i32
    %c0_i32_1 = arith.constant 0 : i32
    %c0_i32_2 = arith.constant 0 : i32
    return %c0_i32, %c0_i32_0, %c0_i32_1 : i32, i32, i32
  }
  func.func @transform_7(%arg0: i32) -> (i32, i32, i32) {
    %c0_i32 = arith.constant 0 : i32
    %c0_i32_0 = arith.constant 0 : i32
    %c0_i32_1 = arith.constant 0 : i32
    %c0_i32_2 = arith.constant 0 : i32
    return %c0_i32, %c0_i32_0, %c0_i32_1 : i32, i32, i32
  }
  func.func @transform_8(%arg0: i32) -> (i32, i32, i32) {
    %c0_i32 = arith.constant 0 : i32
    %c0_i32_0 = arith.constant 0 : i32
    %c0_i32_1 = arith.constant 0 : i32
    %c0_i32_2 = arith.constant 0 : i32
    return %c0_i32, %c0_i32_0, %c0_i32_1 : i32, i32, i32
  }
  func.func @transform_9(%arg0: i32) -> (i32, i32) {
    %c0_i32 = arith.constant 0 : i32
    %c0_i32_0 = arith.constant 0 : i32
    %c0_i32_1 = arith.constant 0 : i32
    return %c0_i32, %c0_i32_0 : i32, i32
  }
  func.func @transform_10(%arg0: i32) -> (i32, i32) {
    %c0_i32 = arith.constant 0 : i32
    %c0_i32_0 = arith.constant 0 : i32
    %c0_i32_1 = arith.constant 0 : i32
    return %c0_i32, %c0_i32_0 : i32, i32
  }
  func.func @transform_11(%arg0: i32) -> (i32, i32, i32) {
    %c0_i32 = arith.constant 0 : i32
    %c0_i32_0 = arith.constant 0 : i32
    %c0_i32_1 = arith.constant 0 : i32
    return %arg0, %c0_i32, %c0_i32_0 : i32, i32, i32
  }
}

</mosaic_0001>

<bundles_post_ra>
// kernel: discriminator_forward.1
= control target key start
LH: loop header
LB: loop body
LE: loop exit
PB: predicated region body
PF: predicated region fallthrough
CT: control target
= control target key end

     0   :  { %s20285_s0 = inlined_call_operand.vmem [shape: f32[2,128,384], index: 0, kind: input, shape index: {}]   ;;  %s20286_s1 = inlined_call_operand.hbm [shape: bf16[3,384,256], index: 1, kind: input, shape index: {}]   ;;  %s20287_s2 = inlined_call_operand.hbm [shape: bf16[384,128], index: 2, kind: input, shape index: {}]   ;;  %s20288_s3 = inlined_call_operand.hbm [shape: bf16[6,3,128,256], index: 3, kind: input, shape index: {}]   ;;  %s20289_s4 = inlined_call_operand.vmem [shape: bf16[6,128,128], index: 4, kind: input, shape index: {}]   ;;  %s20290_s5 = inlined_call_operand.vmem [shape: bf16[7,3,256,128], index: 5, kind: input, shape index: {}]   ;;  %s20291_s6 = inlined_call_operand.vmem [shape: f32[7,1,256], index: 6, kind: input, shape index: {}]   ;;  %s20292_s7 = inlined_call_operand.vmem [shape: f32[7,1,128], index: 7, kind: input, shape index: {}]   ;;  %s20293_s8 = inlined_call_operand.hbm [shape: f32[3,64,128], index: 8, kind: input, shape index: {}]   ;;  %s20294_s9 = inlined_call_operand.vmem [shape: f32[1,128], index: 9, kind: input, shape index: {}]   ;;  %s20295_s10 = inlined_call_operand.<no memory space> [shape: f32[1,1], index: 10, kind: input, shape index: {}]   ;;  %s20296_s11 = inlined_call_operand.vmem [shape: f32[2,1,1], index: 11, kind: output, shape index: {}]  }
   0x1   :  { %v16_v0 = vstv %s20295_s10 }
   0x2   :  { %17 = vst [vmem:[#allocation3] sm:$0x1] %v16_v0 }
   0x3   :  { %18 = vsyncpa [#allocation5], 0 }
   0x4   :  { %19 = vsyncpa [#allocation7], 0 }
   0x5   :  { %20 = vsyncpa [#allocation10], 0  ;;  %s17837_s19 = smov 0  }
   0x6 LB: > { %s17762_s20 = smov [#allocation6]   ;;  %s17843_s22 = sadd.s32 4294967295, %s17760_s19   ;;  %s17760_s19 = sphi %s17837_s19, %s26_s19  }
   0x7   : > { %s318_s21 = sshll.u32 %s17762_s20, 4  ;;  %p12971_p0 = scmp.ge.s32.totalorder %s17760_s19, 1  ;;  %s17848_s21 = int_to_ptr.vmem [resolvable:$true] %s318_s21 }
   0x8   : > { %p293_p1 = scmp.lt.s32.totalorder %s17760_s19, 3  ;;  %p20297_p2 = scmp.eq.s32.totalorder %s17843_s22, 0 }
   0x9   : > { %s17763_s23 = smov [#allocation4]   ;;  %s17764_s26 = smov [#allocation8]  }
   0xa   : > { %p17850_p3 = pnand %p12971_p0, %p293_p1  ;;  %s305_s24 = sshll.u32 %s17763_s23, 4  ;;  %s17856_s24 = int_to_ptr.vmem [resolvable:$true] %s305_s24 }
   0xb   : > { %s17864_s27 = sshll.u32 %s17764_s26, 4  ;;  %s17630_s30 = scalar_lea.hbm %s20287_s2, 3072  ;;  %s332_s27 = int_to_ptr.vmem [resolvable:$true] %s17864_s27 }
   0xc   : > { %s20299_s10 = scalar_select %p17850_p3, 1, 0 }
   0xd   : > { %p16441_p4 = pneg %p17850_p3  ;;  %p17631_p6 = scmp.ne.s32.totalorder %s20287_s2, %s17630_s30 }
   0xe   : > { %p17637_p10 = scmp.lt.u32.totalorder %s17630_s30, %s20287_s2 }
   0xf   : > { %p17860_p5 = pnand %p20297_p2, %p16441_p4 }
  0x11   : > { %p17874_p7 = pneg %p17860_p5 }
  0x13   : > { %p17633_p8 = pnand %p17874_p7, %p17631_p6 }
  0x15   : > { %p17634_p9 = pneg %p17633_p8 }
  0x17   : > { %p17639_p11 = pnand %p17637_p10, %p17634_p9 }
  0x19   : > { %17642 = shalt.err (!%p17639_p11)
}
  0x1a   : > { %s17643_s17 = scalar_lea.vmem %s17848_s21, 3072  ;;  %p17651_p1 = scmp.lt.s32.totalorder %s17848_s21, %s17848_s21 }
  0x1b   : > { %p17644_p12 = scmp.ne.s32.totalorder %s17848_s21, %s17643_s17  ;;  %p17652_p4 = scmp.lt.s32.totalorder %s17643_s17, %s17643_s17 }
  0x1d   : > { %p17646_p13 = pnand %p17644_p12, %p17874_p7  ;;  %p17653_p6 = por %p17652_p4, %p17651_p1 }
  0x1f   : > { %p17647_p0 = pneg %p17646_p13 }
  0x21   : > { %p17654_p8 = pnand %p17653_p6, %p17647_p0 }
  0x23   : > { %17657 = shalt.err (!%p17654_p8)
}
  0x24   : > { %s17765_s18 = smov 64   ;;  %s17766_s20 = smov 4  }
  0x25   : > { %16447 = dma.hbm_to_vmem [thread:$0]  (!%p17860_p5), %s20287_s2, 3072, %s17848_s21, [#allocation7], %s17765_s18, %s17765_s18, %s17766_s20  }
  0x26   : > { %s17658_s30 = scalar_lea.hbm %s20286_s1, 18432 }
  0x27   : > { %p17659_p9 = scmp.ne.s32.totalorder %s20286_s1, %s17658_s30  ;;  %p17665_p12 = scmp.lt.u32.totalorder %s17658_s30, %s20286_s1 }
  0x29   : > { %p17661_p10 = pnand %p17659_p9, %p17874_p7 }
  0x2b   : > { %p17662_p11 = pneg %p17661_p10 }
  0x2d   : > { %p17667_p13 = pnand %p17665_p12, %p17662_p11 }
  0x2f   : > { %17670 = shalt.err (!%p17667_p13)
}
  0x30   : > { %s17671_s21 = scalar_lea.vmem %s17856_s24, 18432  ;;  %p17679_p6 = scmp.lt.s32.totalorder %s17856_s24, %s17856_s24 }
  0x31   : > { %p17672_p0 = scmp.ne.s32.totalorder %s17856_s24, %s17671_s21  ;;  %p17680_p8 = scmp.lt.s32.totalorder %s17671_s21, %s17671_s21 }
  0x33   : > { %p17674_p1 = pnand %p17672_p0, %p17874_p7  ;;  %p17681_p9 = por %p17680_p8, %p17679_p6 }
  0x35   : > { %p17675_p4 = pneg %p17674_p1 }
  0x37   : > { %p17682_p10 = pnand %p17681_p9, %p17675_p4 }
  0x39   : > { %17685 = shalt.err (!%p17682_p10)
}
  0x3a   : > { %s17767_s17 = smov 128   ;;  %s17768_s18 = smov 8  }
  0x3b   : > { %16444 = dma.hbm_to_vmem [thread:$0]  (!%p17860_p5), %s20286_s1, 18432, %s17856_s24, [#allocation5], %s17767_s17, %s17767_s17, %s17768_s18  }
  0x3c   : > { %s17769_s26 = smov [#allocation9]   ;;  %s17686_s12 = scalar_lea.hbm %s20288_s3, 36864 }
  0x3d   : > { %s356_s28 = sshll.u32 %s17769_s26, 4  ;;  %p17687_p11 = scmp.ne.s32.totalorder %s20288_s3, %s17686_s12  ;;  %s357_s28 = int_to_ptr.vmem [resolvable:$true] %s356_s28 }
  0x3e   : > { %p17693_p0 = scmp.lt.u32.totalorder %s17686_s12, %s20288_s3 }
  0x3f   : > { %p17689_p12 = pnand %p17687_p11, %p17874_p7 }
  0x41   : > { %p17690_p13 = pneg %p17689_p12 }
  0x43   : > { %p17695_p1 = pnand %p17693_p0, %p17690_p13 }
  0x45   : > { %17698 = shalt.err (!%p17695_p1)
}
  0x46   : > { %s17699_s24 = scalar_lea.vmem %s332_s27, 36864  ;;  %p17707_p9 = scmp.lt.s32.totalorder %s332_s27, %s332_s27 }
  0x47   : > { %p17700_p4 = scmp.ne.s32.totalorder %s332_s27, %s17699_s24  ;;  %p17708_p10 = scmp.lt.s32.totalorder %s17699_s24, %s17699_s24 }
  0x49   : > { %p17702_p6 = pnand %p17700_p4, %p17874_p7  ;;  %p17709_p2 = por %p17708_p10, %p17707_p9 }
  0x4b   : > { %p17703_p8 = pneg %p17702_p6 }
  0x4d   : > { %p17710_p3 = pnand %p17709_p2, %p17703_p8 }
  0x4f   : > { %17713 = shalt.err (!%p17710_p3)
}
  0x50   : > { %16450 = dma.hbm_to_vmem [thread:$0]  (!%p17860_p5), %s20288_s3, 36864, %s332_s27, [#allocation7], %s17767_s17, %s17767_s17, %s17768_s18  }
  0x51   : > { %s17714_s30 = scalar_lea.hbm %s20293_s8, 3072 }
  0x52   : > { %p17715_p2 = scmp.ne.s32.totalorder %s20293_s8, %s17714_s30  ;;  %p17721_p12 = scmp.lt.u32.totalorder %s17714_s30, %s20293_s8 }
  0x54   : > { %p17717_p3 = pnand %p17715_p2, %p17874_p7 }
  0x56   : > { %p17718_p11 = pneg %p17717_p3 }
  0x58   : > { %p17723_p13 = pnand %p17721_p12, %p17718_p11 }
  0x5a   : > { %17726 = shalt.err (!%p17723_p13)
}
  0x5b   : > { %s17727_s21 = scalar_lea.vmem %s357_s28, 3072  ;;  %p17735_p6 = scmp.lt.s32.totalorder %s357_s28, %s357_s28 }
  0x5c   : > { %p17728_p0 = scmp.ne.s32.totalorder %s357_s28, %s17727_s21  ;;  %p17736_p8 = scmp.lt.s32.totalorder %s17727_s21, %s17727_s21 }
  0x5e   : > { %p17730_p1 = pnand %p17728_p0, %p17874_p7  ;;  %p17737_p9 = por %p17736_p8, %p17735_p6 }
  0x60   : > { %p17731_p4 = pneg %p17730_p1 }
  0x62   : > { %p17738_p10 = pnand %p17737_p9, %p17731_p4 }
  0x64   : > { %17741 = shalt.err (!%p17738_p10)
}
  0x65   : > { %16453 = dma.hbm_to_vmem [thread:$0]  (!%p17860_p5), %s20293_s8, 3072, %s357_s28, [#allocation10], %s17767_s17, %s17767_s17, %s17768_s18  }
  0x66   : > { %p20302_p2 = scmp.ne.s32.totalorder %s20299_s10, 0 }
  0x67   : > { %p20303_p7 = scmp.eq.s32.totalorder (!%p20302_p2), %s17843_s22, 0 }
  0x68   : > { %386 = sbr.rel (%p20302_p2) target bundleno = 6319 (0x18af), region = 64 }
  0x6f   : > { %17747 = dma.done.wait (%p20303_p7), [#allocation5], 18432   ;;  %p20304_p3 = pmov %p20303_p7 }
  0x71   : > { %17749 = vsyncadd (%p20304_p3), [#allocation5], 4294948864  ;;  %p20305_p11 = pmov %p20304_p3 }
  0x72   : > { %p20306_p12 = pmov %p20304_p3 }
  0x73   : > { %17751 = dma.done.wait (%p20305_p11), [#allocation7], 39936  }
  0x74   : > { %17753 = vsyncadd (%p20306_p12), [#allocation7], 4294927360  ;;  %p20307_p13 = pmov %p20304_p3 }
  0x75   : > { %p20308_p5 = pmov %p20304_p3 }
  0x76   : > { %17755 = dma.done.wait (%p20307_p13), [#allocation10], 3072  }
  0x77   : > { %17757 = vsyncadd (%p20308_p5), [#allocation10], 4294964224  ;;  %v687_v1 = vlaneseq  ;;  %v17770_v2 = vmov 0.0   ;;  %v16482_v3 = vld [vmem:[#allocation4 + $0x184] ss:$8 sps:$4 sm:$0xff]   ;;  %p436_p0 = scmp.lt.s32.totalorder %s17843_s22, 1 }
  0x78   : > { %v16484_v4 = vld [vmem:[#allocation4 + $0x180] ss:$8 sps:$4 sm:$0xff]   ;;  %1090 = vmatprep.subr.bf16.mxu0 %v16482_v3  ;;  %v16485_v5 = vld [vmem:[#allocation4 + $0x194] ss:$8 sps:$4 sm:$0xff]   ;;  %v16487_v6 = vld [vmem:[#allocation4 + $0x190] ss:$8 sps:$4 sm:$0xff]  }
  0x79   : > { %vm689_vm0 = vcmp.lt.s32.totalorder %v687_v1, 384  ;;  %1091 = vmatpush1.bf16.msra.mxu0 %v16484_v4  ;;  %v16488_v7 = vld [vmem:[#allocation4 + $0x1a4] ss:$8 sps:$4 sm:$0xff]   ;;  %v16490_v8 = vld [vmem:[#allocation4 + $0x1a0] ss:$8 sps:$4 sm:$0xff]   ;;  %s20310_s22 = smov (!%p436_p0, %s17843_s22), 1 }
  0x7a   : > { %692 = vst.msk [vmem:[#allocation2 + $0x7] ss:$8 sm:$0x7] %vm689_vm0, %v17770_v2  ;;  %695 = vst.msk [vmem:[#allocation2 + $0x198] ss:$8 sm:$0x7] %vm689_vm0, %v17770_v2  ;;  %1092 = vmatprep.subr.bf16.mxu0 %v16485_v5  ;;  %s443_s13 = scalar_lea.vmem %s20296_s11, %s20310_s22 }
  0x7b   : > { %v16491_v9 = vld [vmem:[#allocation4 + $0x1b4] ss:$8 sps:$4 sm:$0xff]   ;;  %v16493_v10 = vld [vmem:[#allocation4 + $0x1b0] ss:$8 sps:$4 sm:$0xff]   ;;  %v16494_v11 = vld [vmem:[#allocation4 + $0x1c4] ss:$8 sps:$4 sm:$0xff]  }
  0x7c   : > { %s16424_s10 = smul.u32 384, %s20310_s22  ;;  %v16496_v12 = vld [vmem:[#allocation4 + $0x1c0] ss:$8 sps:$4 sm:$0xff]   ;;  %v16497_v13 = vld [vmem:[#allocation4 + $0x1d4] ss:$8 sps:$4 sm:$0xff]   ;;  %vm5791_vm3 = vcmask 523264  }
  0x7d   : > { %1093 = vmatpush1.bf16.msra.mxu0 %v16487_v6  ;;  %v16499_v14 = vld [vmem:[#allocation4 + $0x1d0] ss:$8 sps:$4 sm:$0xff]   ;;  %v16500_v15 = vld [vmem:[#allocation4 + $0x1e4] ss:$8 sps:$4 sm:$0xff]   ;;  %v16502_v18 = vld [vmem:[#allocation4 + $0x1e0] ss:$8 sps:$4 sm:$0xff]  }
  0x7e   : > { %1094 = vmatprep.subr.bf16.mxu0 %v16488_v7  ;;  %s17989_s17 = scalar_lea.vmem %s20285_s0, %s16424_s10  ;;  %v16503_v24 = vld [vmem:[#allocation4 + $0x1f4] ss:$8 sps:$4 sm:$0xff]   ;;  %v16505_v28 = vld [vmem:[#allocation4 + $0x1f0] ss:$8 sps:$4 sm:$0xff]   ;;  %v16506_v29 = vld [vmem:[#allocation4 + $0x204] ss:$8 sps:$4 sm:$0xff]  }
  0x7f   : > { %v446_v16 = vld [vmem:[%s17989_s17 + $0x8] sm:$0xff]  ;;  %v449_v17 = vld [vmem:[%s17989_s17 + $0x20] sm:$0xff]  ;;  %v17994_v19 = vld [vmem:[%s17989_s17 + $0x38] sm:$0xff]  ;;  %vm1316_vm1 = vsmask.f32 4352  ;;  %vm7325_vm4 = vcmask 261120  }
  0x80   : > { %698 = vst [vmem:[#allocation2 + $0x20] sm:$0xff] %v446_v16  ;;  %701 = vst [vmem:[#allocation2 + $0x38] sm:$0xff] %v449_v17  ;;  %v827_v20 = vpack.c.bf16 %v449_v17, %v446_v16  ;;  %v17998_v21 = vld [vmem:[%s17989_s17] sm:$0xff]  ;;  %v18001_v22 = vld [vmem:[%s17989_s17 + $0x18] sm:$0xff]  ;;  %vm2125_vm2 = vsmask.f32 7424 }
  0x81   : > { %1095 = vmatpush1.bf16.msra.mxu0 %v16490_v8  ;;  %704 = vst [vmem:[#allocation2 + $0x50] sm:$0xff] %v17994_v19  ;;  %v18003_v23 = vld [vmem:[#allocation2] sm:$0x80]  ;;  %697 = vst [vmem:[#allocation2 + $0x18] sm:$0xff] %v17998_v21  ;;  %v18009_v25 = vld [vmem:[%s17989_s17 + $0x50] sm:$0xff]  ;;  %vm17772_vm5 = vmmov 0  }
  0x82   : > { %1096 = vmatprep.subr.bf16.mxu0 %v16491_v9  ;;  %1122 = vmatprep.mubr.bf16.mxu0 %v827_v20  ;;  %700 = vst [vmem:[#allocation2 + $0x30] sm:$0xff] %v18001_v22  ;;  %4421 = vst [vmem:[#allocation2 + $0x7] sm:$0x1] %v17770_v2  ;;  %v18012_v26 = vld [vmem:[%s17989_s17 + $0x30] sm:$0xff]  ;;  %v18015_v27 = vld [vmem:[%s17989_s17 + $0x48] sm:$0xff]  ;;  %vm8697_vm6 = vcmask 130048  }
  0x83   : > { %707 = vst [vmem:[#allocation2 + $0x68] sm:$0xff] %v18009_v25  ;;  %703 = vst [vmem:[#allocation2 + $0x48] sm:$0xff] %v18012_v26  ;;  %v18021_v30 = vld [vmem:[%s17989_s17 + $0x68] sm:$0xff]  ;;  %v18024_v31 = vld [vmem:[%s17989_s17 + $0x80] sm:$0xff]  ;;  %vm10007_vm7 = vcmask 64512   ;;  %vm11320_vm8 = vcmask 1043456  }
  0x84   : > { %706 = vst [vmem:[#allocation2 + $0x60] sm:$0xff] %v18015_v27  ;;  %v18027_v32 = vld [vmem:[%s17989_s17 + $0x60] sm:$0xff]  ;;  %710 = vst [vmem:[#allocation2 + $0x80] sm:$0xff] %v18021_v30  ;;  %v18032_v33 = vld [vmem:[%s17989_s17 + $0x78] sm:$0xff]  ;;  %vm11316_vm9 = vcmask 31744   ;;  %vm12639_vm10 = vcmask 1041408  }
  0x85   : > { %1097 = vmatpush1.bf16.msra.mxu0 %v16493_v10  ;;  %713 = vst [vmem:[#allocation2 + $0x98] sm:$0xff] %v18024_v31  ;;  %709 = vst [vmem:[#allocation2 + $0x78] sm:$0xff] %v18027_v32  ;;  %v16508_v34 = vld [vmem:[#allocation4 + $0x200] ss:$8 sps:$4 sm:$0xff]   ;;  %v16509_v36 = vld [vmem:[#allocation4 + $0x214] ss:$8 sps:$4 sm:$0xff]  }
  0x86   : > { %1098 = vmatprep.subr.bf16.mxu0 %v16494_v11  ;;  %712 = vst [vmem:[#allocation2 + $0x90] sm:$0xff] %v18032_v33  ;;  %v18037_v35 = vld [vmem:[%s17989_s17 + $0x98] sm:$0xff]  ;;  %v18040_v37 = vld [vmem:[%s17989_s17 + $0xb0] sm:$0xff]  ;;  %v18048_v39 = vld [vmem:[%s17989_s17 + $0xa8] sm:$0xff]  ;;  %vm12635_vm11 = vcmask 15360   ;;  %vm12873_vm12 = vcmask 1040384  }
  0x87   : > { %716 = vst [vmem:[#allocation2 + $0xb0] sm:$0xff] %v18037_v35  ;;  %v18044_v38 = vld [vmem:[%s17989_s17 + $0x90] sm:$0xff]  ;;  %719 = vst [vmem:[#allocation2 + $0xc8] sm:$0xff] %v18040_v37  ;;  %v16511_v40 = vld [vmem:[#allocation4 + $0x210] ss:$8 sps:$4 sm:$0xff]   ;;  %vm12879_vm13 = vcmask 0  }
  0x88   : > { %715 = vst [vmem:[#allocation2 + $0xa8] sm:$0xff] %v18044_v38  ;;  %718 = vst [vmem:[#allocation2 + $0xc0] sm:$0xff] %v18048_v39  ;;  %v18053_v41 = vld [vmem:[%s17989_s17 + $0xc8] sm:$0xff]  ;;  %v18056_v42 = vld [vmem:[%s17989_s17 + $0xe0] sm:$0xff] }
  0x89   : > { %1099 = vmatpush1.bf16.msra.mxu0 %v16496_v12  ;;  %722 = vst [vmem:[#allocation2 + $0xe0] sm:$0xff] %v18053_v41  ;;  %v18060_v43 = vld [vmem:[%s17989_s17 + $0xc0] sm:$0xff]  ;;  %v18063_v44 = vld [vmem:[%s17989_s17 + $0xd8] sm:$0xff]  ;;  %725 = vst [vmem:[#allocation2 + $0xf8] sm:$0xff] %v18056_v42 }
  0x8a   : > { %1100 = vmatprep.subr.bf16.mxu0 %v16497_v13  ;;  %v16512_v45 = vld [vmem:[#allocation4 + $0x224] ss:$8 sps:$4 sm:$0xff]   ;;  %721 = vst [vmem:[#allocation2 + $0xd8] sm:$0xff] %v18060_v43  ;;  %724 = vst [vmem:[#allocation2 + $0xf0] sm:$0xff] %v18063_v44  ;;  %v18080_v49 = vld [vmem:[%s17989_s17 + $0x108] sm:$0xff] }
  0x8b   : > { %v18069_v46 = vld [vmem:[%s17989_s17 + $0xf8] sm:$0xff]  ;;  %v18072_v47 = vld [vmem:[%s17989_s17 + $0x110] sm:$0xff]  ;;  %730 = vst [vmem:[#allocation2 + $0x120] sm:$0xff] %v18080_v49  ;;  %v18085_v52 = vld [vmem:[%s17989_s17 + $0x128] sm:$0xff] }
  0x8c   : > { %728 = vst [vmem:[#allocation2 + $0x110] sm:$0xff] %v18069_v46  ;;  %731 = vst [vmem:[#allocation2 + $0x128] sm:$0xff] %v18072_v47  ;;  %v18077_v48 = vld [vmem:[%s17989_s17 + $0xf0] sm:$0xff]  ;;  %v18088_v53 = vld [vmem:[%s17989_s17 + $0x140] sm:$0xff] }
  0x8d   : > { %1101 = vmatpush1.bf16.msra.mxu0 %v16499_v14  ;;  %v16514_v50 = vld [vmem:[#allocation4 + $0x220] ss:$8 sps:$4 sm:$0xff]   ;;  %v16515_v51 = vld [vmem:[#allocation4 + $0x234] ss:$8 sps:$4 sm:$0xff]   ;;  %727 = vst [vmem:[#allocation2 + $0x108] sm:$0xff] %v18077_v48  ;;  %734 = vst [vmem:[#allocation2 + $0x140] sm:$0xff] %v18085_v52 }
  0x8e   : > { %1102 = vmatprep.subr.bf16.mxu0 %v16500_v15  ;;  %v18091_v54 = vld [vmem:[%s17989_s17 + $0x120] sm:$0xff]  ;;  %737 = vst [vmem:[#allocation2 + $0x158] sm:$0xff] %v18088_v53  ;;  %v18096_v55 = vld [vmem:[%s17989_s17 + $0x138] sm:$0xff]  ;;  %v18104_v58 = vld [vmem:[%s17989_s17 + $0x170] sm:$0xff] }
  0x8f   : > { %733 = vst [vmem:[#allocation2 + $0x138] sm:$0xff] %v18091_v54  ;;  %v16517_v56 = vld [vmem:[#allocation4 + $0x230] ss:$8 sps:$4 sm:$0xff]   ;;  %736 = vst [vmem:[#allocation2 + $0x150] sm:$0xff] %v18096_v55  ;;  %v18101_v57 = vld [vmem:[%s17989_s17 + $0x158] sm:$0xff] }
  0x90   : > { %740 = vst [vmem:[#allocation2 + $0x170] sm:$0xff] %v18101_v57  ;;  %v18108_v59 = vld [vmem:[%s17989_s17 + $0x150] sm:$0xff]  ;;  %v18111_v60 = vld [vmem:[%s17989_s17 + $0x168] sm:$0xff]  ;;  %743 = vst [vmem:[#allocation2 + $0x188] sm:$0xff] %v18104_v58 }
  0x91   : > { %1103 = vmatpush1.bf16.msra.mxu0 %v16502_v18  ;;  %v16518_v61 = vld [vmem:[#allocation4 + $0x244] ss:$8 sps:$4 sm:$0xff]   ;;  %739 = vst [vmem:[#allocation2 + $0x168] sm:$0xff] %v18108_v59  ;;  %742 = vst [vmem:[#allocation2 + $0x180] sm:$0xff] %v18111_v60  ;;  %v18120_v63 = vld [vmem:[%s17989_s17 + $0x28] sm:$0xff]  ;;  %v826_v18 = vpack.c.bf16 %v18001_v22, %v17998_v21 }
  0x92   : > { %1104 = vmatprep.subr.bf16.mxu0 %v16503_v24  ;;  %v18117_v62 = vld [vmem:[%s17989_s17 + $0x10] sm:$0xff]  ;;  %702 = vst [vmem:[#allocation2 + $0x40] sm:$0xff] %v18120_v63  ;;  %v18125_v4 = vld [vmem:[%s17989_s17 + $0x40] sm:$0xff]  ;;  %v18128_v5 = vld [vmem:[%s17989_s17 + $0x58] sm:$0xff]  ;;  %v830_v24 = vpack.c.bf16 %v18009_v25, %v17994_v19  ;;  %v829_v25 = vpack.c.bf16 %v18015_v27, %v18012_v26 }
  0x93   : > { %699 = vst [vmem:[#allocation2 + $0x28] sm:$0xff] %v18117_v62  ;;  %v16520_v0 = vld [vmem:[#allocation4 + $0x240] ss:$8 sps:$4 sm:$0xff]   ;;  %v16521_v3 = vld [vmem:[#allocation4 + $0x254] ss:$8 sps:$4 sm:$0xff]   ;;  %705 = vst [vmem:[#allocation2 + $0x58] sm:$0xff] %v18125_v4 }
  0x94   : > { %708 = vst [vmem:[#allocation2 + $0x70] sm:$0xff] %v18128_v5  ;;  %v16523_v6 = vld [vmem:[#allocation4 + $0x250] ss:$8 sps:$4 sm:$0xff]   ;;  %v16524_v7 = vld [vmem:[#allocation4 + $0x264] ss:$8 sps:$4 sm:$0xff]  }
  0x95   : > { %1105 = vmatpush1.bf16.msra.mxu0 %v16505_v28  ;;  %v18133_v8 = vld [vmem:[%s17989_s17 + $0x70] sm:$0xff]  ;;  %v18136_v9 = vld [vmem:[%s17989_s17 + $0x88] sm:$0xff]  ;;  %v18141_v12 = vld [vmem:[%s17989_s17 + $0xa0] sm:$0xff] }
  0x96   : > { %1106 = vmatprep.subr.bf16.mxu0 %v16506_v29  ;;  %711 = vst [vmem:[#allocation2 + $0x88] sm:$0xff] %v18133_v8  ;;  %714 = vst [vmem:[#allocation2 + $0xa0] sm:$0xff] %v18136_v9  ;;  %v16526_v10 = vld [vmem:[#allocation4 + $0x260] ss:$8 sps:$4 sm:$0xff]   ;;  %v16527_v11 = vld [vmem:[#allocation4 + $0x274] ss:$8 sps:$4 sm:$0xff]  }
  0x97   : > { %v18144_v13 = vld [vmem:[%s17989_s17 + $0xb8] sm:$0xff]  ;;  %717 = vst [vmem:[#allocation2 + $0xb8] sm:$0xff] %v18141_v12  ;;  %v16529_v14 = vld [vmem:[#allocation4 + $0x270] ss:$8 sps:$4 sm:$0xff]   ;;  %v18149_v15 = vld [vmem:[%s17989_s17 + $0xd0] sm:$0xff] }
  0x98   : > { %720 = vst [vmem:[#allocation2 + $0xd0] sm:$0xff] %v18144_v13  ;;  %v18152_v16 = vld [vmem:[%s17989_s17 + $0xe8] sm:$0xff]  ;;  %v16532_v17 = vld [vmem:[#allocation4 + $0x284] ss:$8 sps:$4 sm:$0xff]   ;;  %723 = vst [vmem:[#allocation2 + $0xe8] sm:$0xff] %v18149_v15 }
  0x99   : > { %1107 = vmatpush1.bf16.msra.mxu0 %v16508_v34  ;;  %726 = vst [vmem:[#allocation2 + $0x100] sm:$0xff] %v18152_v16  ;;  %v16530_v20 = vld [vmem:[#allocation4 + $0x280] ss:$8 sps:$4 sm:$0xff]   ;;  %v18161_v28 = vld [vmem:[%s17989_s17 + $0x100] sm:$0xff]  ;;  %v18172_v21 = vld [vmem:[%s17989_s17 + $0x148] sm:$0xff] }
  0x9a   : > { %1108 = vmatprep.subr.bf16.mxu0 %v16509_v36  ;;  %v18164_v29 = vld [vmem:[%s17989_s17 + $0x118] sm:$0xff]  ;;  %v16535_v34 = vld [vmem:[#allocation4 + $0x294] ss:$8 sps:$4 sm:$0xff]   ;;  %729 = vst [vmem:[#allocation2 + $0x118] sm:$0xff] %v18161_v28  ;;  %v16533_v19 = vld [vmem:[#allocation4 + $0x290] ss:$8 sps:$4 sm:$0xff]  }
  0x9b   : > { %732 = vst [vmem:[#allocation2 + $0x130] sm:$0xff] %v18164_v29  ;;  %v18169_v36 = vld [vmem:[%s17989_s17 + $0x130] sm:$0xff]  ;;  %738 = vst [vmem:[#allocation2 + $0x160] sm:$0xff] %v18172_v21 }
  0x9c   : > { %735 = vst [vmem:[#allocation2 + $0x148] sm:$0xff] %v18169_v36  ;;  %v16538_v22 = vld [vmem:[#allocation4 + $0x2a4] ss:$8 sps:$4 sm:$0xff]   ;;  %v16542_v27 = vld [vmem:[#allocation4 + $0x2c0] ss:$8 sps:$4 sm:$0xff]  }
  0x9d   : > { %1109 = vmatpush1.bf16.msra.mxu0 %v16511_v40  ;;  %v18179_v40 = vld [vmem:[%s17989_s17 + $0x160] sm:$0xff] }
  0x9e   : > { %1110 = vmatprep.subr.bf16.mxu0 %v16512_v45  ;;  %v18182_v45 = vld [vmem:[%s17989_s17 + $0x178] sm:$0xff]  ;;  %741 = vst [vmem:[#allocation2 + $0x178] sm:$0xff] %v18179_v40 }
  0x9f   : > { %744 = vst [vmem:[#allocation2 + $0x190] sm:$0xff] %v18182_v45  ;;  %v16544_v26 = vld [vmem:[#allocation4 + $0x2c4] ss:$8 sps:$4 sm:$0xff]  }
  0xa1   : > { %1111 = vmatpush1.bf16.msra.mxu0 %v16514_v50  ;;  %v833_v50 = vpack.c.bf16 %v18024_v31, %v18021_v30  ;;  %v836_v30 = vpack.c.bf16 %v18040_v37, %v18037_v35  ;;  %v16545_v31 = vld [vmem:[#allocation4 + $0x2d0] ss:$8 sps:$4 sm:$0xff]   ;;  %v16556_v35 = vld [vmem:[#allocation4 + $0x4] ss:$8 sps:$4 sm:$0xff]   ;;  %v838_v37 = vpack.c.bf16 %v18063_v44, %v18060_v43  ;;  %v847_v43 = vpack.c.bf16 %v18111_v60, %v18108_v59  ;;  %v16566_v59 = vld [vmem:[#allocation4 + $0x40] ss:$8 sps:$4 sm:$0xff]  }
  0xa2   : > { %1112 = vmatprep.subr.bf16.mxu0 %v16515_v51  ;;  %v16536_v51 = vld [vmem:[#allocation4 + $0x2a0] ss:$8 sps:$4 sm:$0xff]   ;;  %v17771_v44 = vmov 0   ;;  %v834_v60 = vpack.c.bf16 %v18136_v9, %v18133_v8  ;;  %v16575_v8 = vld [vmem:[#allocation4 + $0x70] ss:$8 sps:$4 sm:$0xff]  }
  0xa3   : > { %v16580_v9 = vld [vmem:[#allocation4 + $0x84] ss:$8 sps:$4 sm:$0xff]  }
  0xa5   : > { %1113 = vmatpush1.bf16.msra.mxu0 %v16517_v56  ;;  %v16541_v56 = vld [vmem:[#allocation4 + $0x2b4] ss:$8 sps:$4 sm:$0xff]  }
  0xa6   : > { %1114 = vmatprep.subr.bf16.mxu0 %v16518_v61  ;;  %v16539_v61 = vld [vmem:[#allocation4 + $0x2b0] ss:$8 sps:$4 sm:$0xff]  }
  0xa9   : > { %1115 = vmatpush1.bf16.msra.mxu0 %v16520_v0  ;;  %v832_v0 = vpack.c.bf16 %v18032_v33, %v18027_v32  ;;  %v839_v32 = vpack.c.bf16 %v18056_v42, %v18053_v41  ;;  %v16551_v33 = vld [vmem:[#allocation4 + $0x2f0] ss:$8 sps:$4 sm:$0xff]   ;;  %v844_v41 = vpack.c.bf16 %v18096_v55, %v18091_v54  ;;  %v848_v42 = vpack.c.bf16 %v18104_v58, %v18101_v57  ;;  %v16565_v55 = vld [vmem:[#allocation4 + $0x34] ss:$8 sps:$4 sm:$0xff]   ;;  %v16568_v58 = vld [vmem:[#allocation4 + $0x44] ss:$8 sps:$4 sm:$0xff]  }
  0xaa   : > { %1116 = vmatprep.subr.bf16.mxu0 %v16521_v3  ;;  %v16547_v3 = vld [vmem:[#allocation4 + $0x2d4] ss:$8 sps:$4 sm:$0xff]   ;;  %v831_v54 = vpack.c.bf16 %v18128_v5, %v18125_v4  ;;  %v16563_v57 = vld [vmem:[#allocation4 + $0x30] ss:$8 sps:$4 sm:$0xff]   ;;  %v16574_v4 = vld [vmem:[#allocation4 + $0x64] ss:$8 sps:$4 sm:$0xff]  }
  0xab   : > { %v16572_v5 = vld [vmem:[#allocation4 + $0x60] ss:$8 sps:$4 sm:$0xff]  }
  0xad   : > { %1117 = vmatpush1.bf16.msra.mxu0 %v16523_v6  ;;  %v16550_v6 = vld [vmem:[#allocation4 + $0x2e4] ss:$8 sps:$4 sm:$0xff]  }
  0xae   : > { %1118 = vmatprep.subr.bf16.mxu0 %v16524_v7  ;;  %v16548_v7 = vld [vmem:[#allocation4 + $0x2e0] ss:$8 sps:$4 sm:$0xff]  }
  0xb1   : > { %1119 = vmatpush1.bf16.msra.mxu0 %v16526_v10  ;;  %v835_v10 = vpack.c.bf16 %v18048_v39, %v18044_v38  ;;  %v841_v38 = vpack.c.bf16 %v18080_v49, %v18077_v48  ;;  %v845_v39 = vpack.c.bf16 %v18088_v53, %v18085_v52  ;;  %v16559_v48 = vld [vmem:[#allocation4 + $0x14] ss:$8 sps:$4 sm:$0xff]   ;;  %v16557_v49 = vld [vmem:[#allocation4 + $0x10] ss:$8 sps:$4 sm:$0xff]   ;;  %v16562_v52 = vld [vmem:[#allocation4 + $0x24] ss:$8 sps:$4 sm:$0xff]  }
  0xb2   : > { %1120 = vmatprep.subr.bf16.mxu0 %v16527_v11  ;;  %v16553_v11 = vld [vmem:[#allocation4 + $0x2f4] ss:$8 sps:$4 sm:$0xff]   ;;  %v16560_v53 = vld [vmem:[#allocation4 + $0x20] ss:$8 sps:$4 sm:$0xff]  }
  0xb5   : > { %1121 = vmatpush1.bf16.msra.mxu0 %v16529_v14  ;;  %v842_v14 = vpack.c.bf16 %v18072_v47, %v18069_v46  ;;  %v16554_v46 = vld [vmem:[#allocation4] ss:$8 sps:$4 sm:$0xff]   ;;  %v828_v47 = vpack.c.bf16 %v18120_v63, %v18117_v62  ;;  %v16571_v62 = vld [vmem:[#allocation4 + $0x54] ss:$8 sps:$4 sm:$0xff]   ;;  %v16569_v63 = vld [vmem:[#allocation4 + $0x50] ss:$8 sps:$4 sm:$0xff]  }
  0xb6   : > { %1203 = vmatprep.subr.bf16.mxu0 %v16532_v17  ;;  %v837_v17 = vpack.c.bf16 %v18144_v13, %v18141_v12  ;;  %v16581_v12 = vld [vmem:[#allocation4 + $0x90] ss:$8 sps:$4 sm:$0xff]   ;;  %v16586_v13 = vld [vmem:[#allocation4 + $0xa4] ss:$8 sps:$4 sm:$0xff]  }
  0xb8   : > { %1123 = vmatmul.mubr.bf16.vlgmr.msra.gmra.mrb[0].mxu0 %v826_v18  ;;  %v16577_v18 = vld [vmem:[#allocation4 + $0x74] ss:$8 sps:$4 sm:$0xff]  }
  0xb9   : > { %1132 = vmatprep.mubr.bf16.mxu0 %v830_v24  ;;  %1204 = vmatpush1.bf16.msra.mxu0 %v16530_v20  ;;  %v16578_v20 = vld [vmem:[#allocation4 + $0x80] ss:$8 sps:$4 sm:$0xff]   ;;  %v840_v24 = vpack.c.bf16 %v18152_v16, %v18149_v15 }
  0xba   : > { %1205 = vmatprep.subr.bf16.mxu0 %v16535_v34  ;;  %v16583_v34 = vld [vmem:[#allocation4 + $0x94] ss:$8 sps:$4 sm:$0xff]  }
  0xbb   : > { %v17540_v15 = vld [vmem:[#allocation2 + $0x50] sm:$0xff] }
  0xbd   : > { %1206 = vmatpush1.bf16.msra.mxu0 %v16533_v19  ;;  %v746_v19 = vld [vmem:[#allocation2 + $0x8] sm:$0x80] }
  0xbe   : > { %1207 = vmatprep.subr.bf16.mxu0 %v16538_v22  ;;  %v16584_v22 = vld [vmem:[#allocation4 + $0xa0] ss:$8 sps:$4 sm:$0xff]  }
  0xc0   : > { %1133 = vmatmul.mubr.bf16.gmra.mrb[4].mxu0 %v829_v25  ;;  %v843_v25 = vpack.c.bf16 %v18164_v29, %v18161_v28 }
  0xc1   : > { %1142 = vmatprep.mubr.bf16.mxu0 %v833_v50  ;;  %1208 = vmatpush1.bf16.msra.mxu0 %v16536_v51  ;;  %v17538_v50 = vld [vmem:[#allocation2 + $0x20] sm:$0xff] }
  0xc2   : > { %1209 = vmatprep.subr.bf16.mxu0 %v16541_v56  ;;  %v797_v51 = vpack.c.bf16 %v17538_v50, %v746_v19  ;;  %v17539_v56 = vld [vmem:[#allocation2 + $0x38] sm:$0xff]  ;;  %v17553_v50 = vld [vmem:[#allocation2 + $0xa8] sm:$0xff] }
  0xc3   : > { %v800_v16 = vpack.c.bf16 %v17540_v15, %v17539_v56  ;;  %v16599_v15 = vld [vmem:[#allocation4 + $0xf0] ss:$8 sps:$4 sm:$0xff]  }
  0xc5   : > { %1210 = vmatpush1.bf16.msra.mxu0 %v16539_v61  ;;  %v16589_v61 = vld [vmem:[#allocation4 + $0xb4] ss:$8 sps:$4 sm:$0xff]   ;;  %v1343_v28 = vshrl.u32 %v800_v16, 16  ;;  %v1346_v29 = vshll.u32 %v800_v16, 16 }
  0xc6   : > { %1211 = vmatprep.subr.bf16.mxu0 %v16544_v26  ;;  %v17541_v26 = vld [vmem:[#allocation2 + $0x18] sm:$0xff] }
  0xc8   : > { %1143 = vmatmul.mubr.bf16.gmra.mrb[8].mxu0 %v832_v0  ;;  %v1335_v0 = vshrl.u32 %v797_v51, 16 }
  0xc9   : > { %1152 = vmatprep.mubr.bf16.mxu0 %v836_v30  ;;  %1212 = vmatpush1.bf16.msra.mxu0 %v16542_v27  ;;  %v796_v27 = vpack.c.bf16 %v17541_v26, %v18003_v23  ;;  %v16592_v30 = vld [vmem:[#allocation4 + $0xc4] ss:$8 sps:$4 sm:$0xff]   ;;  %v846_v23 = vpack.c.bf16 %v18172_v21, %v18169_v36  ;;  %v16593_v36 = vld [vmem:[#allocation4 + $0xd0] ss:$8 sps:$4 sm:$0xff]  }
  0xca   : > { %1213 = vmatprep.subr.bf16.mxu0 %v16547_v3  ;;  %v16587_v3 = vld [vmem:[#allocation4 + $0xb0] ss:$8 sps:$4 sm:$0xff]   ;;  %v16598_v21 = vld [vmem:[#allocation4 + $0xe4] ss:$8 sps:$4 sm:$0xff]  }
  0xcb   : > { %v16604_v26 = vld [vmem:[#allocation4 + $0x104] ss:$8 sps:$4 sm:$0xff]  }
  0xcd   : > { %1214 = vmatpush1.bf16.msra.mxu0 %v16545_v31  ;;  %v1338_v31 = vshll.u32 %v797_v51, 16 }
  0xce   : > { %1215 = vmatprep.subr.bf16.mxu0 %v16550_v6  ;;  %v1318_v6 = vshrl.u32 %v796_v27, 16 }
  0xd0   : > { %1153 = vmatmul.mubr.bf16.gmra.mrb[12].mxu0 %v835_v10  ;;  %v1321_v10 = vshll.u32 %v796_v27, 16 }
  0xd1   : > { %1162 = vmatprep.mubr.bf16.mxu0 %v839_v32  ;;  %1216 = vmatpush1.bf16.msra.mxu0 %v16548_v7  ;;  %v16590_v7 = vld [vmem:[#allocation4 + $0xc0] ss:$8 sps:$4 sm:$0xff]   ;;  %v17543_v32 = vld [vmem:[#allocation2 + $0x48] sm:$0xff] }
  0xd2   : > { %1217 = vmatprep.subr.bf16.mxu0 %v16553_v11  ;;  %v17542_v11 = vld [vmem:[#allocation2 + $0x30] sm:$0xff] }
  0xd5   : > { %1218 = vmatpush1.bf16.msra.mxu0 %v16551_v33  ;;  %v799_v33 = vpack.c.bf16 %v17543_v32, %v17542_v11  ;;  %v17556_v11 = vld [vmem:[#allocation2 + $0xc0] sm:$0xff]  ;;  %v18247_v32 = vld [vmem:[#allocation2 + $0xd8] sm:$0xff] }
  0xd6   : > { %1821 = vmatprep.subr.bf16.mxu0 %v16556_v35  ;;  %v1337_v35 = vrot.slane %v1335_v0, 3 }
  0xd8   : > { %1163 = vmatmul.mubr.bf16.gmra.mrb[16].mxu0 %v838_v37  ;;  %v17544_v37 = vld [vmem:[#allocation2 + $0x68] sm:$0xff] }
  0xd9   : > { %1172 = vmatprep.mubr.bf16.mxu0 %v842_v14  ;;  %v17545_v14 = vld [vmem:[#allocation2 + $0x80] sm:$0xff] }
  0xe0   : > { %1173 = vmatmul.mubr.bf16.gmra.mrb[20].mxu0 %v841_v38  ;;  %v803_v38 = vpack.c.bf16 %v17545_v14, %v17544_v37 }
  0xe1   : > { %1182 = vmatprep.mubr.bf16.mxu0 %v845_v39  ;;  %v1340_v39 = vrot.slane %v1338_v31, 4 }
  0xe8   : > { %1183 = vmatmul.mubr.bf16.gmra.mrb[24].mxu0 %v844_v41  ;;  %v1345_v41 = vrot.slane %v1343_v28, 3  ;;  %v16602_v28 = vld [vmem:[#allocation4 + $0x100] ss:$8 sps:$4 sm:$0xff]  }
  0xe9   : > { %1192 = vmatprep.mubr.bf16.mxu0 %v848_v42  ;;  %v1348_v42 = vrot.slane %v1346_v29, 4 }
  0xf0   : > { %1193 = vmatmul.mubr.bf16.gmra.mrb[28].mxu0 %v847_v43  ;;  %v16595_v43 = vld [vmem:[#allocation4 + $0xd4] ss:$8 sps:$4 sm:$0xff]  }
  0xf1   : > { %1235 = vmatprep.mubr.bf16.mxu0 %v17771_v44 }
  0xf8   : > { %1236 = vmatmul.mubr.bf16.vlgmr.msra.gmra.mrb[0].mxu0 %v828_v47  ;;  %v18234_v47 = vrot.slane %v1321_v10, 4 }
  0xf9   : > { %1822 = vmatpush1.bf16.msra.mxu0 %v16554_v46  ;;  %1245 = vmatprep.mubr.bf16.mxu0 %v17771_v44  ;;  %v18232_v46 = vrot.slane %v1318_v6, 3 }
  0xfa   : > { %1823 = vmatprep.subr.bf16.mxu0 %v16559_v48  ;;  %v1326_v48 = vshrl.u32 %v799_v33, 16 }
  0xfb   : > { %v1324_v16 = vor.u32 %v18234_v47, %v18232_v46  ;;  %v16610_v46 = vld [vmem:[#allocation4 + $0x124] ss:$8 sps:$4 sm:$0xff]  }
  0xfd   : > { %1824 = vmatpush1.bf16.msra.mxu0 %v16557_v49  ;;  %v1329_v49 = vshll.u32 %v799_v33, 16  ;;  %v808_v33 = vpack.c.bf16 %v18247_v32, %v17556_v11  ;;  %v16620_v11 = vld [vmem:[#allocation4 + $0x160] ss:$8 sps:$4 sm:$0xff]  }
  0xfe   : > { %1825 = vmatprep.subr.bf16.mxu0 %v16562_v52  ;;  %v1378_v52 = vshrl.u32 %v803_v38, 16 }
 0x100   : > { %1246 = vmatmul.mubr.bf16.gmra.mrb[4].mxu0 %v831_v54  ;;  %v17546_v54 = vld [vmem:[#allocation2 + $0x60] sm:$0xff]  ;;  %v1380_v19 = vrot.slane %v1378_v52, 3 }
 0x101   : > { %1826 = vmatpush1.bf16.msra.mxu0 %v16560_v53  ;;  %1255 = vmatprep.mubr.bf16.mxu0 %v17771_v44  ;;  %v1381_v53 = vshll.u32 %v803_v38, 16 }
 0x102   : > { %1827 = vmatprep.subr.bf16.mxu0 %v16565_v55  ;;  %v17547_v55 = vld [vmem:[#allocation2 + $0x78] sm:$0xff] }
 0x105   : > { %1828 = vmatpush1.bf16.msra.mxu0 %v16563_v57  ;;  %v802_v57 = vpack.c.bf16 %v17547_v55, %v17546_v54  ;;  %v16608_v55 = vld [vmem:[#allocation4 + $0x120] ss:$8 sps:$4 sm:$0xff]  }
 0x106   : > { %1829 = vmatprep.subr.bf16.mxu0 %v16568_v58  ;;  %v1341_v58 = vor.u32 %v1340_v39, %v1337_v35  ;;  %v16607_v35 = vld [vmem:[#allocation4 + $0x114] ss:$8 sps:$4 sm:$0xff]  }
 0x108   : > { %1256 = vmatmul.mubr.bf16.gmra.mrb[8].mxu0 %v834_v60  ;;  %v17548_v60 = vld [vmem:[#allocation2 + $0x98] sm:$0xff] }
 0x109   : > { %1830 = vmatpush1.bf16.msra.mxu0 %v16566_v59  ;;  %1265 = vmatprep.mubr.bf16.mxu0 %v17771_v44  ;;  %v1349_v59 = vor.u32 %v1348_v42, %v1345_v41  ;;  %v16605_v41 = vld [vmem:[#allocation4 + $0x110] ss:$8 sps:$4 sm:$0xff]  }
 0x10a   : > { %1831 = vmatprep.subr.bf16.mxu0 %v16571_v62  ;;  %v17549_v62 = vld [vmem:[#allocation2 + $0xb0] sm:$0xff] }
 0x10d   : > { %1832 = vmatpush1.bf16.msra.mxu0 %v16569_v63  ;;  %v806_v63 = vpack.c.bf16 %v17549_v62, %v17548_v60  ;;  %v16613_v60 = vld [vmem:[#allocation4 + $0x134] ss:$8 sps:$4 sm:$0xff]  }
 0x10e   : > { %1833 = vmatprep.subr.bf16.mxu0 %v16574_v4  ;;  %v849_v4 = vpack.c.bf16 %v18182_v45, %v18179_v40  ;;  %v1372_v40 = vshll.u32 %v802_v57, 16 }
 0x10f   : > { %v1408_v45 = vshll.u32 %v806_v63, 16 }
 0x110   : > { %1266 = vmatmul.mubr.bf16.gmra.mrb[12].mxu0 %v837_v17  ;;  %v1331_v17 = vrot.slane %v1329_v49, 4  ;;  %v1374_v29 = vrot.slane %v1372_v40, 4  ;;  %v1423_v49 = vshrl.u32 %v808_v33, 16  ;;  %v16619_v40 = vld [vmem:[#allocation4 + $0x154] ss:$8 sps:$4 sm:$0xff]  }
 0x111   : > { %1834 = vmatpush1.bf16.msra.mxu0 %v16572_v5  ;;  %1275 = vmatprep.mubr.bf16.mxu0 %v17771_v44  ;;  %v1328_v5 = vrot.slane %v1326_v48, 3  ;;  %v1410_v37 = vrot.slane %v1408_v45, 4 }
 0x112   : > { %1835 = vmatprep.subr.bf16.mxu0 %v16577_v18  ;;  %v17550_v18 = vld [vmem:[#allocation2 + $0xc8] sm:$0xff] }
 0x115   : > { %1836 = vmatpush1.bf16.msra.mxu0 %v16575_v8  ;;  %v17551_v8 = vld [vmem:[#allocation2 + $0xe0] sm:$0xff] }
 0x116   : > { %1837 = vmatprep.subr.bf16.mxu0 %v16580_v9  ;;  %v18239_v9 = vpack.c.bf16 %v17551_v8, %v17550_v18 }
 0x118   : > { %1276 = vmatmul.mubr.bf16.gmra.mrb[16].mxu0 %v840_v24  ;;  %v16601_v24 = vld [vmem:[#allocation4 + $0xf4] ss:$8 sps:$4 sm:$0xff]   ;;  %v1432_v56 = vshrl.u32 %v18239_v9, 16  ;;  %v1435_v38 = vshll.u32 %v18239_v9, 16  ;;  %v1425_v9 = vrot.slane %v1423_v49, 3 }
 0x119   : > { %1838 = vmatpush1.bf16.msra.mxu0 %v16578_v20  ;;  %1285 = vmatprep.mubr.bf16.mxu0 %v17771_v44  ;;  %v16596_v20 = vld [vmem:[#allocation4 + $0xe0] ss:$8 sps:$4 sm:$0xff]  }
 0x11a   : > { %1839 = vmatprep.subr.bf16.mxu0 %v16583_v34  ;;  %v1350_v34 = vsel %vm1316_vm1, %v1341_v58, %v1349_v59  ;;  %v1434_v48 = vrot.slane %v1432_v56, 3  ;;  %v17561_v58 = vld [vmem:[#allocation2 + $0x140] sm:$0xff] }
 0x11d   : > { %1840 = vmatpush1.bf16.msra.mxu0 %v16581_v12  ;;  %v1383_v12 = vrot.slane %v1381_v53, 4  ;;  %v1426_v53 = vshll.u32 %v808_v33, 16  ;;  %v17566_v33 = vld [vmem:[#allocation2 + $0x150] sm:$0xff] }
 0x11e   : > { %1841 = vmatprep.subr.bf16.mxu0 %v16586_v13  ;;  %v1369_v13 = vshrl.u32 %v802_v57, 16  ;;  %v17560_v57 = vld [vmem:[#allocation2 + $0x128] sm:$0xff] }
 0x11f   : > { %v1384_v27 = vor.u32 %v1383_v12, %v1380_v19  ;;  %v16616_v19 = vld [vmem:[#allocation4 + $0x144] ss:$8 sps:$4 sm:$0xff]  }
 0x120   : > { %1286 = vmatmul.mubr.bf16.gmra.mrb[20].mxu0 %v843_v25  ;;  %v17552_v25 = vld [vmem:[#allocation2 + $0x90] sm:$0xff]  ;;  %v1371_v0 = vrot.slane %v1369_v13, 3 }
 0x121   : > { %1842 = vmatpush1.bf16.msra.mxu0 %v16584_v22  ;;  %1295 = vmatprep.mubr.bf16.mxu0 %v17771_v44  ;;  %v1405_v22 = vshrl.u32 %v806_v63, 16  ;;  %v805_v51 = vpack.c.bf16 %v17553_v50, %v17552_v25  ;;  %v1385_v14 = vsel %vm1316_vm1, %v1349_v59, %v1384_v27  ;;  %v815_v59 = vpack.c.bf16 %v17561_v58, %v17560_v57  ;;  %v17562_v25 = vld [vmem:[#allocation2 + $0x120] sm:$0xff]  ;;  %v17563_v50 = vld [vmem:[#allocation2 + $0x138] sm:$0xff] }
 0x122   : > { %1843 = vmatprep.subr.bf16.mxu0 %v16589_v61  ;;  %v1332_v61 = vor.u32 %v1331_v17, %v1328_v5  ;;  %v1375_v47 = vor.u32 %v1374_v29, %v1371_v0  ;;  %v16617_v0 = vld [vmem:[#allocation4 + $0x150] ss:$8 sps:$4 sm:$0xff]  }
 0x123   : > { %v1407_v6 = vrot.slane %v1405_v22, 3  ;;  %v1399_v10 = vshll.u32 %v805_v51, 16  ;;  %v1486_v8 = vshrl.u32 %v815_v59, 16  ;;  %v16614_v22 = vld [vmem:[#allocation4 + $0x140] ss:$8 sps:$4 sm:$0xff]  }
 0x124   : > { %v1376_v62 = vsel %vm1316_vm1, %v1332_v61, %v1375_v47 }
 0x125   : > { %1844 = vmatpush1.bf16.msra.mxu0 %v16587_v3  ;;  %v17554_v3 = vld [vmem:[#allocation2 + $0xf8] sm:$0xff]  ;;  %v1411_v52 = vor.u32 %v1410_v37, %v1407_v6  ;;  %v1488_v29 = vrot.slane %v1486_v8, 3  ;;  %v16625_v37 = vld [vmem:[#allocation4 + $0x174] ss:$8 sps:$4 sm:$0xff]  }
 0x126   : > { %1845 = vmatprep.subr.bf16.mxu0 %v16592_v30  ;;  %v17555_v30 = vld [vmem:[#allocation2 + $0x110] sm:$0xff]  ;;  %v17564_v6 = vld [vmem:[#allocation2 + $0x158] sm:$0xff] }
 0x127   : > { %v18245_v31 = vpack.c.bf16 %v17555_v30, %v17554_v3  ;;  %v1412_v63 = vsel %vm1316_vm1, %v1384_v27, %v1411_v52  ;;  %v18259_v3 = vld [vmem:[#allocation2 + $0xd8] sm:$0xff] }
 0x128   : > { %1296 = vmatmul.mubr.bf16.gmra.mrb[24].mxu0 %v846_v23  ;;  %v1333_v23 = vsel %vm1316_vm1, %v1324_v16, %v1332_v61  ;;  %v1489_v16 = vshll.u32 %v815_v59, 16  ;;  %4422 = vst [vmem:[#allocation2 + $0xd8] sm:$0x1] %v17770_v2 }
 0x129   : > { %1846 = vmatpush1.bf16.msra.mxu0 %v16590_v7  ;;  %1305 = vmatprep.mubr.bf16.mxu0 %v17771_v44  ;;  %v1396_v7 = vshrl.u32 %v805_v51, 16  ;;  %v1459_v39 = vshrl.u32 %v18245_v31, 16  ;;  %v1462_v5 = vshll.u32 %v18245_v31, 16  ;;  %v814_v51 = vpack.c.bf16 %v17563_v50, %v17562_v25  ;;  %v16622_v31 = vld [vmem:[#allocation4 + $0x164] ss:$8 sps:$4 sm:$0xff]  }
 0x12a   : > { %1847 = vmatprep.subr.bf16.mxu0 %v16595_v43  ;;  %v1401_v43 = vrot.slane %v1399_v10, 4 }
 0x12b   : > { %v1398_v42 = vrot.slane %v1396_v7, 3  ;;  %v1461_v13 = vrot.slane %v1459_v39, 3  ;;  %v1477_v61 = vshrl.u32 %v814_v51, 16  ;;  %v17565_v7 = vld [vmem:[#allocation2 + $0x170] sm:$0xff]  ;;  %v1491_v39 = vrot.slane %v1489_v16, 4  ;;  %v17570_v16 = vld [vmem:[#allocation2 + $0x28] sm:$0xff] }
 0x12c   : > { %v818_v10 = vpack.c.bf16 %v17565_v7, %v17564_v6  ;;  %v17571_v7 = vld [vmem:[#allocation2 + $0x70] sm:$0xff] }
 0x12d   : > { %1848 = vmatpush1.bf16.msra.mxu0 %v16593_v36  ;;  %v17558_v36 = vld [vmem:[#allocation2 + $0xf0] sm:$0xff] }
 0x12e   : > { %1849 = vmatprep.subr.bf16.mxu0 %v16598_v21  ;;  %v17559_v21 = vld [vmem:[#allocation2 + $0x108] sm:$0xff] }
 0x12f   : > { %v811_v54 = vpack.c.bf16 %v17559_v21, %v17558_v36  ;;  %v1479_v36 = vrot.slane %v1477_v61, 3 }
 0x130   : > { %1306 = vmatmul.mubr.bf16.gmra.mrb[28].mxu0 %v849_v4  ;;  %v1437_v4 = vrot.slane %v1435_v38, 4 }
 0x131   : > { %1850 = vmatpush1.bf16.msra.mxu0 %v16596_v20  ;;  %1853 = vmatprep.mubr.bf16.mxu0 %v1350_v34  ;;  %v1450_v17 = vshrl.u32 %v811_v54, 16  ;;  %v1453_v18 = vshll.u32 %v811_v54, 16  ;;  %v1428_v20 = vrot.slane %v1426_v53, 4  ;;  %v1402_v34 = vor.u32 %v1401_v43, %v1398_v42 }
 0x132   : > { %1851 = vmatprep.subr.bf16.mxu0 %v16601_v24  ;;  %v16611_v24 = vld [vmem:[#allocation4 + $0x130] ss:$8 sps:$4 sm:$0xff]   ;;  %v1438_v12 = vor.u32 %v1437_v4, %v1434_v48  ;;  %v1513_v42 = vshrl.u32 %v818_v10, 16  ;;  %v1516_v43 = vshll.u32 %v818_v10, 16  ;;  %v1492_v53 = vor.u32 %v1491_v39, %v1488_v29 }
 0x133   : > { %v1403_v45 = vsel %vm1316_vm1, %v1375_v47, %v1402_v34  ;;  %v1455_v27 = vrot.slane %v1453_v18, 4  ;;  %v1429_v30 = vor.u32 %v1428_v20, %v1425_v9  ;;  %v794_v47 = vld [vmem:[#allocation2 + $0x188] sm:$0x7f] }
 0x134   : > { %v1439_v56 = vsel %vm1316_vm1, %v1411_v52, %v1438_v12  ;;  %v16623_v48 = vld [vmem:[#allocation4 + $0x170] ss:$8 sps:$4 sm:$0xff]   ;;  %v16628_v52 = vld [vmem:[#allocation4 + $0x304] ss:$8 sps:$4 sm:$0xff]   ;;  %v1515_v54 = vrot.slane %v1513_v42, 3  ;;  %v1518_v59 = vrot.slane %v1516_v43, 4 }
 0x135   : > { %1852 = vmatpush1.bf16.msra.mxu0 %v16599_v15  ;;  %v1464_v15 = vrot.slane %v1462_v5, 4  ;;  %v793_v5 = vld [vmem:[#allocation2 + $0x180] sm:$0x7f]  ;;  %v17572_v10 = vld [vmem:[#allocation2 + $0x88] sm:$0xff] }
 0x136   : > { %1934 = vmatprep.subr.bf16.mxu0 %v16604_v26  ;;  %v1452_v26 = vrot.slane %v1450_v17, 3  ;;  %v1519_v17 = vor.u32 %v1518_v59, %v1515_v54  ;;  %v820_v20 = vpack.c.bf16 %v793_v5, %v793_v5  ;;  %v17576_v42 = vld [vmem:[#allocation2 + $0xe8] sm:$0xff] }
 0x138   : > { %1854 = vmatmul.mubr.bf16.vlgmr.msra.gmra.mrb[0].mxu0 %v1333_v23  ;;  %v17567_v23 = vld [vmem:[#allocation2 + $0x168] sm:$0xff]  ;;  %v1456_v49 = vor.u32 %v1455_v27, %v1452_v26 }
 0x139   : > { %1863 = vmatprep.mubr.bf16.mxu0 %v1385_v14  ;;  %1935 = vmatpush1.bf16.msra.mxu0 %v16602_v28  ;;  %v1465_v28 = vor.u32 %v1464_v15, %v1461_v13  ;;  %v1430_v14 = vsel %vm1316_vm1, %v1402_v34, %v1429_v30  ;;  %v1520_v34 = vsel %vm1316_vm1, %v1492_v53, %v1519_v17  ;;  %v1534_v13 = vshll.u32 %v820_v20, 16 }
 0x13a   : > { %1936 = vmatprep.subr.bf16.mxu0 %v16607_v35  ;;  %v817_v35 = vpack.c.bf16 %v17567_v23, %v17566_v33  ;;  %v1457_v57 = vsel %vm1316_vm1, %v1429_v30, %v1456_v49 }
 0x13b   : > { %v1466_v38 = vsel %vm1316_vm1, %v1438_v12, %v1465_v28  ;;  %v1493_v58 = vsel %vm1316_vm1, %v1465_v28, %v1492_v53  ;;  %v1531_v12 = vshrl.u32 %v820_v20, 16  ;;  %v1536_v15 = vrot.slane %v1534_v13, 4  ;;  %v16634_v20 = vld [vmem:[#allocation4 + $0x324] ss:$8 sps:$4 sm:$0xff]   ;;  %v16637_v13 = vld [vmem:[#allocation4 + $0x334] ss:$8 sps:$4 sm:$0xff]  }
 0x13d   : > { %1937 = vmatpush1.bf16.msra.mxu0 %v16605_v41  ;;  %v1480_v41 = vshll.u32 %v814_v51, 16  ;;  %v17568_v51 = vld [vmem:[#allocation2 + $0x40] sm:$0xff] }
 0x13e   : > { %1938 = vmatprep.subr.bf16.mxu0 %v16610_v46  ;;  %v1504_v46 = vshrl.u32 %v817_v35, 16 }
 0x13f   : > { %v1482_v21 = vrot.slane %v1480_v41, 4  ;;  %v17575_v41 = vld [vmem:[#allocation2 + $0xd0] sm:$0xff] }
 0x140   : > { %1864 = vmatmul.mubr.bf16.gmra.mrb[4].mxu0 %v1376_v62  ;;  %v1506_v62 = vrot.slane %v1504_v46, 3  ;;  %v810_v43 = vpack.c.bf16 %v17576_v42, %v17575_v41  ;;  %v17577_v46 = vld [vmem:[#allocation2 + $0x100] sm:$0xff] }
 0x141   : > { %1873 = vmatprep.mubr.bf16.mxu0 %v1412_v63  ;;  %1939 = vmatpush1.bf16.msra.mxu0 %v16608_v55  ;;  %v821_v55 = vpack.c.bf16 %v794_v47, %v794_v47  ;;  %v1483_v4 = vor.u32 %v1482_v21, %v1479_v36  ;;  %v17578_v47 = vld [vmem:[#allocation2 + $0x118] sm:$0xff] }
 0x142   : > { %1940 = vmatprep.subr.bf16.mxu0 %v16613_v60  ;;  %v1507_v60 = vshll.u32 %v817_v35, 16 }
 0x143   : > { %v1540_v63 = vshrl.u32 %v821_v55, 16  ;;  %v1543_v18 = vshll.u32 %v821_v55, 16  ;;  %v16626_v55 = vld [vmem:[#allocation4 + $0x300] ss:$8 sps:$4 sm:$0xff]  }
 0x144   : > { %v1509_v8 = vrot.slane %v1507_v60, 4  ;;  %v16631_v60 = vld [vmem:[#allocation4 + $0x314] ss:$8 sps:$4 sm:$0xff]  }
 0x145   : > { %1941 = vmatpush1.bf16.msra.mxu0 %v16611_v24  ;;  %v1542_v9 = vrot.slane %v1540_v63, 3  ;;  %v1484_v24 = vsel %vm1316_vm1, %v1456_v49, %v1483_v4  ;;  %v17580_v63 = vld [vmem:[#allocation2 + $0x148] sm:$0xff] }
 0x146   : > { %1942 = vmatprep.subr.bf16.mxu0 %v16616_v19  ;;  %v1545_v19 = vrot.slane %v1543_v18, 4  ;;  %v1510_v25 = vor.u32 %v1509_v8, %v1506_v62  ;;  %v17579_v62 = vld [vmem:[#allocation2 + $0x130] sm:$0xff] }
 0x148   : > { %1874 = vmatmul.mubr.bf16.gmra.mrb[8].mxu0 %v1403_v45  ;;  %v1546_v50 = vor.u32 %v1545_v19, %v1542_v9  ;;  %v1511_v26 = vsel %vm1316_vm1, %v1483_v4, %v1510_v25  ;;  %v816_v4 = vpack.c.bf16 %v17580_v63, %v17579_v62  ;;  %v16629_v9 = vld [vmem:[#allocation4 + $0x310] ss:$8 sps:$4 sm:$0xff]   ;;  %v16632_v19 = vld [vmem:[#allocation4 + $0x320] ss:$8 sps:$4 sm:$0xff]  }
 0x149   : > { %1883 = vmatprep.mubr.bf16.mxu0 %v1439_v56  ;;  %1943 = vmatpush1.bf16.msra.mxu0 %v16614_v22  ;;  %v747_v22 = vld [vmem:[#allocation2 + $0x10] sm:$0x80]  ;;  %v1533_v56 = vrot.slane %v1531_v12, 3  ;;  %v16656_v63 = vld [vmem:[#allocation4 + $0x3a0] ss:$8 sps:$4 sm:$0xff]  }
 0x14a   : > { %1944 = vmatprep.subr.bf16.mxu0 %v16619_v40  ;;  %v17569_v40 = vld [vmem:[#allocation2 + $0x58] sm:$0xff]  ;;  %v798_v61 = vpack.c.bf16 %v17570_v16, %v747_v22  ;;  %v1547_v27 = vsel %vm1316_vm1, %v1519_v17, %v1546_v50  ;;  %v16635_v50 = vld [vmem:[#allocation4 + $0x330] ss:$8 sps:$4 sm:$0xff]   ;;  %v16643_v16 = vld [vmem:[#allocation4 + $0x354] ss:$8 sps:$4 sm:$0xff]  }
 0x14b   : > { %v801_v45 = vpack.c.bf16 %v17569_v40, %v17568_v51  ;;  %v16640_v51 = vld [vmem:[#allocation4 + $0x344] ss:$8 sps:$4 sm:$0xff]   ;;  %v1498_v40 = vshll.u32 %v816_v4, 16 }
 0x14c   : > { %v1352_v28 = vshrl.u32 %v798_v61, 16  ;;  %v1355_v29 = vshll.u32 %v798_v61, 16  ;;  %v17581_v61 = vld [vmem:[#allocation2 + $0x160] sm:$0xff] }
 0x14d   : > { %1945 = vmatpush1.bf16.msra.mxu0 %v16617_v0  ;;  %v1360_v0 = vshrl.u32 %v801_v45, 16  ;;  %v1363_v30 = vshll.u32 %v801_v45, 16  ;;  %v1500_v42 = vrot.slane %v1498_v40, 4  ;;  %v2062_v40 = vld [vmem:[#allocation2 + $0x90] sm:$0xff] }
 0x14e   : > { %1946 = vmatprep.subr.bf16.mxu0 %v16622_v31  ;;  %v1537_v31 = vor.u32 %v1536_v15, %v1533_v56  ;;  %v1354_v35 = vrot.slane %v1352_v28, 3  ;;  %v16638_v56 = vld [vmem:[#allocation4 + $0x340] ss:$8 sps:$4 sm:$0xff]   ;;  %v16646_v28 = vld [vmem:[#allocation4 + $0x364] ss:$8 sps:$4 sm:$0xff]  }
 0x14f   : > { %v1362_v6 = vrot.slane %v1360_v0, 3  ;;  %v1365_v33 = vrot.slane %v1363_v30, 4 }
 0x150   : > { %1884 = vmatmul.mubr.bf16.gmra.mrb[12].mxu0 %v1430_v14  ;;  %v1538_v23 = vsel %vm1316_vm1, %v1510_v25, %v1537_v31  ;;  %v17573_v14 = vld [vmem:[#allocation2 + $0xa0] sm:$0xff] }
 0x151   : > { %1893 = vmatprep.mubr.bf16.mxu0 %v1466_v38  ;;  %1947 = vmatpush1.bf16.msra.mxu0 %v16620_v11  ;;  %v804_v11 = vpack.c.bf16 %v17572_v10, %v17571_v7  ;;  %v17574_v38 = vld [vmem:[#allocation2 + $0xb8] sm:$0xff]  ;;  %v1366_v36 = vor.u32 %v1365_v33, %v1362_v6  ;;  %v16641_v31 = vld [vmem:[#allocation4 + $0x350] ss:$8 sps:$4 sm:$0xff]   ;;  %v795_v33 = vld [vmem:[#allocation2 + $0x190] sm:$0x7f] }
 0x152   : > { %1948 = vmatprep.subr.bf16.mxu0 %v16625_v37  ;;  %v1357_v37 = vrot.slane %v1355_v29, 4  ;;  %v807_v39 = vpack.c.bf16 %v17574_v38, %v17573_v14  ;;  %v16644_v7 = vld [vmem:[#allocation4 + $0x360] ss:$8 sps:$4 sm:$0xff]   ;;  %v16652_v38 = vld [vmem:[#allocation4 + $0x384] ss:$8 sps:$4 sm:$0xff]  }
 0x153   : > { %v1387_v49 = vshrl.u32 %v804_v11, 16 }
 0x154   : > { %v1358_v53 = vor.u32 %v1357_v37, %v1354_v35  ;;  %v1414_v21 = vshrl.u32 %v807_v39, 16  ;;  %v1417_v54 = vshll.u32 %v807_v39, 16  ;;  %v16647_v37 = vld [vmem:[#allocation4 + $0x370] ss:$8 sps:$4 sm:$0xff]  }
 0x155   : > { %1949 = vmatpush1.bf16.msra.mxu0 %v16623_v48  ;;  %v18271_v48 = vpack.c.bf16 %v17578_v47, %v17577_v46  ;;  %v1389_v17 = vrot.slane %v1387_v49, 3  ;;  %v16650_v46 = vld [vmem:[#allocation4 + $0x380] ss:$8 sps:$4 sm:$0xff]   ;;  %v2048_v49 = vld [vmem:[#allocation2 + $0x20] sm:$0xfe] }
 0x156   : > { %2594 = vmatprep.subr.bf16.mxu0 %v16628_v52  ;;  %v1390_v52 = vshll.u32 %v804_v11, 16  ;;  %v1367_v5 = vsel %vm1316_vm1, %v1358_v53, %v1366_v36  ;;  %v1416_v12 = vrot.slane %v1414_v21, 3  ;;  %v1419_v25 = vrot.slane %v1417_v54, 4  ;;  %v16649_v11 = vld [vmem:[#allocation4 + $0x374] ss:$8 sps:$4 sm:$0xff]  }
 0x157   : > { %v1468_v59 = vshrl.u32 %v18271_v48, 16  ;;  %v1471_v8 = vshll.u32 %v18271_v48, 16  ;;  %v16655_v48 = vld [vmem:[#allocation4 + $0x394] ss:$8 sps:$4 sm:$0xff]   ;;  %v16653_v21 = vld [vmem:[#allocation4 + $0x390] ss:$8 sps:$4 sm:$0xff]  }
 0x158   : > { %1894 = vmatmul.mubr.bf16.gmra.mrb[16].mxu0 %v1457_v57  ;;  %v1441_v57 = vshrl.u32 %v810_v43, 16  ;;  %v1392_v18 = vrot.slane %v1390_v52, 4  ;;  %v1420_v45 = vor.u32 %v1419_v25, %v1416_v12  ;;  %v2051_v52 = vld [vmem:[#allocation2 + $0x38] sm:$0xff] }
 0x159   : > { %1903 = vmatprep.mubr.bf16.mxu0 %v1493_v58  ;;  %v1444_v58 = vshll.u32 %v810_v43, 16  ;;  %v1470_v10 = vrot.slane %v1468_v59, 3  ;;  %v1473_v35 = vrot.slane %v1471_v8, 4  ;;  %v822_v43 = vpack.c.bf16 %v795_v33, %v795_v33  ;;  %v16658_v54 = vld [vmem:[#allocation4 + $0x3a4] ss:$8 sps:$4 sm:$0xff]  }
 0x15a   : > { %v1443_v15 = vrot.slane %v1441_v57, 3  ;;  %v2047_v57 = vld [vmem:[#allocation2 + $0x18] sm:$0xfe]  ;;  %v18286_v62 = vpack.c.bf16 %v2051_v52, %v2048_v49  ;;  %v2078_v33 = vld [vmem:[#allocation2 + $0x110] sm:$0xff] }
 0x15b   : > { %v1446_v30 = vrot.slane %v1444_v58, 4  ;;  %v1474_v41 = vor.u32 %v1473_v35, %v1470_v10  ;;  %v2050_v58 = vld [vmem:[#allocation2 + $0x30] sm:$0xff]  ;;  %v2063_v12 = vld [vmem:[#allocation2 + $0x98] sm:$0xff]  ;;  %v2077_v35 = vld [vmem:[#allocation2 + $0x108] sm:$0xff] }
 0x15c   : > { %v18290_v8 = vpack.c.bf16 %v2050_v58, %v2047_v57  ;;  %v16667_v10 = vld [vmem:[#allocation4 + $0x3d4] ss:$8 sps:$4 sm:$0xff]  }
 0x15d   : > { %v1447_v6 = vor.u32 %v1446_v30, %v1443_v15  ;;  %v2139_v15 = vshrl.u32 %v18286_v62, 16  ;;  %v16662_v30 = vld [vmem:[#allocation4 + $0x3c0] ss:$8 sps:$4 sm:$0xff]  }
 0x15f   : > { %v1475_v53 = vsel %vm1316_vm1, %v1447_v6, %v1474_v41 }
 0x160   : > { %1904 = vmatmul.mubr.bf16.gmra.mrb[20].mxu0 %v1484_v24  ;;  %v1495_v24 = vshrl.u32 %v816_v4, 16 }
 0x161   : > { %1913 = vmatprep.mubr.bf16.mxu0 %v1520_v34  ;;  %v1393_v34 = vor.u32 %v1392_v18, %v1389_v17  ;;  %v2054_v17 = vld [vmem:[#allocation2 + $0x50] sm:$0xff]  ;;  %v2057_v18 = vld [vmem:[#allocation2 + $0x68] sm:$0xff] }
 0x162   : > { %v1497_v39 = vrot.slane %v1495_v24, 3  ;;  %v2053_v24 = vld [vmem:[#allocation2 + $0x48] sm:$0xff] }
 0x163   : > { %v1394_v22 = vsel %vm1316_vm1, %v1366_v36, %v1393_v34  ;;  %v1421_v0 = vsel %vm1316_vm1, %v1393_v34, %v1420_v45  ;;  %v1549_v36 = vshrl.u32 %v822_v43, 16  ;;  %v2056_v34 = vld [vmem:[#allocation2 + $0x60] sm:$0xff] }
 0x164   : > { %v1501_v59 = vor.u32 %v1500_v42, %v1497_v39  ;;  %v2084_v39 = vld [vmem:[#allocation2 + $0x140] sm:$0xff] }
 0x165   : > { %v18288_v4 = vrot.slane %v1549_v36, 3  ;;  %v16670_v36 = vld [vmem:[#allocation4 + $0x3e4] ss:$8 sps:$4 sm:$0xff]  }
 0x168   : > { %1914 = vmatmul.mubr.bf16.gmra.mrb[24].mxu0 %v1511_v26  ;;  %v17582_v26 = vld [vmem:[#allocation2 + $0x178] sm:$0xff] }
 0x169   : > { %1923 = vmatprep.mubr.bf16.mxu0 %v1547_v27  ;;  %v819_v27 = vpack.c.bf16 %v17582_v26, %v17581_v61  ;;  %v2069_v61 = vld [vmem:[#allocation2 + $0xc8] sm:$0xff]  ;;  %v18301_v26 = vpack.c.bf16 %v2056_v34, %v2053_v24 }
 0x16b   : > { %v1522_v29 = vshrl.u32 %v819_v27, 16  ;;  %v1525_v14 = vshll.u32 %v819_v27, 16  ;;  %v2065_v27 = vld [vmem:[#allocation2 + $0xa8] sm:$0xff]  ;;  %v2162_v24 = vshrl.u32 %v18301_v26, 16 }
 0x16d   : > { %v1524_v47 = vrot.slane %v1522_v29, 3  ;;  %v2072_v29 = vld [vmem:[#allocation2 + $0xe0] sm:$0xff] }
 0x170   : > { %1924 = vmatmul.mubr.bf16.gmra.mrb[28].mxu0 %v1538_v23  ;;  %v1448_v23 = vsel %vm1316_vm1, %v1420_v45, %v1447_v6  ;;  %v2075_v6 = vld [vmem:[#allocation2 + $0xf8] sm:$0xff] }
 0x171   : > { %1966 = vmatprep.mubr.bf16.mxu0 %v17771_v44 }
 0x178   : > { %1967 = vmatmul.mubr.bf16.vlgmr.msra.gmra.mrb[0].mxu0 %v1367_v5  ;;  %v16661_v5 = vld [vmem:[#allocation4 + $0x3b4] ss:$8 sps:$4 sm:$0xff]  }
 0x179   : > { %2595 = vmatpush1.bf16.msra.mxu0 %v16626_v55  ;;  %1976 = vmatprep.mubr.bf16.mxu0 %v17771_v44  ;;  %v1527_v55 = vrot.slane %v1525_v14, 4 }
 0x17a   : > { %2596 = vmatprep.subr.bf16.mxu0 %v16631_v60  ;;  %v1552_v60 = vshll.u32 %v822_v43, 16  ;;  %v2134_v43 = vshll.u32 %v18301_v26, 16  ;;  %v16707_v26 = vld [vmem:[%s20290_s5 + $0x20] sm:$0xff]  }
 0x17b   : > { %v1528_v45 = vor.u32 %v1527_v55, %v1524_v47  ;;  %v16665_v47 = vld [vmem:[#allocation4 + $0x3d0] ss:$8 sps:$4 sm:$0xff]   ;;  %v18319_v55 = vpack.c.bf16 %v2075_v6, %v2072_v29 }
 0x17c   : > { %v18294_v25 = vrot.slane %v1552_v60, 4 }
 0x17d   : > { %2597 = vmatpush1.bf16.msra.mxu0 %v16629_v9  ;;  %v1502_v9 = vsel %vm1316_vm1, %v1474_v41, %v1501_v59  ;;  %v1529_v14 = vsel %vm1316_vm1, %v1501_v59, %v1528_v45  ;;  %v2087_v41 = vld [vmem:[#allocation2 + $0x158] sm:$0xff] }
 0x17e   : > { %2598 = vmatprep.subr.bf16.mxu0 %v16634_v20  ;;  %v2141_v20 = vshll.u32 %v18286_v62, 16  ;;  %v1555_v42 = vor.u32 %v18294_v25, %v18288_v4  ;;  %v2083_v62 = vld [vmem:[#allocation2 + $0x138] sm:$0xff]  ;;  %v18329_v4 = vrot.slane %v2134_v43, 1 }
 0x180   : > { %1977 = vmatmul.mubr.bf16.gmra.mrb[4].mxu0 %v1394_v22  ;;  %v16664_v22 = vld [vmem:[#allocation4 + $0x3c4] ss:$8 sps:$4 sm:$0xff]  }
 0x181   : > { %2599 = vmatpush1.bf16.msra.mxu0 %v16632_v19  ;;  %1986 = vmatprep.mubr.bf16.mxu0 %v17771_v44  ;;  %v2060_v19 = vld [vmem:[#allocation2 + $0x80] sm:$0xff] }
 0x182   : > { %2600 = vmatprep.subr.bf16.mxu0 %v16637_v13  ;;  %v16659_v13 = vld [vmem:[#allocation4 + $0x3b0] ss:$8 sps:$4 sm:$0xff]  }
 0x185   : > { %2601 = vmatpush1.bf16.msra.mxu0 %v16635_v50  ;;  %v2129_v50 = vshll.u32 %v18290_v8, 16 }
 0x186   : > { %2602 = vmatprep.subr.bf16.mxu0 %v16640_v51  ;;  %v2059_v51 = vld [vmem:[#allocation2 + $0x78] sm:$0xff] }
 0x187   : > { %v2131_v49 = vrot.slane %v2129_v50, 1 }
 0x188   : > { %1987 = vmatmul.mubr.bf16.gmra.mrb[8].mxu0 %v1421_v0  ;;  %v2068_v0 = vld [vmem:[#allocation2 + $0xc0] sm:$0xff] }
 0x189   : > { %2603 = vmatpush1.bf16.msra.mxu0 %v16638_v56  ;;  %1996 = vmatprep.mubr.bf16.mxu0 %v17771_v44  ;;  %v18298_v56 = vpack.c.bf16 %v2057_v18, %v2054_v17  ;;  %v2090_v18 = vld [vmem:[#allocation2 + $0x170] sm:$0xff] }
 0x18a   : > { %2604 = vmatprep.subr.bf16.mxu0 %v16643_v16  ;;  %v2066_v16 = vld [vmem:[#allocation2 + $0xb0] sm:$0xff] }
 0x18d   : > { %2605 = vmatpush1.bf16.msra.mxu0 %v16641_v31  ;;  %v2143_v31 = vrot.slane %v2141_v20, 1 }
 0x18e   : > { %2606 = vmatprep.subr.bf16.mxu0 %v16646_v28  ;;  %v18303_v28 = vpack.c.bf16 %v2063_v12, %v2060_v19  ;;  %v1556_v19 = vsel %vm1316_vm1, %v1528_v45, %v1555_v42  ;;  %v16673_v12 = vld [vmem:[#allocation4 + $0x3f4] ss:$8 sps:$4 sm:$0xff]  }
 0x190   : > { %1997 = vmatmul.mubr.bf16.gmra.mrb[12].mxu0 %v1448_v23  ;;  %v2081_v23 = vld [vmem:[#allocation2 + $0x128] sm:$0xff]  ;;  %v2174_v52 = vshll.u32 %v18303_v28, 16 }
 0x191   : > { %2607 = vmatpush1.bf16.msra.mxu0 %v16644_v7  ;;  %2006 = vmatprep.mubr.bf16.mxu0 %v17771_v44  ;;  %v2074_v7 = vld [vmem:[#allocation2 + $0xf0] sm:$0xff]  ;;  %v18325_v59 = vpack.c.bf16 %v2081_v23, %v2078_v33  ;;  %v16699_v33 = vld [vmem:[%s20290_s5] sm:$0xff]   ;;  %v16700_v23 = vld [vmem:[%s20290_s5 + $0x48] sm:$0xff]  }
 0x192   : > { %2608 = vmatprep.subr.bf16.mxu0 %v16649_v11  ;;  %v18305_v11 = vpack.c.bf16 %v2062_v40, %v2059_v51  ;;  %v18322_v57 = vpack.c.bf16 %v2074_v7, %v18259_v3  ;;  %v18333_v3 = vpack.c.bf16 %v2087_v41, %v2084_v39  ;;  %v18335_v20 = vrot.slane %v2174_v52, 1  ;;  %v16676_v41 = vld [vmem:[#allocation4 + $0x404] ss:$8 sps:$4 sm:$0xff]  }
 0x193   : > { %v2194_v51 = vshrl.u32 %v18303_v28, 16  ;;  %v2246_v40 = vshll.u32 %v18325_v59, 16  ;;  %v2266_v42 = vshrl.u32 %v18325_v59, 16 }
 0x194   : > { %v2214_v25 = vshll.u32 %v18322_v57, 16  ;;  %v2186_v45 = vshrl.u32 %v18305_v11, 16  ;;  %v2290_v52 = vshrl.u32 %v18333_v3, 16 }
 0x195   : > { %2609 = vmatpush1.bf16.msra.mxu0 %v16647_v37  ;;  %v2080_v37 = vld [vmem:[#allocation2 + $0x120] sm:$0xff] }
 0x196   : > { %2610 = vmatprep.subr.bf16.mxu0 %v16652_v38  ;;  %v2146_v38 = vshll.u32 %v18298_v56, 16  ;;  %v18327_v60 = vpack.c.bf16 %v2080_v37, %v2077_v35  ;;  %v18362_v7 = vrot.slane %v2214_v25, 1  ;;  %v16671_v35 = vld [vmem:[#allocation4 + $0x3f0] ss:$8 sps:$4 sm:$0xff]   ;;  %v2242_v37 = vshrl.u32 %v18319_v55, 16 }
 0x197   : > { %v16685_v25 = vld [vmem:[#allocation4 + $0x434] ss:$8 sps:$4 sm:$0xff]  }
 0x198   : > { %2007 = vmatmul.mubr.bf16.gmra.mrb[16].mxu0 %v1475_v53  ;;  %v18316_v53 = vpack.c.bf16 %v2068_v0, %v2065_v27  ;;  %v2148_v58 = vrot.slane %v2146_v38, 1  ;;  %v2234_v38 = vshrl.u32 %v18322_v57, 16 }
 0x199   : > { %2611 = vmatpush1.bf16.msra.mxu0 %v16650_v46  ;;  %2016 = vmatprep.mubr.bf16.mxu0 %v17771_v44  ;;  %v18312_v46 = vpack.c.bf16 %v2069_v61, %v2066_v16  ;;  %v2270_v16 = vshll.u32 %v18333_v3, 16 }
 0x19a   : > { %2612 = vmatprep.subr.bf16.mxu0 %v16655_v48  ;;  %v2127_v48 = vshrl.u32 %v18290_v8, 16  ;;  %v2093_v8 = vld [vmem:[#allocation2 + $0x188] sm:$0xff]  ;;  %v2190_v34 = vshll.u32 %v18316_v53, 16  ;;  %v2210_v6 = vshrl.u32 %v18316_v53, 16  ;;  %v2236_v53 = vor.u32 %v2234_v38, %v18362_v7  ;;  %v2055_v38 = vld [vmem:[#allocation2 + $0x58] sm:$0xff] }
 0x19b   : > { %v2198_v17 = vshll.u32 %v18312_v46, 16  ;;  %v18380_v43 = vrot.slane %v2270_v16, 1  ;;  %v16686_v16 = vld [vmem:[#allocation4 + $0x440] ss:$8 sps:$4 sm:$0xff]  }
 0x19c   : > { %v2132_v27 = vor.u32 %v2131_v49, %v2127_v48  ;;  %v18354_v0 = vrot.slane %v2190_v34, 1  ;;  %v16674_v49 = vld [vmem:[#allocation4 + $0x400] ss:$8 sps:$4 sm:$0xff]  }
 0x19d   : > { %2613 = vmatpush1.bf16.msra.mxu0 %v16653_v21  ;;  %v2144_v21 = vor.u32 %v2143_v31, %v2139_v15  ;;  %v18348_v15 = vrot.slane %v2198_v17, 1  ;;  %v18357_v31 = vpack.c.bf16 %v2093_v8, %v2090_v18  ;;  %v16704_v17 = vld [vmem:[%s20290_s5 + $0x58] sm:$0xff]   ;;  %v16677_v18 = vld [vmem:[#allocation4 + $0x410] ss:$8 sps:$4 sm:$0xff]  }
 0x19e   : > { %2614 = vmatprep.subr.bf16.mxu0 %v16658_v54  ;;  %v2166_v54 = vshll.u32 %v18305_v11, 16  ;;  %v16682_v8 = vld [vmem:[#allocation4 + $0x424] ss:$8 sps:$4 sm:$0xff]   ;;  %v16689_v11 = vld [vmem:[#allocation4 + $0x450] ss:$8 sps:$4 sm:$0xff]  }
 0x19f   : > { %v2149_v50 = vsel %vm2125_vm2, %v2144_v21, %v2148_v58  ;;  %v16701_v21 = vld [vmem:[%s20290_s5 + $0x8] sm:$0xff]   ;;  %v16705_v34 = vld [vmem:[%s20290_s5 + $0x18] sm:$0xff]   ;;  %v2314_v3 = vshrl.u32 %v18357_v31, 16 }
 0x1a0   : > { %2017 = vmatmul.mubr.bf16.gmra.mrb[20].mxu0 %v1502_v9  ;;  %v16668_v9 = vld [vmem:[#allocation4 + $0x3e0] ss:$8 sps:$4 sm:$0xff]  }
 0x1a1   : > { %2615 = vmatpush1.bf16.msra.mxu0 %v16656_v63  ;;  %2026 = vmatprep.mubr.bf16.mxu0 %v17771_v44  ;;  %v2086_v63 = vld [vmem:[#allocation2 + $0x150] sm:$0xff] }
 0x1a2   : > { %2616 = vmatprep.subr.bf16.mxu0 %v16661_v5  ;;  %v2170_v5 = vshrl.u32 %v18298_v56, 16  ;;  %v2238_v56 = vshll.u32 %v18327_v60, 16  ;;  %v18352_v61 = vpack.c.bf16 %v2086_v63, %v2083_v62  ;;  %v2137_v62 = vsel %vm2125_vm2, %v2132_v27, %v18329_v4  ;;  %v16703_v63 = vld [vmem:[%s20290_s5 + $0x10] sm:$0xff]  }
 0x1a3   : > { %v16691_v27 = vld [vmem:[#allocation4 + $0x454] ss:$8 sps:$4 sm:$0xff]  }
 0x1a4   : > { %v2172_v28 = vor.u32 %v2170_v5, %v2148_v58  ;;  %v18377_v39 = vrot.slane %v2238_v56, 1  ;;  %v2262_v48 = vshll.u32 %v18352_v61, 16  ;;  %v16679_v58 = vld [vmem:[#allocation4 + $0x414] ss:$8 sps:$4 sm:$0xff]  }
 0x1a5   : > { %2617 = vmatpush1.bf16.msra.mxu0 %v16659_v13  ;;  %v18340_v13 = vrot.slane %v2166_v54, 1  ;;  %v16702_v54 = vld [vmem:[%s20290_s5 + $0x50] sm:$0xff]  }
 0x1a6   : > { %2618 = vmatprep.subr.bf16.mxu0 %v16664_v22  ;;  %v2222_v22 = vshll.u32 %v18319_v55, 16  ;;  %v2177_v5 = vsel %vm2125_vm2, %v2172_v28, %v18335_v20  ;;  %v2264_v59 = vrot.slane %v2262_v48, 1  ;;  %v2076_v48 = vld [vmem:[#allocation2 + $0x100] sm:$0xff] }
 0x1a8   : > { %2027 = vmatmul.mubr.bf16.gmra.mrb[24].mxu0 %v1529_v14  ;;  %v18359_v29 = vrot.slane %v2222_v22, 1  ;;  %v18374_v14 = vrot.slane %v2246_v40, 1  ;;  %v16680_v22 = vld [vmem:[#allocation4 + $0x420] ss:$8 sps:$4 sm:$0xff]   ;;  %v2188_v40 = vor.u32 %v2186_v45, %v18340_v13 }
 0x1a9   : > { %2619 = vmatpush1.bf16.msra.mxu0 %v16662_v30  ;;  %2036 = vmatprep.mubr.bf16.mxu0 %v17771_v44  ;;  %v2218_v30 = vshrl.u32 %v18312_v46, 16  ;;  %v2212_v46 = vor.u32 %v2210_v6, %v18354_v0  ;;  %v16692_v45 = vld [vmem:[#allocation4 + $0x460] ss:$8 sps:$4 sm:$0xff]   ;;  %v2241_v6 = vsel %vm2125_vm2, %v2236_v53, %v18377_v39 }
 0x1aa   : > { %2620 = vmatprep.subr.bf16.mxu0 %v16667_v10  ;;  %v16698_v10 = vld [vmem:[%s20290_s5 + $0x40] sm:$0xff]   ;;  %v2193_v28 = vsel %vm2125_vm2, %v2188_v40, %v18354_v0  ;;  %v2268_v55 = vor.u32 %v2266_v42, %v18374_v14  ;;  %v2089_v0 = vld [vmem:[#allocation2 + $0x168] sm:$0xff]  ;;  %v2058_v42 = vld [vmem:[#allocation2 + $0x70] sm:$0xff] }
 0x1ab   : > { %14599 = vmatprep.subr.bf16.mxu1 %v16698_v10  ;;  %v2220_v56 = vor.u32 %v2218_v30, %v18348_v15  ;;  %v16697_v30 = vld [vmem:[#allocation4 + $0x474] ss:$8 sps:$4 sm:$0xff]  }
 0x1ac   : > { %14600 = vmatpush3.bf16.msra.mxu1 %v16699_v33  ;;  %v2217_v33 = vsel %vm2125_vm2, %v2212_v46, %v18362_v7  ;;  %v2049_v7 = vld [vmem:[#allocation2 + $0x28] sm:$0xfe] }
 0x1ad   : > { %2621 = vmatpush1.bf16.msra.mxu0 %v16665_v47  ;;  %v2258_v47 = vshrl.u32 %v18327_v60, 16  ;;  %14601 = vmatprep.subr.bf16.mxu1 %v16700_v23  ;;  %v2225_v10 = vsel %vm2125_vm2, %v2220_v56, %v18359_v29 }
 0x1ae   : > { %2622 = vmatprep.subr.bf16.mxu0 %v16670_v36  ;;  %v2294_v36 = vshll.u32 %v18357_v31, 16 }
 0x1af   : > { %v2260_v57 = vor.u32 %v2258_v47, %v18377_v39  ;;  %v2067_v39 = vld [vmem:[#allocation2 + $0xb8] sm:$0xff]  ;;  %v2070_v47 = vld [vmem:[#allocation2 + $0xd0] sm:$0xff] }
 0x1b0   : > { %2037 = vmatmul.mubr.bf16.gmra.mrb[28].mxu0 %v1556_v19  ;;  %14602 = vmatpush3.bf16.msra.mxu1 %v16701_v21  ;;  %v2196_v19 = vor.u32 %v2194_v51, %v18335_v20  ;;  %v16708_v20 = vld [vmem:[%s20290_s5 + $0x68] sm:$0xff]   ;;  %v16688_v51 = vld [vmem:[#allocation4 + $0x444] ss:$8 sps:$4 sm:$0xff]  }
 0x1b1   : > { %2623 = vmatpush1.bf16.msra.mxu0 %v16668_v9  ;;  %2626 = vmatprep.mubr.bf16.mxu0 %v2149_v50  ;;  %v2164_v9 = vor.u32 %v2162_v24, %v18329_v4  ;;  %v16683_v24 = vld [vmem:[#allocation4 + $0x430] ss:$8 sps:$4 sm:$0xff]  }
 0x1b2   : > { %2624 = vmatprep.subr.bf16.mxu0 %v16673_v12  ;;  %14603 = vmatprep.subr.bf16.mxu1 %v16702_v54  ;;  %v16706_v12 = vld [vmem:[%s20290_s5 + $0x60] sm:$0xff]   ;;  %v2201_v4 = vsel %vm2125_vm2, %v2196_v19, %v18348_v15  ;;  %v2244_v15 = vor.u32 %v2242_v37, %v18359_v29  ;;  %v2061_v54 = vld [vmem:[#allocation2 + $0x88] sm:$0xff]  ;;  %v2103_v19 = vpack.c.bf16 %v2058_v42, %v2055_v38 }
 0x1b3   : > { %v2169_v50 = vsel %vm2125_vm2, %v2164_v9, %v18340_v13  ;;  %v16694_v13 = vld [vmem:[#allocation4 + $0x464] ss:$8 sps:$4 sm:$0xff]   ;;  %v2085_v42 = vld [vmem:[#allocation2 + $0x148] sm:$0xff] }
 0x1b4   : > { %14604 = vmatpush3.bf16.msra.mxu1 %v16703_v63  ;;  %v2249_v23 = vsel %vm2125_vm2, %v2244_v15, %v18374_v14  ;;  %v2092_v29 = vld [vmem:[#allocation2 + $0x180] sm:$0xff]  ;;  %v2296_v63 = vrot.slane %v2294_v36, 1  ;;  %v2109_v36 = vpack.c.bf16 %v2070_v47, %v2067_v39  ;;  %v2097_v39 = vld [vmem:[#allocation2 + $0x1a8] sm:$0x1] }
 0x1b5   : > { %2625 = vmatpush1.bf16.msra.mxu0 %v16671_v35  ;;  %14605 = vmatprep.subr.bf16.mxu1 %v16704_v17  ;;  %v16695_v35 = vld [vmem:[#allocation4 + $0x470] ss:$8 sps:$4 sm:$0xff]   ;;  %v2096_v37 = vld [vmem:[#allocation2 + $0x1a0] sm:$0x1]  ;;  %v2119_v21 = vpack.c.bf16 %v2092_v29, %v2089_v0  ;;  %v2265_v17 = vsel %vm2125_vm2, %v2260_v57, %v2264_v59 }
 0x1b6   : > { %2707 = vmatprep.subr.bf16.mxu0 %v16676_v41  ;;  %v2273_v41 = vsel %vm2125_vm2, %v2268_v55, %v18380_v43  ;;  %v2052_v14 = vld [vmem:[#allocation2 + $0x40] sm:$0xff]  ;;  %v2123_v60 = vpack.c.bf16 %v2096_v37, %v2096_v37  ;;  %v2226_v53 = vshrl.u32 %v2109_v36, 16 }
 0x1b7   : > { %v2286_v9 = vshll.u32 %v2119_v21, 16 }
 0x1b8   : > { %2627 = vmatmul.mubr.bf16.vlgmr.msra.gmra.mrb[0].mxu0 %v2137_v62  ;;  %14606 = vmatpush3.bf16.msra.mxu1 %v16705_v34  ;;  %v2292_v62 = vor.u32 %v2290_v52, %v18380_v43  ;;  %v2100_v34 = vpack.c.bf16 %v2052_v14, %v2049_v7  ;;  %v2318_v43 = vshll.u32 %v2123_v60, 16  ;;  %v2094_v60 = vld [vmem:[#allocation2 + $0x190] sm:$0xff] }
 0x1b9   : > { %2636 = vmatprep.mubr.bf16.mxu0 %v2177_v5  ;;  %2708 = vmatpush1.bf16.msra.mxu0 %v16674_v49  ;;  %v2095_v49 = vld [vmem:[#allocation2 + $0x198] sm:$0x1]  ;;  %v2073_v5 = vld [vmem:[#allocation2 + $0xe8] sm:$0xff] }
 0x1ba   : > { %2709 = vmatprep.subr.bf16.mxu0 %v16679_v58  ;;  %14607 = vmatprep.subr.bf16.mxu1 %v16706_v12  ;;  %v2064_v58 = vld [vmem:[#allocation2 + $0xa0] sm:$0xff]  ;;  %v2297_v12 = vsel %vm2125_vm2, %v2292_v62, %v2296_v63  ;;  %v2320_v40 = vrot.slane %v2318_v43, 1 }
 0x1bb   : > { %v2106_v52 = vpack.c.bf16 %v2064_v58, %v2061_v54 }
 0x1bc   : > { %14608 = vmatpush3.bf16.msra.mxu1 %v16707_v26 }
 0x1bd   : > { %2710 = vmatpush1.bf16.msra.mxu0 %v16677_v18  ;;  %14609 = vmatprep.subr.bf16.mxu1 %v16708_v20  ;;  %v2122_v18 = vpack.c.bf16 %v2095_v49, %v2095_v49  ;;  %v2288_v20 = vrot.slane %v2286_v9, 1  ;;  %v2182_v56 = vshll.u32 %v2106_v52, 16 }
 0x1be   : > { %2711 = vmatprep.subr.bf16.mxu0 %v16682_v8  ;;  %v2282_v8 = vshrl.u32 %v18352_v61, 16  ;;  %v2158_v61 = vshll.u32 %v2103_v19, 16 }
 0x1bf   : > { %v2310_v26 = vshll.u32 %v2122_v18, 16 }
 0x1c0   : > { %2637 = vmatmul.mubr.bf16.gmra.mrb[4].mxu0 %v2169_v50  ;;  %v2082_v50 = vld [vmem:[#allocation2 + $0x130] sm:$0xff]  ;;  %v2160_v15 = vrot.slane %v2158_v61, 1 }
 0x1c1   : > { %2646 = vmatprep.mubr.bf16.mxu0 %v2201_v4  ;;  %2712 = vmatpush1.bf16.msra.mxu0 %v16680_v22  ;;  %v2112_v22 = vpack.c.bf16 %v2076_v48, %v2073_v5  ;;  %v2284_v4 = vor.u32 %v2282_v8, %v2264_v59  ;;  %v2312_v31 = vrot.slane %v2310_v26, 1  ;;  %v2124_v8 = vpack.c.bf16 %v2097_v39, %v2097_v39  ;;  %v16711_v61 = vld [vmem:[%s20290_s5 + $0x30] sm:$0xff]  }
 0x1c2   : > { %2713 = vmatprep.subr.bf16.mxu0 %v16685_v25  ;;  %v2079_v25 = vld [vmem:[#allocation2 + $0x118] sm:$0xff] }
 0x1c3   : > { %v2250_v0 = vshrl.u32 %v2112_v22, 16 }
 0x1c5   : > { %2714 = vmatpush1.bf16.msra.mxu0 %v16683_v24  ;;  %v2153_v24 = vshll.u32 %v2100_v34, 16 }
 0x1c6   : > { %2715 = vmatprep.subr.bf16.mxu0 %v16688_v51  ;;  %v2316_v51 = vor.u32 %v2314_v3, %v2296_v63  ;;  %v2091_v63 = vld [vmem:[#allocation2 + $0x178] sm:$0xff] }
 0x1c7   : > { %v2155_v46 = vrot.slane %v2153_v24, 1  ;;  %v2121_v18 = vpack.c.bf16 %v2094_v60, %v2091_v63  ;;  %v16710_v24 = vld [vmem:[%s20290_s5 + $0x70] sm:$0xff]  }
 0x1c8   : > { %2647 = vmatmul.mubr.bf16.gmra.mrb[8].mxu0 %v2193_v28  ;;  %v2306_v28 = vshrl.u32 %v2119_v21, 16  ;;  %v2088_v21 = vld [vmem:[#allocation2 + $0x160] sm:$0xff]  ;;  %v16718_v63 = vld [vmem:[%s20290_s5 + $0x150] sm:$0xff]  }
 0x1c9   : > { %2656 = vmatprep.mubr.bf16.mxu0 %v2225_v10  ;;  %2716 = vmatpush1.bf16.msra.mxu0 %v16686_v16  ;;  %v2206_v16 = vshll.u32 %v2109_v36, 16  ;;  %v2115_v10 = vpack.c.bf16 %v2082_v50, %v2079_v25  ;;  %v2118_v47 = vpack.c.bf16 %v2088_v21, %v2085_v42  ;;  %v2322_v36 = vshrl.u32 %v2121_v18, 16 }
 0x1ca   : > { %2717 = vmatprep.subr.bf16.mxu0 %v16691_v27  ;;  %v2230_v27 = vshll.u32 %v2112_v22, 16 }
 0x1cb   : > { %v2254_v29 = vshll.u32 %v2115_v10, 16  ;;  %v2274_v48 = vshrl.u32 %v2115_v10, 16  ;;  %v2298_v3 = vshrl.u32 %v2118_v47, 16 }
 0x1cc   : > { %v2232_v55 = vrot.slane %v2230_v27, 1 }
 0x1cd   : > { %2718 = vmatpush1.bf16.msra.mxu0 %v16689_v11  ;;  %v2289_v11 = vsel %vm2125_vm2, %v2284_v4, %v2288_v20  ;;  %v2256_v62 = vrot.slane %v2254_v29, 1 }
 0x1ce   : > { %2719 = vmatprep.subr.bf16.mxu0 %v16694_v13  ;;  %v2151_v13 = vshrl.u32 %v2100_v34, 16  ;;  %v2252_v58 = vor.u32 %v2250_v0, %v2232_v55 }
 0x1cf   : > { %v2276_v9 = vor.u32 %v2274_v48, %v2256_v62 }
 0x1d0   : > { %2657 = vmatmul.mubr.bf16.gmra.mrb[12].mxu0 %v2217_v33  ;;  %v2184_v33 = vrot.slane %v2182_v56, 1  ;;  %v2257_v5 = vsel %vm2125_vm2, %v2252_v58, %v2256_v62  ;;  %v16714_v56 = vld [vmem:[%s20290_s5 + $0x140] sm:$0xff]  }
 0x1d1   : > { %2666 = vmatprep.mubr.bf16.mxu0 %v2249_v23  ;;  %2720 = vmatpush1.bf16.msra.mxu0 %v16692_v45  ;;  %v2321_v45 = vsel %vm2125_vm2, %v2316_v51, %v2320_v40  ;;  %v2202_v23 = vshrl.u32 %v2106_v52, 16  ;;  %v16712_v51 = vld [vmem:[%s20290_s5 + $0x78] sm:$0xff]  }
 0x1d2   : > { %2721 = vmatprep.subr.bf16.mxu0 %v16697_v30  ;;  %v2178_v30 = vshrl.u32 %v2103_v19, 16  ;;  %v2302_v19 = vshll.u32 %v2121_v18, 16  ;;  %v16713_v40 = vld [vmem:[%s20290_s5 + $0x38] sm:$0xff]  }
 0x1d3   : > { %v2204_v7 = vor.u32 %v2202_v23, %v2184_v33 }
 0x1d4   : > { %v2180_v57 = vor.u32 %v2178_v30, %v2160_v15  ;;  %v2304_v52 = vrot.slane %v2302_v19, 1 }
 0x1d5   : > { %2722 = vmatpush1.bf16.msra.mxu0 %v16695_v35  ;;  %v2208_v35 = vrot.slane %v2206_v16, 1  ;;  %v2855_v16 = vshrl.u32 %v687_v1, 7 }
 0x1d6   : > { %v2185_v59 = vsel %vm2125_vm2, %v2180_v57, %v2184_v33  ;;  %v2324_v26 = vor.u32 %v2322_v36, %v2304_v52 }
 0x1d7   : > { %v2209_v14 = vsel %vm2125_vm2, %v2204_v7, %v2208_v35  ;;  %v2228_v38 = vor.u32 %v2226_v53, %v2208_v35  ;;  %v18504_v27 = vsub.s32 0, %v2855_v16 }
 0x1d8   : > { %2667 = vmatmul.mubr.bf16.gmra.mrb[16].mxu0 %v2241_v6  ;;  %v2308_v6 = vor.u32 %v2306_v28, %v2288_v20  ;;  %v16709_v20 = vld [vmem:[%s20290_s5 + $0x28] sm:$0xff]   ;;  %v2852_v28 = vld [vmem:[%s20291_s6] sm:$0x3] }
 0x1d9   : > { %2676 = vmatprep.mubr.bf16.mxu0 %v2273_v41  ;;  %v2156_v41 = vor.u32 %v2155_v46, %v2151_v13  ;;  %v2233_v54 = vsel %vm2125_vm2, %v2228_v38, %v2232_v55  ;;  %14610 = vmatpush3.bf16.msra.mxu1 %v16709_v20  ;;  %v18512_v10 = vrot.slane %v2852_v28, %v18504_v27 }
 0x1da   : > { %v2313_v37 = vsel %vm2125_vm2, %v2308_v6, %v2312_v31  ;;  %14611 = vmatprep.subr.bf16.mxu1 %v16710_v24  ;;  %v18509_v31 = vsub.s32 1, %v2855_v16 }
 0x1db   : > { %v2161_v49 = vsel %vm2125_vm2, %v2156_v41, %v2160_v15  ;;  %v16715_v41 = vld [vmem:[%s20290_s5 + $0x100] sm:$0xff]  }
 0x1dd   : > { %14612 = vmatpush3.bf16.msra.mxu1 %v16711_v61  ;;  %v16723_v61 = vld [vmem:[%s20290_s5 + $0x120] sm:$0xff]  }
 0x1de   : > { %14613 = vmatprep.subr.bf16.mxu1 %v16712_v51 }
 0x1e0   : > { %2677 = vmatmul.mubr.bf16.gmra.mrb[20].mxu0 %v2265_v17  ;;  %v2278_v17 = vshll.u32 %v2118_v47, 16 }
 0x1e1   : > { %2686 = vmatprep.mubr.bf16.mxu0 %v2297_v12  ;;  %v2326_v12 = vshll.u32 %v2124_v8, 16  ;;  %14614 = vmatpush3.bf16.msra.mxu1 %v16713_v40 }
 0x1e2   : > { %v2280_v34 = vrot.slane %v2278_v17, 1  ;;  %14663 = vmatprep.subr.bf16.mxu1 %v16714_v56  ;;  %v16719_v17 = vld [vmem:[%s20290_s5 + $0x110] sm:$0xff]   ;;  %v16724_v56 = vld [vmem:[%s20290_s5 + $0x168] sm:$0xff]  }
 0x1e3   : > { %v2328_v22 = vrot.slane %v2326_v12, 1 }
 0x1e4   : > { %v2281_v43 = vsel %vm2125_vm2, %v2276_v9, %v2280_v34  ;;  %v2300_v25 = vor.u32 %v2298_v3, %v2280_v34  ;;  %v16720_v9 = vld [vmem:[%s20290_s5 + $0x158] sm:$0xff]  }
 0x1e5   : > { %v2329_v4 = vsel %vm2125_vm2, %v2324_v26, %v2328_v22 }
 0x1e6   : > { %v2305_v50 = vsel %vm2125_vm2, %v2300_v25, %v2304_v52  ;;  %v16721_v52 = vld [vmem:[%s20290_s5 + $0x118] sm:$0xff]   ;;  %v16722_v25 = vld [vmem:[%s20290_s5 + $0x160] sm:$0xff]  }
 0x1e8   : > { %2687 = vmatmul.mubr.bf16.gmra.mrb[24].mxu0 %v2289_v11  ;;  %v18515_v11 = vrot.slane %v2852_v28, %v18509_v31 }
 0x1e9   : > { %2696 = vmatprep.mubr.bf16.mxu0 %v2321_v45 }
 0x1f0   : > { %2697 = vmatmul.mubr.bf16.gmra.mrb[28].mxu0 %v2313_v37 }
 0x1f1   : > { %2739 = vmatprep.mubr.bf16.mxu0 %v17771_v44 }
 0x1f8   : > { %2740 = vmatmul.mubr.bf16.vlgmr.msra.gmra.mrb[0].mxu0 %v2161_v49 }
 0x1f9   : > { %2749 = vmatprep.mubr.bf16.mxu0 %v17771_v44 }
 0x200   : > { %2750 = vmatmul.mubr.bf16.gmra.mrb[4].mxu0 %v2185_v59  ;;  %v16716_v59 = vld [vmem:[%s20290_s5 + $0x148] sm:$0xff]  }
 0x201   : > { %2759 = vmatprep.mubr.bf16.mxu0 %v17771_v44 }
 0x208   : > { %2760 = vmatmul.mubr.bf16.gmra.mrb[8].mxu0 %v2209_v14 }
 0x209   : > { %2769 = vmatprep.mubr.bf16.mxu0 %v17771_v44 }
 0x210   : > { %2770 = vmatmul.mubr.bf16.gmra.mrb[12].mxu0 %v2233_v54  ;;  %v16717_v54 = vld [vmem:[%s20290_s5 + $0x108] sm:$0xff]  }
 0x211   : > { %2779 = vmatprep.mubr.bf16.mxu0 %v17771_v44 }
 0x218   : > { %2780 = vmatmul.mubr.bf16.gmra.mrb[16].mxu0 %v2257_v5 }
 0x219   : > { %2789 = vmatprep.mubr.bf16.mxu0 %v17771_v44 }
 0x220   : > { %2790 = vmatmul.mubr.bf16.gmra.mrb[20].mxu0 %v2281_v43 }
 0x221   : > { %2799 = vmatprep.mubr.bf16.mxu0 %v17771_v44 }
 0x228   : > { %2800 = vmatmul.mubr.bf16.gmra.mrb[24].mxu0 %v2305_v50 }
 0x229   : > { %2809 = vmatprep.mubr.bf16.mxu0 %v17771_v44 }
 0x230   : > { %2810 = vmatmul.mubr.bf16.gmra.mrb[28].mxu0 %v2329_v4 }
 0x2cb   : > { %v2741_v13 = vpop.f32.mrb[0].mxu0 }
 0x2cc   : > { %v2864_v46 = vadd.f32 %v18512_v10, %v2741_v13  ;;  %v2743_v15 = vpop.f32.mrb[1].mxu0 }
 0x2cd   : > { %v2865_v1 = vadd.f32 %v18515_v11, %v2743_v15  ;;  %v2745_v45 = vpop.f32.mrb[2].mxu0 }
 0x2ce   : > { %v2866_v30 = vadd.f32 %v18512_v10, %v2745_v45  ;;  %v2747_v33 = vpop.f32.mrb[3].mxu0  ;;  %v2896_v35 = vmax.f32 %v2864_v46, 0.0 }
 0x2cf   : > { %v2867_v23 = vadd.f32 %v18515_v11, %v2747_v33  ;;  %v2897_v55 = vmax.f32 %v2865_v1, 0.0  ;;  %v16725_v1 = vld [vmem:[%s20290_s5 + $0x128] sm:$0xff]   ;;  %v16726_v33 = vld [vmem:[%s20290_s5 + $0x170] sm:$0xff]  }
 0x2d0   : > { %v2898_v53 = vmax.f32 %v2866_v30, 0.0 }
 0x2d1   : > { %v2899_v0 = vmax.f32 %v2867_v23, 0.0 }
 0x2d2   : > { %v18521_v29 = vpack.c.bf16 %v2898_v53, %v2896_v35 }
 0x2d3   : > { %v18523_v6 = vpack.c.bf16 %v2899_v0, %v2897_v55  ;;  %v2751_v37 = vpop.f32.mrb[4].mxu0 }
 0x2d4   : > { %v2868_v49 = vadd.f32 %v18512_v10, %v2751_v37  ;;  %v2753_v57 = vpop.f32.mrb[5].mxu0  ;;  %v16727_v37 = vld [vmem:[%s20290_s5 + $0x130] sm:$0xff]  }
 0x2d5   : > { %v2869_v7 = vadd.f32 %v18515_v11, %v2753_v57  ;;  %v2755_v14 = vpop.f32.mrb[6].mxu0  ;;  %3104 = vmatprep.mubr.bf16.mxu1 %v18523_v6  ;;  %v16728_v57 = vld [vmem:[%s20290_s5 + $0x178] sm:$0xff]  }
 0x2d6   : > { %v2870_v38 = vadd.f32 %v18512_v10, %v2755_v14  ;;  %v2757_v42 = vpop.f32.mrb[7].mxu0  ;;  %3105 = vmatmul.mubr.bf16.vlgmr.msra.gmra.mrb[0].mxu1 %v18521_v29  ;;  %v2900_v58 = vmax.f32 %v2868_v49, 0.0 }
 0x2d7   : > { %v2871_v21 = vadd.f32 %v18515_v11, %v2757_v42  ;;  %14664 = vmatpush3.bf16.msra.mxu1 %v16715_v41  ;;  %v2901_v60 = vmax.f32 %v2869_v7, 0.0 }
 0x2d8   : > { %v2902_v62 = vmax.f32 %v2870_v38, 0.0  ;;  %14665 = vmatprep.subr.bf16.mxu1 %v16716_v59 }
 0x2d9   : > { %v2903_v39 = vmax.f32 %v2871_v21, 0.0  ;;  %v16729_v21 = vld [vmem:[%s20290_s5 + $0x138] sm:$0xff]  }
 0x2da   : > { %v18543_v47 = vpack.c.bf16 %v2902_v62, %v2900_v58  ;;  %v16730_v62 = vld [vmem:[#allocation6 + $0x40] sm:$0xff]  }
 0x2db   : > { %v18545_v5 = vpack.c.bf16 %v2903_v39, %v2901_v60  ;;  %v2761_v48 = vpop.f32.mrb[8].mxu0  ;;  %14666 = vmatpush3.bf16.msra.mxu1 %v16717_v54 }
 0x2dc   : > { %v2872_v18 = vadd.f32 %v18512_v10, %v2761_v48  ;;  %v2763_v8 = vpop.f32.mrb[9].mxu0  ;;  %14667 = vmatprep.subr.bf16.mxu1 %v16718_v63 }
 0x2dd   : > { %v2873_v34 = vadd.f32 %v18515_v11, %v2763_v8  ;;  %v2765_v19 = vpop.f32.mrb[10].mxu0  ;;  %3112 = vmatprep.mubr.bf16.mxu1 %v18545_v5 }
 0x2de   : > { %v2874_v12 = vadd.f32 %v18512_v10, %v2765_v19  ;;  %v2767_v3 = vpop.f32.mrb[11].mxu0  ;;  %3113 = vmatmul.mubr.bf16.gmra.mrb[4].mxu1 %v18543_v47  ;;  %v2904_v36 = vmax.f32 %v2872_v18, 0.0 }
 0x2df   : > { %v2875_v43 = vadd.f32 %v18515_v11, %v2767_v3  ;;  %14668 = vmatpush3.bf16.msra.mxu1 %v16719_v17  ;;  %v2905_v50 = vmax.f32 %v2873_v34, 0.0 }
 0x2e0   : > { %v2906_v22 = vmax.f32 %v2874_v12, 0.0  ;;  %14669 = vmatprep.subr.bf16.mxu1 %v16720_v9 }
 0x2e1   : > { %v2907_v26 = vmax.f32 %v2875_v43, 0.0 }
 0x2e2   : > { %v18565_v4 = vpack.c.bf16 %v2906_v22, %v2904_v36 }
 0x2e3   : > { %v18567_v20 = vpack.c.bf16 %v2907_v26, %v2905_v50  ;;  %v2771_v24 = vpop.f32.mrb[12].mxu0  ;;  %14670 = vmatpush3.bf16.msra.mxu1 %v16721_v52 }
 0x2e4   : > { %v2876_v51 = vadd.f32 %v18512_v10, %v2771_v24  ;;  %v2773_v40 = vpop.f32.mrb[13].mxu0  ;;  %14671 = vmatprep.subr.bf16.mxu1 %v16722_v25 }
 0x2e5   : > { %v2877_v16 = vadd.f32 %v18515_v11, %v2773_v40  ;;  %v2775_v28 = vpop.f32.mrb[14].mxu0  ;;  %3120 = vmatprep.mubr.bf16.mxu1 %v18567_v20 }
 0x2e6   : > { %v2878_v13 = vadd.f32 %v18512_v10, %v2775_v28  ;;  %v2777_v46 = vpop.f32.mrb[15].mxu0  ;;  %3121 = vmatmul.mubr.bf16.gmra.mrb[8].mxu1 %v18565_v4  ;;  %v2908_v45 = vmax.f32 %v2876_v51, 0.0 }
 0x2e7   : > { %v2879_v15 = vadd.f32 %v18515_v11, %v2777_v46  ;;  %14672 = vmatpush3.bf16.msra.mxu1 %v16723_v61  ;;  %v2909_v23 = vmax.f32 %v2877_v16, 0.0 }
 0x2e8   : > { %v2910_v30 = vmax.f32 %v2878_v13, 0.0  ;;  %14673 = vmatprep.subr.bf16.mxu1 %v16724_v56 }
 0x2e9   : > { %v2911_v35 = vmax.f32 %v2879_v15, 0.0 }
 0x2ea   : > { %v18587_v53 = vpack.c.bf16 %v2910_v30, %v2908_v45 }
 0x2eb   : > { %v18589_v55 = vpack.c.bf16 %v2911_v35, %v2909_v23  ;;  %v2781_v0 = vpop.f32.mrb[16].mxu0  ;;  %14674 = vmatpush3.bf16.msra.mxu1 %v16725_v1 }
 0x2ec   : > { %v2880_v41 = vadd.f32 %v18512_v10, %v2781_v0  ;;  %v2783_v49 = vpop.f32.mrb[17].mxu0  ;;  %14675 = vmatprep.subr.bf16.mxu1 %v16726_v33 }
 0x2ed   : > { %v2881_v59 = vadd.f32 %v18515_v11, %v2783_v49  ;;  %v2785_v7 = vpop.f32.mrb[18].mxu0  ;;  %3128 = vmatprep.mubr.bf16.mxu1 %v18589_v55 }
 0x2ee   : > { %v2882_v14 = vadd.f32 %v18512_v10, %v2785_v7  ;;  %v2787_v38 = vpop.f32.mrb[19].mxu0  ;;  %3129 = vmatmul.mubr.bf16.gmra.mrb[12].mxu1 %v18587_v53  ;;  %v2912_v54 = vmax.f32 %v2880_v41, 0.0 }
 0x2ef   : > { %v2883_v42 = vadd.f32 %v18515_v11, %v2787_v38  ;;  %14676 = vmatpush3.bf16.msra.mxu1 %v16727_v37  ;;  %v2913_v63 = vmax.f32 %v2881_v59, 0.0 }
 0x2f0   : > { %v2914_v58 = vmax.f32 %v2882_v14, 0.0  ;;  %14677 = vmatprep.subr.bf16.mxu1 %v16728_v57 }
 0x2f1   : > { %v2915_v60 = vmax.f32 %v2883_v42, 0.0 }
 0x2f2   : > { %v18606_v39 = vpack.c.bf16 %v2914_v58, %v2912_v54  ;;  %v16732_v54 = vld [vmem:[#allocation6 + $0x48] sm:$0xff]   ;;  %v16734_v58 = vld [vmem:[#allocation6 + $0x50] sm:$0xff]  }
 0x2f3   : > { %v18608_v48 = vpack.c.bf16 %v2915_v60, %v2913_v63  ;;  %v2791_v17 = vpop.f32.mrb[20].mxu0  ;;  %14678 = vmatpush3.bf16.msra.mxu1 %v16729_v21  ;;  %v16736_v63 = vld [vmem:[#allocation6 + $0x58] sm:$0xff]  }
 0x2f4   : > { %v2884_v18 = vadd.f32 %v18512_v10, %v2791_v17  ;;  %v2793_v8 = vpop.f32.mrb[21].mxu0  ;;  %14727 = vmatprep.subr.bf16.mxu1 %v16730_v62  ;;  %v16735_v62 = vld [vmem:[#allocation6 + $0x10] sm:$0xff]   ;;  %v16737_v60 = vld [vmem:[#allocation6 + $0x18] sm:$0xff]   ;;  %v16738_v17 = vld [vmem:[#allocation6 + $0x60] sm:$0xff]  }
 0x2f5   : > { %v2885_v9 = vadd.f32 %v18515_v11, %v2793_v8  ;;  %v2795_v34 = vpop.f32.mrb[22].mxu0  ;;  %3136 = vmatprep.mubr.bf16.mxu1 %v18608_v48  ;;  %v16740_v8 = vld [vmem:[#allocation6 + $0x68] sm:$0xff]  }
 0x2f6   : > { %v2886_v19 = vadd.f32 %v18512_v10, %v2795_v34  ;;  %v2797_v12 = vpop.f32.mrb[23].mxu0  ;;  %3137 = vmatmul.mubr.bf16.gmra.mrb[16].mxu1 %v18606_v39  ;;  %v2916_v43 = vmax.f32 %v2884_v18, 0.0  ;;  %v16739_v18 = vld [vmem:[#allocation6 + $0x20] sm:$0xff]   ;;  %v16742_v34 = vld [vmem:[#allocation6 + $0x70] sm:$0xff]  }
 0x2f7   : > { %v2887_v3 = vadd.f32 %v18515_v11, %v2797_v12  ;;  %v2917_v36 = vmax.f32 %v2885_v9, 0.0  ;;  %v16741_v9 = vld [vmem:[#allocation6 + $0x28] sm:$0xff]   ;;  %v16744_v12 = vld [vmem:[#allocation6 + $0x78] sm:$0xff]  }
 0x2f8   : > { %v2918_v52 = vmax.f32 %v2886_v19, 0.0  ;;  %v16743_v19 = vld [vmem:[#allocation6 + $0x30] sm:$0xff]  }
 0x2f9   : > { %v2919_v22 = vmax.f32 %v2887_v3, 0.0  ;;  %v16745_v3 = vld [vmem:[#allocation6 + $0x38] sm:$0xff]  }
 0x2fa   : > { %v18616_v25 = vpack.c.bf16 %v2918_v52, %v2916_v43  ;;  %v16746_v43 = vld [vmem:[#allocation6 + $0x80] sm:$0xff]   ;;  %v17583_v52 = vld [vmem:[#allocation2 + $0x20] sm:$0xff] }
 0x2fb   : > { %v18618_v50 = vpack.c.bf16 %v2919_v22, %v2917_v36  ;;  %v2801_v26 = vpop.f32.mrb[24].mxu0  ;;  %v17584_v36 = vld [vmem:[#allocation2 + $0x38] sm:$0xff] }
 0x2fc   : > { %v2888_v24 = vadd.f32 %v18512_v10, %v2801_v26  ;;  %v2803_v61 = vpop.f32.mrb[25].mxu0  ;;  %v3429_v22 = vpack.c.bf16 %v17584_v36, %v17583_v52  ;;  %v17585_v26 = vld [vmem:[#allocation2 + $0x18] sm:$0xff]  ;;  %v17606_v52 = vld [vmem:[#allocation2 + $0x140] sm:$0xff] }
 0x2fd   : > { %v2889_v51 = vadd.f32 %v18515_v11, %v2803_v61  ;;  %v2805_v40 = vpop.f32.mrb[26].mxu0  ;;  %3144 = vmatprep.mubr.bf16.mxu1 %v18618_v50  ;;  %v17607_v36 = vld [vmem:[#allocation2 + $0x158] sm:$0xff] }
 0x2fe   : > { %v2890_v56 = vadd.f32 %v18512_v10, %v2805_v40  ;;  %v2807_v16 = vpop.f32.mrb[27].mxu0  ;;  %3145 = vmatmul.mubr.bf16.gmra.mrb[20].mxu1 %v18616_v25  ;;  %v2920_v13 = vmax.f32 %v2888_v24, 0.0  ;;  %v17586_v24 = vld [vmem:[#allocation2 + $0x30] sm:$0xff]  ;;  %v17588_v40 = vld [vmem:[#allocation2 + $0x68] sm:$0xff] }
 0x2ff   : > { %v2891_v28 = vadd.f32 %v18515_v11, %v2807_v16  ;;  %v2921_v15 = vmax.f32 %v2889_v51, 0.0  ;;  %v3428_v61 = vpack.c.bf16 %v17586_v24, %v17585_v26  ;;  %v17587_v51 = vld [vmem:[#allocation2 + $0x50] sm:$0xff]  ;;  %v16747_v16 = vld [vmem:[#allocation6 + $0x88] sm:$0xff]  }
 0x300   : > { %v2922_v46 = vmax.f32 %v2890_v56, 0.0  ;;  %v3432_v56 = vpack.c.bf16 %v17588_v40, %v17587_v51  ;;  %v17608_v26 = vld [vmem:[#allocation2 + $0x138] sm:$0xff]  ;;  %v17609_v24 = vld [vmem:[#allocation2 + $0x150] sm:$0xff] }
 0x301   : > { %v2923_v1 = vmax.f32 %v2891_v28, 0.0  ;;  %v16748_v28 = vld [vmem:[#allocation6 + $0x90] sm:$0xff]   ;;  %v17610_v51 = vld [vmem:[#allocation2 + $0x170] sm:$0xff] }
 0x302   : > { %v18626_v45 = vpack.c.bf16 %v2922_v46, %v2920_v13  ;;  %v17589_v13 = vld [vmem:[#allocation2 + $0x48] sm:$0xff]  ;;  %v17590_v46 = vld [vmem:[#allocation2 + $0x60] sm:$0xff] }
 0x303   : > { %v18628_v30 = vpack.c.bf16 %v2923_v1, %v2921_v15  ;;  %v2811_v33 = vpop.f32.mrb[28].mxu0  ;;  %v3431_v15 = vpack.c.bf16 %v17590_v46, %v17589_v13  ;;  %v17591_v1 = vld [vmem:[#allocation2 + $0x80] sm:$0xff]  ;;  %v17614_v13 = vld [vmem:[#allocation2 + $0x28] sm:$0xff] }
 0x304   : > { %v2892_v23 = vadd.f32 %v18512_v10, %v2811_v33  ;;  %v2813_v35 = vpop.f32.mrb[29].mxu0  ;;  %v17592_v33 = vld [vmem:[#allocation2 + $0x98] sm:$0xff]  ;;  %v17615_v46 = vld [vmem:[#allocation2 + $0x40] sm:$0xff] }
 0x305   : > { %v2893_v0 = vadd.f32 %v18515_v11, %v2813_v35  ;;  %v2815_v37 = vpop.f32.mrb[30].mxu0  ;;  %3152 = vmatprep.mubr.bf16.mxu1 %v18628_v30  ;;  %v16749_v35 = vld [vmem:[#allocation6 + $0x98] sm:$0xff]  }
 0x306   : > { %v2894_v41 = vadd.f32 %v18512_v10, %v2815_v37  ;;  %v2817_v49 = vpop.f32.mrb[31].mxu0  ;;  %3153 = vmatmul.mubr.bf16.gmra.mrb[24].mxu1 %v18626_v45  ;;  %v2924_v59 = vmax.f32 %v2892_v23, 0.0  ;;  %v16731_v10 = vld [vmem:[#allocation6] sm:$0xff]   ;;  %v3435_v23 = vpack.c.bf16 %v17592_v33, %v17591_v1 }
 0x307   : > { %v2895_v57 = vadd.f32 %v18515_v11, %v2817_v49  ;;  %v2925_v14 = vmax.f32 %v2893_v0, 0.0  ;;  %v16733_v11 = vld [vmem:[#allocation6 + $0x8] sm:$0xff]   ;;  %v16750_v0 = vld [vmem:[#allocation6 + $0xa0] sm:$0xff]  }
 0x308   : > { %v2926_v7 = vmax.f32 %v2894_v41, 0.0  ;;  %v17593_v37 = vld [vmem:[#allocation2 + $0x78] sm:$0xff]  ;;  %v17594_v41 = vld [vmem:[#allocation2 + $0x90] sm:$0xff] }
 0x309   : > { %v2927_v38 = vmax.f32 %v2895_v57, 0.0  ;;  %v3434_v49 = vpack.c.bf16 %v17594_v41, %v17593_v37  ;;  %v17595_v57 = vld [vmem:[#allocation2 + $0xb0] sm:$0xff]  ;;  %v17616_v1 = vld [vmem:[#allocation2 + $0x58] sm:$0xff]  ;;  %v17619_v37 = vld [vmem:[#allocation2 + $0xa0] sm:$0xff] }
 0x30a   : > { %v18636_v42 = vpack.c.bf16 %v2926_v7, %v2924_v59  ;;  %v17596_v59 = vld [vmem:[#allocation2 + $0xc8] sm:$0xff]  ;;  %v17617_v33 = vld [vmem:[#allocation2 + $0x70] sm:$0xff] }
 0x30b   : > { %v18638_v21 = vpack.c.bf16 %v2927_v38, %v2925_v14  ;;  %v3438_v7 = vpack.c.bf16 %v17596_v59, %v17595_v57  ;;  %v16751_v14 = vld [vmem:[#allocation6 + $0xa8] sm:$0xff]   ;;  %v16752_v38 = vld [vmem:[#allocation6 + $0xb0] sm:$0xff]   ;;  %v16758_v59 = vld [vmem:[%s20290_s5 + $0xd0] sm:$0xff]  }
 0x30c   : > { %v16757_v57 = vld [vmem:[%s20290_s5 + $0x88] sm:$0xff]  }
 0x30d   : > { %3160 = vmatprep.mubr.bf16.mxu1 %v18638_v21 }
 0x30e   : > { %3161 = vmatmul.mubr.bf16.gmra.mrb[28].mxu1 %v18636_v42 }
 0x30f   : > { %3363 = vmatprep.mubr.bf16.mxu1 %v18523_v6 }
 0x316   : > { %3364 = vmatmul.mubr.bf16.vlgmr.msra.gmra.mrb[32].mxu1 %v18521_v29 }
 0x317   : > { %3371 = vmatprep.mubr.bf16.mxu1 %v18545_v5  ;;  %14728 = vmatpush3.bf16.msra.mxu1 %v16731_v10  ;;  %v17597_v10 = vld [vmem:[#allocation2 + $0xa8] sm:$0xff] }
 0x318   : > { %14729 = vmatprep.subr.bf16.mxu1 %v16732_v54  ;;  %v17598_v54 = vld [vmem:[#allocation2 + $0xc0] sm:$0xff] }
 0x31b   : > { %14730 = vmatpush3.bf16.msra.mxu1 %v16733_v11  ;;  %v3437_v11 = vpack.c.bf16 %v17598_v54, %v17597_v10  ;;  %v16759_v10 = vld [vmem:[%s20290_s5 + $0x90] sm:$0xff]   ;;  %v17622_v54 = vld [vmem:[#allocation2 + $0xe8] sm:$0xff] }
 0x31c   : > { %14731 = vmatprep.subr.bf16.mxu1 %v16734_v58  ;;  %v17599_v58 = vld [vmem:[#allocation2 + $0xe0] sm:$0xff] }
 0x31e   : > { %3372 = vmatmul.mubr.bf16.gmra.mrb[36].mxu1 %v18543_v47 }
 0x31f   : > { %3379 = vmatprep.mubr.bf16.mxu1 %v18567_v20  ;;  %14732 = vmatpush3.bf16.msra.mxu1 %v16735_v62  ;;  %v17600_v62 = vld [vmem:[#allocation2 + $0xf8] sm:$0xff] }
 0x320   : > { %14733 = vmatprep.subr.bf16.mxu1 %v16736_v63  ;;  %v3441_v63 = vpack.c.bf16 %v17600_v62, %v17599_v58  ;;  %v16760_v62 = vld [vmem:[%s20290_s5 + $0xd8] sm:$0xff]  }
 0x323   : > { %14734 = vmatpush3.bf16.msra.mxu1 %v16737_v60  ;;  %v16753_v60 = vld [vmem:[#allocation6 + $0xb8] sm:$0xff]  }
 0x324   : > { %14735 = vmatprep.subr.bf16.mxu1 %v16738_v17  ;;  %v16754_v17 = vld [vmem:[%s20290_s5 + $0xc0] sm:$0xff]  }
 0x326   : > { %3380 = vmatmul.mubr.bf16.gmra.mrb[40].mxu1 %v18565_v4 }
 0x327   : > { %3387 = vmatprep.mubr.bf16.mxu1 %v18589_v55  ;;  %14736 = vmatpush3.bf16.msra.mxu1 %v16739_v18  ;;  %v17601_v18 = vld [vmem:[#allocation2 + $0xf0] sm:$0xff] }
 0x328   : > { %14737 = vmatprep.subr.bf16.mxu1 %v16740_v8  ;;  %v3440_v8 = vpack.c.bf16 %v17601_v18, %v18247_v32  ;;  %v17611_v32 = vld [vmem:[#allocation2 + $0x188] sm:$0xff]  ;;  %v17625_v18 = vld [vmem:[#allocation2 + $0x130] sm:$0xff] }
 0x329   : > { %v3450_v40 = vpack.c.bf16 %v17611_v32, %v17610_v51 }
 0x32b   : > { %14738 = vmatpush3.bf16.msra.mxu1 %v16741_v9  ;;  %v17602_v9 = vld [vmem:[#allocation2 + $0x110] sm:$0xff] }
 0x32c   : > { %14739 = vmatprep.subr.bf16.mxu1 %v16742_v34  ;;  %v17603_v34 = vld [vmem:[#allocation2 + $0x128] sm:$0xff] }
 0x32e   : > { %3388 = vmatmul.mubr.bf16.gmra.mrb[44].mxu1 %v18587_v53 }
 0x32f   : > { %3395 = vmatprep.mubr.bf16.mxu1 %v18608_v48  ;;  %14740 = vmatpush3.bf16.msra.mxu1 %v16743_v19  ;;  %v3444_v19 = vpack.c.bf16 %v17603_v34, %v17602_v9  ;;  %v16763_v9 = vld [vmem:[%s20290_s5 + $0xa0] sm:$0xff]   ;;  %v17626_v34 = vld [vmem:[#allocation2 + $0x148] sm:$0xff] }
 0x330   : > { %14741 = vmatprep.subr.bf16.mxu1 %v16744_v12  ;;  %v17604_v12 = vld [vmem:[#allocation2 + $0x108] sm:$0xff] }
 0x333   : > { %14742 = vmatpush3.bf16.msra.mxu1 %v16745_v3  ;;  %v17605_v3 = vld [vmem:[#allocation2 + $0x120] sm:$0xff] }
 0x334   : > { %15550 = vmatprep.subr.bf16.mxu1 %v16746_v43 }
 0x336   : > { %3396 = vmatmul.mubr.bf16.gmra.mrb[48].mxu1 %v18606_v39 }
 0x337   : > { %3403 = vmatprep.mubr.bf16.mxu1 %v18618_v50 }
 0x33e   : > { %3404 = vmatmul.mubr.bf16.gmra.mrb[52].mxu1 %v18616_v25 }
 0x33f   : > { %3411 = vmatprep.mubr.bf16.mxu1 %v18628_v30 }
 0x346   : > { %3412 = vmatmul.mubr.bf16.gmra.mrb[56].mxu1 %v18626_v45 }
 0x347   : > { %3419 = vmatprep.mubr.bf16.mxu1 %v18638_v21 }
 0x34e   : > { %3420 = vmatmul.mubr.bf16.gmra.mrb[60].mxu1 %v18636_v42 }
 0x34f   : > { %3628 = vmatprep.mubr.bf16.mxu1 %v3429_v22  ;;  %v3447_v22 = vpack.c.bf16 %v17607_v36, %v17606_v52  ;;  %v16766_v52 = vld [vmem:[%s20290_s5 + $0xf0] sm:$0xff]  }
 0x356   : > { %3629 = vmatmul.mubr.bf16.vlgmr.msra.gmra.mrb[64].mxu1 %v3428_v61  ;;  %v3446_v61 = vpack.c.bf16 %v17609_v24, %v17608_v26  ;;  %v17628_v26 = vld [vmem:[#allocation2 + $0x178] sm:$0xff]  ;;  %v17629_v24 = vld [vmem:[#allocation2 + $0x190] sm:$0xff] }
 0x357   : > { %3636 = vmatprep.mubr.bf16.mxu1 %v3432_v56  ;;  %15551 = vmatpush3.bf16.msra.mxu1 %v16746_v43  ;;  %v3443_v43 = vpack.c.bf16 %v17605_v3, %v17604_v12  ;;  %v17612_v56 = vld [vmem:[#allocation2 + $0x168] sm:$0xff] }
 0x358   : > { %15552 = vmatprep.subr.bf16.mxu1 %v16747_v16  ;;  %v16764_v3 = vld [vmem:[%s20290_s5 + $0xe8] sm:$0xff]  }
 0x35b   : > { %15553 = vmatpush3.bf16.msra.mxu1 %v16747_v16  ;;  %v17613_v16 = vld [vmem:[#allocation2 + $0x180] sm:$0xff] }
 0x35c   : > { %15554 = vmatprep.subr.bf16.mxu1 %v16748_v28 }
 0x35e   : > { %3637 = vmatmul.mubr.bf16.gmra.mrb[68].mxu1 %v3431_v15  ;;  %v3430_v15 = vpack.c.bf16 %v17615_v46, %v17614_v13  ;;  %v16769_v13 = vld [vmem:[%s20290_s5 + $0xb8] sm:$0xff]  }
 0x35f   : > { %3644 = vmatprep.mubr.bf16.mxu1 %v3435_v23  ;;  %15555 = vmatpush3.bf16.msra.mxu1 %v16748_v28  ;;  %v3449_v28 = vpack.c.bf16 %v17613_v16, %v17612_v56  ;;  %v3433_v23 = vpack.c.bf16 %v17617_v33, %v17616_v1  ;;  %v16768_v16 = vld [vmem:[%s20290_s5 + $0xf8] sm:$0xff]  }
 0x360   : > { %15556 = vmatprep.subr.bf16.mxu1 %v16749_v35 }
 0x363   : > { %15557 = vmatpush3.bf16.msra.mxu1 %v16749_v35  ;;  %v16755_v35 = vld [vmem:[%s20290_s5 + $0x80] sm:$0xff]  }
 0x364   : > { %15558 = vmatprep.subr.bf16.mxu1 %v16750_v0 }
 0x366   : > { %3645 = vmatmul.mubr.bf16.gmra.mrb[72].mxu1 %v3434_v49  ;;  %v16756_v49 = vld [vmem:[%s20290_s5 + $0xc8] sm:$0xff]  }
 0x367   : > { %3652 = vmatprep.mubr.bf16.mxu1 %v3438_v7  ;;  %15559 = vmatpush3.bf16.msra.mxu1 %v16750_v0  ;;  %v17618_v0 = vld [vmem:[#allocation2 + $0x88] sm:$0xff]  ;;  %v17620_v7 = vld [vmem:[#allocation2 + $0xb8] sm:$0xff] }
 0x368   : > { %15560 = vmatprep.subr.bf16.mxu1 %v16751_v14  ;;  %v3436_v41 = vpack.c.bf16 %v17619_v37, %v17618_v0 }
 0x36b   : > { %15561 = vmatpush3.bf16.msra.mxu1 %v16751_v14  ;;  %v17621_v14 = vld [vmem:[#allocation2 + $0xd0] sm:$0xff] }
 0x36c   : > { %15562 = vmatprep.subr.bf16.mxu1 %v16752_v38 }
 0x36e   : > { %3653 = vmatmul.mubr.bf16.gmra.mrb[76].mxu1 %v3437_v11  ;;  %v17623_v11 = vld [vmem:[#allocation2 + $0x100] sm:$0xff] }
 0x36f   : > { %3660 = vmatprep.mubr.bf16.mxu1 %v3441_v63  ;;  %15563 = vmatpush3.bf16.msra.mxu1 %v16752_v38  ;;  %v3439_v38 = vpack.c.bf16 %v17621_v14, %v17620_v7  ;;  %v3442_v58 = vpack.c.bf16 %v17623_v11, %v17622_v54  ;;  %v16761_v63 = vld [vmem:[%s20290_s5 + $0x98] sm:$0xff]  }
 0x370   : > { %15564 = vmatprep.subr.bf16.mxu1 %v16753_v60 }
 0x373   : > { %15565 = vmatpush3.bf16.msra.mxu1 %v16753_v60  ;;  %v16762_v60 = vld [vmem:[%s20290_s5 + $0xe0] sm:$0xff]  }
 0x374   : > { %14807 = vmatprep.subr.bf16.mxu1 %v16754_v17  ;;  %v17624_v17 = vld [vmem:[#allocation2 + $0x118] sm:$0xff] }
 0x376   : > { %3661 = vmatmul.mubr.bf16.gmra.mrb[80].mxu1 %v3440_v8  ;;  %v3445_v8 = vpack.c.bf16 %v17625_v18, %v17624_v17 }
 0x377   : > { %3668 = vmatprep.mubr.bf16.mxu1 %v3444_v19  ;;  %v17627_v19 = vld [vmem:[#allocation2 + $0x160] sm:$0xff] }
 0x378   : > { %v3448_v12 = vpack.c.bf16 %v17627_v19, %v17626_v34 }
 0x37e   : > { %3669 = vmatmul.mubr.bf16.gmra.mrb[84].mxu1 %v3443_v43  ;;  %v16765_v43 = vld [vmem:[%s20290_s5 + $0xa8] sm:$0xff]  }
 0x37f   : > { %3676 = vmatprep.mubr.bf16.mxu1 %v3447_v22 }
 0x386   : > { %3677 = vmatmul.mubr.bf16.gmra.mrb[88].mxu1 %v3446_v61  ;;  %v3451_v61 = vpack.c.bf16 %v17629_v24, %v17628_v26 }
 0x387   : > { %3684 = vmatprep.mubr.bf16.mxu1 %v3450_v40  ;;  %v16767_v40 = vld [vmem:[%s20290_s5 + $0xb0] sm:$0xff]  }
 0x38e   : > { %3685 = vmatmul.mubr.bf16.gmra.mrb[92].mxu1 %v3449_v28 }
 0x38f   : > { %15566 = vmatprep.mubr.bf16.mxu1 %v3430_v15 }
 0x396   : > { %15567 = vmatmul.mubr.bf16.vlgmr.msra.gmra.mrb[96].mxu1 %v3433_v23 }
 0x397   : > { %14808 = vmatpush3.bf16.msra.mxu1 %v16755_v35  ;;  %15570 = vmatprep.mubr.bf16.mxu1 %v3436_v41 }
 0x398   : > { %14809 = vmatprep.subr.bf16.mxu1 %v16756_v49 }
 0x39b   : > { %14810 = vmatpush3.bf16.msra.mxu1 %v16757_v57 }
 0x39c   : > { %14811 = vmatprep.subr.bf16.mxu1 %v16758_v59 }
 0x39e   : > { %15571 = vmatmul.mubr.bf16.gmra.mrb[100].mxu1 %v3439_v38 }
 0x39f   : > { %14812 = vmatpush3.bf16.msra.mxu1 %v16759_v10  ;;  %15574 = vmatprep.mubr.bf16.mxu1 %v3442_v58 }
 0x3a0   : > { %14813 = vmatprep.subr.bf16.mxu1 %v16760_v62 }
 0x3a3   : > { %14814 = vmatpush3.bf16.msra.mxu1 %v16761_v63 }
 0x3a4   : > { %14815 = vmatprep.subr.bf16.mxu1 %v16762_v60 }
 0x3a6   : > { %15575 = vmatmul.mubr.bf16.gmra.mrb[104].mxu1 %v3445_v8 }
 0x3a7   : > { %14816 = vmatpush3.bf16.msra.mxu1 %v16763_v9  ;;  %15578 = vmatprep.mubr.bf16.mxu1 %v3448_v12 }
 0x3a8   : > { %14817 = vmatprep.subr.bf16.mxu1 %v16764_v3 }
 0x3a9   : > { %v14615_v36 = vpop.f32.mrb[0].mxu1 }
 0x3aa   : > { %v14616_v22 = vpop.f32.mrb[1].mxu1 }
 0x3ab   : > { %v14617_v51 = vadd.f32 %v14616_v22, %v14615_v36  ;;  %v14618_v32 = vpop.f32.mrb[2].mxu1  ;;  %14818 = vmatpush3.bf16.msra.mxu1 %v16765_v43 }
 0x3ac   : > { %v14619_v56 = vpop.f32.mrb[3].mxu1  ;;  %14819 = vmatprep.subr.bf16.mxu1 %v16766_v52 }
 0x3ad   : > { %v14620_v28 = vadd.f32 %v14619_v56, %v14618_v32 }
 0x3ae   : > { %15579 = vmatmul.mubr.bf16.gmra.mrb[108].mxu1 %v3451_v61 }
 0x3af   : > { %14820 = vmatpush3.bf16.msra.mxu1 %v16767_v40  ;;  %3944 = vmatprep.mubr.bf16.mxu1 %v18523_v6  ;;  %v18708_v46 = vpack.c.bf16 %v14620_v28, %v14617_v51 }
 0x3b0   : > { %14821 = vmatprep.subr.bf16.mxu1 %v16768_v16 }
 0x3b1   : > { %v14621_v15 = vpop.f32.mrb[4].mxu1 }
 0x3b2   : > { %v14622_v1 = vpop.f32.mrb[5].mxu1 }
 0x3b3   : > { %v14623_v33 = vadd.f32 %v14622_v1, %v14621_v15  ;;  %v14624_v23 = vpop.f32.mrb[6].mxu1  ;;  %14822 = vmatpush3.bf16.msra.mxu1 %v16769_v13 }
 0x3b4   : > { %v14625_v35 = vpop.f32.mrb[7].mxu1 }
 0x3b5   : > { %v14626_v0 = vadd.f32 %v14625_v35, %v14624_v23 }
 0x3b6   : > { %3945 = vmatmul.mubr.bf16.vlgmr.msra.gmra.mrb[112].mxu1 %v18521_v29 }
 0x3b7   : > { %3952 = vmatprep.mubr.bf16.mxu1 %v18545_v5  ;;  %v18712_v37 = vpack.c.bf16 %v14626_v0, %v14623_v33 }
 0x3b9   : > { %v14627_v6 = vpop.f32.mrb[8].mxu1 }
 0x3ba   : > { %v14628_v41 = vpop.f32.mrb[9].mxu1 }
 0x3bb   : > { %v14629_v49 = vadd.f32 %v14628_v41, %v14627_v6  ;;  %v14630_v57 = vpop.f32.mrb[10].mxu1 }
 0x3bc   : > { %v14631_v59 = vpop.f32.mrb[11].mxu1 }
 0x3bd   : > { %v14632_v7 = vadd.f32 %v14631_v59, %v14630_v57 }
 0x3be   : > { %3953 = vmatmul.mubr.bf16.gmra.mrb[116].mxu1 %v18543_v47 }
 0x3bf   : > { %v18715_v14 = vpack.c.bf16 %v14632_v7, %v14629_v49  ;;  %3960 = vmatprep.mubr.bf16.mxu1 %v18567_v20 }
 0x3c1   : > { %v14633_v38 = vpop.f32.mrb[12].mxu1 }
 0x3c2   : > { %v14634_v10 = vpop.f32.mrb[13].mxu1 }
 0x3c3   : > { %v14635_v54 = vadd.f32 %v14634_v10, %v14633_v38  ;;  %v14636_v29 = vpop.f32.mrb[14].mxu1 }
 0x3c4   : > { %v14637_v11 = vpop.f32.mrb[15].mxu1 }
 0x3c5   : > { %v14638_v5 = vadd.f32 %v14637_v11, %v14636_v29 }
 0x3c6   : > { %3961 = vmatmul.mubr.bf16.gmra.mrb[120].mxu1 %v18565_v4 }
 0x3c7   : > { %v18719_v58 = vpack.c.bf16 %v14638_v5, %v14635_v54  ;;  %3968 = vmatprep.mubr.bf16.mxu1 %v18589_v55 }
 0x3c9   : > { %v14639_v62 = vpop.f32.mrb[16].mxu1 }
 0x3ca   : > { %v14640_v63 = vpop.f32.mrb[17].mxu1 }
 0x3cb   : > { %v14641_v60 = vadd.f32 %v14640_v63, %v14639_v62  ;;  %v14642_v47 = vpop.f32.mrb[18].mxu1 }
 0x3cc   : > { %v14643_v17 = vpop.f32.mrb[19].mxu1 }
 0x3cd   : > { %v14644_v18 = vadd.f32 %v14643_v17, %v14642_v47 }
 0x3ce   : > { %3969 = vmatmul.mubr.bf16.gmra.mrb[124].mxu1 %v18587_v53 }
 0x3cf   : > { %v18723_v20 = vpack.c.bf16 %v14644_v18, %v14641_v60  ;;  %3976 = vmatprep.mubr.bf16.mxu1 %v18608_v48 }
 0x3d1   : > { %v14645_v8 = vpop.f32.mrb[20].mxu1 }
 0x3d2   : > { %v14646_v9 = vpop.f32.mrb[21].mxu1 }
 0x3d3   : > { %v14647_v34 = vadd.f32 %v14646_v9, %v14645_v8  ;;  %v14648_v4 = vpop.f32.mrb[22].mxu1 }
 0x3d4   : > { %v14649_v19 = vpop.f32.mrb[23].mxu1 }
 0x3d5   : > { %v14650_v12 = vadd.f32 %v14649_v19, %v14648_v4 }
 0x3d6   : > { %3977 = vmatmul.mubr.bf16.gmra.mrb[128].mxu1 %v18606_v39 }
 0x3d7   : > { %v18727_v55 = vpack.c.bf16 %v14650_v12, %v14647_v34  ;;  %3984 = vmatprep.mubr.bf16.mxu1 %v18618_v50 }
 0x3d9   : > { %v14651_v3 = vpop.f32.mrb[24].mxu1 }
 0x3da   : > { %v14652_v43 = vpop.f32.mrb[25].mxu1 }
 0x3db   : > { %v14653_v52 = vadd.f32 %v14652_v43, %v14651_v3  ;;  %v14654_v53 = vpop.f32.mrb[26].mxu1 }
 0x3dc   : > { %v14655_v36 = vpop.f32.mrb[27].mxu1 }
 0x3dd   : > { %v14656_v22 = vadd.f32 %v14655_v36, %v14654_v53 }
 0x3de   : > { %3985 = vmatmul.mubr.bf16.gmra.mrb[132].mxu1 %v18616_v25 }
 0x3df   : > { %v18731_v48 = vpack.c.bf16 %v14656_v22, %v14653_v52  ;;  %3992 = vmatprep.mubr.bf16.mxu1 %v18628_v30 }
 0x3e1   : > { %v14657_v26 = vpop.f32.mrb[28].mxu1 }
 0x3e2   : > { %v14658_v24 = vpop.f32.mrb[29].mxu1 }
 0x3e3   : > { %v14659_v61 = vadd.f32 %v14658_v24, %v14657_v26  ;;  %v14660_v39 = vpop.f32.mrb[30].mxu1 }
 0x3e4   : > { %v14661_v51 = vpop.f32.mrb[31].mxu1 }
 0x3e5   : > { %v14662_v32 = vadd.f32 %v14661_v51, %v14660_v39 }
 0x3e6   : > { %3993 = vmatmul.mubr.bf16.gmra.mrb[136].mxu1 %v18626_v45 }
 0x3e7   : > { %v18735_v50 = vpack.c.bf16 %v14662_v32, %v14659_v61  ;;  %4000 = vmatprep.mubr.bf16.mxu1 %v18638_v21 }
 0x3e9   : > { %v14679_v40 = vpop.f32.mrb[32].mxu1 }
 0x3ea   : > { %v14680_v56 = vpop.f32.mrb[33].mxu1 }
 0x3eb   : > { %v14681_v16 = vadd.f32 %v14680_v56, %v14679_v40  ;;  %v14682_v25 = vpop.f32.mrb[34].mxu1 }
 0x3ec   : > { %v14683_v28 = vpop.f32.mrb[35].mxu1 }
 0x3ed   : > { %v14684_v13 = vadd.f32 %v14683_v28, %v14682_v25 }
 0x3ee   : > { %4001 = vmatmul.mubr.bf16.gmra.mrb[140].mxu1 %v18636_v42 }
 0x3ef   : > { %v18739_v30 = vpack.c.bf16 %v14684_v13, %v14681_v16 }
 0x3f1   : > { %v14685_v15 = vpop.f32.mrb[36].mxu1 }
 0x3f2   : > { %v14686_v1 = vpop.f32.mrb[37].mxu1 }
 0x3f3   : > { %v14687_v33 = vadd.f32 %v14686_v1, %v14685_v15  ;;  %v14688_v23 = vpop.f32.mrb[38].mxu1 }
 0x3f4   : > { %v14689_v35 = vpop.f32.mrb[39].mxu1 }
 0x3f5   : > { %v14690_v45 = vadd.f32 %v14689_v35, %v14688_v23 }
 0x3f7   : > { %v18741_v0 = vpack.c.bf16 %v14690_v45, %v14687_v33 }
 0x3f9   : > { %v14691_v6 = vpop.f32.mrb[40].mxu1 }
 0x3fa   : > { %v14692_v21 = vpop.f32.mrb[41].mxu1 }
 0x3fb   : > { %v14693_v41 = vadd.f32 %v14692_v21, %v14691_v6  ;;  %v14694_v49 = vpop.f32.mrb[42].mxu1 }
 0x3fc   : > { %v14695_v57 = vpop.f32.mrb[43].mxu1 }
 0x3fd   : > { %v14696_v59 = vadd.f32 %v14695_v57, %v14694_v49 }
 0x3ff   : > { %v18743_v7 = vpack.c.bf16 %v14696_v59, %v14693_v41 }
 0x401   : > { %v14697_v38 = vpop.f32.mrb[44].mxu1 }
 0x402   : > { %v14698_v42 = vpop.f32.mrb[45].mxu1 }
 0x403   : > { %v14699_v10 = vadd.f32 %v14698_v42, %v14697_v38  ;;  %v14700_v54 = vpop.f32.mrb[46].mxu1 }
 0x404   : > { %v14701_v29 = vpop.f32.mrb[47].mxu1 }
 0x405   : > { %v14702_v11 = vadd.f32 %v14701_v29, %v14700_v54 }
 0x407   : > { %v18745_v5 = vpack.c.bf16 %v14702_v11, %v14699_v10 }
 0x409   : > { %v14703_v62 = vpop.f32.mrb[48].mxu1 }
 0x40a   : > { %v14704_v63 = vpop.f32.mrb[49].mxu1 }
 0x40b   : > { %v14705_v60 = vadd.f32 %v14704_v63, %v14703_v62  ;;  %v14706_v47 = vpop.f32.mrb[50].mxu1 }
 0x40c   : > { %v14707_v17 = vpop.f32.mrb[51].mxu1 }
 0x40d   : > { %v14708_v18 = vadd.f32 %v14707_v17, %v14706_v47 }
 0x40f   : > { %v18747_v8 = vpack.c.bf16 %v14708_v18, %v14705_v60 }
 0x411   : > { %v14709_v9 = vpop.f32.mrb[52].mxu1 }
 0x412   : > { %v14710_v34 = vpop.f32.mrb[53].mxu1 }
 0x413   : > { %v14711_v4 = vadd.f32 %v14710_v34, %v14709_v9  ;;  %v14712_v19 = vpop.f32.mrb[54].mxu1 }
 0x414   : > { %v14713_v12 = vpop.f32.mrb[55].mxu1 }
 0x415   : > { %v14714_v3 = vadd.f32 %v14713_v12, %v14712_v19  ;;  %v3799_v12 = vld [vmem:[#allocation9 + $0x40] sm:$0xff] }
 0x416   : > { %15614 = vmatprep.mubr.f32.mxu1 %v3799_v12 }
 0x417   : > { %v18749_v43 = vpack.c.bf16 %v14714_v3, %v14711_v4 }
 0x419   : > { %v14715_v52 = vpop.f32.mrb[56].mxu1 }
 0x41a   : > { %v14716_v53 = vpop.f32.mrb[57].mxu1 }
 0x41b   : > { %v14717_v36 = vadd.f32 %v14716_v53, %v14715_v52  ;;  %v14718_v22 = vpop.f32.mrb[58].mxu1 }
 0x41c   : > { %v14719_v26 = vpop.f32.mrb[59].mxu1 }
 0x41d   : > { %v14720_v24 = vadd.f32 %v14719_v26, %v14718_v22 }
 0x41f   : > { %v18751_v61 = vpack.c.bf16 %v14720_v24, %v14717_v36 }
 0x421   : > { %v14721_v39 = vpop.f32.mrb[60].mxu1 }
 0x422   : > { %v14722_v51 = vpop.f32.mrb[61].mxu1 }
 0x423   : > { %v14723_v32 = vadd.f32 %v14722_v51, %v14721_v39  ;;  %v14724_v40 = vpop.f32.mrb[62].mxu1 }
 0x424   : > { %v14725_v56 = vpop.f32.mrb[63].mxu1 }
 0x425   : > { %v14726_v16 = vadd.f32 %v14725_v56, %v14724_v40 }
 0x427   : > { %v18753_v25 = vpack.c.bf16 %v14726_v16, %v14723_v32 }
 0x429   : > { %v14743_v28 = vpop.f32.mrb[64].mxu1 }
 0x42a   : > { %v14744_v13 = vpop.f32.mrb[65].mxu1 }
 0x42b   : > { %v14745_v15 = vadd.f32 %v14744_v13, %v14743_v28  ;;  %v14746_v1 = vpop.f32.mrb[66].mxu1 }
 0x42c   : > { %v14747_v33 = vpop.f32.mrb[67].mxu1 }
 0x42d   : > { %v14748_v23 = vadd.f32 %v14747_v33, %v14746_v1 }
 0x431   : > { %v14749_v35 = vpop.f32.mrb[68].mxu1 }
 0x432   : > { %v14750_v45 = vpop.f32.mrb[69].mxu1 }
 0x433   : > { %v14751_v6 = vadd.f32 %v14750_v45, %v14749_v35  ;;  %v14752_v21 = vpop.f32.mrb[70].mxu1 }
 0x434   : > { %v14753_v41 = vpop.f32.mrb[71].mxu1 }
 0x435   : > { %v14754_v49 = vadd.f32 %v14753_v41, %v14752_v21 }
 0x439   : > { %v14755_v57 = vpop.f32.mrb[72].mxu1 }
 0x43a   : > { %v14756_v59 = vpop.f32.mrb[73].mxu1 }
 0x43b   : > { %v14757_v38 = vadd.f32 %v14756_v59, %v14755_v57  ;;  %v14758_v42 = vpop.f32.mrb[74].mxu1 }
 0x43c   : > { %v14759_v10 = vpop.f32.mrb[75].mxu1 }
 0x43d   : > { %v14760_v54 = vadd.f32 %v14759_v10, %v14758_v42 }
 0x441   : > { %v14761_v29 = vpop.f32.mrb[76].mxu1 }
 0x442   : > { %v14762_v11 = vpop.f32.mrb[77].mxu1 }
 0x443   : > { %v14763_v62 = vadd.f32 %v14762_v11, %v14761_v29  ;;  %v14764_v63 = vpop.f32.mrb[78].mxu1 }
 0x444   : > { %v14765_v60 = vpop.f32.mrb[79].mxu1 }
 0x445   : > { %v14766_v47 = vadd.f32 %v14765_v60, %v14764_v63 }
 0x449   : > { %v14767_v17 = vpop.f32.mrb[80].mxu1 }
 0x44a   : > { %v14768_v18 = vpop.f32.mrb[81].mxu1 }
 0x44b   : > { %v14769_v9 = vadd.f32 %v14768_v18, %v14767_v17  ;;  %v14770_v34 = vpop.f32.mrb[82].mxu1 }
 0x44c   : > { %v14771_v4 = vpop.f32.mrb[83].mxu1 }
 0x44d   : > { %v14772_v19 = vadd.f32 %v14771_v4, %v14770_v34 }
 0x451   : > { %v14773_v3 = vpop.f32.mrb[84].mxu1 }
 0x452   : > { %v14774_v52 = vpop.f32.mrb[85].mxu1 }
 0x453   : > { %v14775_v53 = vadd.f32 %v14774_v52, %v14773_v3  ;;  %v14776_v36 = vpop.f32.mrb[86].mxu1 }
 0x454   : > { %v14777_v22 = vpop.f32.mrb[87].mxu1 }
 0x455   : > { %v14778_v26 = vadd.f32 %v14777_v22, %v14776_v36 }
 0x459   : > { %v14779_v24 = vpop.f32.mrb[88].mxu1 }
 0x45a   : > { %v14780_v39 = vpop.f32.mrb[89].mxu1 }
 0x45b   : > { %v14781_v51 = vadd.f32 %v14780_v39, %v14779_v24  ;;  %v14782_v32 = vpop.f32.mrb[90].mxu1 }
 0x45c   : > { %v14783_v40 = vpop.f32.mrb[91].mxu1 }
 0x45d   : > { %v14784_v56 = vadd.f32 %v14783_v40, %v14782_v32 }
 0x461   : > { %v14785_v16 = vpop.f32.mrb[92].mxu1 }
 0x462   : > { %v14786_v28 = vpop.f32.mrb[93].mxu1 }
 0x463   : > { %v14787_v13 = vadd.f32 %v14786_v28, %v14785_v16  ;;  %v14788_v1 = vpop.f32.mrb[94].mxu1 }
 0x464   : > { %v14789_v33 = vpop.f32.mrb[95].mxu1 }
 0x465   : > { %v14790_v35 = vadd.f32 %v14789_v33, %v14788_v1 }
 0x469   : > { %v15568_v45 = vpop.f32.mrb[96].mxu1 }
 0x46a   : > { %v3736_v21 = vadd.f32 %v15568_v45, %v14751_v6  ;;  %v3727_v41 = vpop.f32.mrb[97].mxu1 }
 0x46b   : > { %v3728_v57 = vadd.f32 %v14745_v15, %v3727_v41  ;;  %v15569_v59 = vpop.f32.mrb[98].mxu1 }
 0x46c   : > { %v3739_v42 = vadd.f32 %v15569_v59, %v14754_v49  ;;  %v3730_v10 = vpop.f32.mrb[99].mxu1 }
 0x46d   : > { %v3731_v29 = vadd.f32 %v14748_v23, %v3730_v10 }
 0x471   : > { %v15572_v11 = vpop.f32.mrb[100].mxu1 }
 0x472   : > { %v3752_v63 = vadd.f32 %v15572_v11, %v14763_v62  ;;  %v3743_v60 = vpop.f32.mrb[101].mxu1 }
 0x473   : > { %v3744_v17 = vadd.f32 %v14757_v38, %v3743_v60  ;;  %v15573_v18 = vpop.f32.mrb[102].mxu1 }
 0x474   : > { %v3755_v34 = vadd.f32 %v15573_v18, %v14766_v47  ;;  %v3746_v4 = vpop.f32.mrb[103].mxu1 }
 0x475   : > { %v3747_v12 = vadd.f32 %v14760_v54, %v3746_v4 }
 0x479   : > { %v15576_v3 = vpop.f32.mrb[104].mxu1 }
 0x47a   : > { %v18755_v52 = vadd.f32 %v15576_v3, %v14775_v53  ;;  %v3759_v36 = vpop.f32.mrb[105].mxu1 }
 0x47b   : > { %v3760_v22 = vadd.f32 %v14769_v9, %v3759_v36  ;;  %v15577_v6 = vpop.f32.mrb[106].mxu1 }
 0x47c   : > { %v18757_v24 = vadd.f32 %v15577_v6, %v14778_v26  ;;  %v3762_v15 = vpop.f32.mrb[107].mxu1 }
 0x47d   : > { %v3763_v49 = vadd.f32 %v14772_v19, %v3762_v15 }
 0x481   : > { %v15580_v39 = vpop.f32.mrb[108].mxu1 }
 0x482   : > { %v18759_v23 = vadd.f32 %v15580_v39, %v14787_v13  ;;  %v3775_v62 = vpop.f32.mrb[109].mxu1 }
 0x483   : > { %v18761_v32 = vadd.f32 %v14781_v51, %v3775_v62  ;;  %v15581_v38 = vpop.f32.mrb[110].mxu1 }
 0x484   : > { %v18763_v47 = vadd.f32 %v15581_v38, %v14790_v35  ;;  %v3778_v54 = vpop.f32.mrb[111].mxu1 }
 0x485   : > { %v18765_v40 = vadd.f32 %v14784_v56, %v3778_v54 }
 0x489   : > { %v14823_v53 = vpop.f32.mrb[112].mxu1 }
 0x48a   : > { %v14824_v16 = vpop.f32.mrb[113].mxu1 }
 0x48b   : > { %v14825_v9 = vadd.f32 %v14824_v16, %v14823_v53  ;;  %v14826_v28 = vpop.f32.mrb[114].mxu1 }
 0x48c   : > { %v14827_v26 = vpop.f32.mrb[115].mxu1 }
 0x48d   : > { %v3947_v1 = vadd.f32 %v14825_v9, %v3728_v57  ;;  %v14828_v33 = vadd.f32 %v14827_v26, %v14826_v28 }
 0x48f   : > { %v3950_v19 = vadd.f32 %v14828_v33, %v3731_v29 }
 0x491   : > { %v14829_v45 = vpop.f32.mrb[116].mxu1  ;;  %v16003_v13 = vpack.c.bf16 %v3950_v19, %v3947_v1 }
 0x492   : > { %v14830_v41 = vpop.f32.mrb[117].mxu1 }
 0x493   : > { %v14831_v59 = vadd.f32 %v14830_v41, %v14829_v45  ;;  %v14832_v51 = vpop.f32.mrb[118].mxu1  ;;  %16004 = vmatprep.subr.bf16.mxu1 %v16003_v13 }
 0x494   : > { %v14833_v10 = vpop.f32.mrb[119].mxu1  ;;  %16006 = vmatpush3.bf16.msra.mxu1 %v16003_v13 }
 0x495   : > { %v3955_v35 = vadd.f32 %v14831_v59, %v3736_v21  ;;  %v14834_v11 = vadd.f32 %v14833_v10, %v14832_v51 }
 0x497   : > { %v3958_v56 = vadd.f32 %v14834_v11, %v3739_v42 }
 0x499   : > { %v14835_v60 = vpop.f32.mrb[120].mxu1  ;;  %v16007_v18 = vpack.c.bf16 %v3958_v56, %v3955_v35 }
 0x49a   : > { %v14836_v4 = vpop.f32.mrb[121].mxu1 }
 0x49b   : > { %v14837_v3 = vadd.f32 %v14836_v4, %v14835_v60  ;;  %v14838_v36 = vpop.f32.mrb[122].mxu1  ;;  %16008 = vmatprep.subr.bf16.mxu1 %v16007_v18 }
 0x49c   : > { %v14839_v57 = vpop.f32.mrb[123].mxu1  ;;  %16010 = vmatpush3.bf16.msra.mxu1 %v16007_v18 }
 0x49d   : > { %v3963_v29 = vadd.f32 %v14837_v3, %v3744_v17  ;;  %v14840_v6 = vadd.f32 %v14839_v57, %v14838_v36 }
 0x49f   : > { %v3966_v15 = vadd.f32 %v14840_v6, %v3747_v12 }
 0x4a1   : > { %v14841_v39 = vpop.f32.mrb[124].mxu1  ;;  %v16011_v62 = vpack.c.bf16 %v3966_v15, %v3963_v29 }
 0x4a2   : > { %v14842_v38 = vpop.f32.mrb[125].mxu1 }
 0x4a3   : > { %v14843_v54 = vadd.f32 %v14842_v38, %v14841_v39  ;;  %v14844_v53 = vpop.f32.mrb[126].mxu1  ;;  %16012 = vmatprep.subr.bf16.mxu1 %v16011_v62 }
 0x4a4   : > { %v14845_v21 = vpop.f32.mrb[127].mxu1  ;;  %16014 = vmatpush3.bf16.msra.mxu1 %v16011_v62 }
 0x4a5   : > { %v3971_v42 = vadd.f32 %v14843_v54, %v3752_v63  ;;  %v14846_v16 = vadd.f32 %v14845_v21, %v14844_v53 }
 0x4a7   : > { %v3974_v9 = vadd.f32 %v14846_v16, %v3755_v34  ;;  %v3803_v16 = vld [vmem:[#allocation9 + $0x60] sm:$0xff] }
 0x4a9   : > { %v14847_v28 = vpop.f32.mrb[128].mxu1  ;;  %v16015_v26 = vpack.c.bf16 %v3974_v9, %v3971_v42  ;;  %v3802_v42 = vld [vmem:[#allocation9 + $0x58] sm:$0xff] }
 0x4aa   : > { %v14848_v1 = vpop.f32.mrb[129].mxu1  ;;  %v3806_v9 = vld [vmem:[#allocation9 + $0x78] sm:$0xff] }
 0x4ab   : > { %v14849_v33 = vadd.f32 %v14848_v1, %v14847_v28  ;;  %v14850_v19 = vpop.f32.mrb[130].mxu1  ;;  %16016 = vmatprep.subr.bf16.mxu1 %v16015_v26  ;;  %v3810_v28 = vld [vmem:[#allocation9 + $0x90] sm:$0xff] }
 0x4ac   : > { %v14851_v17 = vpop.f32.mrb[131].mxu1  ;;  %16018 = vmatpush3.bf16.msra.mxu1 %v16015_v26  ;;  %v16775_v26 = vld [vmem:[#allocation8 + $0x94] ss:$8 sps:$4 sm:$0xff]   ;;  %v16773_v1 = vld [vmem:[#allocation8 + $0x90] ss:$8 sps:$4 sm:$0xff]  }
 0x4ad   : > { %v3979_v12 = vadd.f32 %v14849_v33, %v3760_v22  ;;  %v14852_v45 = vadd.f32 %v14851_v17, %v14850_v19  ;;  %v16778_v33 = vld [vmem:[#allocation8 + $0xa4] ss:$8 sps:$4 sm:$0xff]   ;;  %v16776_v19 = vld [vmem:[#allocation8 + $0xa0] ss:$8 sps:$4 sm:$0xff]   ;;  %v3814_v17 = vld [vmem:[#allocation9 + $0xb0] sm:$0xff] }
 0x4af   : > { %v3982_v13 = vadd.f32 %v14852_v45, %v3763_v49  ;;  %v16779_v45 = vld [vmem:[#allocation8 + $0xb0] ss:$8 sps:$4 sm:$0xff]  }
 0x4b1   : > { %v14853_v41 = vpop.f32.mrb[132].mxu1  ;;  %v16019_v59 = vpack.c.bf16 %v3982_v13, %v3979_v12  ;;  %v3815_v12 = vld [vmem:[#allocation9 + $0xb8] sm:$0xff]  ;;  %v16784_v13 = vld [vmem:[#allocation8 + $0xc4] ss:$8 sps:$4 sm:$0xff]  }
 0x4b2   : > { %v14854_v51 = vpop.f32.mrb[133].mxu1 }
 0x4b3   : > { %v14855_v10 = vadd.f32 %v14854_v51, %v14853_v41  ;;  %v14856_v35 = vpop.f32.mrb[134].mxu1  ;;  %16020 = vmatprep.subr.bf16.mxu1 %v16019_v59  ;;  %v16782_v41 = vld [vmem:[#allocation8 + $0xc0] ss:$8 sps:$4 sm:$0xff]   ;;  %v16785_v51 = vld [vmem:[#allocation8 + $0xd0] ss:$8 sps:$4 sm:$0xff]  }
 0x4b4   : > { %v14857_v63 = vpop.f32.mrb[135].mxu1  ;;  %16022 = vmatpush3.bf16.msra.mxu1 %v16019_v59  ;;  %v16787_v59 = vld [vmem:[#allocation8 + $0xd4] ss:$8 sps:$4 sm:$0xff]  }
 0x4b5   : > { %v3987_v34 = vadd.f32 %v14855_v10, %v18755_v52  ;;  %v14858_v11 = vadd.f32 %v14857_v63, %v14856_v35  ;;  %v16790_v10 = vld [vmem:[#allocation8 + $0xe4] ss:$8 sps:$4 sm:$0xff]   ;;  %v16788_v35 = vld [vmem:[#allocation8 + $0xe0] ss:$8 sps:$4 sm:$0xff]   ;;  %v16793_v63 = vld [vmem:[#allocation8 + $0xf4] ss:$8 sps:$4 sm:$0xff]  }
 0x4b7   : > { %v3990_v56 = vadd.f32 %v14858_v11, %v18757_v24  ;;  %v16796_v11 = vld [vmem:[#allocation8 + $0x4] ss:$8 sps:$4 sm:$0xff]  }
 0x4b9   : > { %v14859_v60 = vpop.f32.mrb[136].mxu1  ;;  %v16023_v18 = vpack.c.bf16 %v3990_v56, %v3987_v34  ;;  %v16791_v34 = vld [vmem:[#allocation8 + $0xf0] ss:$8 sps:$4 sm:$0xff]   ;;  %v4431_v56 = vld [vmem:[#allocation2] sm:$0x80] }
 0x4ba   : > { %v14860_v4 = vpop.f32.mrb[137].mxu1  ;;  %6171 = vst [vmem:[#allocation2 + $0x7] sm:$0x1] %v17770_v2 }
 0x4bb   : > { %v14861_v3 = vadd.f32 %v14860_v4, %v14859_v60  ;;  %v14862_v22 = vpop.f32.mrb[138].mxu1  ;;  %16024 = vmatprep.subr.bf16.mxu1 %v16023_v18  ;;  %v16842_v60 = vld [vmem:[%s20290_s5 + $0x1c0] sm:$0xff]   ;;  %v16844_v4 = vld [vmem:[%s20290_s5 + $0x1c8] sm:$0xff]  }
 0x4bc   : > { %v14863_v49 = vpop.f32.mrb[139].mxu1  ;;  %16026 = vmatpush3.bf16.msra.mxu1 %v16023_v18  ;;  %v16843_v18 = vld [vmem:[%s20290_s5 + $0x180] sm:$0xff]   ;;  %14943 = vmatprep.subr.bf16.mxu0 %v16842_v60 }
 0x4bd   : > { %v3995_v36 = vadd.f32 %v14861_v3, %v18761_v32  ;;  %v14864_v57 = vadd.f32 %v14863_v49, %v14862_v22  ;;  %v3800_v32 = vld [vmem:[#allocation9 + $0x48] sm:$0xff]  ;;  %14944 = vmatpush3.bf16.msra.mxu0 %v16843_v18  ;;  %v16845_v3 = vld [vmem:[%s20290_s5 + $0x188] sm:$0xff]   ;;  %v16846_v22 = vld [vmem:[%s20290_s5 + $0x1d0] sm:$0xff]  }
 0x4be   : > { %14945 = vmatprep.subr.bf16.mxu0 %v16844_v4  ;;  %v16847_v49 = vld [vmem:[%s20290_s5 + $0x190] sm:$0xff]  }
 0x4bf   : > { %v3998_v29 = vadd.f32 %v14864_v57, %v18765_v40  ;;  %v3801_v40 = vld [vmem:[#allocation9 + $0x50] sm:$0xff]  ;;  %v16849_v57 = vld [vmem:[%s20290_s5 + $0x198] sm:$0xff]  }
 0x4c1   : > { %v14865_v6 = vpop.f32.mrb[140].mxu1  ;;  %v16027_v15 = vpack.c.bf16 %v3998_v29, %v3995_v36  ;;  %14946 = vmatpush3.bf16.msra.mxu0 %v16845_v3  ;;  %v16848_v36 = vld [vmem:[%s20290_s5 + $0x1d8] sm:$0xff]   ;;  %v16854_v29 = vld [vmem:[%s20290_s5 + $0x1e0] sm:$0xff]  }
 0x4c2   : > { %v14866_v39 = vpop.f32.mrb[141].mxu1  ;;  %14947 = vmatprep.subr.bf16.mxu0 %v16846_v22 }
 0x4c3   : > { %v14867_v52 = vadd.f32 %v14866_v39, %v14865_v6  ;;  %v14868_v62 = vpop.f32.mrb[142].mxu1  ;;  %16028 = vmatprep.subr.bf16.mxu1 %v16027_v15  ;;  %v16855_v6 = vld [vmem:[%s20290_s5 + $0x1a0] sm:$0xff]   ;;  %v16861_v39 = vld [vmem:[%s20290_s5 + $0x1a8] sm:$0xff]  }
 0x4c4   : > { %v14869_v24 = vpop.f32.mrb[143].mxu1  ;;  %16030 = vmatpush3.bf16.msra.mxu1 %v16027_v15  ;;  %v16860_v15 = vld [vmem:[%s20290_s5 + $0x1e8] sm:$0xff]  }
 0x4c5   : > { %v4003_v38 = vadd.f32 %v14867_v52, %v18759_v23  ;;  %v14870_v54 = vadd.f32 %v14869_v24, %v14868_v62  ;;  %v3804_v23 = vld [vmem:[#allocation9 + $0x68] sm:$0xff]  ;;  %14948 = vmatpush3.bf16.msra.mxu0 %v16847_v49 }
 0x4c6   : > { %14949 = vmatprep.subr.bf16.mxu0 %v16848_v36  ;;  %v13263_v52 = vld [vmem:[%s20292_s7] ss:$0 sm:$0xff] }
 0x4c7   : > { %v4006_v53 = vadd.f32 %v14870_v54, %v18763_v47  ;;  %v3805_v47 = vld [vmem:[#allocation9 + $0x70] sm:$0xff] }
 0x4c9   : > { %v16031_v21 = vpack.c.bf16 %v4006_v53, %v4003_v38  ;;  %14950 = vmatpush3.bf16.msra.mxu0 %v16849_v57 }
 0x4ca   : > { %14951 = vmatprep.subr.bf16.mxu0 %v16854_v29  ;;  %v16803_v29 = vld [vmem:[#allocation8 + $0x30] ss:$8 sps:$4 sm:$0xff]  }
 0x4cb   : > { %16032 = vmatprep.subr.bf16.mxu1 %v16031_v21 }
 0x4cc   : > { %16034 = vmatpush3.bf16.msra.mxu1 %v16031_v21 }
 0x4cd   : > { %16036 = vmatprep.subr.bf16.mxu1 %v18708_v46  ;;  %14952 = vmatpush3.bf16.msra.mxu0 %v16855_v6 }
 0x4ce   : > { %14953 = vmatprep.subr.bf16.mxu0 %v16860_v15 }
 0x4cf   : > { %15615 = vmatmul.mubr.f32.vlgmr.msra.gmra.mrb[144].mxu1 %v3800_v32 }
 0x4d0   : > { %16038 = vmatpush3.bf16.msra.mxu1 %v18708_v46  ;;  %15617 = vmatprep.mubr.f32.mxu1 %v3801_v40  ;;  %v3790_v46 = vld [vmem:[#allocation9] sm:$0xff] }
 0x4d1   : > { %16040 = vmatprep.subr.bf16.mxu1 %v18712_v37  ;;  %14954 = vmatpush3.bf16.msra.mxu0 %v16861_v39 }
 0x4d3   : > { %15618 = vmatmul.mubr.f32.gmra.mrb[146].mxu1 %v3802_v42 }
 0x4d4   : > { %16042 = vmatpush3.bf16.msra.mxu1 %v18712_v37  ;;  %15620 = vmatprep.mubr.f32.mxu1 %v3803_v16  ;;  %v3791_v37 = vld [vmem:[#allocation9 + $0x8] sm:$0xff] }
 0x4d5   : > { %16044 = vmatprep.subr.bf16.mxu1 %v18715_v14 }
 0x4d7   : > { %15621 = vmatmul.mubr.f32.gmra.mrb[148].mxu1 %v3804_v23  ;;  %v16794_v23 = vld [vmem:[#allocation8] ss:$8 sps:$4 sm:$0xff]  }
 0x4d8   : > { %16046 = vmatpush3.bf16.msra.mxu1 %v18715_v14  ;;  %15623 = vmatprep.mubr.f32.mxu1 %v3805_v47  ;;  %v3792_v14 = vld [vmem:[#allocation9 + $0x10] sm:$0xff] }
 0x4d9   : > { %16048 = vmatprep.subr.bf16.mxu1 %v18719_v58 }
 0x4db   : > { %15624 = vmatmul.mubr.f32.gmra.mrb[150].mxu1 %v3806_v9 }
 0x4dc   : > { %16050 = vmatpush3.bf16.msra.mxu1 %v18719_v58  ;;  %15658 = vmatprep.mubr.f32.mxu1 %v3790_v46  ;;  %v3793_v58 = vld [vmem:[#allocation9 + $0x18] sm:$0xff] }
 0x4dd   : > { %16052 = vmatprep.subr.bf16.mxu1 %v18723_v20  ;;  %v16799_v46 = vld [vmem:[#allocation8 + $0x14] ss:$8 sps:$4 sm:$0xff]  }
 0x4e0   : > { %16054 = vmatpush3.bf16.msra.mxu1 %v18723_v20  ;;  %v3794_v20 = vld [vmem:[#allocation9 + $0x20] sm:$0xff] }
 0x4e1   : > { %16056 = vmatprep.subr.bf16.mxu1 %v18727_v55 }
 0x4e4   : > { %16058 = vmatpush3.bf16.msra.mxu1 %v18727_v55  ;;  %v3795_v55 = vld [vmem:[#allocation9 + $0x28] sm:$0xff] }
 0x4e5   : > { %16060 = vmatprep.subr.bf16.mxu1 %v18731_v48 }
 0x4e8   : > { %16062 = vmatpush3.bf16.msra.mxu1 %v18731_v48  ;;  %v3796_v48 = vld [vmem:[#allocation9 + $0x30] sm:$0xff] }
 0x4e9   : > { %16064 = vmatprep.subr.bf16.mxu1 %v18735_v50 }
 0x4ec   : > { %16066 = vmatpush3.bf16.msra.mxu1 %v18735_v50  ;;  %v3797_v50 = vld [vmem:[#allocation9 + $0x38] sm:$0xff] }
 0x4ed   : > { %16068 = vmatprep.subr.bf16.mxu1 %v18739_v30 }
 0x4ef   : > { %15659 = vmatmul.mubr.f32.vlgmr.msra.gmra.mrb[144].mxu1 %v3791_v37 }
 0x4f0   : > { %16070 = vmatpush3.bf16.msra.mxu1 %v18739_v30  ;;  %15661 = vmatprep.mubr.f32.mxu1 %v3792_v14  ;;  %v3808_v30 = vld [vmem:[#allocation9 + $0x80] sm:$0xff] }
 0x4f1   : > { %16072 = vmatprep.subr.bf16.mxu1 %v18741_v0 }
 0x4f3   : > { %15662 = vmatmul.mubr.f32.gmra.mrb[146].mxu1 %v3793_v58 }
 0x4f4   : > { %16074 = vmatpush3.bf16.msra.mxu1 %v18741_v0  ;;  %15664 = vmatprep.mubr.f32.mxu1 %v3794_v20  ;;  %v16772_v0 = vld [vmem:[#allocation8 + $0x84] ss:$8 sps:$4 sm:$0xff]  }
 0x4f5   : > { %16076 = vmatprep.subr.bf16.mxu1 %v18743_v7 }
 0x4f7   : > { %15665 = vmatmul.mubr.f32.gmra.mrb[148].mxu1 %v3795_v55 }
 0x4f8   : > { %16078 = vmatpush3.bf16.msra.mxu1 %v18743_v7  ;;  %15667 = vmatprep.mubr.f32.mxu1 %v3796_v48  ;;  %v3809_v7 = vld [vmem:[#allocation9 + $0x88] sm:$0xff] }
 0x4f9   : > { %16080 = vmatprep.subr.bf16.mxu1 %v18745_v5 }
 0x4fb   : > { %15668 = vmatmul.mubr.f32.gmra.mrb[150].mxu1 %v3797_v50 }
 0x4fc   : > { %16082 = vmatpush3.bf16.msra.mxu1 %v18745_v5  ;;  %15702 = vmatprep.mubr.f32.mxu1 %v3808_v30  ;;  %v16770_v5 = vld [vmem:[#allocation8 + $0x80] ss:$8 sps:$4 sm:$0xff]  }
 0x4fd   : > { %16084 = vmatprep.subr.bf16.mxu1 %v18747_v8 }
 0x500   : > { %16086 = vmatpush3.bf16.msra.mxu1 %v18747_v8  ;;  %v3811_v8 = vld [vmem:[#allocation9 + $0x98] sm:$0xff] }
 0x501   : > { %16088 = vmatprep.subr.bf16.mxu1 %v18749_v43 }
 0x504   : > { %16090 = vmatpush3.bf16.msra.mxu1 %v18749_v43  ;;  %v3812_v43 = vld [vmem:[#allocation9 + $0xa0] sm:$0xff] }
 0x505   : > { %16092 = vmatprep.subr.bf16.mxu1 %v18751_v61 }
 0x508   : > { %16094 = vmatpush3.bf16.msra.mxu1 %v18751_v61  ;;  %v3813_v61 = vld [vmem:[#allocation9 + $0xa8] sm:$0xff] }
 0x509   : > { %16096 = vmatprep.subr.bf16.mxu1 %v18753_v25 }
 0x50c   : > { %16098 = vmatpush3.bf16.msra.mxu1 %v18753_v25  ;;  %v16781_v25 = vld [vmem:[#allocation8 + $0xb4] ss:$8 sps:$4 sm:$0xff]  }
 0x50d   : > { %4530 = vmatprep.subr.bf16.mxu1 %v16772_v0 }
 0x50f   : > { %15703 = vmatmul.mubr.f32.vlgmr.msra.gmra.mrb[144].mxu1 %v3809_v7  ;;  %v16797_v7 = vld [vmem:[#allocation8 + $0x10] ss:$8 sps:$4 sm:$0xff]  }
 0x510   : > { %15705 = vmatprep.mubr.f32.mxu1 %v3810_v28  ;;  %4531 = vmatpush1.bf16.msra.mxu1 %v16770_v5 }
 0x511   : > { %4532 = vmatprep.subr.bf16.mxu1 %v16775_v26 }
 0x513   : > { %15706 = vmatmul.mubr.f32.gmra.mrb[146].mxu1 %v3811_v8  ;;  %v16802_v8 = vld [vmem:[#allocation8 + $0x24] ss:$8 sps:$4 sm:$0xff]  }
 0x514   : > { %15708 = vmatprep.mubr.f32.mxu1 %v3812_v43  ;;  %4533 = vmatpush1.bf16.msra.mxu1 %v16773_v1 }
 0x515   : > { %4534 = vmatprep.subr.bf16.mxu1 %v16778_v33 }
 0x517   : > { %15709 = vmatmul.mubr.f32.gmra.mrb[148].mxu1 %v3813_v61 }
 0x518   : > { %15711 = vmatprep.mubr.f32.mxu1 %v3814_v17  ;;  %4535 = vmatpush1.bf16.msra.mxu1 %v16776_v19 }
 0x519   : > { %4536 = vmatprep.subr.bf16.mxu1 %v16781_v25 }
 0x51b   : > { %15712 = vmatmul.mubr.f32.gmra.mrb[150].mxu1 %v3815_v12 }
 0x51c   : > { %4537 = vmatpush1.bf16.msra.mxu1 %v16779_v45  ;;  %4562 = vmatprep.mubr.bf16.mxu1 %v17771_v44 }
 0x51d   : > { %4538 = vmatprep.subr.bf16.mxu1 %v16784_v13 }
 0x520   : > { %4539 = vmatpush1.bf16.msra.mxu1 %v16782_v41  ;;  %v16800_v41 = vld [vmem:[#allocation8 + $0x20] ss:$8 sps:$4 sm:$0xff]  }
 0x521   : > { %4540 = vmatprep.subr.bf16.mxu1 %v16787_v59 }
 0x524   : > { %4541 = vmatpush1.bf16.msra.mxu1 %v16785_v51 }
 0x525   : > { %4542 = vmatprep.subr.bf16.mxu1 %v16790_v10 }
 0x528   : > { %4543 = vmatpush1.bf16.msra.mxu1 %v16788_v35 }
 0x529   : > { %4544 = vmatprep.subr.bf16.mxu1 %v16793_v63 }
 0x52c   : > { %4545 = vmatpush1.bf16.msra.mxu1 %v16791_v34 }
 0x52d   : > { %4731 = vmatprep.subr.bf16.mxu1 %v16796_v11  ;;  %v16805_v11 = vld [vmem:[#allocation8 + $0x34] ss:$8 sps:$4 sm:$0xff]  }
 0x5e2   : > { %v15704_v62 = vpop.f32.mrb[144].mxu1 }
 0x5e3   : > { %v18846_v24 = vadd.f32 %v15704_v62, %v13263_v52  ;;  %v4285_v38 = vpop.f32.mrb[145].mxu1 }
 0x5e4   : > { %v18848_v54 = vadd.f32 %v13263_v52, %v4285_v38 }
 0x5e5   : > { %v4348_v53 = vmax.f32 %v18846_v24, 0.0 }
 0x5e6   : > { %v4347_v21 = vmax.f32 %v18848_v54, 0.0  ;;  %v5501_v32 = vpack.c.bf16 %v18846_v24, %v18848_v54  ;;  %v15707_v40 = vpop.f32.mrb[146].mxu1  ;;  %v16898_v24 = vld [vmem:[#allocation8 + $0x200] ss:$8 sps:$4 sm:$0xff]   ;;  %v16900_v54 = vld [vmem:[#allocation8 + $0x204] ss:$8 sps:$4 sm:$0xff]  }
 0x5e7   : > { %v18854_v42 = vadd.f32 %v15707_v40, %v13263_v52  ;;  %v4295_v16 = vpop.f32.mrb[147].mxu1 }
 0x5e8   : > { %4423 = vst [vmem:[#allocation2 + $0x18] sm:$0xff] %v4347_v21  ;;  %v18856_v47 = vadd.f32 %v13263_v52, %v4295_v16  ;;  %v4446_v9 = vpack.c.bf16 %v4348_v53, %v4347_v21  ;;  %v4440_v37 = vpack.c.bf16 %v4347_v21, %v4431_v56 }
 0x5e9   : > { %v4350_v14 = vmax.f32 %v18854_v42, 0.0 }
 0x5ea   : > { %v4349_v58 = vmax.f32 %v18856_v47, 0.0  ;;  %v5502_v20 = vpack.c.bf16 %v18854_v42, %v18856_v47  ;;  %v15710_v55 = vpop.f32.mrb[148].mxu1  ;;  %4563 = vmatmul.mubr.bf16.vlgmr.msra.gmra.mrb[152].mxu1 %v4446_v9  ;;  %v4604_v48 = vshrl.u32 %v4440_v37, 16  ;;  %v4607_v50 = vshll.u32 %v4440_v37, 16 }
 0x5eb   : > { %v18862_v30 = vadd.f32 %v15710_v55, %v13263_v52  ;;  %v4305_v0 = vpop.f32.mrb[149].mxu1  ;;  %4732 = vmatpush1.bf16.msra.mxu1 %v16794_v23  ;;  %4572 = vmatprep.mubr.bf16.mxu1 %v17771_v44  ;;  %v16806_v55 = vld [vmem:[#allocation8 + $0x40] ss:$8 sps:$4 sm:$0xff]  }
 0x5ec   : > { %v18865_v5 = vadd.f32 %v13263_v52, %v4305_v0  ;;  %4733 = vmatprep.subr.bf16.mxu1 %v16799_v46  ;;  %v4441_v28 = vpack.c.bf16 %v4349_v58, %v4348_v53  ;;  %v4447_v26 = vpack.c.bf16 %v4350_v14, %v4349_v58  ;;  %v4606_v1 = vrot.slane %v4604_v48, 3 }
 0x5ed   : > { %v4352_v43 = vmax.f32 %v18862_v30, 0.0  ;;  %v4609_v33 = vrot.slane %v4607_v50, 4 }
 0x5ee   : > { %v4351_v61 = vmax.f32 %v18865_v5, 0.0  ;;  %v5503_v19 = vpack.c.bf16 %v18862_v30, %v18865_v5  ;;  %v15713_v17 = vpop.f32.mrb[150].mxu1  ;;  %v4612_v25 = vshrl.u32 %v4441_v28, 16  ;;  %v4615_v12 = vshll.u32 %v4441_v28, 16  ;;  %v16811_v28 = vld [vmem:[#allocation8 + $0x54] ss:$8 sps:$4 sm:$0xff]  }
 0x5ef   : > { %4428 = vst [vmem:[#allocation2 + $0x90] sm:$0xff] %v4352_v43  ;;  %v18871_v45 = vadd.f32 %v15713_v17, %v13263_v52  ;;  %v4315_v13 = vpop.f32.mrb[151].mxu1  ;;  %4734 = vmatpush1.bf16.msra.mxu1 %v16797_v7  ;;  %v4610_v59 = vor.u32 %v4609_v33, %v4606_v1  ;;  %v4804_v51 = vld [vmem:[#allocation2 + $0x18] sm:$0xfe]  ;;  %v4826_v10 = vshll.u32 %v4447_v26, 16  ;;  %v4830_v39 = vshrl.u32 %v4447_v26, 16 }
 0x5f0   : > { %4427 = vst [vmem:[#allocation2 + $0x78] sm:$0xff] %v4351_v61  ;;  %v18873_v35 = vadd.f32 %v13263_v52, %v4315_v13  ;;  %v4614_v63 = vrot.slane %v4612_v25, 3  ;;  %v4617_v34 = vrot.slane %v4615_v12, 4  ;;  %4735 = vmatprep.subr.bf16.mxu1 %v16802_v8  ;;  %v4442_v56 = vpack.c.bf16 %v4351_v61, %v4350_v14  ;;  %v16808_v52 = vld [vmem:[#allocation8 + $0x44] ss:$8 sps:$4 sm:$0xff]  }
 0x5f1   : > { %v4354_v60 = vmax.f32 %v18871_v45, 0.0  ;;  %v4448_v18 = vpack.c.bf16 %v4352_v43, %v4351_v61  ;;  %v4813_v4 = vpack.c.bf16 %v4348_v53, %v4804_v51  ;;  %v4828_v3 = vrot.slane %v4826_v10, 1  ;;  %6172 = vst [vmem:[#allocation2 + $0x78] sm:$0x1] %v17770_v2  ;;  %v16809_v12 = vld [vmem:[#allocation8 + $0x50] ss:$8 sps:$4 sm:$0xff]  }
 0x5f2   : > { %v4353_v22 = vmax.f32 %v18873_v35, 0.0  ;;  %v5504_v49 = vpack.c.bf16 %v18871_v45, %v18873_v35  ;;  %4573 = vmatmul.mubr.bf16.gmra.mrb[156].mxu1 %v4447_v26  ;;  %v4618_v36 = vor.u32 %v4617_v34, %v4614_v63  ;;  %v4621_v57 = vshrl.u32 %v4442_v56, 16  ;;  %v16812_v51 = vld [vmem:[#allocation8 + $0x60] ss:$8 sps:$4 sm:$0xff]   ;;  %v16817_v10 = vld [vmem:[#allocation8 + $0x74] ss:$8 sps:$4 sm:$0xff]  }
 0x5f3   : > { %4430 = vst [vmem:[#allocation2 + $0xc0] sm:$0xff] %v4354_v60  ;;  %4736 = vmatpush1.bf16.msra.mxu1 %v16800_v41  ;;  %4582 = vmatprep.mubr.bf16.mxu1 %v17771_v44  ;;  %v4624_v6 = vshll.u32 %v4442_v56, 16  ;;  %v4821_v15 = vshll.u32 %v4813_v4, 16  ;;  %v4819_v16 = vshrl.u32 %v4813_v4, 16  ;;  %v4834_v9 = vshll.u32 %v4448_v18, 16 }
 0x5f4   : > { %4429 = vst [vmem:[#allocation2 + $0xa8] sm:$0xff] %v4353_v22  ;;  %4737 = vmatprep.subr.bf16.mxu1 %v16805_v11  ;;  %v4443_v62 = vpack.c.bf16 %v4353_v22, %v4352_v43  ;;  %v18881_v38 = vpack.c.bf16 %v4354_v60, %v4353_v22  ;;  %v4619_v53 = vsel %vm1316_vm1, %v4610_v59, %v4618_v36  ;;  %v4623_v21 = vrot.slane %v4621_v57, 3  ;;  %v16814_v41 = vld [vmem:[#allocation8 + $0x64] ss:$8 sps:$4 sm:$0xff]   ;;  %v16815_v63 = vld [vmem:[#allocation8 + $0x70] ss:$8 sps:$4 sm:$0xff]  }
 0x5f5   : > { %v4626_v40 = vrot.slane %v4624_v6, 4  ;;  %v4823_v23 = vrot.slane %v4821_v15, 1  ;;  %v4832_v14 = vor.u32 %v4830_v39, %v4828_v3  ;;  %v4836_v0 = vrot.slane %v4834_v9, 1  ;;  %v16820_v34 = vld [vmem:[#allocation8 + $0x104] ss:$8 sps:$4 sm:$0xff]  }
 0x5f6   : > { %v4630_v46 = vshrl.u32 %v4443_v62, 16  ;;  %v4633_v37 = vshll.u32 %v4443_v62, 16  ;;  %v4842_v58 = vshll.u32 %v18881_v38, 16  ;;  %v4838_v7 = vshrl.u32 %v4448_v18, 16  ;;  %v16818_v11 = vld [vmem:[#allocation8 + $0x100] ss:$8 sps:$4 sm:$0xff]  }
 0x5f7   : > { %4738 = vmatpush1.bf16.msra.mxu1 %v16803_v29  ;;  %v4627_v48 = vor.u32 %v4626_v40, %v4623_v21  ;;  %v4824_v50 = vor.u32 %v4823_v23, %v4819_v16  ;;  %v18892_v61 = vsel %vm2125_vm2, %v4832_v14, %v4836_v0  ;;  %v16823_v56 = vld [vmem:[#allocation8 + $0x114] ss:$8 sps:$4 sm:$0xff]   ;;  %v16821_v60 = vld [vmem:[#allocation8 + $0x110] ss:$8 sps:$4 sm:$0xff]   ;;  %v16832_v29 = vld [vmem:[#allocation8 + $0x144] ss:$8 sps:$4 sm:$0xff]  }
 0x5f8   : > { %4739 = vmatprep.subr.bf16.mxu1 %v16808_v52  ;;  %v4632_v26 = vrot.slane %v4630_v46, 3  ;;  %v4635_v8 = vrot.slane %v4633_v37, 4  ;;  %v18885_v1 = vrot.slane %v4842_v58, 1  ;;  %v4840_v17 = vor.u32 %v4838_v7, %v4836_v0  ;;  %v16829_v22 = vld [vmem:[#allocation8 + $0x134] ss:$8 sps:$4 sm:$0xff]   ;;  %v16858_v7 = vld [vmem:[%s20290_s5 + $0x258] sm:$0xff]  }
 0x5f9   : > { %v4628_v43 = vsel %vm1316_vm1, %v4618_v36, %v4627_v48  ;;  %v18889_v33 = vsel %vm2125_vm2, %v4824_v50, %v4828_v3  ;;  %v16824_v3 = vld [vmem:[#allocation8 + $0x120] ss:$8 sps:$4 sm:$0xff]   ;;  %v16827_v57 = vld [vmem:[#allocation8 + $0x130] ss:$8 sps:$4 sm:$0xff]   ;;  %v16835_v52 = vld [vmem:[#allocation8 + $0x154] ss:$8 sps:$4 sm:$0xff]  }
 0x5fa   : > { %4583 = vmatmul.mubr.bf16.gmra.mrb[160].mxu1 %v4448_v18  ;;  %v4636_v25 = vor.u32 %v4635_v8, %v4632_v26  ;;  %v18897_v13 = vsel %vm2125_vm2, %v4840_v17, %v18885_v1  ;;  %v16826_v18 = vld [vmem:[#allocation8 + $0x124] ss:$8 sps:$4 sm:$0xff]   ;;  %v16830_v39 = vld [vmem:[#allocation8 + $0x140] ss:$8 sps:$4 sm:$0xff]   ;;  %v16833_v21 = vld [vmem:[#allocation8 + $0x150] ss:$8 sps:$4 sm:$0xff]  }
 0x5fb   : > { %4740 = vmatpush1.bf16.msra.mxu1 %v16806_v55  ;;  %4592 = vmatprep.mubr.bf16.mxu1 %v17771_v44  ;;  %v4439_v4 = vld [vmem:[#allocation2 + $0xc0] sm:$0x7f]  ;;  %v16836_v23 = vld [vmem:[#allocation8 + $0x160] ss:$8 sps:$4 sm:$0xff]   ;;  %v16852_v55 = vld [vmem:[%s20290_s5 + $0x248] sm:$0xff]  }
 0x5fc   : > { %4741 = vmatprep.subr.bf16.mxu1 %v16811_v28  ;;  %v4637_v59 = vsel %vm1316_vm1, %v4627_v48, %v4636_v25  ;;  %v4444_v36 = vpack.c.bf16 %v4439_v4, %v4439_v4  ;;  %v16838_v40 = vld [vmem:[#allocation8 + $0x164] ss:$8 sps:$4 sm:$0xff]   ;;  %v16841_v9 = vld [vmem:[#allocation8 + $0x174] ss:$8 sps:$4 sm:$0xff]   ;;  %v16839_v37 = vld [vmem:[#allocation8 + $0x170] ss:$8 sps:$4 sm:$0xff]  }
 0x5fd   : > { %v16850_v14 = vld [vmem:[%s20290_s5 + $0x240] sm:$0xff]   ;;  %v16853_v48 = vld [vmem:[%s20290_s5 + $0x208] sm:$0xff]   ;;  %v16856_v50 = vld [vmem:[%s20290_s5 + $0x250] sm:$0xff]  }
 0x5fe   : > { %v4639_v6 = vshrl.u32 %v4444_v36, 16  ;;  %v4642_v15 = vshll.u32 %v4444_v36, 16  ;;  %v16851_v58 = vld [vmem:[%s20290_s5 + $0x200] sm:$0xff]   ;;  %v16857_v0 = vld [vmem:[%s20290_s5 + $0x210] sm:$0xff]   ;;  %v4812_v28 = vld [vmem:[#allocation2 + $0xd8] sm:$0x1] }
 0x5ff   : > { %4742 = vmatpush1.bf16.msra.mxu1 %v16809_v12  ;;  %v16859_v26 = vld [vmem:[%s20290_s5 + $0x218] sm:$0xff]   ;;  %v16862_v8 = vld [vmem:[%s20290_s5 + $0x260] sm:$0xff]  }
 0x600   : > { %4743 = vmatprep.subr.bf16.mxu1 %v16814_v41  ;;  %v4641_v62 = vrot.slane %v4639_v6, 3 }
 0x602   : > { %4593 = vmatmul.mubr.bf16.gmra.mrb[164].mxu1 %v18881_v38 }
 0x603   : > { %4744 = vmatpush1.bf16.msra.mxu1 %v16812_v51  ;;  %4763 = vmatprep.mubr.bf16.mxu1 %v17771_v44  ;;  %v16865_v51 = vld [vmem:[%s20290_s5 + $0x228] sm:$0xff]  }
 0x604   : > { %4745 = vmatprep.subr.bf16.mxu1 %v16817_v10  ;;  %v16869_v10 = vld [vmem:[%s20290_s5 + $0x230] sm:$0xff]  }
 0x607   : > { %4746 = vmatpush1.bf16.msra.mxu1 %v16815_v63  ;;  %v16870_v63 = vld [vmem:[%s20290_s5 + $0x1f8] sm:$0xff]  }
 0x608   : > { %4938 = vmatprep.subr.bf16.mxu1 %v16820_v34  ;;  %v16871_v34 = vld [vmem:[%s20290_s5 + $0x278] sm:$0xff]  }
 0x60a   : > { %4764 = vmatmul.mubr.bf16.vlgmr.msra.gmra.mrb[152].mxu1 %v4619_v53  ;;  %v4644_v53 = vrot.slane %v4642_v15, 4 }
 0x60b   : > { %4939 = vmatpush1.bf16.msra.mxu1 %v16818_v11  ;;  %4773 = vmatprep.mubr.bf16.mxu1 %v17771_v44  ;;  %v16872_v11 = vld [vmem:[%s20290_s5 + $0x1b8] sm:$0xff]  }
 0x60c   : > { %4940 = vmatprep.subr.bf16.mxu1 %v16823_v56  ;;  %v4645_v16 = vor.u32 %v4644_v53, %v4641_v62  ;;  %v16873_v56 = vld [vmem:[%s20290_s5 + $0x238] sm:$0xff]  }
 0x60e   : > { %v4646_v46 = vsel %vm1316_vm1, %v4636_v25, %v4645_v16  ;;  %v4846_v25 = vshrl.u32 %v18881_v38, 16  ;;  %v16868_v38 = vld [vmem:[%s20290_s5 + $0x270] sm:$0xff]  }
 0x60f   : > { %4941 = vmatpush1.bf16.msra.mxu1 %v16821_v60  ;;  %v16874_v60 = vld [vmem:[%s20290_s5 + $0x2c0] sm:$0xff]  }
 0x610   : > { %4942 = vmatprep.subr.bf16.mxu1 %v16826_v18  ;;  %v4848_v12 = vor.u32 %v4846_v25, %v18885_v1  ;;  %v16867_v1 = vld [vmem:[%s20290_s5 + $0x1b0] sm:$0xff]   ;;  %v13312_v18 = vld [vmem:[%s20291_s6 + $0x2] sm:$0x3] }
 0x611   : > { %v18983_v4 = vrot.slane %v13312_v18, %v18504_v27 }
 0x612   : > { %4774 = vmatmul.mubr.bf16.gmra.mrb[156].mxu1 %v4628_v43  ;;  %v4817_v43 = vpack.c.bf16 %v4812_v28, %v4812_v28  ;;  %v16877_v28 = vld [vmem:[%s20290_s5 + $0x288] sm:$0xff]  }
 0x613   : > { %4943 = vmatpush1.bf16.msra.mxu1 %v16824_v3  ;;  %4783 = vmatprep.mubr.bf16.mxu1 %v17771_v44  ;;  %v18986_v3 = vrot.slane %v13312_v18, %v18509_v31  ;;  %v16882_v18 = vld [vmem:[%s20290_s5 + $0x2e0] sm:$0xff]  }
 0x614   : > { %4944 = vmatprep.subr.bf16.mxu1 %v16829_v22  ;;  %v4850_v17 = vshll.u32 %v4817_v43, 16  ;;  %v16878_v43 = vld [vmem:[%s20290_s5 + $0x2d0] sm:$0xff]  }
 0x616   : > { %v4852_v41 = vrot.slane %v4850_v17, 1 }
 0x617   : > { %4945 = vmatpush1.bf16.msra.mxu1 %v16827_v57 }
 0x618   : > { %4946 = vmatprep.subr.bf16.mxu1 %v16832_v29 }
 0x61a   : > { %4784 = vmatmul.mubr.bf16.gmra.mrb[160].mxu1 %v4637_v59  ;;  %v4853_v59 = vsel %vm2125_vm2, %v4848_v12, %v4852_v41  ;;  %v16879_v41 = vld [vmem:[%s20290_s5 + $0x290] sm:$0xff]  }
 0x61b   : > { %4947 = vmatpush1.bf16.msra.mxu1 %v16830_v39  ;;  %4793 = vmatprep.mubr.bf16.mxu1 %v17771_v44 }
 0x61c   : > { %4948 = vmatprep.subr.bf16.mxu1 %v16835_v52 }
 0x61f   : > { %4949 = vmatpush1.bf16.msra.mxu1 %v16833_v21 }
 0x620   : > { %4950 = vmatprep.subr.bf16.mxu1 %v16838_v40 }
 0x622   : > { %4794 = vmatmul.mubr.bf16.gmra.mrb[164].mxu1 %v4646_v46  ;;  %v16875_v46 = vld [vmem:[%s20290_s5 + $0x280] sm:$0xff]  }
 0x623   : > { %4951 = vmatpush1.bf16.msra.mxu1 %v16836_v23  ;;  %4970 = vmatprep.mubr.bf16.mxu1 %v17771_v44 }
 0x624   : > { %4952 = vmatprep.subr.bf16.mxu1 %v16841_v9 }
 0x627   : > { %4953 = vmatpush1.bf16.msra.mxu1 %v16839_v37 }
 0x628   : > { %15035 = vmatprep.subr.bf16.mxu1 %v16850_v14 }
 0x62a   : > { %4971 = vmatmul.mubr.bf16.vlgmr.msra.gmra.mrb[152].mxu1 %v18889_v33  ;;  %v16863_v33 = vld [vmem:[%s20290_s5 + $0x220] sm:$0xff]  }
 0x62b   : > { %4980 = vmatprep.mubr.bf16.mxu1 %v17771_v44  ;;  %15036 = vmatpush3.bf16.msra.mxu1 %v16851_v58  ;;  %v16876_v58 = vld [vmem:[%s20290_s5 + $0x2c8] sm:$0xff]  }
 0x62c   : > { %15037 = vmatprep.subr.bf16.mxu1 %v16852_v55 }
 0x62f   : > { %15038 = vmatpush3.bf16.msra.mxu1 %v16853_v48 }
 0x630   : > { %15039 = vmatprep.subr.bf16.mxu1 %v16856_v50 }
 0x632   : > { %4981 = vmatmul.mubr.bf16.gmra.mrb[156].mxu1 %v18892_v61  ;;  %v16864_v61 = vld [vmem:[%s20290_s5 + $0x268] sm:$0xff]  }
 0x633   : > { %4990 = vmatprep.mubr.bf16.mxu1 %v17771_v44  ;;  %15040 = vmatpush3.bf16.msra.mxu1 %v16857_v0 }
 0x634   : > { %15041 = vmatprep.subr.bf16.mxu1 %v16858_v7 }
 0x637   : > { %15042 = vmatpush3.bf16.msra.mxu1 %v16859_v26 }
 0x638   : > { %15043 = vmatprep.subr.bf16.mxu1 %v16862_v8 }
 0x63a   : > { %4991 = vmatmul.mubr.bf16.gmra.mrb[160].mxu1 %v18897_v13  ;;  %v16866_v13 = vld [vmem:[%s20290_s5 + $0x1f0] sm:$0xff]  }
 0x63b   : > { %5000 = vmatprep.mubr.bf16.mxu1 %v17771_v44  ;;  %15044 = vmatpush3.bf16.msra.mxu1 %v16863_v33 }
 0x63c   : > { %15045 = vmatprep.subr.bf16.mxu1 %v16864_v61  ;;  %14955 = vmatprep.subr.bf16.mxu0 %v16866_v13  ;;  %v16880_v13 = vld [vmem:[%s20290_s5 + $0x2d8] sm:$0xff]  }
 0x63d   : > { %14956 = vmatpush3.bf16.msra.mxu0 %v16867_v1 }
 0x63e   : > { %14957 = vmatprep.subr.bf16.mxu0 %v16870_v63 }
 0x63f   : > { %15046 = vmatpush3.bf16.msra.mxu1 %v16865_v51 }
 0x640   : > { %15047 = vmatprep.subr.bf16.mxu1 %v16868_v38 }
 0x641   : > { %14958 = vmatpush3.bf16.msra.mxu0 %v16872_v11  ;;  %v16881_v11 = vld [vmem:[%s20290_s5 + $0x298] sm:$0xff]  }
 0x642   : > { %5001 = vmatmul.mubr.bf16.gmra.mrb[164].mxu1 %v4853_v59  ;;  %14983 = vmatprep.subr.bf16.mxu0 %v16874_v60 }
 0x643   : > { %15048 = vmatpush3.bf16.msra.mxu1 %v16869_v10 }
 0x644   : > { %15049 = vmatprep.subr.bf16.mxu1 %v16871_v34 }
 0x647   : > { %15050 = vmatpush3.bf16.msra.mxu1 %v16873_v56 }
 0x648   : > { %6268 = vmatprep.subr.bf16.mxu1 %v16900_v54 }
 0x6fd   : > { %v4972_v22 = vpop.f32.mrb[152].mxu1 }
 0x6fe   : > { %v5040_v36 = vadd.f32 %v18983_v4, %v4972_v22  ;;  %v4974_v57 = vpop.f32.mrb[153].mxu1 }
 0x6ff   : > { %v5041_v29 = vadd.f32 %v18986_v3, %v4974_v57  ;;  %v4976_v6 = vpop.f32.mrb[154].mxu1 }
 0x700   : > { %v5042_v15 = vadd.f32 %v18983_v4, %v4976_v6  ;;  %v4978_v39 = vpop.f32.mrb[155].mxu1  ;;  %v5056_v62 = vmax.f32 %v5040_v36, 0.0 }
 0x701   : > { %v5043_v52 = vadd.f32 %v18986_v3, %v4978_v39  ;;  %v5057_v21 = vmax.f32 %v5041_v29, 0.0 }
 0x702   : > { %v5058_v53 = vmax.f32 %v5042_v15, 0.0  ;;  %v16883_v15 = vld [vmem:[%s20290_s5 + $0x2a0] sm:$0xff]  }
 0x703   : > { %v5059_v40 = vmax.f32 %v5043_v52, 0.0 }
 0x704   : > { %v18992_v16 = vpack.c.bf16 %v5058_v53, %v5056_v62  ;;  %v16884_v62 = vld [vmem:[%s20290_s5 + $0x2e8] sm:$0xff]  }
 0x705   : > { %v18994_v23 = vpack.c.bf16 %v5059_v40, %v5057_v21  ;;  %v4982_v9 = vpop.f32.mrb[156].mxu1 }
 0x706   : > { %v5044_v37 = vadd.f32 %v18983_v4, %v4982_v9  ;;  %v4984_v14 = vpop.f32.mrb[157].mxu1 }
 0x707   : > { %v5045_v55 = vadd.f32 %v18986_v3, %v4984_v14  ;;  %v4986_v48 = vpop.f32.mrb[158].mxu1  ;;  %5241 = vmatprep.mubr.bf16.mxu0 %v18994_v23  ;;  %5758 = vmatprep.mubr.bf16.mxu1 %v18994_v23 }
 0x708   : > { %v5046_v50 = vadd.f32 %v18983_v4, %v4986_v48  ;;  %v4988_v0 = vpop.f32.mrb[159].mxu1  ;;  %5242 = vmatmul.mubr.bf16.vlgmr.msra.gmra.mrb[32].mxu0 %v18992_v16  ;;  %5759 = vmatmul.mubr.bf16.vlgmr.msra.gmra.mrb[168].mxu1 %v18992_v16  ;;  %v5060_v26 = vmax.f32 %v5044_v37, 0.0  ;;  %v16885_v37 = vld [vmem:[%s20290_s5 + $0x2a8] sm:$0xff]  }
 0x709   : > { %v5047_v7 = vadd.f32 %v18986_v3, %v4988_v0  ;;  %14984 = vmatpush3.bf16.msra.mxu0 %v16875_v46  ;;  %v5061_v33 = vmax.f32 %v5045_v55, 0.0  ;;  %v16886_v55 = vld [vmem:[%s20290_s5 + $0x2f0] sm:$0xff]   ;;  %6269 = vmatpush1.bf16.msra.mxu1 %v16898_v24 }
 0x70a   : > { %v5062_v8 = vmax.f32 %v5046_v50, 0.0  ;;  %14985 = vmatprep.subr.bf16.mxu0 %v16876_v58 }
 0x70b   : > { %v5063_v61 = vmax.f32 %v5047_v7, 0.0  ;;  %v16888_v7 = vld [vmem:[%s20290_s5 + $0x2f8] sm:$0xff]  }
 0x70c   : > { %v19016_v17 = vpack.c.bf16 %v5062_v8, %v5060_v26  ;;  %v16890_v26 = vld [vmem:[%s20289_s4] sm:$0xff]   ;;  %v16891_v8 = vld [vmem:[%s20289_s4 + $0x8] sm:$0xff]  }
 0x70d   : > { %v19018_v25 = vpack.c.bf16 %v5063_v61, %v5061_v33  ;;  %v4992_v12 = vpop.f32.mrb[160].mxu1  ;;  %14986 = vmatpush3.bf16.msra.mxu0 %v16877_v28  ;;  %v16889_v28 = vld [vmem:[%s20290_s5 + $0x2b8] sm:$0xff]   ;;  %v16895_v33 = vld [vmem:[%s20289_s4 + $0x28] sm:$0xff]   ;;  %v16896_v61 = vld [vmem:[%s20289_s4 + $0x30] sm:$0xff]  }
 0x70e   : > { %v5048_v59 = vadd.f32 %v18983_v4, %v4992_v12  ;;  %v4994_v51 = vpop.f32.mrb[161].mxu1  ;;  %14987 = vmatprep.subr.bf16.mxu0 %v16878_v43  ;;  %v16893_v43 = vld [vmem:[%s20289_s4 + $0x18] sm:$0xff]   ;;  %v16901_v12 = vld [vmem:[#allocation8 + $0x210] ss:$8 sps:$4 sm:$0xff]  }
 0x70f   : > { %v5049_v38 = vadd.f32 %v18986_v3, %v4994_v51  ;;  %v4996_v1 = vpop.f32.mrb[162].mxu1  ;;  %5249 = vmatprep.mubr.bf16.mxu0 %v19018_v25  ;;  %5766 = vmatprep.mubr.bf16.mxu1 %v19018_v25  ;;  %v16904_v51 = vld [vmem:[#allocation8 + $0x220] ss:$8 sps:$4 sm:$0xff]  }
 0x710   : > { %v5050_v10 = vadd.f32 %v18983_v4, %v4996_v1  ;;  %v4998_v63 = vpop.f32.mrb[163].mxu1  ;;  %5250 = vmatmul.mubr.bf16.gmra.mrb[36].mxu0 %v19016_v17  ;;  %5767 = vmatmul.mubr.bf16.gmra.mrb[172].mxu1 %v19016_v17  ;;  %v5064_v56 = vmax.f32 %v5048_v59, 0.0  ;;  %v16909_v1 = vld [vmem:[#allocation8 + $0x234] ss:$8 sps:$4 sm:$0xff]  }
 0x711   : > { %v5051_v34 = vadd.f32 %v18986_v3, %v4998_v63  ;;  %14988 = vmatpush3.bf16.msra.mxu0 %v16879_v41  ;;  %v5065_v22 = vmax.f32 %v5049_v38, 0.0  ;;  %v16907_v63 = vld [vmem:[#allocation8 + $0x230] ss:$8 sps:$4 sm:$0xff]  }
 0x712   : > { %v5066_v60 = vmax.f32 %v5050_v10, 0.0  ;;  %14989 = vmatprep.subr.bf16.mxu0 %v16880_v13 }
 0x713   : > { %v5067_v36 = vmax.f32 %v5051_v34, 0.0 }
 0x714   : > { %v5076_v57 = vpack.c.bf16 %v5066_v60, %v5064_v56  ;;  %v16912_v56 = vld [vmem:[#allocation8 + $0x244] ss:$8 sps:$4 sm:$0xff]  }
 0x715   : > { %v5077_v29 = vpack.c.bf16 %v5067_v36, %v5065_v22  ;;  %v5002_v6 = vpop.f32.mrb[164].mxu1  ;;  %14990 = vmatpush3.bf16.msra.mxu0 %v16881_v11 }
 0x716   : > { %v5052_v39 = vadd.f32 %v18983_v4, %v5002_v6  ;;  %v5004_v52 = vpop.f32.mrb[165].mxu1  ;;  %14991 = vmatprep.subr.bf16.mxu0 %v16882_v18 }
 0x717   : > { %v5053_v53 = vadd.f32 %v18986_v3, %v5004_v52  ;;  %v5006_v21 = vpop.f32.mrb[166].mxu1  ;;  %5257 = vmatprep.mubr.bf16.mxu0 %v5077_v29  ;;  %5774 = vmatprep.mubr.bf16.mxu1 %v5077_v29 }
 0x718   : > { %v5054_v40 = vadd.f32 %v18983_v4, %v5006_v21  ;;  %v5008_v9 = vpop.f32.mrb[167].mxu1  ;;  %5258 = vmatmul.mubr.bf16.gmra.mrb[40].mxu0 %v5076_v57  ;;  %5775 = vmatmul.mubr.bf16.gmra.mrb[176].mxu1 %v5076_v57  ;;  %v5068_v14 = vmax.f32 %v5052_v39, 0.0  ;;  %v16910_v39 = vld [vmem:[#allocation8 + $0x240] ss:$8 sps:$4 sm:$0xff]  }
 0x719   : > { %v5055_v46 = vadd.f32 %v18986_v3, %v5008_v9  ;;  %14992 = vmatpush3.bf16.msra.mxu0 %v16883_v15  ;;  %v5069_v48 = vmax.f32 %v5053_v53, 0.0  ;;  %v16887_v3 = vld [vmem:[%s20290_s5 + $0x2b0] sm:$0xff]  }
 0x71a   : > { %v5070_v58 = vmax.f32 %v5054_v40, 0.0  ;;  %14993 = vmatprep.subr.bf16.mxu0 %v16884_v62 }
 0x71b   : > { %v5071_v50 = vmax.f32 %v5055_v46, 0.0 }
 0x71c   : > { %v5078_v4 = vpack.c.bf16 %v5070_v58, %v5068_v14 }
 0x71d   : > { %v5079_v0 = vpack.c.bf16 %v5071_v50, %v5069_v48  ;;  %14994 = vmatpush3.bf16.msra.mxu0 %v16885_v37 }
 0x71e   : > { %14995 = vmatprep.subr.bf16.mxu0 %v16886_v55 }
 0x71f   : > { %5265 = vmatprep.mubr.bf16.mxu0 %v5079_v0  ;;  %5782 = vmatprep.mubr.bf16.mxu1 %v5079_v0 }
 0x720   : > { %5266 = vmatmul.mubr.bf16.gmra.mrb[44].mxu0 %v5078_v4  ;;  %5783 = vmatmul.mubr.bf16.gmra.mrb[180].mxu1 %v5078_v4 }
 0x721   : > { %14996 = vmatpush3.bf16.msra.mxu0 %v16887_v3  ;;  %5468 = vmatprep.mubr.bf16.mxu0 %v18994_v23  ;;  %v16892_v23 = vld [vmem:[%s20289_s4 + $0x10] sm:$0xff]  }
 0x722   : > { %14997 = vmatprep.subr.bf16.mxu0 %v16888_v7  ;;  %6300 = vmatprep.mubr.bf16.mxu1 %v17771_v44 }
 0x725   : > { %14998 = vmatpush3.bf16.msra.mxu0 %v16889_v28 }
 0x726   : > { %15714 = vmatprep.subr.bf16.mxu0 %v16890_v26 }
 0x728   : > { %5469 = vmatmul.mubr.bf16.vlgmr.msra.gmra.mrb[48].mxu0 %v18992_v16  ;;  %v16894_v16 = vld [vmem:[%s20289_s4 + $0x20] sm:$0xff]  }
 0x729   : > { %5476 = vmatprep.mubr.bf16.mxu0 %v19018_v25  ;;  %15715 = vmatpush3.bf16.msra.mxu0 %v16890_v26  ;;  %v5622_v25 = vld [vmem:[#allocation9 + $0x40] sm:$0xff] }
 0x72a   : > { %15716 = vmatprep.subr.bf16.mxu0 %v16891_v8 }
 0x72d   : > { %15717 = vmatpush3.bf16.msra.mxu0 %v16891_v8 }
 0x72e   : > { %15718 = vmatprep.subr.bf16.mxu0 %v16892_v23 }
 0x730   : > { %5477 = vmatmul.mubr.bf16.gmra.mrb[52].mxu0 %v19016_v17  ;;  %v16897_v17 = vld [vmem:[%s20289_s4 + $0x38] sm:$0xff]  }
 0x731   : > { %5484 = vmatprep.mubr.bf16.mxu0 %v5077_v29  ;;  %15719 = vmatpush3.bf16.msra.mxu0 %v16892_v23 }
 0x732   : > { %15720 = vmatprep.subr.bf16.mxu0 %v16893_v43 }
 0x735   : > { %15721 = vmatpush3.bf16.msra.mxu0 %v16893_v43 }
 0x736   : > { %15722 = vmatprep.subr.bf16.mxu0 %v16894_v16 }
 0x738   : > { %5485 = vmatmul.mubr.bf16.gmra.mrb[56].mxu0 %v5076_v57 }
 0x739   : > { %5492 = vmatprep.mubr.bf16.mxu0 %v5079_v0  ;;  %15723 = vmatpush3.bf16.msra.mxu0 %v16894_v16 }
 0x73a   : > { %15724 = vmatprep.subr.bf16.mxu0 %v16895_v33 }
 0x73d   : > { %15725 = vmatpush3.bf16.msra.mxu0 %v16895_v33 }
 0x73e   : > { %15726 = vmatprep.subr.bf16.mxu0 %v16896_v61 }
 0x740   : > { %5493 = vmatmul.mubr.bf16.gmra.mrb[60].mxu0 %v5078_v4 }
 0x741   : > { %15727 = vmatpush3.bf16.msra.mxu0 %v16896_v61  ;;  %15730 = vmatprep.mubr.bf16.mxu0 %v5501_v32  ;;  %v16903_v32 = vld [vmem:[#allocation8 + $0x214] ss:$8 sps:$4 sm:$0xff]  }
 0x742   : > { %15728 = vmatprep.subr.bf16.mxu0 %v16897_v17  ;;  %6270 = vmatprep.subr.bf16.mxu1 %v16903_v32 }
 0x743   : > { %6271 = vmatpush1.bf16.msra.mxu1 %v16901_v12 }
 0x745   : > { %15729 = vmatpush3.bf16.msra.mxu0 %v16897_v17 }
 0x748   : > { %15731 = vmatmul.mubr.bf16.vlgmr.msra.gmra.mrb[64].mxu0 %v5502_v20  ;;  %v16906_v20 = vld [vmem:[#allocation8 + $0x224] ss:$8 sps:$4 sm:$0xff]  }
 0x749   : > { %15734 = vmatprep.mubr.bf16.mxu0 %v5503_v19  ;;  %6272 = vmatprep.subr.bf16.mxu1 %v16906_v20 }
 0x74a   : > { %6273 = vmatpush1.bf16.msra.mxu1 %v16904_v51 }
 0x74b   : > { %6274 = vmatprep.subr.bf16.mxu1 %v16909_v1 }
 0x74e   : > { %6275 = vmatpush1.bf16.msra.mxu1 %v16907_v63 }
 0x74f   : > { %6276 = vmatprep.subr.bf16.mxu1 %v16912_v56 }
 0x750   : > { %15735 = vmatmul.mubr.bf16.gmra.mrb[68].mxu0 %v5504_v49 }
 0x751   : > { %15754 = vmatprep.mubr.msk.f32.mxu0 %vm5791_vm3, %v5622_v25 }
 0x752   : > { %6277 = vmatpush1.bf16.msra.mxu1 %v16910_v39 }
 0x7db   : > { %v14959_v42 = vpop.f32.mrb[32].mxu0  ;;  %v15051_v47 = vpop.f32.mrb[168].mxu1 }
 0x7dc   : > { %v14960_v30 = vpop.f32.mrb[33].mxu0  ;;  %v15052_v5 = vpop.f32.mrb[169].mxu1 }
 0x7dd   : > { %v14961_v19 = vadd.f32 %v14960_v30, %v14959_v42  ;;  %v19107_v41 = vadd.f32 %v15052_v5, %v15051_v47  ;;  %v14962_v45 = vpop.f32.mrb[34].mxu0  ;;  %v15054_v35 = vpop.f32.mrb[170].mxu1 }
 0x7de   : > { %v14963_v49 = vpop.f32.mrb[35].mxu0  ;;  %v15055_v59 = vpop.f32.mrb[171].mxu1 }
 0x7df   : > { %v14964_v13 = vadd.f32 %v14963_v49, %v14962_v45  ;;  %v19109_v38 = vadd.f32 %v15055_v59, %v15054_v35 }
 0x7e1   : > { %v19111_v10 = vpack.c.bf16 %v14964_v13, %v14961_v19 }
 0x7e3   : > { %v14965_v34 = vpop.f32.mrb[36].mxu0  ;;  %v15057_v11 = vpop.f32.mrb[172].mxu1 }
 0x7e4   : > { %v14966_v60 = vpop.f32.mrb[37].mxu0  ;;  %v15058_v18 = vpop.f32.mrb[173].mxu1 }
 0x7e5   : > { %v14967_v22 = vadd.f32 %v14966_v60, %v14965_v34  ;;  %v19113_v36 = vadd.f32 %v15058_v18, %v15057_v11  ;;  %v14968_v57 = vpop.f32.mrb[38].mxu0  ;;  %v15060_v29 = vpop.f32.mrb[174].mxu1 }
 0x7e6   : > { %v14969_v6 = vpop.f32.mrb[39].mxu0  ;;  %v15061_v15 = vpop.f32.mrb[175].mxu1 }
 0x7e7   : > { %v14970_v52 = vadd.f32 %v14969_v6, %v14968_v57  ;;  %v19115_v62 = vadd.f32 %v15061_v15, %v15060_v29 }
 0x7e9   : > { %v19117_v53 = vpack.c.bf16 %v14970_v52, %v14967_v22 }
 0x7eb   : > { %v14971_v21 = vpop.f32.mrb[40].mxu0  ;;  %v15063_v40 = vpop.f32.mrb[176].mxu1 }
 0x7ec   : > { %v14972_v9 = vpop.f32.mrb[41].mxu0  ;;  %v15064_v46 = vpop.f32.mrb[177].mxu1 }
 0x7ed   : > { %v14973_v37 = vadd.f32 %v14972_v9, %v14971_v21  ;;  %v19119_v14 = vadd.f32 %v15064_v46, %v15063_v40  ;;  %v14974_v58 = vpop.f32.mrb[42].mxu0  ;;  %v15066_v55 = vpop.f32.mrb[178].mxu1 }
 0x7ee   : > { %v14975_v48 = vpop.f32.mrb[43].mxu0  ;;  %v15067_v50 = vpop.f32.mrb[179].mxu1 }
 0x7ef   : > { %v14976_v4 = vadd.f32 %v14975_v48, %v14974_v58  ;;  %v19121_v0 = vadd.f32 %v15067_v50, %v15066_v55 }
 0x7f1   : > { %v19123_v3 = vpack.c.bf16 %v14976_v4, %v14973_v37 }
 0x7f3   : > { %v14977_v7 = vpop.f32.mrb[44].mxu0  ;;  %v15069_v28 = vpop.f32.mrb[180].mxu1 }
 0x7f4   : > { %v14978_v26 = vpop.f32.mrb[45].mxu0  ;;  %v15070_v8 = vpop.f32.mrb[181].mxu1 }
 0x7f5   : > { %v14979_v23 = vadd.f32 %v14978_v26, %v14977_v7  ;;  %v15071_v43 = vadd.f32 %v15070_v8, %v15069_v28  ;;  %v14980_v16 = vpop.f32.mrb[46].mxu0  ;;  %v15072_v33 = vpop.f32.mrb[182].mxu1 }
 0x7f6   : > { %v14981_v61 = vpop.f32.mrb[47].mxu0  ;;  %v15073_v17 = vpop.f32.mrb[183].mxu1 }
 0x7f7   : > { %v14982_v25 = vadd.f32 %v14981_v61, %v14980_v16  ;;  %v15074_v24 = vadd.f32 %v15073_v17, %v15072_v33  ;;  %v5620_v61 = vld [vmem:[#allocation9 + $0x10] sm:$0xff]  ;;  %v5626_v17 = vld [vmem:[#allocation9 + $0x80] sm:$0xff] }
 0x7f9   : > { %v19125_v54 = vpack.c.bf16 %v14982_v25, %v14979_v23  ;;  %v5628_v25 = vld [vmem:[#allocation9 + $0x90] sm:$0xff] }
 0x7fb   : > { %v14999_v32 = vpop.f32.mrb[48].mxu0 }
 0x7fc   : > { %v15000_v12 = vpop.f32.mrb[49].mxu0 }
 0x7fd   : > { %v15001_v42 = vadd.f32 %v15000_v12, %v14999_v32  ;;  %v15002_v47 = vpop.f32.mrb[50].mxu0  ;;  %v16913_v32 = vld [vmem:[#allocation8 + $0x250] ss:$8 sps:$4 sm:$0xff]   ;;  %v16918_v12 = vld [vmem:[#allocation8 + $0x264] ss:$8 sps:$4 sm:$0xff]  }
 0x7fe   : > { %v15003_v20 = vpop.f32.mrb[51].mxu0 }
 0x7ff   : > { %v15004_v30 = vadd.f32 %v15003_v20, %v15002_v47  ;;  %v16921_v47 = vld [vmem:[#allocation8 + $0x274] ss:$8 sps:$4 sm:$0xff]   ;;  %v16919_v20 = vld [vmem:[#allocation8 + $0x270] ss:$8 sps:$4 sm:$0xff]  }
 0x801   : > { %v19127_v5 = vpack.c.bf16 %v15004_v30, %v15001_v42  ;;  %v16916_v42 = vld [vmem:[#allocation8 + $0x260] ss:$8 sps:$4 sm:$0xff]   ;;  %v16924_v30 = vld [vmem:[#allocation8 + $0x184] ss:$8 sps:$4 sm:$0xff]  }
 0x803   : > { %v15005_v19 = vpop.f32.mrb[52].mxu0 }
 0x804   : > { %v15006_v45 = vpop.f32.mrb[53].mxu0 }
 0x805   : > { %v15007_v35 = vadd.f32 %v15006_v45, %v15005_v19  ;;  %v15008_v49 = vpop.f32.mrb[54].mxu0  ;;  %v16978_v19 = vld [vmem:[%s20290_s5 + $0x340] sm:$0xff]  }
 0x806   : > { %v15009_v59 = vpop.f32.mrb[55].mxu0  ;;  %v16979_v45 = vld [vmem:[%s20290_s5 + $0x300] sm:$0xff]  }
 0x807   : > { %v15010_v51 = vadd.f32 %v15009_v59, %v15008_v49  ;;  %v16981_v49 = vld [vmem:[%s20290_s5 + $0x308] sm:$0xff]   ;;  %v16982_v59 = vld [vmem:[%s20290_s5 + $0x350] sm:$0xff]  }
 0x809   : > { %v19129_v13 = vpack.c.bf16 %v15010_v51, %v15007_v35  ;;  %v16980_v35 = vld [vmem:[%s20290_s5 + $0x348] sm:$0xff]   ;;  %v16983_v51 = vld [vmem:[%s20290_s5 + $0x310] sm:$0xff]  }
 0x80b   : > { %v15011_v1 = vpop.f32.mrb[56].mxu0 }
 0x80c   : > { %v15012_v63 = vpop.f32.mrb[57].mxu0 }
 0x80d   : > { %v15013_v34 = vadd.f32 %v15012_v63, %v15011_v1  ;;  %v15014_v11 = vpop.f32.mrb[58].mxu0  ;;  %v16985_v1 = vld [vmem:[%s20290_s5 + $0x318] sm:$0xff]   ;;  %v16986_v63 = vld [vmem:[%s20290_s5 + $0x360] sm:$0xff]  }
 0x80e   : > { %v15015_v56 = vpop.f32.mrb[59].mxu0 }
 0x80f   : > { %v15016_v60 = vadd.f32 %v15015_v56, %v15014_v11  ;;  %v16988_v11 = vld [vmem:[%s20290_s5 + $0x368] sm:$0xff]  }
 0x810   : > { %v16989_v56 = vld [vmem:[%s20290_s5 + $0x328] sm:$0xff]  }
 0x811   : > { %v19131_v18 = vpack.c.bf16 %v15016_v60, %v15013_v34  ;;  %v16987_v34 = vld [vmem:[%s20290_s5 + $0x320] sm:$0xff]  }
 0x812   : > { %v13478_v60 = vld [vmem:[%s20292_s7 + $0x1] ss:$0 sm:$0xff] }
 0x813   : > { %v15017_v22 = vpop.f32.mrb[60].mxu0 }
 0x814   : > { %v15018_v57 = vpop.f32.mrb[61].mxu0 }
 0x815   : > { %v15019_v29 = vadd.f32 %v15018_v57, %v15017_v22  ;;  %v15020_v6 = vpop.f32.mrb[62].mxu0 }
 0x816   : > { %v15021_v15 = vpop.f32.mrb[63].mxu0 }
 0x817   : > { %v15022_v39 = vadd.f32 %v15021_v15, %v15020_v6 }
 0x819   : > { %v16143_v52 = vpack.c.bf16 %v15022_v39, %v15019_v29 }
 0x81b   : > { %v15732_v21 = vpop.f32.mrb[64].mxu0 }
 0x81c   : > { %v5769_v40 = vadd.f32 %v15732_v21, %v19113_v36  ;;  %v5587_v9 = vpop.f32.mrb[65].mxu0 }
 0x81d   : > { %v5761_v46 = vadd.f32 %v19107_v41, %v5587_v9  ;;  %v15733_v37 = vpop.f32.mrb[66].mxu0  ;;  %v16922_v9 = vld [vmem:[#allocation8 + $0x180] ss:$8 sps:$4 sm:$0xff]  }
 0x81e   : > { %v5772_v58 = vadd.f32 %v15733_v37, %v19115_v62  ;;  %v5590_v55 = vpop.f32.mrb[67].mxu0 }
 0x81f   : > { %v5764_v48 = vadd.f32 %v19109_v38, %v5590_v55  ;;  %v5623_v38 = vld [vmem:[#allocation9 + $0x48] sm:$0xff] }
 0x820   : > { %v16103_v50 = vpack.c.bf16 %v5772_v58, %v5769_v40  ;;  %v16927_v58 = vld [vmem:[#allocation8 + $0x194] ss:$8 sps:$4 sm:$0xff]  }
 0x821   : > { %v16099_v4 = vpack.c.bf16 %v5764_v48, %v5761_v46 }
 0x823   : > { %v15736_v7 = vpop.f32.mrb[68].mxu0  ;;  %16100 = vmatprep.subr.bf16.mxu0 %v16099_v4 }
 0x824   : > { %v5785_v28 = vadd.f32 %v15736_v7, %v15071_v43  ;;  %v5603_v26 = vpop.f32.mrb[69].mxu0  ;;  %16102 = vmatpush3.bf16.msra.mxu0 %v16099_v4  ;;  %v5624_v43 = vld [vmem:[#allocation9 + $0x50] sm:$0xff] }
 0x825   : > { %v5777_v8 = vadd.f32 %v19119_v14, %v5603_v26  ;;  %v15737_v23 = vpop.f32.mrb[70].mxu0  ;;  %16104 = vmatprep.subr.bf16.mxu0 %v16103_v50  ;;  %v5625_v14 = vld [vmem:[#allocation9 + $0x58] sm:$0xff] }
 0x826   : > { %v5788_v36 = vadd.f32 %v15737_v23, %v15074_v24  ;;  %v5606_v16 = vpop.f32.mrb[71].mxu0  ;;  %v5629_v24 = vld [vmem:[#allocation9 + $0x98] sm:$0xff] }
 0x827   : > { %v5780_v41 = vadd.f32 %v19121_v0, %v5606_v16  ;;  %v5618_v0 = vld [vmem:[#allocation9] sm:$0xff]  ;;  %v16925_v26 = vld [vmem:[#allocation8 + $0x190] ss:$8 sps:$4 sm:$0xff]  }
 0x828   : > { %v16111_v33 = vpack.c.bf16 %v5788_v36, %v5785_v28  ;;  %16106 = vmatpush3.bf16.msra.mxu0 %v16103_v50 }
 0x829   : > { %v16107_v62 = vpack.c.bf16 %v5780_v41, %v5777_v8  ;;  %v16930_v8 = vld [vmem:[#allocation8 + $0x1a4] ss:$8 sps:$4 sm:$0xff]  }
 0x82b   : > { %16108 = vmatprep.subr.bf16.mxu0 %v16107_v62 }
 0x82c   : > { %16110 = vmatpush3.bf16.msra.mxu0 %v16107_v62 }
 0x82d   : > { %16112 = vmatprep.subr.bf16.mxu0 %v16111_v33 }
 0x830   : > { %16114 = vmatpush3.bf16.msra.mxu0 %v16111_v33 }
 0x831   : > { %16116 = vmatprep.subr.bf16.mxu0 %v19111_v10 }
 0x833   : > { %15755 = vmatmul.mubr.msk.f32.vlgmr.msra.gmra.mrb[72].mxu0 %vm5791_vm3, %v5623_v38  ;;  %v16928_v38 = vld [vmem:[#allocation8 + $0x1a0] ss:$8 sps:$4 sm:$0xff]  }
 0x834   : > { %16118 = vmatpush3.bf16.msra.mxu0 %v19111_v10  ;;  %15757 = vmatprep.mubr.msk.f32.mxu0 %vm5791_vm3, %v5624_v43  ;;  %v5619_v10 = vld [vmem:[#allocation9 + $0x8] sm:$0xff] }
 0x835   : > { %16120 = vmatprep.subr.bf16.mxu0 %v19117_v53 }
 0x837   : > { %15758 = vmatmul.mubr.msk.f32.gmra.mrb[74].mxu0 %vm5791_vm3, %v5625_v14 }
 0x838   : > { %16122 = vmatpush3.bf16.msra.mxu0 %v19117_v53  ;;  %15776 = vmatprep.mubr.msk.f32.mxu0 %vm5791_vm3, %v5618_v0  ;;  %v5621_v53 = vld [vmem:[#allocation9 + $0x18] sm:$0xff] }
 0x839   : > { %16124 = vmatprep.subr.bf16.mxu0 %v19123_v3 }
 0x83c   : > { %16126 = vmatpush3.bf16.msra.mxu0 %v19123_v3  ;;  %v5627_v3 = vld [vmem:[#allocation9 + $0x88] sm:$0xff] }
 0x83d   : > { %16128 = vmatprep.subr.bf16.mxu0 %v19125_v54 }
 0x840   : > { %16130 = vmatpush3.bf16.msra.mxu0 %v19125_v54  ;;  %v16915_v54 = vld [vmem:[#allocation8 + $0x254] ss:$8 sps:$4 sm:$0xff]  }
 0x841   : > { %16132 = vmatprep.subr.bf16.mxu0 %v19127_v5  ;;  %6278 = vmatprep.subr.bf16.mxu1 %v16915_v54  ;;  %v16936_v54 = vld [vmem:[#allocation8 + $0x1c4] ss:$8 sps:$4 sm:$0xff]  }
 0x842   : > { %6279 = vmatpush1.bf16.msra.mxu1 %v16913_v32 }
 0x843   : > { %15777 = vmatmul.mubr.msk.f32.vlgmr.msra.gmra.mrb[72].mxu0 %vm5791_vm3, %v5619_v10  ;;  %6280 = vmatprep.subr.bf16.mxu1 %v16918_v12  ;;  %v16933_v10 = vld [vmem:[#allocation8 + $0x1b4] ss:$8 sps:$4 sm:$0xff]  }
 0x844   : > { %16134 = vmatpush3.bf16.msra.mxu0 %v19127_v5  ;;  %15779 = vmatprep.mubr.msk.f32.mxu0 %vm5791_vm3, %v5620_v61  ;;  %v6177_v5 = vld [vmem:[#allocation2] sm:$0x80] }
 0x845   : > { %16136 = vmatprep.subr.bf16.mxu0 %v19129_v13  ;;  %7651 = vst [vmem:[#allocation2 + $0x7] sm:$0x1] %v17770_v2 }
 0x846   : > { %6281 = vmatpush1.bf16.msra.mxu1 %v16916_v42 }
 0x847   : > { %15780 = vmatmul.mubr.msk.f32.gmra.mrb[74].mxu0 %vm5791_vm3, %v5621_v53  ;;  %6282 = vmatprep.subr.bf16.mxu1 %v16921_v47 }
 0x848   : > { %16138 = vmatpush3.bf16.msra.mxu0 %v19129_v13  ;;  %15798 = vmatprep.mubr.msk.f32.mxu0 %vm5791_vm3, %v5626_v17  ;;  %v16984_v13 = vld [vmem:[%s20290_s5 + $0x358] sm:$0xff]  }
 0x849   : > { %16140 = vmatprep.subr.bf16.mxu0 %v19131_v18 }
 0x84a   : > { %6283 = vmatpush1.bf16.msra.mxu1 %v16919_v20 }
 0x84b   : > { %6429 = vmatprep.subr.bf16.mxu1 %v16924_v30  ;;  %v16934_v30 = vld [vmem:[#allocation8 + $0x1c0] ss:$8 sps:$4 sm:$0xff]  }
 0x84c   : > { %16142 = vmatpush3.bf16.msra.mxu0 %v19131_v18 }
 0x84d   : > { %16144 = vmatprep.subr.bf16.mxu0 %v16143_v52 }
 0x850   : > { %16146 = vmatpush3.bf16.msra.mxu0 %v16143_v52 }
 0x851   : > { %15111 = vmatprep.subr.bf16.mxu0 %v16978_v19 }
 0x853   : > { %15799 = vmatmul.mubr.msk.f32.vlgmr.msra.gmra.mrb[72].mxu0 %vm5791_vm3, %v5627_v3 }
 0x854   : > { %15801 = vmatprep.mubr.msk.f32.mxu0 %vm5791_vm3, %v5628_v25  ;;  %15112 = vmatpush3.bf16.msra.mxu0 %v16979_v45  ;;  %v16937_v45 = vld [vmem:[#allocation8 + $0x1d0] ss:$8 sps:$4 sm:$0xff]  }
 0x855   : > { %15113 = vmatprep.subr.bf16.mxu0 %v16980_v35  ;;  %v16942_v35 = vld [vmem:[#allocation8 + $0x1e4] ss:$8 sps:$4 sm:$0xff]  }
 0x857   : > { %15802 = vmatmul.mubr.msk.f32.gmra.mrb[74].mxu0 %vm5791_vm3, %v5629_v24  ;;  %v16931_v24 = vld [vmem:[#allocation8 + $0x1b0] ss:$8 sps:$4 sm:$0xff]  }
 0x858   : > { %15114 = vmatpush3.bf16.msra.mxu0 %v16981_v49 }
 0x859   : > { %15115 = vmatprep.subr.bf16.mxu0 %v16982_v59  ;;  %v16940_v59 = vld [vmem:[#allocation8 + $0x1e0] ss:$8 sps:$4 sm:$0xff]  }
 0x85c   : > { %15116 = vmatpush3.bf16.msra.mxu0 %v16983_v51  ;;  %v16945_v51 = vld [vmem:[#allocation8 + $0x1f4] ss:$8 sps:$4 sm:$0xff]  }
 0x85d   : > { %15117 = vmatprep.subr.bf16.mxu0 %v16984_v13 }
 0x860   : > { %15118 = vmatpush3.bf16.msra.mxu0 %v16985_v1  ;;  %v16943_v1 = vld [vmem:[#allocation8 + $0x1f0] ss:$8 sps:$4 sm:$0xff]  }
 0x861   : > { %15119 = vmatprep.subr.bf16.mxu0 %v16986_v63  ;;  %v16948_v63 = vld [vmem:[#allocation8 + $0x284] ss:$8 sps:$4 sm:$0xff]  }
 0x864   : > { %15120 = vmatpush3.bf16.msra.mxu0 %v16987_v34 }
 0x865   : > { %15121 = vmatprep.subr.bf16.mxu0 %v16988_v11 }
 0x868   : > { %15122 = vmatpush3.bf16.msra.mxu0 %v16989_v56  ;;  %v16946_v56 = vld [vmem:[#allocation8 + $0x280] ss:$8 sps:$4 sm:$0xff]  }
 0x926   : > { %v15800_v18 = vpop.f32.mrb[72].mxu0 }
 0x927   : > { %v19204_v22 = vadd.f32 %v15800_v18, %v13478_v60  ;;  %v6064_v57 = vpop.f32.mrb[73].mxu0 }
 0x928   : > { %v19206_v29 = vadd.f32 %v13478_v60, %v6064_v57 }
 0x929   : > { %v6100_v6 = vmax.f32 %v19204_v22, 0.0 }
 0x92a   : > { %v6099_v15 = vmax.f32 %v19206_v29, 0.0  ;;  %v7075_v39 = vpack.c.bf16 %v19204_v22, %v19206_v29  ;;  %v15803_v52 = vpop.f32.mrb[74].mxu0  ;;  %v16977_v22 = vld [vmem:[%s20289_s4 + $0x78] sm:$0xff]   ;;  %v16990_v29 = vld [vmem:[%s20290_s5 + $0x370] sm:$0xff]  }
 0x92b   : > { %v19212_v21 = vadd.f32 %v15803_v52, %v13478_v60  ;;  %v6074_v40 = vpop.f32.mrb[75].mxu0  ;;  %15123 = vmatprep.subr.bf16.mxu0 %v16990_v29  ;;  %v17015_v29 = vld [vmem:[%s20290_s5 + $0x390] sm:$0xff]  }
 0x92c   : > { %6173 = vst [vmem:[#allocation2 + $0x18] sm:$0xff] %v6099_v15  ;;  %v19214_v46 = vadd.f32 %v13478_v60, %v6074_v40  ;;  %v6186_v37 = vpack.c.bf16 %v6100_v6, %v6099_v15  ;;  %v6182_v55 = vpack.c.bf16 %v6099_v15, %v6177_v5  ;;  %v16939_v5 = vld [vmem:[#allocation8 + $0x1d4] ss:$8 sps:$4 sm:$0xff]   ;;  %v16954_v15 = vld [vmem:[#allocation8 + $0x2a4] ss:$8 sps:$4 sm:$0xff]  }
 0x92d   : > { %v6102_v48 = vmax.f32 %v19212_v21, 0.0  ;;  %v16951_v60 = vld [vmem:[#allocation8 + $0x294] ss:$8 sps:$4 sm:$0xff]   ;;  %v16952_v40 = vld [vmem:[#allocation8 + $0x2a0] ss:$8 sps:$4 sm:$0xff]  }
 0x92e   : > { %v6101_v50 = vmax.f32 %v19214_v46, 0.0  ;;  %v7076_v4 = vpack.c.bf16 %v19212_v21, %v19214_v46  ;;  %6301 = vmatmul.mubr.bf16.vlgmr.msra.gmra.mrb[184].mxu1 %v6186_v37  ;;  %v6322_v7 = vshrl.u32 %v6182_v55, 16  ;;  %v6325_v28 = vshll.u32 %v6182_v55, 16  ;;  %v16960_v55 = vld [vmem:[#allocation8 + $0x2c4] ss:$8 sps:$4 sm:$0xff]  }
 0x92f   : > { %6176 = vst [vmem:[#allocation2 + $0x60] sm:$0xff] %v6102_v48  ;;  %6430 = vmatpush1.bf16.msra.mxu1 %v16922_v9  ;;  %6310 = vmatprep.mubr.bf16.mxu1 %v17771_v44  ;;  %v16957_v9 = vld [vmem:[#allocation8 + $0x2b4] ss:$8 sps:$4 sm:$0xff]  }
 0x930   : > { %6175 = vst [vmem:[#allocation2 + $0x48] sm:$0xff] %v6101_v50  ;;  %6431 = vmatprep.subr.bf16.mxu1 %v16927_v58  ;;  %v6183_v23 = vpack.c.bf16 %v6101_v50, %v6100_v6  ;;  %v19221_v36 = vpack.c.bf16 %v6102_v48, %v6101_v50  ;;  %v6324_v33 = vrot.slane %v6322_v7, 3  ;;  %v6327_v62 = vrot.slane %v6325_v28, 4  ;;  %v16955_v58 = vld [vmem:[#allocation8 + $0x2b0] ss:$8 sps:$4 sm:$0xff]  }
 0x931   : > { %7652 = vst [vmem:[#allocation2 + $0x48] sm:$0x1] %v17770_v2  ;;  %v16958_v48 = vld [vmem:[#allocation8 + $0x2c0] ss:$8 sps:$4 sm:$0xff]   ;;  %v16963_v50 = vld [vmem:[#allocation8 + $0x2d4] ss:$8 sps:$4 sm:$0xff]  }
 0x932   : > { %v6330_v16 = vshrl.u32 %v6183_v23, 16  ;;  %v6333_v41 = vshll.u32 %v6183_v23, 16  ;;  %v6328_v53 = vor.u32 %v6327_v62, %v6324_v33  ;;  %v6498_v25 = vshll.u32 %v19221_v36, 16  ;;  %v16961_v7 = vld [vmem:[#allocation8 + $0x2d0] ss:$8 sps:$4 sm:$0xff]  }
 0x933   : > { %6432 = vmatpush1.bf16.msra.mxu1 %v16925_v26  ;;  %v6482_v43 = vld [vmem:[#allocation2 + $0x18] sm:$0xfe]  ;;  %v6486_v23 = vld [vmem:[#allocation2 + $0x78] sm:$0x1]  ;;  %v16971_v62 = vld [vmem:[%s20289_s4 + $0x48] sm:$0xff]  }
 0x934   : > { %6433 = vmatprep.subr.bf16.mxu1 %v16930_v8  ;;  %v6332_v14 = vrot.slane %v6330_v16, 3  ;;  %v6335_v0 = vrot.slane %v6333_v41, 4  ;;  %v6487_v61 = vpack.c.bf16 %v6100_v6, %v6482_v43  ;;  %v19228_v20 = vrot.slane %v6498_v25, 1  ;;  %v16949_v6 = vld [vmem:[#allocation8 + $0x290] ss:$8 sps:$4 sm:$0xff]   ;;  %v16992_v25 = vld [vmem:[%s20290_s5 + $0x378] sm:$0xff]  }
 0x935   : > { %v16966_v28 = vld [vmem:[#allocation8 + $0x2e4] ss:$8 sps:$4 sm:$0xff]   ;;  %v16964_v26 = vld [vmem:[#allocation8 + $0x2e0] ss:$8 sps:$4 sm:$0xff]   ;;  %v16969_v8 = vld [vmem:[#allocation8 + $0x2f4] ss:$8 sps:$4 sm:$0xff]   ;;  %v6489_v33 = vpack.c.bf16 %v6486_v23, %v6486_v23 }
 0x936   : > { %6311 = vmatmul.mubr.bf16.gmra.mrb[188].mxu1 %v19221_v36  ;;  %v6336_v17 = vor.u32 %v6335_v0, %v6332_v14  ;;  %v6493_v3 = vshll.u32 %v6487_v61, 16  ;;  %v6491_v12 = vshrl.u32 %v6487_v61, 16  ;;  %v6181_v49 = vld [vmem:[#allocation2 + $0x60] sm:$0x7f]  ;;  %v6502_v43 = vshrl.u32 %v19221_v36, 16  ;;  %v16972_v14 = vld [vmem:[%s20289_s4 + $0x50] sm:$0xff]  }
 0x937   : > { %6434 = vmatpush1.bf16.msra.mxu1 %v16928_v38  ;;  %6461 = vmatprep.mubr.bf16.mxu1 %v17771_v44  ;;  %v6184_v13 = vpack.c.bf16 %v6181_v49, %v6181_v49  ;;  %v16967_v16 = vld [vmem:[#allocation8 + $0x2f0] ss:$8 sps:$4 sm:$0xff]   ;;  %v6506_v38 = vshll.u32 %v6489_v33, 16  ;;  %v16973_v61 = vld [vmem:[%s20289_s4 + $0x58] sm:$0xff]   ;;  %v17006_v33 = vld [vmem:[%s20290_s5 + $0x470] sm:$0xff]  }
 0x938   : > { %6435 = vmatprep.subr.bf16.mxu1 %v16933_v10  ;;  %v6337_v32 = vsel %vm1316_vm1, %v6328_v53, %v6336_v17  ;;  %v6495_v42 = vrot.slane %v6493_v3, 1  ;;  %v16970_v41 = vld [vmem:[%s20289_s4 + $0x40] sm:$0xff]   ;;  %v6504_v0 = vor.u32 %v6502_v43, %v19228_v20  ;;  %v16976_v3 = vld [vmem:[%s20289_s4 + $0x70] sm:$0xff]  }
 0x939   : > { %v6339_v34 = vshrl.u32 %v6184_v13, 16  ;;  %v6342_v11 = vshll.u32 %v6184_v13, 16  ;;  %v6508_v10 = vrot.slane %v6506_v38, 1  ;;  %v16974_v36 = vld [vmem:[%s20289_s4 + $0x60] sm:$0xff]   ;;  %v17007_v38 = vld [vmem:[%s20290_s5 + $0x430] sm:$0xff]  }
 0x93a   : > { %v6496_v47 = vor.u32 %v6495_v42, %v6491_v12  ;;  %v16994_v21 = vld [vmem:[%s20290_s5 + $0x440] sm:$0xff]  }
 0x93b   : > { %6436 = vmatpush1.bf16.msra.mxu1 %v16931_v24  ;;  %v6341_v18 = vrot.slane %v6339_v34, 3  ;;  %v6344_v57 = vrot.slane %v6342_v11, 4  ;;  %v6509_v53 = vsel %vm2125_vm2, %v6504_v0, %v6508_v10  ;;  %v16993_v24 = vld [vmem:[%s20290_s5 + $0x338] sm:$0xff]   ;;  %v13543_v46 = vld [vmem:[%s20291_s6 + $0x4] sm:$0x3] }
 0x93c   : > { %6437 = vmatprep.subr.bf16.mxu1 %v16936_v54  ;;  %v6501_v19 = vsel %vm2125_vm2, %v6496_v47, %v19228_v20  ;;  %v6663_v54 = vrot.slane %v13543_v46, %v18509_v31  ;;  %v17003_v23 = vld [vmem:[%s20290_s5 + $0x420] sm:$0xff]  }
 0x93d   : > { %v6345_v52 = vor.u32 %v6344_v57, %v6341_v18 }
 0x93f   : > { %6438 = vmatpush1.bf16.msra.mxu1 %v16934_v30  ;;  %v6346_v37 = vsel %vm1316_vm1, %v6336_v17, %v6345_v52  ;;  %v16975_v17 = vld [vmem:[%s20289_s4 + $0x68] sm:$0xff]  }
 0x940   : > { %6439 = vmatprep.subr.bf16.mxu1 %v16939_v5  ;;  %v16997_v52 = vld [vmem:[%s20290_s5 + $0x408] sm:$0xff]  }
 0x943   : > { %6440 = vmatpush1.bf16.msra.mxu1 %v16937_v45 }
 0x944   : > { %6441 = vmatprep.subr.bf16.mxu1 %v16942_v35 }
 0x947   : > { %6442 = vmatpush1.bf16.msra.mxu1 %v16940_v59 }
 0x948   : > { %6443 = vmatprep.subr.bf16.mxu1 %v16945_v51 }
 0x94b   : > { %6444 = vmatpush1.bf16.msra.mxu1 %v16943_v1 }
 0x94c   : > { %6592 = vmatprep.subr.bf16.mxu1 %v16948_v63  ;;  %v16995_v63 = vld [vmem:[%s20290_s5 + $0x400] sm:$0xff]  }
 0x94e   : > { %6462 = vmatmul.mubr.bf16.vlgmr.msra.gmra.mrb[184].mxu1 %v6337_v32 }
 0x94f   : > { %6593 = vmatpush1.bf16.msra.mxu1 %v16946_v56  ;;  %6471 = vmatprep.mubr.bf16.mxu1 %v17771_v44  ;;  %v16996_v56 = vld [vmem:[%s20290_s5 + $0x448] sm:$0xff]  }
 0x950   : > { %6594 = vmatprep.subr.bf16.mxu1 %v16951_v60 }
 0x953   : > { %6595 = vmatpush1.bf16.msra.mxu1 %v16949_v6 }
 0x954   : > { %6596 = vmatprep.subr.bf16.mxu1 %v16954_v15 }
 0x956   : > { %6472 = vmatmul.mubr.bf16.gmra.mrb[188].mxu1 %v6346_v37  ;;  %v16998_v37 = vld [vmem:[%s20290_s5 + $0x450] sm:$0xff]  }
 0x957   : > { %6597 = vmatpush1.bf16.msra.mxu1 %v16952_v40  ;;  %6624 = vmatprep.mubr.bf16.mxu1 %v17771_v44 }
 0x958   : > { %6598 = vmatprep.subr.bf16.mxu1 %v16957_v9 }
 0x95b   : > { %6599 = vmatpush1.bf16.msra.mxu1 %v16955_v58 }
 0x95c   : > { %6600 = vmatprep.subr.bf16.mxu1 %v16960_v55 }
 0x95f   : > { %6601 = vmatpush1.bf16.msra.mxu1 %v16958_v48 }
 0x960   : > { %6602 = vmatprep.subr.bf16.mxu1 %v16963_v50 }
 0x963   : > { %6603 = vmatpush1.bf16.msra.mxu1 %v16961_v7  ;;  %v16999_v7 = vld [vmem:[%s20290_s5 + $0x410] sm:$0xff]  }
 0x964   : > { %6604 = vmatprep.subr.bf16.mxu1 %v16966_v28  ;;  %v17000_v28 = vld [vmem:[%s20290_s5 + $0x458] sm:$0xff]  }
 0x967   : > { %6605 = vmatpush1.bf16.msra.mxu1 %v16964_v26  ;;  %v17001_v26 = vld [vmem:[%s20290_s5 + $0x418] sm:$0xff]  }
 0x968   : > { %6606 = vmatprep.subr.bf16.mxu1 %v16969_v8  ;;  %v17002_v8 = vld [vmem:[%s20290_s5 + $0x460] sm:$0xff]  }
 0x96b   : > { %6607 = vmatpush1.bf16.msra.mxu1 %v16967_v16  ;;  %v17004_v16 = vld [vmem:[%s20290_s5 + $0x468] sm:$0xff]  }
 0x96c   : > { %15804 = vmatprep.subr.bf16.mxu1 %v16970_v41 }
 0x96e   : > { %6625 = vmatmul.mubr.bf16.vlgmr.msra.gmra.mrb[184].mxu1 %v6501_v19 }
 0x96f   : > { %15805 = vmatpush3.bf16.msra.mxu1 %v16970_v41  ;;  %6634 = vmatprep.mubr.bf16.mxu1 %v17771_v44  ;;  %v17005_v41 = vld [vmem:[%s20290_s5 + $0x428] sm:$0xff]  }
 0x970   : > { %15806 = vmatprep.subr.bf16.mxu1 %v16971_v62 }
 0x973   : > { %15807 = vmatpush3.bf16.msra.mxu1 %v16971_v62 }
 0x974   : > { %15808 = vmatprep.subr.bf16.mxu1 %v16972_v14 }
 0x976   : > { %6635 = vmatmul.mubr.bf16.gmra.mrb[188].mxu1 %v6509_v53  ;;  %v17010_v53 = vld [vmem:[%s20290_s5 + $0x3c0] sm:$0xff]  }
 0x977   : > { %15809 = vmatpush3.bf16.msra.mxu1 %v16972_v14  ;;  %15820 = vmatprep.mubr.bf16.mxu1 %v7075_v39  ;;  %v16991_v39 = vld [vmem:[%s20290_s5 + $0x330] sm:$0xff]   ;;  %v17008_v14 = vld [vmem:[%s20290_s5 + $0x478] sm:$0xff]  }
 0x978   : > { %15810 = vmatprep.subr.bf16.mxu1 %v16973_v61  ;;  %15124 = vmatpush3.bf16.msra.mxu0 %v16991_v39  ;;  %v17016_v39 = vld [vmem:[%s20290_s5 + $0x3d8] sm:$0xff]  }
 0x979   : > { %15125 = vmatprep.subr.bf16.mxu0 %v16992_v25  ;;  %v17017_v25 = vld [vmem:[%s20290_s5 + $0x398] sm:$0xff]  }
 0x97b   : > { %15811 = vmatpush3.bf16.msra.mxu1 %v16973_v61  ;;  %v17009_v61 = vld [vmem:[%s20290_s5 + $0x438] sm:$0xff]  }
 0x97c   : > { %15812 = vmatprep.subr.bf16.mxu1 %v16974_v36  ;;  %15126 = vmatpush3.bf16.msra.mxu0 %v16993_v24  ;;  %v17018_v24 = vld [vmem:[%s20290_s5 + $0x3e0] sm:$0xff]  }
 0x97d   : > { %15139 = vmatprep.subr.bf16.mxu0 %v16994_v21  ;;  %v17019_v21 = vld [vmem:[%s20290_s5 + $0x3a0] sm:$0xff]  }
 0x97f   : > { %15813 = vmatpush3.bf16.msra.mxu1 %v16974_v36  ;;  %v17011_v36 = vld [vmem:[%s20290_s5 + $0x380] sm:$0xff]  }
 0x980   : > { %15814 = vmatprep.subr.bf16.mxu1 %v16975_v17 }
 0x983   : > { %15815 = vmatpush3.bf16.msra.mxu1 %v16975_v17  ;;  %v17012_v17 = vld [vmem:[%s20290_s5 + $0x3c8] sm:$0xff]  }
 0x984   : > { %15816 = vmatprep.subr.bf16.mxu1 %v16976_v3 }
 0x987   : > { %15817 = vmatpush3.bf16.msra.mxu1 %v16976_v3  ;;  %v17013_v3 = vld [vmem:[%s20290_s5 + $0x388] sm:$0xff]  }
 0x988   : > { %15818 = vmatprep.subr.bf16.mxu1 %v16977_v22 }
 0x98b   : > { %15819 = vmatpush3.bf16.msra.mxu1 %v16977_v22  ;;  %v17014_v22 = vld [vmem:[%s20290_s5 + $0x3d0] sm:$0xff]  }
 0x98e   : > { %15821 = vmatmul.mubr.bf16.vlgmr.msra.gmra.mrb[192].mxu1 %v7076_v4  ;;  %v6659_v4 = vrot.slane %v13543_v46, %v18504_v27  ;;  %v17020_v46 = vld [vmem:[%s20290_s5 + $0x3e8] sm:$0xff]  }
 0xa41   : > { %v6626_v32 = vpop.f32.mrb[184].mxu1 }
 0xa42   : > { %v6666_v12 = vadd.f32 %v6659_v4, %v6626_v32  ;;  %v6628_v42 = vpop.f32.mrb[185].mxu1  ;;  %v17023_v32 = vld [vmem:[%s20290_s5 + $0x3b0] sm:$0xff]  }
 0xa43   : > { %v6667_v47 = vadd.f32 %v6663_v54, %v6628_v42  ;;  %v6630_v20 = vpop.f32.mrb[186].mxu1  ;;  %v17025_v42 = vld [vmem:[%s20290_s5 + $0x3b8] sm:$0xff]  }
 0xa44   : > { %v6668_v30 = vadd.f32 %v6659_v4, %v6630_v20  ;;  %v6632_v5 = vpop.f32.mrb[187].mxu1  ;;  %v6674_v45 = vmax.f32 %v6666_v12, 0.0  ;;  %v17024_v12 = vld [vmem:[%s20290_s5 + $0x3f8] sm:$0xff]  }
 0xa45   : > { %v6669_v19 = vadd.f32 %v6663_v54, %v6632_v5  ;;  %v6675_v49 = vmax.f32 %v6667_v47, 0.0  ;;  %v19411_v47 = vld [vmem:[#allocation9 + $0x40] sm:$0xff]  ;;  %v17031_v5 = vld [vmem:[#allocation8 + $0x394] ss:$8 sps:$4 sm:$0xff]  }
 0xa46   : > { %v6676_v35 = vmax.f32 %v6668_v30, 0.0  ;;  %15832 = vmatprep.mubr.msk.f32.mxu1 %vm7325_vm4, %v19411_v47  ;;  %v17026_v20 = vld [vmem:[#allocation8 + $0x380] ss:$8 sps:$4 sm:$0xff]   ;;  %v17028_v30 = vld [vmem:[#allocation8 + $0x384] ss:$8 sps:$4 sm:$0xff]  }
 0xa47   : > { %v6677_v59 = vmax.f32 %v6669_v19, 0.0  ;;  %v17029_v19 = vld [vmem:[#allocation8 + $0x390] ss:$8 sps:$4 sm:$0xff]  }
 0xa48   : > { %v19289_v51 = vpack.c.bf16 %v6676_v35, %v6674_v45  ;;  %v17034_v45 = vld [vmem:[#allocation8 + $0x3a4] ss:$8 sps:$4 sm:$0xff]   ;;  %v17032_v35 = vld [vmem:[#allocation8 + $0x3a0] ss:$8 sps:$4 sm:$0xff]  }
 0xa49   : > { %v19291_v13 = vpack.c.bf16 %v6677_v59, %v6675_v49  ;;  %v6636_v1 = vpop.f32.mrb[188].mxu1  ;;  %v17037_v49 = vld [vmem:[#allocation8 + $0x3b4] ss:$8 sps:$4 sm:$0xff]   ;;  %v17035_v59 = vld [vmem:[#allocation8 + $0x3b0] ss:$8 sps:$4 sm:$0xff]  }
 0xa4a   : > { %v6670_v34 = vadd.f32 %v6659_v4, %v6636_v1  ;;  %v6638_v11 = vpop.f32.mrb[189].mxu1 }
 0xa4b   : > { %v6671_v60 = vadd.f32 %v6663_v54, %v6638_v11  ;;  %v6640_v18 = vpop.f32.mrb[190].mxu1  ;;  %6847 = vmatprep.mubr.bf16.mxu0 %v19291_v13 }
 0xa4c   : > { %v6672_v57 = vadd.f32 %v6659_v4, %v6640_v18  ;;  %v6642_v6 = vpop.f32.mrb[191].mxu1  ;;  %6848 = vmatmul.mubr.bf16.vlgmr.msra.gmra.mrb[76].mxu0 %v19289_v51  ;;  %v6678_v40 = vmax.f32 %v6670_v34, 0.0  ;;  %v17021_v4 = vld [vmem:[%s20290_s5 + $0x3a8] sm:$0xff]  }
 0xa4d   : > { %v6673_v15 = vadd.f32 %v6663_v54, %v6642_v6  ;;  %15140 = vmatpush3.bf16.msra.mxu0 %v16995_v63  ;;  %v6679_v58 = vmax.f32 %v6671_v60, 0.0  ;;  %v17022_v54 = vld [vmem:[%s20290_s5 + $0x3f0] sm:$0xff]  }
 0xa4e   : > { %v6680_v9 = vmax.f32 %v6672_v57, 0.0  ;;  %15141 = vmatprep.subr.bf16.mxu0 %v16996_v56 }
 0xa4f   : > { %v6681_v55 = vmax.f32 %v6673_v15, 0.0 }
 0xa50   : > { %v19307_v48 = vpack.c.bf16 %v6680_v9, %v6678_v40 }
 0xa51   : > { %v19309_v50 = vpack.c.bf16 %v6681_v55, %v6679_v58  ;;  %15142 = vmatpush3.bf16.msra.mxu0 %v16997_v52 }
 0xa52   : > { %15143 = vmatprep.subr.bf16.mxu0 %v16998_v37 }
 0xa53   : > { %6855 = vmatprep.mubr.bf16.mxu0 %v19309_v50 }
 0xa54   : > { %6856 = vmatmul.mubr.bf16.gmra.mrb[80].mxu0 %v19307_v48 }
 0xa55   : > { %15144 = vmatpush3.bf16.msra.mxu0 %v16999_v7  ;;  %7058 = vmatprep.mubr.bf16.mxu0 %v19291_v13 }
 0xa56   : > { %15145 = vmatprep.subr.bf16.mxu0 %v17000_v28 }
 0xa59   : > { %15146 = vmatpush3.bf16.msra.mxu0 %v17001_v26 }
 0xa5a   : > { %15147 = vmatprep.subr.bf16.mxu0 %v17002_v8 }
 0xa5d   : > { %15148 = vmatpush3.bf16.msra.mxu0 %v17003_v23 }
 0xa5e   : > { %15149 = vmatprep.subr.bf16.mxu0 %v17004_v16 }
 0xa61   : > { %15150 = vmatpush3.bf16.msra.mxu0 %v17005_v41  ;;  %v19338_v62 = vpop.f32.mrb[192].mxu1 }
 0xa62   : > { %v19343_v43 = vpop.f32.mrb[193].mxu1  ;;  %15151 = vmatprep.subr.bf16.mxu0 %v17006_v33 }
 0xa63   : > { %v19348_v0 = vpop.f32.mrb[194].mxu1 }
 0xa64   : > { %v19350_v10 = vpop.f32.mrb[195].mxu1 }
 0xa65   : > { %15152 = vmatpush3.bf16.msra.mxu0 %v17007_v38 }
 0xa66   : > { %15153 = vmatprep.subr.bf16.mxu0 %v17008_v14 }
 0xa69   : > { %15154 = vmatpush3.bf16.msra.mxu0 %v17009_v61 }
 0xa6a   : > { %15177 = vmatprep.subr.bf16.mxu0 %v17010_v53 }
 0xa6c   : > { %7059 = vmatmul.mubr.bf16.vlgmr.msra.gmra.mrb[84].mxu0 %v19289_v51 }
 0xa6d   : > { %7066 = vmatprep.mubr.bf16.mxu0 %v19309_v50  ;;  %15178 = vmatpush3.bf16.msra.mxu0 %v17011_v36 }
 0xa6e   : > { %15179 = vmatprep.subr.bf16.mxu0 %v17012_v17 }
 0xa71   : > { %15180 = vmatpush3.bf16.msra.mxu0 %v17013_v3 }
 0xa72   : > { %15181 = vmatprep.subr.bf16.mxu0 %v17014_v22 }
 0xa74   : > { %7067 = vmatmul.mubr.bf16.gmra.mrb[88].mxu0 %v19307_v48 }
 0xa75   : > { %15182 = vmatpush3.bf16.msra.mxu0 %v17015_v29  ;;  %7308 = vmatprep.mubr.bf16.mxu0 %v19291_v13  ;;  %v17038_v13 = vld [vmem:[#allocation8 + $0x3c0] ss:$8 sps:$4 sm:$0xff]  }
 0xa76   : > { %15183 = vmatprep.subr.bf16.mxu0 %v17016_v39 }
 0xa79   : > { %15184 = vmatpush3.bf16.msra.mxu0 %v17017_v25 }
 0xa7a   : > { %15185 = vmatprep.subr.bf16.mxu0 %v17018_v24 }
 0xa7d   : > { %15186 = vmatpush3.bf16.msra.mxu0 %v17019_v21 }
 0xa7e   : > { %15187 = vmatprep.subr.bf16.mxu0 %v17020_v46 }
 0xa81   : > { %15188 = vmatpush3.bf16.msra.mxu0 %v17021_v4 }
 0xa82   : > { %15189 = vmatprep.subr.bf16.mxu0 %v17022_v54 }
 0xa85   : > { %15190 = vmatpush3.bf16.msra.mxu0 %v17023_v32 }
 0xa86   : > { %15191 = vmatprep.subr.bf16.mxu0 %v17024_v12 }
 0xa89   : > { %15192 = vmatpush3.bf16.msra.mxu0 %v17025_v42 }
 0xa8a   : > { %7742 = vmatprep.subr.bf16.mxu0 %v17028_v30  ;;  %v19419_v30 = vld [vmem:[#allocation9] sm:$0xff] }
 0xa8c   : > { %7309 = vmatmul.mubr.bf16.vlgmr.msra.gmra.mrb[92].mxu0 %v19289_v51  ;;  %v17040_v51 = vld [vmem:[#allocation8 + $0x3c4] ss:$8 sps:$4 sm:$0xff]  }
 0xa8d   : > { %7316 = vmatprep.mubr.bf16.mxu0 %v19309_v50  ;;  %7743 = vmatpush1.bf16.msra.mxu0 %v17026_v20 }
 0xa8e   : > { %7744 = vmatprep.subr.bf16.mxu0 %v17031_v5  ;;  %v17043_v5 = vld [vmem:[#allocation8 + $0x3d4] ss:$8 sps:$4 sm:$0xff]  }
 0xa91   : > { %7745 = vmatpush1.bf16.msra.mxu0 %v17029_v19  ;;  %v17041_v19 = vld [vmem:[#allocation8 + $0x3d0] ss:$8 sps:$4 sm:$0xff]  }
 0xa92   : > { %7746 = vmatprep.subr.bf16.mxu0 %v17034_v45  ;;  %v17046_v45 = vld [vmem:[#allocation8 + $0x3e4] ss:$8 sps:$4 sm:$0xff]  }
 0xa94   : > { %7317 = vmatmul.mubr.bf16.gmra.mrb[96].mxu0 %v19307_v48 }
 0xa95   : > { %7774 = vmatprep.mubr.bf16.mxu0 %v17771_v44  ;;  %7747 = vmatpush1.bf16.msra.mxu0 %v17032_v35  ;;  %v17044_v35 = vld [vmem:[#allocation8 + $0x3e0] ss:$8 sps:$4 sm:$0xff]  }
 0xa96   : > { %7748 = vmatprep.subr.bf16.mxu0 %v17037_v49  ;;  %v17049_v49 = vld [vmem:[#allocation8 + $0x3f4] ss:$8 sps:$4 sm:$0xff]  }
 0xa99   : > { %7749 = vmatpush1.bf16.msra.mxu0 %v17035_v59  ;;  %v17047_v59 = vld [vmem:[#allocation8 + $0x3f0] ss:$8 sps:$4 sm:$0xff]  }
 0xa9a   : > { %7750 = vmatprep.subr.bf16.mxu0 %v17040_v51  ;;  %v17052_v51 = vld [vmem:[#allocation8 + $0x304] ss:$8 sps:$4 sm:$0xff]  }
 0xa9d   : > { %7751 = vmatpush1.bf16.msra.mxu0 %v17038_v13  ;;  %v19430_v13 = vld [vmem:[#allocation2] sm:$0x80] }
 0xa9e   : > { %7752 = vmatprep.subr.bf16.mxu0 %v17043_v5  ;;  %8996 = vst [vmem:[#allocation2 + $0x7] sm:$0x1] %v17770_v2 }
 0xaa1   : > { %7753 = vmatpush1.bf16.msra.mxu0 %v17041_v19  ;;  %v17074_v19 = vld [vmem:[#allocation8 + $0x400] ss:$8 sps:$4 sm:$0xff]  }
 0xaa2   : > { %7754 = vmatprep.subr.bf16.mxu0 %v17046_v45  ;;  %v17079_v45 = vld [vmem:[#allocation8 + $0x414] ss:$8 sps:$4 sm:$0xff]  }
 0xaa5   : > { %7755 = vmatpush1.bf16.msra.mxu0 %v17044_v35 }
 0xaa6   : > { %7756 = vmatprep.subr.bf16.mxu0 %v17049_v49  ;;  %v17077_v49 = vld [vmem:[#allocation8 + $0x410] ss:$8 sps:$4 sm:$0xff]  }
 0xaa9   : > { %7757 = vmatpush1.bf16.msra.mxu0 %v17047_v59  ;;  %v17082_v59 = vld [vmem:[#allocation8 + $0x424] ss:$8 sps:$4 sm:$0xff]  }
 0xaaa   : > { %7883 = vmatprep.subr.bf16.mxu0 %v17052_v51  ;;  %v17080_v51 = vld [vmem:[#allocation8 + $0x420] ss:$8 sps:$4 sm:$0xff]  }
 0xb1f   : > { %v15127_v1 = vpop.f32.mrb[76].mxu0 }
 0xb20   : > { %v15128_v63 = vpop.f32.mrb[77].mxu0 }
 0xb21   : > { %v15129_v34 = vadd.f32 %v15128_v63, %v15127_v1  ;;  %v15130_v11 = vpop.f32.mrb[78].mxu0  ;;  %v17098_v1 = vld [vmem:[%s20290_s5 + $0x4c0] sm:$0xff]  }
 0xb22   : > { %v15131_v56 = vpop.f32.mrb[79].mxu0  ;;  %v17099_v63 = vld [vmem:[%s20290_s5 + $0x480] sm:$0xff]  }
 0xb23   : > { %v15132_v60 = vadd.f32 %v15131_v56, %v15130_v11  ;;  %v17103_v11 = vld [vmem:[%s20290_s5 + $0x488] sm:$0xff]   ;;  %v17106_v56 = vld [vmem:[%s20290_s5 + $0x4d0] sm:$0xff]  }
 0xb25   : > { %v16155_v18 = vpack.c.bf16 %v15132_v60, %v15129_v34  ;;  %v17102_v34 = vld [vmem:[%s20290_s5 + $0x4c8] sm:$0xff]   ;;  %v17107_v60 = vld [vmem:[%s20290_s5 + $0x490] sm:$0xff]  }
 0xb27   : > { %v15133_v57 = vpop.f32.mrb[80].mxu0 }
 0xb28   : > { %v15134_v6 = vpop.f32.mrb[81].mxu0 }
 0xb29   : > { %v15135_v15 = vadd.f32 %v15134_v6, %v15133_v57  ;;  %v15136_v52 = vpop.f32.mrb[82].mxu0  ;;  %v17111_v57 = vld [vmem:[%s20290_s5 + $0x498] sm:$0xff]   ;;  %v17114_v6 = vld [vmem:[%s20290_s5 + $0x4e0] sm:$0xff]  }
 0xb2a   : > { %v15137_v40 = vpop.f32.mrb[83].mxu0 }
 0xb2b   : > { %v15138_v9 = vadd.f32 %v15137_v40, %v15136_v52  ;;  %v17118_v52 = vld [vmem:[%s20290_s5 + $0x4e8] sm:$0xff]  }
 0xb2c   : > { %v17119_v40 = vld [vmem:[%s20290_s5 + $0x4a8] sm:$0xff]  }
 0xb2d   : > { %v16159_v37 = vpack.c.bf16 %v15138_v9, %v15135_v15  ;;  %v17115_v15 = vld [vmem:[%s20290_s5 + $0x4a0] sm:$0xff]  }
 0xb2e   : > { %v13703_v9 = vld [vmem:[%s20292_s7 + $0x2] ss:$0 sm:$0xff] }
 0xb3f   : > { %v15155_v58 = vpop.f32.mrb[84].mxu0 }
 0xb40   : > { %v15156_v55 = vpop.f32.mrb[85].mxu0 }
 0xb41   : > { %v15157_v48 = vadd.f32 %v15156_v55, %v15155_v58  ;;  %v15158_v50 = vpop.f32.mrb[86].mxu0 }
 0xb42   : > { %v15159_v7 = vpop.f32.mrb[87].mxu0 }
 0xb43   : > { %v15160_v28 = vadd.f32 %v15159_v7, %v15158_v50 }
 0xb45   : > { %v16163_v26 = vpack.c.bf16 %v15160_v28, %v15157_v48 }
 0xb47   : > { %v15161_v8 = vpop.f32.mrb[88].mxu0 }
 0xb48   : > { %v15162_v23 = vpop.f32.mrb[89].mxu0 }
 0xb49   : > { %v15163_v16 = vadd.f32 %v15162_v23, %v15161_v8  ;;  %v15164_v41 = vpop.f32.mrb[90].mxu0  ;;  %v17055_v23 = vld [vmem:[#allocation8 + $0x314] ss:$8 sps:$4 sm:$0xff]  }
 0xb4a   : > { %v15165_v33 = vpop.f32.mrb[91].mxu0 }
 0xb4b   : > { %v15166_v38 = vadd.f32 %v15165_v33, %v15164_v41  ;;  %v17058_v41 = vld [vmem:[#allocation8 + $0x324] ss:$8 sps:$4 sm:$0xff]  }
 0xb4d   : > { %v16167_v14 = vpack.c.bf16 %v15166_v38, %v15163_v16  ;;  %v17053_v16 = vld [vmem:[#allocation8 + $0x310] ss:$8 sps:$4 sm:$0xff]   ;;  %v17056_v38 = vld [vmem:[#allocation8 + $0x320] ss:$8 sps:$4 sm:$0xff]  }
 0xb5f   : > { %v15193_v61 = vpop.f32.mrb[92].mxu0 }
 0xb60   : > { %v15194_v53 = vpop.f32.mrb[93].mxu0 }
 0xb61   : > { %v15195_v36 = vadd.f32 %v15194_v53, %v15193_v61  ;;  %v15196_v17 = vpop.f32.mrb[94].mxu0  ;;  %v17059_v61 = vld [vmem:[#allocation8 + $0x330] ss:$8 sps:$4 sm:$0xff]   ;;  %v17064_v53 = vld [vmem:[#allocation8 + $0x344] ss:$8 sps:$4 sm:$0xff]  }
 0xb62   : > { %v15197_v3 = vpop.f32.mrb[95].mxu0 }
 0xb63   : > { %v7311_v22 = vadd.f32 %v15195_v36, %v19343_v43  ;;  %v15198_v29 = vadd.f32 %v15197_v3, %v15196_v17  ;;  %v7177_v43 = vld [vmem:[#allocation9 + $0x48] sm:$0xff]  ;;  %v17067_v17 = vld [vmem:[#allocation8 + $0x354] ss:$8 sps:$4 sm:$0xff]  }
 0xb64   : > { %v17062_v36 = vld [vmem:[#allocation8 + $0x340] ss:$8 sps:$4 sm:$0xff]  }
 0xb65   : > { %v7314_v39 = vadd.f32 %v15198_v29, %v19350_v10  ;;  %v7175_v10 = vld [vmem:[#allocation9 + $0x8] sm:$0xff] }
 0xb67   : > { %v15199_v25 = vpop.f32.mrb[96].mxu0  ;;  %v16147_v24 = vpack.c.bf16 %v7314_v39, %v7311_v22  ;;  %v17065_v22 = vld [vmem:[#allocation8 + $0x350] ss:$8 sps:$4 sm:$0xff]   ;;  %v17070_v39 = vld [vmem:[#allocation8 + $0x364] ss:$8 sps:$4 sm:$0xff]  }
 0xb68   : > { %v15200_v21 = vpop.f32.mrb[97].mxu0 }
 0xb69   : > { %v15201_v46 = vadd.f32 %v15200_v21, %v15199_v25  ;;  %v15202_v4 = vpop.f32.mrb[98].mxu0  ;;  %16148 = vmatprep.subr.bf16.mxu1 %v16147_v24  ;;  %v17068_v21 = vld [vmem:[#allocation8 + $0x360] ss:$8 sps:$4 sm:$0xff]  }
 0xb6a   : > { %v15203_v54 = vpop.f32.mrb[99].mxu0  ;;  %16150 = vmatpush3.bf16.msra.mxu1 %v16147_v24 }
 0xb6b   : > { %v7319_v32 = vadd.f32 %v19338_v62, %v15201_v46  ;;  %v15204_v12 = vadd.f32 %v15203_v54, %v15202_v4  ;;  %v19424_v62 = vld [vmem:[#allocation9 + $0x80] sm:$0xff]  ;;  %v17073_v54 = vld [vmem:[#allocation8 + $0x374] ss:$8 sps:$4 sm:$0xff]  }
 0xb6d   : > { %v7322_v42 = vadd.f32 %v19348_v0, %v15204_v12  ;;  %v7179_v0 = vld [vmem:[#allocation9 + $0x88] sm:$0xff] }
 0xb6f   : > { %v16151_v20 = vpack.c.bf16 %v7322_v42, %v7319_v32  ;;  %v17071_v42 = vld [vmem:[#allocation8 + $0x370] ss:$8 sps:$4 sm:$0xff]  }
 0xb71   : > { %16152 = vmatprep.subr.bf16.mxu1 %v16151_v20 }
 0xb72   : > { %16154 = vmatpush3.bf16.msra.mxu1 %v16151_v20 }
 0xb73   : > { %16156 = vmatprep.subr.bf16.mxu1 %v16155_v18 }
 0xb75   : > { %15833 = vmatmul.mubr.msk.f32.vlgmr.msra.gmra.mrb[196].mxu1 %vm7325_vm4, %v7177_v43 }
 0xb76   : > { %16158 = vmatpush3.bf16.msra.mxu1 %v16155_v18  ;;  %15843 = vmatprep.mubr.msk.f32.mxu1 %vm7325_vm4, %v19419_v30  ;;  %v17110_v18 = vld [vmem:[%s20290_s5 + $0x4d8] sm:$0xff]  }
 0xb77   : > { %16160 = vmatprep.subr.bf16.mxu1 %v16159_v37 }
 0xb7a   : > { %16162 = vmatpush3.bf16.msra.mxu1 %v16159_v37 }
 0xb7b   : > { %16164 = vmatprep.subr.bf16.mxu1 %v16163_v26 }
 0xb7d   : > { %15844 = vmatmul.mubr.msk.f32.vlgmr.msra.gmra.mrb[196].mxu1 %vm7325_vm4, %v7175_v10  ;;  %v17076_v10 = vld [vmem:[#allocation8 + $0x404] ss:$8 sps:$4 sm:$0xff]  }
 0xb7e   : > { %16166 = vmatpush3.bf16.msra.mxu1 %v16163_v26  ;;  %15854 = vmatprep.mubr.msk.f32.mxu1 %vm7325_vm4, %v19424_v62  ;;  %v17050_v26 = vld [vmem:[#allocation8 + $0x300] ss:$8 sps:$4 sm:$0xff]  }
 0xb7f   : > { %16168 = vmatprep.subr.bf16.mxu1 %v16167_v14 }
 0xb82   : > { %16170 = vmatpush3.bf16.msra.mxu1 %v16167_v14  ;;  %v17061_v14 = vld [vmem:[#allocation8 + $0x334] ss:$8 sps:$4 sm:$0xff]  }
 0xb83   : > { %15223 = vmatprep.subr.bf16.mxu1 %v17098_v1  ;;  %v17083_v1 = vld [vmem:[#allocation8 + $0x430] ss:$8 sps:$4 sm:$0xff]  }
 0xb85   : > { %15855 = vmatmul.mubr.msk.f32.vlgmr.msra.gmra.mrb[196].mxu1 %vm7325_vm4, %v7179_v0 }
 0xb86   : > { %15224 = vmatpush3.bf16.msra.mxu1 %v17099_v63  ;;  %v17088_v63 = vld [vmem:[#allocation8 + $0x444] ss:$8 sps:$4 sm:$0xff]  }
 0xb87   : > { %15225 = vmatprep.subr.bf16.mxu1 %v17102_v34 }
 0xb8a   : > { %15226 = vmatpush3.bf16.msra.mxu1 %v17103_v11  ;;  %v17086_v11 = vld [vmem:[#allocation8 + $0x440] ss:$8 sps:$4 sm:$0xff]  }
 0xb8b   : > { %15227 = vmatprep.subr.bf16.mxu1 %v17106_v56  ;;  %v17091_v56 = vld [vmem:[#allocation8 + $0x454] ss:$8 sps:$4 sm:$0xff]  }
 0xb8e   : > { %15228 = vmatpush3.bf16.msra.mxu1 %v17107_v60 }
 0xb8f   : > { %15229 = vmatprep.subr.bf16.mxu1 %v17110_v18  ;;  %v7928_v18 = vld [vmem:[#allocation2 + $0x48] sm:$0x1] }
 0xb92   : > { %15230 = vmatpush3.bf16.msra.mxu1 %v17111_v57  ;;  %v17089_v57 = vld [vmem:[#allocation8 + $0x450] ss:$8 sps:$4 sm:$0xff]  }
 0xb93   : > { %15231 = vmatprep.subr.bf16.mxu1 %v17114_v6  ;;  %v17094_v6 = vld [vmem:[#allocation8 + $0x464] ss:$8 sps:$4 sm:$0xff]  }
 0xb96   : > { %15232 = vmatpush3.bf16.msra.mxu1 %v17115_v15  ;;  %v7930_v15 = vpack.c.bf16 %v7928_v18, %v7928_v18  ;;  %v17133_v18 = vld [vmem:[%s20290_s5 + $0x588] sm:$0xff]  }
 0xb97   : > { %15233 = vmatprep.subr.bf16.mxu1 %v17118_v52 }
 0xb9a   : > { %15234 = vmatpush3.bf16.msra.mxu1 %v17119_v40  ;;  %v17092_v40 = vld [vmem:[#allocation8 + $0x460] ss:$8 sps:$4 sm:$0xff]  }
 0xc58   : > { %v15856_v37 = vpop.f32.mrb[196].mxu1 }
 0xc59   : > { %v19472_v58 = vadd.f32 %v15856_v37, %v13703_v9  ;;  %v7560_v55 = vpop.f32.mrb[197].mxu1 }
 0xc5a   : > { %v19474_v48 = vadd.f32 %v13703_v9, %v7560_v55  ;;  %v17097_v9 = vld [vmem:[#allocation8 + $0x474] ss:$8 sps:$4 sm:$0xff]   ;;  %v7939_v55 = vshll.u32 %v7930_v15, 16  ;;  %v17136_v15 = vld [vmem:[%s20290_s5 + $0x5d8] sm:$0xff]  }
 0xc5b   : > { %v19477_v50 = vmax.f32 %v19472_v58, 0.0 }
 0xc5c   : > { %v7581_v7 = vmax.f32 %v19474_v48, 0.0  ;;  %v8467_v28 = vpack.c.bf16 %v19472_v58, %v19474_v48 }
 0xc5d   : > { %7654 = vst [vmem:[#allocation2 + $0x30] sm:$0xff] %v19477_v50 }
 0xc5e   : > { %7653 = vst [vmem:[#allocation2 + $0x18] sm:$0xff] %v7581_v7  ;;  %v7661_v8 = vpack.c.bf16 %v19477_v50, %v7581_v7  ;;  %v7658_v29 = vpack.c.bf16 %v7581_v7, %v19430_v13  ;;  %v17085_v13 = vld [vmem:[#allocation8 + $0x434] ss:$8 sps:$4 sm:$0xff]   ;;  %v17095_v7 = vld [vmem:[#allocation8 + $0x470] ss:$8 sps:$4 sm:$0xff]  }
 0xc60   : > { %7775 = vmatmul.mubr.bf16.vlgmr.msra.gmra.mrb[100].mxu0 %v7661_v8  ;;  %v7786_v46 = vshrl.u32 %v7658_v29, 16  ;;  %v7789_v4 = vshll.u32 %v7658_v29, 16  ;;  %v17121_v29 = vld [vmem:[%s20290_s5 + $0x528] sm:$0xff]  }
 0xc61   : > { %7884 = vmatpush1.bf16.msra.mxu0 %v17050_v26  ;;  %7915 = vmatprep.mubr.bf16.mxu0 %v17771_v44 }
 0xc62   : > { %7885 = vmatprep.subr.bf16.mxu0 %v17055_v23  ;;  %v7788_v20 = vrot.slane %v7786_v46, 3  ;;  %v7791_v43 = vrot.slane %v7789_v4, 4  ;;  %v7941_v23 = vrot.slane %v7939_v55, 1  ;;  %v17126_v46 = vld [vmem:[%s20290_s5 + $0x4f8] sm:$0xff]   ;;  %v17141_v55 = vld [vmem:[%s20290_s5 + $0x5a8] sm:$0xff]  }
 0xc63   : > { %v17127_v4 = vld [vmem:[%s20290_s5 + $0x4b8] sm:$0xff]  }
 0xc64   : > { %v7657_v33 = vld [vmem:[#allocation2 + $0x30] sm:$0x7f]  ;;  %v7792_v5 = vor.u32 %v7791_v43, %v7788_v20 }
 0xc65   : > { %7886 = vmatpush1.bf16.msra.mxu0 %v17053_v16  ;;  %8997 = vst [vmem:[#allocation2 + $0x30] sm:$0x1] %v17770_v2  ;;  %v7659_v3 = vpack.c.bf16 %v7657_v33, %v7657_v33  ;;  %v7926_v34 = vld [vmem:[#allocation2 + $0x18] sm:$0xfe]  ;;  %v17101_v16 = vld [vmem:[%s20290_s5 + $0x500] sm:$0xff]  }
 0xc66   : > { %7887 = vmatprep.subr.bf16.mxu0 %v17058_v41  ;;  %v7929_v60 = vpack.c.bf16 %v19477_v50, %v7926_v34  ;;  %v17100_v50 = vld [vmem:[%s20290_s5 + $0x540] sm:$0xff]   ;;  %v17104_v41 = vld [vmem:[%s20290_s5 + $0x548] sm:$0xff]  }
 0xc67   : > { %v7794_v25 = vshrl.u32 %v7659_v3, 16  ;;  %v7797_v24 = vshll.u32 %v7659_v3, 16  ;;  %v17117_v3 = vld [vmem:[%s20290_s5 + $0x520] sm:$0xff]  }
 0xc68   : > { %v7934_v52 = vshll.u32 %v7929_v60, 16  ;;  %v7932_v26 = vshrl.u32 %v7929_v60, 16  ;;  %v17132_v60 = vld [vmem:[%s20290_s5 + $0x5c8] sm:$0xff]  }
 0xc69   : > { %7888 = vmatpush1.bf16.msra.mxu0 %v17056_v38  ;;  %v7796_v32 = vrot.slane %v7794_v25, 3  ;;  %v7799_v12 = vrot.slane %v7797_v24, 4  ;;  %v17105_v38 = vld [vmem:[%s20290_s5 + $0x508] sm:$0xff]   ;;  %v17123_v25 = vld [vmem:[%s20290_s5 + $0x4b0] sm:$0xff]  }
 0xc6a   : > { %7889 = vmatprep.subr.bf16.mxu0 %v17061_v14  ;;  %v7936_v37 = vrot.slane %v7934_v52, 1  ;;  %v17108_v14 = vld [vmem:[%s20290_s5 + $0x550] sm:$0xff]   ;;  %v17137_v52 = vld [vmem:[%s20290_s5 + $0x598] sm:$0xff]  }
 0xc6b   : > { %v7800_v0 = vor.u32 %v7799_v12, %v7796_v32  ;;  %v17124_v24 = vld [vmem:[%s20290_s5 + $0x570] sm:$0xff]   ;;  %v17129_v32 = vld [vmem:[%s20290_s5 + $0x538] sm:$0xff]   ;;  %v17130_v12 = vld [vmem:[%s20290_s5 + $0x5c0] sm:$0xff]  }
 0xc6c   : > { %v7937_v8 = vor.u32 %v7936_v37, %v7932_v26  ;;  %v17140_v37 = vld [vmem:[%s20290_s5 + $0x5e8] sm:$0xff]   ;;  %v17143_v26 = vld [vmem:[%s20290_s5 + $0x5b0] sm:$0xff]  }
 0xc6d   : > { %7890 = vmatpush1.bf16.msra.mxu0 %v17059_v61  ;;  %v7801_v35 = vsel %vm1316_vm1, %v7792_v5, %v7800_v0  ;;  %v17109_v61 = vld [vmem:[%s20290_s5 + $0x510] sm:$0xff]  }
 0xc6e   : > { %7891 = vmatprep.subr.bf16.mxu0 %v17064_v53  ;;  %v7942_v33 = vsel %vm2125_vm2, %v7937_v8, %v7941_v23  ;;  %v17112_v53 = vld [vmem:[%s20290_s5 + $0x558] sm:$0xff]   ;;  %v17146_v23 = vld [vmem:[%s20289_s4 + $0x80] sm:$0xff]  }
 0xc6f   : > { %v17145_v8 = vld [vmem:[%s20290_s5 + $0x5b8] sm:$0xff]  }
 0xc71   : > { %7892 = vmatpush1.bf16.msra.mxu0 %v17062_v36  ;;  %v17113_v36 = vld [vmem:[%s20290_s5 + $0x518] sm:$0xff]  }
 0xc72   : > { %7893 = vmatprep.subr.bf16.mxu0 %v17067_v17  ;;  %v17116_v17 = vld [vmem:[%s20290_s5 + $0x560] sm:$0xff]  }
 0xc75   : > { %7894 = vmatpush1.bf16.msra.mxu0 %v17065_v22  ;;  %v17120_v22 = vld [vmem:[%s20290_s5 + $0x568] sm:$0xff]  }
 0xc76   : > { %7895 = vmatprep.subr.bf16.mxu0 %v17070_v39  ;;  %v17122_v39 = vld [vmem:[%s20290_s5 + $0x4f0] sm:$0xff]  }
 0xc77   : > { %15235 = vmatprep.subr.bf16.mxu1 %v17122_v39 }
 0xc78   : > { %15236 = vmatpush3.bf16.msra.mxu1 %v17123_v25 }
 0xc79   : > { %7896 = vmatpush1.bf16.msra.mxu0 %v17068_v21  ;;  %v17125_v21 = vld [vmem:[%s20290_s5 + $0x530] sm:$0xff]   ;;  %15237 = vmatprep.subr.bf16.mxu1 %v17126_v46 }
 0xc7a   : > { %7897 = vmatprep.subr.bf16.mxu0 %v17073_v54  ;;  %v17128_v54 = vld [vmem:[%s20290_s5 + $0x578] sm:$0xff]  }
 0xc7c   : > { %15238 = vmatpush3.bf16.msra.mxu1 %v17127_v4 }
 0xc7d   : > { %7898 = vmatpush1.bf16.msra.mxu0 %v17071_v42  ;;  %15245 = vmatprep.subr.bf16.mxu1 %v17130_v12  ;;  %v13768_v42 = vld [vmem:[%s20291_s6 + $0x6] sm:$0x3] }
 0xc7e   : > { %8024 = vmatprep.subr.bf16.mxu0 %v17076_v10  ;;  %v8077_v20 = vrot.slane %v13768_v42, %v18504_v27  ;;  %v8081_v43 = vrot.slane %v13768_v42, %v18509_v31 }
 0xc80   : > { %7916 = vmatmul.mubr.bf16.vlgmr.msra.gmra.mrb[100].mxu0 %v7801_v35 }
 0xc81   : > { %8025 = vmatpush1.bf16.msra.mxu0 %v17074_v19  ;;  %8056 = vmatprep.mubr.bf16.mxu0 %v17771_v44 }
 0xc82   : > { %8026 = vmatprep.subr.bf16.mxu0 %v17079_v45 }
 0xc85   : > { %8027 = vmatpush1.bf16.msra.mxu0 %v17077_v49 }
 0xc86   : > { %8028 = vmatprep.subr.bf16.mxu0 %v17082_v59 }
 0xc89   : > { %8029 = vmatpush1.bf16.msra.mxu0 %v17080_v51 }
 0xc8a   : > { %8030 = vmatprep.subr.bf16.mxu0 %v17085_v13 }
 0xc8d   : > { %8031 = vmatpush1.bf16.msra.mxu0 %v17083_v1 }
 0xc8e   : > { %8032 = vmatprep.subr.bf16.mxu0 %v17088_v63 }
 0xc91   : > { %8033 = vmatpush1.bf16.msra.mxu0 %v17086_v11 }
 0xc92   : > { %8034 = vmatprep.subr.bf16.mxu0 %v17091_v56  ;;  %v17131_v56 = vld [vmem:[%s20290_s5 + $0x580] sm:$0xff]  }
 0xc95   : > { %8035 = vmatpush1.bf16.msra.mxu0 %v17089_v57  ;;  %v17134_v57 = vld [vmem:[%s20290_s5 + $0x5d0] sm:$0xff]  }
 0xc96   : > { %8036 = vmatprep.subr.bf16.mxu0 %v17094_v6  ;;  %v17135_v6 = vld [vmem:[%s20290_s5 + $0x590] sm:$0xff]  }
 0xc99   : > { %8037 = vmatpush1.bf16.msra.mxu0 %v17092_v40  ;;  %v17138_v40 = vld [vmem:[%s20290_s5 + $0x5e0] sm:$0xff]  }
 0xc9a   : > { %8038 = vmatprep.subr.bf16.mxu0 %v17097_v9  ;;  %v17139_v9 = vld [vmem:[%s20290_s5 + $0x5a0] sm:$0xff]  }
 0xc9d   : > { %8039 = vmatpush1.bf16.msra.mxu0 %v17095_v7  ;;  %v17142_v7 = vld [vmem:[%s20290_s5 + $0x5f0] sm:$0xff]  }
 0xc9e   : > { %15276 = vmatprep.subr.bf16.mxu0 %v17100_v50  ;;  %v17144_v50 = vld [vmem:[%s20290_s5 + $0x5f8] sm:$0xff]  }
 0xca0   : > { %8057 = vmatmul.mubr.bf16.vlgmr.msra.gmra.mrb[100].mxu0 %v7942_v33  ;;  %v17149_v33 = vld [vmem:[%s20289_s4 + $0x98] sm:$0xff]  }
 0xca1   : > { %15277 = vmatpush3.bf16.msra.mxu0 %v17101_v16  ;;  %v17147_v16 = vld [vmem:[%s20289_s4 + $0x88] sm:$0xff]  }
 0xca2   : > { %15278 = vmatprep.subr.bf16.mxu0 %v17104_v41  ;;  %v17148_v41 = vld [vmem:[%s20289_s4 + $0x90] sm:$0xff]  }
 0xca5   : > { %15279 = vmatpush3.bf16.msra.mxu0 %v17105_v38  ;;  %v17150_v38 = vld [vmem:[%s20289_s4 + $0xa0] sm:$0xff]  }
 0xca6   : > { %15280 = vmatprep.subr.bf16.mxu0 %v17108_v14  ;;  %v17151_v14 = vld [vmem:[%s20289_s4 + $0xa8] sm:$0xff]  }
 0xca9   : > { %15281 = vmatpush3.bf16.msra.mxu0 %v17109_v61  ;;  %v17152_v61 = vld [vmem:[%s20289_s4 + $0xb0] sm:$0xff]  }
 0xcaa   : > { %15282 = vmatprep.subr.bf16.mxu0 %v17112_v53  ;;  %v17153_v53 = vld [vmem:[%s20289_s4 + $0xb8] sm:$0xff]  }
 0xcad   : > { %15283 = vmatpush3.bf16.msra.mxu0 %v17113_v36  ;;  %v17773_v36 = vmov 0.0|0.0  }
 0xcae   : > { %15284 = vmatprep.subr.bf16.mxu0 %v17116_v17 }
 0xcb1   : > { %15285 = vmatpush3.bf16.msra.mxu0 %v17117_v3 }
 0xcb2   : > { %15286 = vmatprep.subr.bf16.mxu0 %v17120_v22 }
 0xcb5   : > { %15287 = vmatpush3.bf16.msra.mxu0 %v17121_v29 }
 0xcb6   : > { %15288 = vmatprep.subr.bf16.mxu0 %v17124_v24 }
 0xcb9   : > { %15289 = vmatpush3.bf16.msra.mxu0 %v17125_v21 }
 0xcba   : > { %15290 = vmatprep.subr.bf16.mxu0 %v17128_v54 }
 0xcbd   : > { %15291 = vmatpush3.bf16.msra.mxu0 %v17129_v32 }
 0xcbe   : > { %16171 = vmatprep.subr.bf16.mxu0 %v17773_v36 }
 0xd73   : > { %v8058_v10 = vpop.f32.mrb[100].mxu0 }
 0xd74   : > { %v8084_v0 = vadd.f32 %v8077_v20, %v8058_v10  ;;  %v8060_v5 = vpop.f32.mrb[101].mxu0  ;;  %v17156_v10 = vld [vmem:[#allocation8 + $0x504] ss:$8 sps:$4 sm:$0xff]  }
 0xd75   : > { %v8085_v19 = vadd.f32 %v8081_v43, %v8060_v5  ;;  %v8062_v45 = vpop.f32.mrb[102].mxu0  ;;  %v17154_v5 = vld [vmem:[#allocation8 + $0x500] ss:$8 sps:$4 sm:$0xff]  }
 0xd76   : > { %v8086_v35 = vadd.f32 %v8077_v20, %v8062_v45  ;;  %v8064_v49 = vpop.f32.mrb[103].mxu0  ;;  %v8088_v51 = vmax.f32 %v8084_v0, 0.0  ;;  %v17165_v45 = vld [vmem:[#allocation8 + $0x524] ss:$8 sps:$4 sm:$0xff]  }
 0xd77   : > { %v8087_v59 = vadd.f32 %v8081_v43, %v8064_v49  ;;  %v8089_v1 = vmax.f32 %v8085_v19, 0.0  ;;  %v17159_v19 = vld [vmem:[#allocation8 + $0x514] ss:$8 sps:$4 sm:$0xff]  }
 0xd78   : > { %v8090_v13 = vmax.f32 %v8086_v35, 0.0  ;;  %v17163_v35 = vld [vmem:[#allocation8 + $0x520] ss:$8 sps:$4 sm:$0xff]  }
 0xd79   : > { %v8091_v63 = vmax.f32 %v8087_v59, 0.0 }
 0xd7a   : > { %v8092_v34 = vpack.c.bf16 %v8090_v13, %v8088_v51 }
 0xd7b   : > { %v8093_v11 = vpack.c.bf16 %v8091_v63, %v8089_v1 }
 0xd7d   : > { %8255 = vmatprep.mubr.bf16.mxu1 %v8093_v11  ;;  %8688 = vmatprep.mubr.bf16.mxu0 %v8093_v11 }
 0xd7e   : > { %8256 = vmatmul.mubr.bf16.vlgmr.msra.gmra.mrb[200].mxu1 %v8092_v34  ;;  %8689 = vmatmul.mubr.bf16.vlgmr.msra.gmra.mrb[104].mxu0 %v8092_v34 }
 0xd7f   : > { %15246 = vmatpush3.bf16.msra.mxu1 %v17131_v56  ;;  %8458 = vmatprep.mubr.bf16.mxu1 %v8093_v11  ;;  %v17166_v56 = vld [vmem:[#allocation8 + $0x490] ss:$8 sps:$4 sm:$0xff]  }
 0xd80   : > { %15247 = vmatprep.subr.bf16.mxu1 %v17132_v60  ;;  %15881 = vmatprep.mubr.msk.f32.mxu0 %vm17772_vm5, %v17770_v2  ;;  %v17168_v60 = vld [vmem:[#allocation8 + $0x494] ss:$8 sps:$4 sm:$0xff]  }
 0xd83   : > { %15248 = vmatpush3.bf16.msra.mxu1 %v17133_v18  ;;  %v17169_v18 = vld [vmem:[#allocation8 + $0x530] ss:$8 sps:$4 sm:$0xff]  }
 0xd84   : > { %15249 = vmatprep.subr.bf16.mxu1 %v17134_v57  ;;  %v17171_v57 = vld [vmem:[#allocation8 + $0x534] ss:$8 sps:$4 sm:$0xff]  }
 0xd87   : > { %15250 = vmatpush3.bf16.msra.mxu1 %v17135_v6  ;;  %v17177_v6 = vld [vmem:[#allocation8 + $0x544] ss:$8 sps:$4 sm:$0xff]  }
 0xd88   : > { %15251 = vmatprep.subr.bf16.mxu1 %v17136_v15  ;;  %v17175_v15 = vld [vmem:[#allocation8 + $0x540] ss:$8 sps:$4 sm:$0xff]  }
 0xd8b   : > { %15252 = vmatpush3.bf16.msra.mxu1 %v17137_v52  ;;  %v17183_v52 = vld [vmem:[#allocation8 + $0x554] ss:$8 sps:$4 sm:$0xff]  }
 0xd8c   : > { %15253 = vmatprep.subr.bf16.mxu1 %v17138_v40  ;;  %v17181_v40 = vld [vmem:[#allocation8 + $0x550] ss:$8 sps:$4 sm:$0xff]  }
 0xd8f   : > { %15254 = vmatpush3.bf16.msra.mxu1 %v17139_v9  ;;  %v17174_v9 = vld [vmem:[#allocation8 + $0x4a4] ss:$8 sps:$4 sm:$0xff]  }
 0xd90   : > { %15255 = vmatprep.subr.bf16.mxu1 %v17140_v37  ;;  %v17189_v37 = vld [vmem:[#allocation8 + $0x564] ss:$8 sps:$4 sm:$0xff]  }
 0xd93   : > { %15256 = vmatpush3.bf16.msra.mxu1 %v17141_v55  ;;  %v17187_v55 = vld [vmem:[#allocation8 + $0x560] ss:$8 sps:$4 sm:$0xff]  }
 0xd94   : > { %15257 = vmatprep.subr.bf16.mxu1 %v17142_v7  ;;  %v17180_v7 = vld [vmem:[#allocation8 + $0x4b4] ss:$8 sps:$4 sm:$0xff]  }
 0xd97   : > { %15258 = vmatpush3.bf16.msra.mxu1 %v17143_v26  ;;  %v17178_v26 = vld [vmem:[#allocation8 + $0x4b0] ss:$8 sps:$4 sm:$0xff]  }
 0xd98   : > { %15259 = vmatprep.subr.bf16.mxu1 %v17144_v50  ;;  %v17195_v50 = vld [vmem:[#allocation8 + $0x574] ss:$8 sps:$4 sm:$0xff]  }
 0xd9b   : > { %15260 = vmatpush3.bf16.msra.mxu1 %v17145_v8  ;;  %v17193_v8 = vld [vmem:[#allocation8 + $0x570] ss:$8 sps:$4 sm:$0xff]  }
 0xd9c   : > { %15857 = vmatprep.subr.bf16.mxu1 %v17770_v2 }
 0xd9e   : > { %8459 = vmatmul.mubr.bf16.vlgmr.msra.gmra.mrb[204].mxu1 %v8092_v34  ;;  %v17162_v34 = vld [vmem:[#allocation8 + $0x484] ss:$8 sps:$4 sm:$0xff]  }
 0xd9f   : > { %15858 = vmatpush3.bf16.msra.mxu1 %v17146_v23  ;;  %15873 = vmatprep.mubr.msk.bf16.mxu1 %vm17772_vm5, %v17770_v2  ;;  %v17186_v23 = vld [vmem:[#allocation8 + $0x4c4] ss:$8 sps:$4 sm:$0xff]  }
 0xda0   : > { %15859 = vmatprep.subr.bf16.mxu1 %v17770_v2 }
 0xda3   : > { %15860 = vmatpush3.bf16.msra.mxu1 %v17147_v16  ;;  %v17184_v16 = vld [vmem:[#allocation8 + $0x4c0] ss:$8 sps:$4 sm:$0xff]  }
 0xda4   : > { %15861 = vmatprep.subr.bf16.mxu1 %v17770_v2 }
 0xda7   : > { %15862 = vmatpush3.bf16.msra.mxu1 %v17148_v41  ;;  %v17201_v41 = vld [vmem:[#allocation8 + $0x584] ss:$8 sps:$4 sm:$0xff]  }
 0xda8   : > { %15863 = vmatprep.subr.bf16.mxu1 %v17770_v2 }
 0xdab   : > { %15864 = vmatpush3.bf16.msra.mxu1 %v17149_v33  ;;  %v17192_v33 = vld [vmem:[#allocation8 + $0x4d4] ss:$8 sps:$4 sm:$0xff]  }
 0xdac   : > { %15865 = vmatprep.subr.bf16.mxu1 %v17770_v2 }
 0xdaf   : > { %15866 = vmatpush3.bf16.msra.mxu1 %v17150_v38  ;;  %v17190_v38 = vld [vmem:[#allocation8 + $0x4d0] ss:$8 sps:$4 sm:$0xff]  }
 0xdb0   : > { %15867 = vmatprep.subr.bf16.mxu1 %v17770_v2 }
 0xdb3   : > { %15868 = vmatpush3.bf16.msra.mxu1 %v17151_v14  ;;  %v17198_v14 = vld [vmem:[#allocation8 + $0x4e4] ss:$8 sps:$4 sm:$0xff]  }
 0xdb4   : > { %15869 = vmatprep.subr.bf16.mxu1 %v17770_v2 }
 0xdb7   : > { %15870 = vmatpush3.bf16.msra.mxu1 %v17152_v61  ;;  %v17196_v61 = vld [vmem:[#allocation8 + $0x4e0] ss:$8 sps:$4 sm:$0xff]  }
 0xdb8   : > { %15871 = vmatprep.subr.bf16.mxu1 %v17770_v2 }
 0xdbb   : > { %15872 = vmatpush3.bf16.msra.mxu1 %v17153_v53  ;;  %v17204_v53 = vld [vmem:[#allocation8 + $0x4f4] ss:$8 sps:$4 sm:$0xff]  }
 0xdbc   : > { %16174 = vmatprep.subr.bf16.mxu1 %v17773_v36 }
 0xdbe   : > { %15874 = vmatmul.mubr.bf16.vlgmr.msra.gmra.mrb[208].mxu1 %v8467_v28 }
 0xdbf   : > { %15888 = vmatprep.mubr.msk.f32.mxu1 %vm17772_vm5, %v17770_v2 }
 0xe51   : > { %v15239_v17 = vpop.f32.mrb[200].mxu1  ;;  %v15292_v3 = vpop.f32.mrb[104].mxu0 }
 0xe52   : > { %v15240_v22 = vpop.f32.mrb[201].mxu1  ;;  %v15293_v29 = vpop.f32.mrb[105].mxu0 }
 0xe53   : > { %v15241_v39 = vadd.f32 %v15240_v22, %v15239_v17  ;;  %v15294_v25 = vadd.f32 %v15293_v29, %v15292_v3  ;;  %v15242_v24 = vpop.f32.mrb[202].mxu1  ;;  %v15295_v21 = vpop.f32.mrb[106].mxu0  ;;  %v17202_v17 = vld [vmem:[#allocation8 + $0x4f0] ss:$8 sps:$4 sm:$0xff]  }
 0xe54   : > { %v15243_v46 = vpop.f32.mrb[203].mxu1  ;;  %v15296_v4 = vpop.f32.mrb[107].mxu0 }
 0xe55   : > { %v15244_v54 = vadd.f32 %v15243_v46, %v15242_v24  ;;  %v15297_v32 = vadd.f32 %v15296_v4, %v15295_v21  ;;  %v13925_v46 = vld [vmem:[%s20292_s7 + $0x3] ss:$0 sm:$0xff] }
 0xe57   : > { %v16175_v58 = vpack.c.bf16 %v15244_v54, %v15241_v39 }
 0xe59   : > { %16176 = vmatpush3.bf16.msra.mxu1 %v16175_v58  ;;  %v17199_v58 = vld [vmem:[#allocation8 + $0x580] ss:$8 sps:$4 sm:$0xff]  }
 0xe5a   : > { %16177 = vmatprep.subr.bf16.mxu1 %v17773_v36  ;;  %v8999_v36 = vld [vmem:[#allocation2] sm:$0x80] }
 0xe5b   : > { %10306 = vst [vmem:[#allocation2 + $0x7] sm:$0x1] %v17770_v2 }
 0xe5c   : > { %15889 = vmatmul.mubr.msk.f32.vlgmr.msra.gmra.mrb[198].mxu1 %vm8697_vm6, %v19419_v30  ;;  %v17157_v30 = vld [vmem:[#allocation8 + $0x510] ss:$8 sps:$4 sm:$0xff]  }
 0xe5d   : > { %15895 = vmatprep.mubr.msk.f32.mxu1 %vm17772_vm5, %v17770_v2 }
 0xe71   : > { %v15261_v48 = vpop.f32.mrb[204].mxu1 }
 0xe72   : > { %v15262_v28 = vpop.f32.mrb[205].mxu1 }
 0xe73   : > { %v15263_v12 = vadd.f32 %v15262_v28, %v15261_v48  ;;  %v15264_v42 = vpop.f32.mrb[206].mxu1  ;;  %v17207_v28 = vld [vmem:[#allocation8 + $0x594] ss:$8 sps:$4 sm:$0xff]  }
 0xe74   : > { %v15265_v20 = vpop.f32.mrb[207].mxu1 }
 0xe75   : > { %v15266_v43 = vadd.f32 %v15265_v20, %v15264_v42  ;;  %v17210_v42 = vld [vmem:[#allocation8 + $0x5a4] ss:$8 sps:$4 sm:$0xff]  }
 0xe77   : > { %v16178_v0 = vpack.c.bf16 %v15266_v43, %v15263_v12  ;;  %v17205_v12 = vld [vmem:[#allocation8 + $0x590] ss:$8 sps:$4 sm:$0xff]   ;;  %v17208_v43 = vld [vmem:[#allocation8 + $0x5a0] ss:$8 sps:$4 sm:$0xff]  }
 0xe79   : > { %16179 = vmatpush3.bf16.msra.mxu1 %v16178_v0 }
 0xe7a   : > { %9084 = vmatprep.subr.bf16.mxu1 %v17156_v10 }
 0xe7c   : > { %15896 = vmatmul.mubr.msk.f32.vlgmr.msra.gmra.mrb[212].mxu1 %vm8697_vm6, %v19424_v62  ;;  %v17160_v62 = vld [vmem:[#allocation8 + $0x480] ss:$8 sps:$4 sm:$0xff]  }
 0xe7d   : > { %9085 = vmatpush1.bf16.msra.mxu1 %v17154_v5  ;;  %9116 = vmatprep.mubr.bf16.mxu1 %v17771_v44  ;;  %v17213_v5 = vld [vmem:[#allocation8 + $0x5b4] ss:$8 sps:$4 sm:$0xff]  }
 0xe7e   : > { %9086 = vmatprep.subr.bf16.mxu1 %v17159_v19 }
 0xe81   : > { %9087 = vmatpush1.bf16.msra.mxu1 %v17157_v30 }
 0xe82   : > { %9088 = vmatprep.subr.bf16.mxu1 %v17165_v45  ;;  %v17211_v45 = vld [vmem:[#allocation8 + $0x5b0] ss:$8 sps:$4 sm:$0xff]  }
 0xe85   : > { %9089 = vmatpush1.bf16.msra.mxu1 %v17163_v35 }
 0xe86   : > { %9090 = vmatprep.subr.bf16.mxu1 %v17171_v57  ;;  %v17223_v57 = vld [vmem:[#allocation8 + $0x5f0] ss:$8 sps:$4 sm:$0xff]  }
 0xe89   : > { %9091 = vmatpush1.bf16.msra.mxu1 %v17169_v18 }
 0xe8a   : > { %9092 = vmatprep.subr.bf16.mxu1 %v17177_v6 }
 0xe8d   : > { %9093 = vmatpush1.bf16.msra.mxu1 %v17175_v15 }
 0xe8e   : > { %9094 = vmatprep.subr.bf16.mxu1 %v17183_v52 }
 0xe91   : > { %v8550_v49 = vpop.f32.mrb[208].mxu1  ;;  %9095 = vmatpush1.bf16.msra.mxu1 %v17181_v40  ;;  %v17226_v40 = vld [vmem:[%s20290_s5 + $0x640] sm:$0xff]  }
 0xe92   : > { %v8691_v59 = vadd.f32 %v15294_v25, %v8550_v49  ;;  %v15875_v51 = vpop.f32.mrb[209].mxu1  ;;  %9096 = vmatprep.subr.bf16.mxu1 %v17189_v37  ;;  %v17229_v37 = vld [vmem:[%s20290_s5 + $0x700] sm:$0xff]  }
 0xe93   : > { %v8553_v13 = vpop.f32.mrb[210].mxu1 }
 0xe94   : > { %v8694_v1 = vadd.f32 %v15297_v32, %v8553_v13  ;;  %v15876_v63 = vpop.f32.mrb[211].mxu1  ;;  %v17214_v13 = vld [vmem:[#allocation8 + $0x5c0] ss:$8 sps:$4 sm:$0xff]  }
 0xe95   : > { %9097 = vmatpush1.bf16.msra.mxu1 %v17187_v55  ;;  %v9256_v63 = vld [vmem:[#allocation2 + $0x30] sm:$0x1]  ;;  %v17230_v55 = vld [vmem:[%s20290_s5 + $0x648] sm:$0xff]  }
 0xe96   : > { %v16172_v11 = vpack.c.bf16 %v8694_v1, %v8691_v59  ;;  %9098 = vmatprep.subr.bf16.mxu1 %v17195_v50  ;;  %v17216_v59 = vld [vmem:[#allocation8 + $0x5c4] ss:$8 sps:$4 sm:$0xff]   ;;  %v17219_v1 = vld [vmem:[#allocation8 + $0x5d4] ss:$8 sps:$4 sm:$0xff]  }
 0xe97   : > { %v17233_v50 = vld [vmem:[%s20290_s5 + $0x708] sm:$0xff]  }
 0xe98   : > { %16173 = vmatpush3.bf16.msra.mxu0 %v16172_v11  ;;  %v17222_v11 = vld [vmem:[#allocation8 + $0x5e4] ss:$8 sps:$4 sm:$0xff]  }
 0xe99   : > { %9214 = vmatprep.subr.bf16.mxu0 %v17162_v34  ;;  %9099 = vmatpush1.bf16.msra.mxu1 %v17193_v8  ;;  %v17217_v34 = vld [vmem:[#allocation8 + $0x5d0] ss:$8 sps:$4 sm:$0xff]   ;;  %v17234_v8 = vld [vmem:[%s20290_s5 + $0x650] sm:$0xff]  }
 0xe9a   : > { %9346 = vmatprep.subr.bf16.mxu1 %v17201_v41  ;;  %v17237_v41 = vld [vmem:[%s20290_s5 + $0x710] sm:$0xff]  }
 0xe9b   : > { %15882 = vmatmul.mubr.msk.f32.vlgmr.msra.gmra.mrb[108].mxu0 %vm8697_vm6, %v19411_v47  ;;  %v17172_v47 = vld [vmem:[#allocation8 + $0x4a0] ss:$8 sps:$4 sm:$0xff]  }
 0xe9c   : > { %9215 = vmatpush1.bf16.msra.mxu0 %v17160_v62  ;;  %9246 = vmatprep.mubr.bf16.mxu0 %v17771_v44 }
 0xe9d   : > { %9216 = vmatprep.subr.bf16.mxu0 %v17168_v60  ;;  %v17225_v60 = vld [vmem:[#allocation8 + $0x5f4] ss:$8 sps:$4 sm:$0xff]  }
 0xea0   : > { %9217 = vmatpush1.bf16.msra.mxu0 %v17166_v56  ;;  %v17220_v56 = vld [vmem:[#allocation8 + $0x5e0] ss:$8 sps:$4 sm:$0xff]  }
 0xea1   : > { %9218 = vmatprep.subr.bf16.mxu0 %v17174_v9  ;;  %v17227_v9 = vld [vmem:[%s20290_s5 + $0x740] sm:$0xff]  }
 0xea4   : > { %9219 = vmatpush1.bf16.msra.mxu0 %v17172_v47  ;;  %v17228_v47 = vld [vmem:[%s20290_s5 + $0x600] sm:$0xff]  }
 0xea5   : > { %9220 = vmatprep.subr.bf16.mxu0 %v17180_v7  ;;  %v17231_v7 = vld [vmem:[%s20290_s5 + $0x748] sm:$0xff]  }
 0xea8   : > { %9221 = vmatpush1.bf16.msra.mxu0 %v17178_v26  ;;  %v17232_v26 = vld [vmem:[%s20290_s5 + $0x608] sm:$0xff]  }
 0xea9   : > { %9222 = vmatprep.subr.bf16.mxu0 %v17186_v23  ;;  %v17235_v23 = vld [vmem:[%s20290_s5 + $0x750] sm:$0xff]  }
 0xeac   : > { %9223 = vmatpush1.bf16.msra.mxu0 %v17184_v16  ;;  %v17236_v16 = vld [vmem:[%s20290_s5 + $0x610] sm:$0xff]  }
 0xead   : > { %9224 = vmatprep.subr.bf16.mxu0 %v17192_v33  ;;  %v17238_v33 = vld [vmem:[%s20290_s5 + $0x658] sm:$0xff]  }
 0xeb0   : > { %9225 = vmatpush1.bf16.msra.mxu0 %v17190_v38  ;;  %v17239_v38 = vld [vmem:[%s20290_s5 + $0x758] sm:$0xff]  }
 0xeb1   : > { %9226 = vmatprep.subr.bf16.mxu0 %v17198_v14  ;;  %v17240_v14 = vld [vmem:[%s20290_s5 + $0x618] sm:$0xff]  }
 0xeb4   : > { %9227 = vmatpush1.bf16.msra.mxu0 %v17196_v61  ;;  %v17241_v61 = vld [vmem:[%s20290_s5 + $0x718] sm:$0xff]  }
 0xeb5   : > { %9228 = vmatprep.subr.bf16.mxu0 %v17204_v53  ;;  %v17242_v53 = vld [vmem:[%s20290_s5 + $0x660] sm:$0xff]  }
 0xeb8   : > { %9229 = vmatpush1.bf16.msra.mxu0 %v17202_v17  ;;  %v17244_v17 = vld [vmem:[%s20290_s5 + $0x620] sm:$0xff]  }
 0xeb9   : > { %15307 = vmatprep.subr.bf16.mxu0 %v17226_v40 }
 0xf2f   : > { %v8840_v3 = vpop.f32.mrb[198].mxu1 }
 0xf30   : > { %v15890_v22 = vpop.f32.mrb[199].mxu1 }
 0xf31   : > { %v17246_v22 = vld [vmem:[%s20290_s5 + $0x668] sm:$0xff]  }
 0xf4f   : > { %v8913_v29 = vpop.f32.mrb[212].mxu1 }
 0xf50   : > { %v15897_v39 = vpop.f32.mrb[213].mxu1 }
 0xf51   : > { %v17248_v39 = vld [vmem:[%s20290_s5 + $0x628] sm:$0xff]  }
 0xf6e   : > { %v8767_v25 = vpop.f32.mrb[108].mxu0 }
 0xf6f   : > { %v8841_v24 = vadd.f32 %v8840_v3, %v8767_v25  ;;  %v15883_v21 = vpop.f32.mrb[109].mxu0  ;;  %v17245_v3 = vld [vmem:[%s20290_s5 + $0x720] sm:$0xff]   ;;  %v17249_v25 = vld [vmem:[%s20290_s5 + $0x728] sm:$0xff]  }
 0xf70   : > { %v17251_v21 = vld [vmem:[%s20290_s5 + $0x770] sm:$0xff]  }
 0xf71   : > { %v8917_v4 = vadd.f32 %v8913_v29, %v8841_v24  ;;  %v17247_v29 = vld [vmem:[%s20290_s5 + $0x768] sm:$0xff]   ;;  %v17250_v24 = vld [vmem:[%s20290_s5 + $0x670] sm:$0xff]  }
 0xf73   : > { %v19659_v54 = vadd.f32 %v13925_v46, %v8917_v4  ;;  %v17252_v46 = vld [vmem:[%s20290_s5 + $0x630] sm:$0xff]  }
 0xf74   : > { %v17253_v4 = vld [vmem:[%s20290_s5 + $0x730] sm:$0xff]  }
 0xf75   : > { %v8927_v32 = vmax.f32 %v19659_v54, 0.0 }
 0xf77   : > { %8998 = vst [vmem:[#allocation2 + $0x18] sm:$0xff] %v8927_v32  ;;  %v9003_v48 = vpack.c.bf16 %v8927_v32, %v8927_v32  ;;  %v17254_v32 = vld [vmem:[%s20290_s5 + $0x678] sm:$0xff]  }
 0xf79   : > { %9117 = vmatmul.mubr.bf16.vlgmr.msra.gmra.mrb[216].mxu1 %v9003_v48  ;;  %v17256_v48 = vld [vmem:[%s20290_s5 + $0x638] sm:$0xff]  }
 0xf7a   : > { %9347 = vmatpush1.bf16.msra.mxu1 %v17199_v58  ;;  %9378 = vmatprep.mubr.bf16.mxu1 %v17771_v44  ;;  %v17255_v58 = vld [vmem:[%s20290_s5 + $0x778] sm:$0xff]  }
 0xf7b   : > { %9348 = vmatprep.subr.bf16.mxu1 %v17207_v28  ;;  %v17257_v28 = vld [vmem:[%s20290_s5 + $0x738] sm:$0xff]  }
 0xf7e   : > { %9349 = vmatpush1.bf16.msra.mxu1 %v17205_v12  ;;  %v9000_v20 = vld [vmem:[#allocation2 + $0x18] sm:$0x7f]  ;;  %v17258_v12 = vld [vmem:[%s20290_s5 + $0x6c0] sm:$0xff]  }
 0xf7f   : > { %v9255_v10 = vld [vmem:[#allocation2 + $0x18] sm:$0xfe]  ;;  %v9001_v0 = vpack.c.bf16 %v9000_v20, %v8999_v36  ;;  %9350 = vmatprep.subr.bf16.mxu1 %v17210_v42  ;;  %v17243_v36 = vld [vmem:[%s20290_s5 + $0x760] sm:$0xff]  }
 0xf80   : > { %10307 = vst [vmem:[#allocation2 + $0x1c] sm:$0x1] %v17770_v2  ;;  %v9257_v62 = vpack.c.bf16 %v9256_v63, %v9255_v10 }
 0xf81   : > { %v9126_v19 = vshrl.u32 %v9001_v0, 16  ;;  %v9129_v30 = vshll.u32 %v9001_v0, 16 }
 0xf82   : > { %9351 = vmatpush1.bf16.msra.mxu1 %v17208_v43  ;;  %v9261_v18 = vshll.u32 %v9257_v62, 16  ;;  %v9259_v15 = vshrl.u32 %v9257_v62, 16 }
 0xf83   : > { %v9128_v35 = vrot.slane %v9126_v19, 3  ;;  %v9131_v49 = vrot.slane %v9129_v30, 4  ;;  %9352 = vmatprep.subr.bf16.mxu1 %v17213_v5 }
 0xf84   : > { %v9263_v6 = vrot.slane %v9261_v18, 1 }
 0xf85   : > { %v9132_v51 = vor.u32 %v9131_v49, %v9128_v35  ;;  %v13990_v49 = vld [vmem:[%s20291_s6 + $0x8] sm:$0x3] }
 0xf86   : > { %9353 = vmatpush1.bf16.msra.mxu1 %v17211_v45  ;;  %v9264_v52 = vor.u32 %v9263_v6, %v9259_v15  ;;  %v17259_v15 = vld [vmem:[%s20289_s4 + $0xc0] sm:$0xff]  }
 0xf87   : > { %9247 = vmatmul.mubr.bf16.vlgmr.msra.gmra.mrb[112].mxu0 %v9132_v51  ;;  %9354 = vmatprep.subr.bf16.mxu1 %v17216_v59  ;;  %v9395_v59 = vrot.slane %v13990_v49, %v18504_v27 }
 0xf88   : > { %15308 = vmatpush3.bf16.msra.mxu0 %v17228_v47  ;;  %v17262_v47 = vld [vmem:[%s20289_s4 + $0xc8] sm:$0xff]  }
 0xf89   : > { %15309 = vmatprep.subr.bf16.mxu0 %v17230_v55  ;;  %v17264_v55 = vld [vmem:[%s20290_s5 + $0x6d0] sm:$0xff]  }
 0xf8a   : > { %9355 = vmatpush1.bf16.msra.mxu1 %v17214_v13  ;;  %v9399_v13 = vrot.slane %v13990_v49, %v18509_v31 }
 0xf8b   : > { %9356 = vmatprep.subr.bf16.mxu1 %v17219_v1 }
 0xf8c   : > { %15310 = vmatpush3.bf16.msra.mxu0 %v17232_v26  ;;  %v17266_v26 = vld [vmem:[%s20290_s5 + $0x690] sm:$0xff]  }
 0xf8d   : > { %15311 = vmatprep.subr.bf16.mxu0 %v17234_v8  ;;  %v17268_v8 = vld [vmem:[%s20289_s4 + $0xd8] sm:$0xff]  }
 0xf8e   : > { %9357 = vmatpush1.bf16.msra.mxu1 %v17217_v34 }
 0xf8f   : > { %9358 = vmatprep.subr.bf16.mxu1 %v17222_v11 }
 0xf90   : > { %15312 = vmatpush3.bf16.msra.mxu0 %v17236_v16  ;;  %v17270_v16 = vld [vmem:[%s20290_s5 + $0x6e0] sm:$0xff]  }
 0xf91   : > { %15313 = vmatprep.subr.bf16.mxu0 %v17238_v33  ;;  %v17272_v33 = vld [vmem:[%s20290_s5 + $0x6a0] sm:$0xff]  }
 0xf92   : > { %9359 = vmatpush1.bf16.msra.mxu1 %v17220_v56 }
 0xf93   : > { %9360 = vmatprep.subr.bf16.mxu1 %v17225_v60 }
 0xf94   : > { %15314 = vmatpush3.bf16.msra.mxu0 %v17240_v14  ;;  %v17274_v14 = vld [vmem:[%s20289_s4 + $0xe8] sm:$0xff]  }
 0xf95   : > { %15315 = vmatprep.subr.bf16.mxu0 %v17242_v53  ;;  %v17276_v53 = vld [vmem:[%s20290_s5 + $0x6f0] sm:$0xff]  }
 0xf96   : > { %9361 = vmatpush1.bf16.msra.mxu1 %v17223_v57 }
 0xf97   : > { %15329 = vmatprep.subr.bf16.mxu1 %v17227_v9  ;;  %v17261_v9 = vld [vmem:[%s20290_s5 + $0x6c8] sm:$0xff]  }
 0xf98   : > { %15316 = vmatpush3.bf16.msra.mxu0 %v17244_v17  ;;  %v17278_v17 = vld [vmem:[%s20290_s5 + $0x6b0] sm:$0xff]  }
 0xf99   : > { %9379 = vmatmul.mubr.bf16.vlgmr.msra.gmra.mrb[220].mxu1 %v9264_v52  ;;  %15317 = vmatprep.subr.bf16.mxu0 %v17246_v22  ;;  %v17260_v52 = vld [vmem:[%s20290_s5 + $0x680] sm:$0xff]   ;;  %v17280_v22 = vld [vmem:[%s20289_s4 + $0xf8] sm:$0xff]  }
 0xf9a   : > { %15330 = vmatpush3.bf16.msra.mxu1 %v17229_v37  ;;  %v17263_v37 = vld [vmem:[%s20290_s5 + $0x688] sm:$0xff]  }
 0xf9b   : > { %15331 = vmatprep.subr.bf16.mxu1 %v17231_v7  ;;  %v17265_v7 = vld [vmem:[%s20289_s4 + $0xd0] sm:$0xff]  }
 0xf9c   : > { %15318 = vmatpush3.bf16.msra.mxu0 %v17248_v39  ;;  %v9779_v39 = vpack.c.bf16 %v19659_v54, %v19659_v54 }
 0xf9d   : > { %15319 = vmatprep.subr.bf16.mxu0 %v17250_v24  ;;  %v17290_v24 = vld [vmem:[#allocation8 + $0x604] ss:$8 sps:$4 sm:$0xff]  }
 0xf9e   : > { %15332 = vmatpush3.bf16.msra.mxu1 %v17233_v50  ;;  %v17267_v50 = vld [vmem:[%s20290_s5 + $0x6d8] sm:$0xff]  }
 0xf9f   : > { %15333 = vmatprep.subr.bf16.mxu1 %v17235_v23  ;;  %v17269_v23 = vld [vmem:[%s20290_s5 + $0x698] sm:$0xff]  }
 0xfa0   : > { %15320 = vmatpush3.bf16.msra.mxu0 %v17252_v46 }
 0xfa1   : > { %15321 = vmatprep.subr.bf16.mxu0 %v17254_v32 }
 0xfa2   : > { %15334 = vmatpush3.bf16.msra.mxu1 %v17237_v41  ;;  %v17271_v41 = vld [vmem:[%s20289_s4 + $0xe0] sm:$0xff]  }
 0xfa3   : > { %15335 = vmatprep.subr.bf16.mxu1 %v17239_v38  ;;  %v17273_v38 = vld [vmem:[%s20290_s5 + $0x6e8] sm:$0xff]  }
 0xfa4   : > { %15322 = vmatpush3.bf16.msra.mxu0 %v17256_v48 }
 0xfa5   : > { %15898 = vmatprep.subr.bf16.mxu0 %v17770_v2 }
 0xfa6   : > { %15336 = vmatpush3.bf16.msra.mxu1 %v17241_v61  ;;  %v17275_v61 = vld [vmem:[%s20290_s5 + $0x6a8] sm:$0xff]  }
 0xfa7   : > { %15337 = vmatprep.subr.bf16.mxu1 %v17243_v36  ;;  %v17277_v36 = vld [vmem:[%s20289_s4 + $0xf0] sm:$0xff]  }
 0xfaa   : > { %15338 = vmatpush3.bf16.msra.mxu1 %v17245_v3  ;;  %v17279_v3 = vld [vmem:[%s20290_s5 + $0x6f8] sm:$0xff]  }
 0xfab   : > { %15339 = vmatprep.subr.bf16.mxu1 %v17247_v29  ;;  %v17281_v29 = vld [vmem:[%s20290_s5 + $0x6b8] sm:$0xff]  }
 0xfae   : > { %15340 = vmatpush3.bf16.msra.mxu1 %v17249_v25  ;;  %v17288_v25 = vld [vmem:[#allocation8 + $0x600] ss:$8 sps:$4 sm:$0xff]  }
 0xfaf   : > { %15341 = vmatprep.subr.bf16.mxu1 %v17251_v21 }
 0xfb2   : > { %15342 = vmatpush3.bf16.msra.mxu1 %v17253_v4 }
 0xfb3   : > { %15343 = vmatprep.subr.bf16.mxu1 %v17255_v58 }
 0xfb6   : > { %15344 = vmatpush3.bf16.msra.mxu1 %v17257_v28 }
 0xfb7   : > { %15360 = vmatprep.subr.bf16.mxu1 %v17258_v12 }
0x104c   : > { %v9118_v42 = vpop.f32.mrb[216].mxu1 }
0x104d   : > { %v9120_v20 = vpop.f32.mrb[217].mxu1 }
0x104e   : > { %v9122_v43 = vpop.f32.mrb[218].mxu1 }
0x104f   : > { %v9123_v10 = vpop.f32.mrb[219].mxu1 }
0x105a   : > { %v9248_v0 = vpop.f32.mrb[112].mxu0 }
0x105b   : > { %v9249_v5 = vadd.f32 %v9248_v0, %v9118_v42  ;;  %v9250_v19 = vpop.f32.mrb[113].mxu0 }
0x105c   : > { %v9251_v30 = vadd.f32 %v9250_v19, %v9120_v20  ;;  %v9252_v45 = vpop.f32.mrb[114].mxu0 }
0x105d   : > { %v9253_v35 = vpop.f32.mrb[115].mxu0 }
0x106c   : > { %v9380_v51 = vpop.f32.mrb[220].mxu1 }
0x106d   : > { %v9387_v1 = vadd.f32 %v9380_v51, %v9249_v5  ;;  %v9382_v63 = vpop.f32.mrb[221].mxu1  ;;  %v9868_v51 = vld [vmem:[#allocation9] sm:$0xf] }
0x106e   : > { %v9388_v34 = vadd.f32 %v9382_v63, %v9251_v30  ;;  %v9384_v11 = vpop.f32.mrb[222].mxu1  ;;  %v17282_v63 = vld [vmem:[#allocation8 + $0x680] ss:$8 sps:$4 sm:$0xff]  }
0x106f   : > { %v9402_v62 = vadd.f32 %v9395_v59, %v9387_v1  ;;  %v9385_v56 = vpop.f32.mrb[223].mxu1  ;;  %v9869_v59 = vld [vmem:[#allocation9 + $0x40] sm:$0xf]  ;;  %v17285_v11 = vld [vmem:[#allocation8 + $0x690] ss:$8 sps:$4 sm:$0xff]  }
0x1070   : > { %v9403_v60 = vadd.f32 %v9399_v13, %v9388_v34  ;;  %v17284_v13 = vld [vmem:[#allocation8 + $0x684] ss:$8 sps:$4 sm:$0xff]   ;;  %v9870_v1 = vld [vmem:[#allocation9 + $0x80] sm:$0xf]  ;;  %v17287_v34 = vld [vmem:[#allocation8 + $0x694] ss:$8 sps:$4 sm:$0xff]  }
0x1071   : > { %v9404_v18 = vmax.f32 %v9402_v62, 0.0  ;;  %v17293_v62 = vld [vmem:[#allocation8 + $0x6a4] ss:$8 sps:$4 sm:$0xff]   ;;  %v17291_v56 = vld [vmem:[#allocation8 + $0x6a0] ss:$8 sps:$4 sm:$0xff]  }
0x1072   : > { %v9405_v57 = vmax.f32 %v9403_v60, 0.0  ;;  %v17294_v60 = vld [vmem:[#allocation8 + $0x610] ss:$8 sps:$4 sm:$0xff]  }
0x1073   : > { %v9406_v40 = vpack.c.bf16 %v9404_v18, %v9404_v18  ;;  %v17296_v18 = vld [vmem:[#allocation8 + $0x614] ss:$8 sps:$4 sm:$0xff]  }
0x1074   : > { %v9407_v6 = vpack.c.bf16 %v9405_v57, %v9405_v57  ;;  %v17299_v57 = vld [vmem:[#allocation8 + $0x6b4] ss:$8 sps:$4 sm:$0xff]  }
0x1076   : > { %9569 = vmatprep.mubr.bf16.mxu0 %v9407_v6  ;;  %9771 = vmatprep.mubr.bf16.mxu1 %v9407_v6 }
0x1077   : > { %9570 = vmatmul.mubr.bf16.vlgmr.msra.gmra.mrb[116].mxu0 %v9406_v40  ;;  %9772 = vmatmul.mubr.bf16.vlgmr.msra.gmra.mrb[224].mxu1 %v9406_v40 }
0x1078   : > { %15899 = vmatpush3.bf16.msra.mxu0 %v17259_v15  ;;  %15361 = vmatpush3.bf16.msra.mxu1 %v17260_v52  ;;  %v17300_v15 = vld [vmem:[#allocation8 + $0x620] ss:$8 sps:$4 sm:$0xff]   ;;  %v17302_v52 = vld [vmem:[#allocation8 + $0x624] ss:$8 sps:$4 sm:$0xff]  }
0x1079   : > { %9999 = vmatprep.mubr.bf16.mxu1 %v9407_v6  ;;  %15900 = vmatprep.subr.bf16.mxu0 %v17770_v2  ;;  %v17297_v6 = vld [vmem:[#allocation8 + $0x6b0] ss:$8 sps:$4 sm:$0xff]  }
0x107a   : > { %15362 = vmatprep.subr.bf16.mxu1 %v17261_v9  ;;  %15914 = vmatprep.mubr.msk.bf16.mxu0 %vm17772_vm5, %v17770_v2  ;;  %v17303_v9 = vld [vmem:[#allocation8 + $0x6c0] ss:$8 sps:$4 sm:$0xff]  }
0x107c   : > { %15901 = vmatpush3.bf16.msra.mxu0 %v17262_v47  ;;  %15363 = vmatpush3.bf16.msra.mxu1 %v17263_v37  ;;  %v17308_v47 = vld [vmem:[#allocation8 + $0x634] ss:$8 sps:$4 sm:$0xff]   ;;  %v17306_v37 = vld [vmem:[#allocation8 + $0x630] ss:$8 sps:$4 sm:$0xff]  }
0x107d   : > { %15902 = vmatprep.subr.bf16.mxu0 %v17770_v2  ;;  %15364 = vmatprep.subr.bf16.mxu1 %v17264_v55  ;;  %v17311_v55 = vld [vmem:[#allocation8 + $0x6d4] ss:$8 sps:$4 sm:$0xff]  }
0x1080   : > { %15903 = vmatpush3.bf16.msra.mxu0 %v17265_v7  ;;  %15365 = vmatpush3.bf16.msra.mxu1 %v17266_v26  ;;  %v17309_v7 = vld [vmem:[#allocation8 + $0x6d0] ss:$8 sps:$4 sm:$0xff]   ;;  %v17314_v26 = vld [vmem:[#allocation8 + $0x644] ss:$8 sps:$4 sm:$0xff]  }
0x1081   : > { %15904 = vmatprep.subr.bf16.mxu0 %v17770_v2  ;;  %15366 = vmatprep.subr.bf16.mxu1 %v17267_v50  ;;  %v17312_v50 = vld [vmem:[#allocation8 + $0x640] ss:$8 sps:$4 sm:$0xff]  }
0x1084   : > { %15905 = vmatpush3.bf16.msra.mxu0 %v17268_v8  ;;  %15367 = vmatpush3.bf16.msra.mxu1 %v17269_v23  ;;  %v17315_v8 = vld [vmem:[#allocation8 + $0x6e0] ss:$8 sps:$4 sm:$0xff]   ;;  %v17317_v23 = vld [vmem:[#allocation8 + $0x6e4] ss:$8 sps:$4 sm:$0xff]  }
0x1085   : > { %15906 = vmatprep.subr.bf16.mxu0 %v17770_v2  ;;  %15368 = vmatprep.subr.bf16.mxu1 %v17270_v16  ;;  %v17320_v16 = vld [vmem:[#allocation8 + $0x654] ss:$8 sps:$4 sm:$0xff]  }
0x1088   : > { %15907 = vmatpush3.bf16.msra.mxu0 %v17271_v41  ;;  %15369 = vmatpush3.bf16.msra.mxu1 %v17272_v33  ;;  %v17318_v41 = vld [vmem:[#allocation8 + $0x650] ss:$8 sps:$4 sm:$0xff]   ;;  %v17323_v33 = vld [vmem:[#allocation8 + $0x6f4] ss:$8 sps:$4 sm:$0xff]  }
0x1089   : > { %15908 = vmatprep.subr.bf16.mxu0 %v17770_v2  ;;  %15370 = vmatprep.subr.bf16.mxu1 %v17273_v38  ;;  %v17321_v38 = vld [vmem:[#allocation8 + $0x6f0] ss:$8 sps:$4 sm:$0xff]  }
0x108c   : > { %15909 = vmatpush3.bf16.msra.mxu0 %v17274_v14  ;;  %15371 = vmatpush3.bf16.msra.mxu1 %v17275_v61  ;;  %v17326_v14 = vld [vmem:[#allocation8 + $0x664] ss:$8 sps:$4 sm:$0xff]  }
0x108d   : > { %15910 = vmatprep.subr.bf16.mxu0 %v17770_v2  ;;  %15372 = vmatprep.subr.bf16.mxu1 %v17276_v53  ;;  %v17329_v61 = vld [vmem:[#allocation8 + $0x704] ss:$8 sps:$4 sm:$0xff]   ;;  %v17324_v53 = vld [vmem:[#allocation8 + $0x660] ss:$8 sps:$4 sm:$0xff]  }
0x1090   : > { %15911 = vmatpush3.bf16.msra.mxu0 %v17277_v36  ;;  %15373 = vmatpush3.bf16.msra.mxu1 %v17278_v17  ;;  %v10309_v36 = vld [vmem:[#allocation2] sm:$0x80]  ;;  %v17330_v17 = vld [vmem:[#allocation8 + $0x670] ss:$8 sps:$4 sm:$0xff]  }
0x1091   : > { %15912 = vmatprep.subr.bf16.mxu0 %v17770_v2  ;;  %15374 = vmatprep.subr.bf16.mxu1 %v17279_v3  ;;  %11625 = vst [vmem:[#allocation2 + $0x7] sm:$0x1] %v17770_v2  ;;  %v17332_v3 = vld [vmem:[#allocation8 + $0x674] ss:$8 sps:$4 sm:$0xff]  }
0x1094   : > { %15913 = vmatpush3.bf16.msra.mxu0 %v17280_v22  ;;  %15375 = vmatpush3.bf16.msra.mxu1 %v17281_v29 }
0x1095   : > { %15918 = vmatprep.subr.mxu0 %v17770_v2  ;;  %10524 = vmatprep.subr.bf16.mxu1 %v17290_v24 }
0x1097   : > { %15915 = vmatmul.mubr.bf16.vlgmr.msra.gmra.mrb[120].mxu0 %v9779_v39  ;;  %10000 = vmatmul.mubr.bf16.vlgmr.msra.gmra.mrb[228].mxu1 %v9406_v40  ;;  %v17305_v40 = vld [vmem:[#allocation8 + $0x6c4] ss:$8 sps:$4 sm:$0xff]  }
0x1098   : > { %15920 = vmatprep.mubr.msk.f32.mxu0 %vm17772_vm5, %v17770_v2  ;;  %10556 = vmatprep.mubr.bf16.mxu1 %v17771_v44 }
0x1099   : > { %10525 = vmatpush1.bf16.msra.mxu1 %v17288_v25 }
0x109a   : > { %10526 = vmatprep.subr.bf16.mxu1 %v17296_v18  ;;  %v17353_v18 = vld [vmem:[#allocation8 + $0x774] ss:$8 sps:$4 sm:$0xff]  }
0x109d   : > { %10527 = vmatpush1.bf16.msra.mxu1 %v17294_v60  ;;  %v17348_v60 = vld [vmem:[#allocation8 + $0x760] ss:$8 sps:$4 sm:$0xff]  }
0x109e   : > { %10528 = vmatprep.subr.bf16.mxu1 %v17302_v52 }
0x10a1   : > { %10529 = vmatpush1.bf16.msra.mxu1 %v17300_v15 }
0x10a2   : > { %10530 = vmatprep.subr.bf16.mxu1 %v17308_v47  ;;  %v17355_v47 = vld [vmem:[%s20290_s5 + $0x8c0] sm:$0xff]  }
0x10a5   : > { %10531 = vmatpush1.bf16.msra.mxu1 %v17306_v37  ;;  %v17356_v37 = vld [vmem:[%s20290_s5 + $0x780] sm:$0xff]  }
0x10a6   : > { %10532 = vmatprep.subr.bf16.mxu1 %v17314_v26  ;;  %v17359_v26 = vld [vmem:[%s20290_s5 + $0x8c8] sm:$0xff]  }
0x10a9   : > { %10533 = vmatpush1.bf16.msra.mxu1 %v17312_v50  ;;  %v17360_v50 = vld [vmem:[%s20290_s5 + $0x788] sm:$0xff]  }
0x10aa   : > { %10534 = vmatprep.subr.bf16.mxu1 %v17320_v16  ;;  %v17363_v16 = vld [vmem:[%s20290_s5 + $0x8d0] sm:$0xff]  }
0x10ad   : > { %10535 = vmatpush1.bf16.msra.mxu1 %v17318_v41  ;;  %v17364_v41 = vld [vmem:[%s20290_s5 + $0x790] sm:$0xff]  }
0x10ae   : > { %10536 = vmatprep.subr.bf16.mxu1 %v17326_v14  ;;  %v17367_v14 = vld [vmem:[%s20290_s5 + $0x8d8] sm:$0xff]  }
0x10b1   : > { %10537 = vmatpush1.bf16.msra.mxu1 %v17324_v53  ;;  %v17369_v53 = vld [vmem:[%s20290_s5 + $0x898] sm:$0xff]  }
0x10b2   : > { %10538 = vmatprep.subr.bf16.mxu1 %v17332_v3  ;;  %v17372_v3 = vld [vmem:[%s20290_s5 + $0x7a0] sm:$0xff]  }
0x10b5   : > { %10539 = vmatpush1.bf16.msra.mxu1 %v17330_v17  ;;  %v17371_v17 = vld [vmem:[%s20290_s5 + $0x8e0] sm:$0xff]  }
0x114a   : > { %v15323_v21 = vpop.f32.mrb[116].mxu0  ;;  %v15345_v46 = vpop.f32.mrb[224].mxu1 }
0x114b   : > { %v15324_v4 = vpop.f32.mrb[117].mxu0  ;;  %v15346_v32 = vpop.f32.mrb[225].mxu1 }
0x114c   : > { %v15325_v58 = vadd.f32 %v15324_v4, %v15323_v21  ;;  %v15347_v48 = vadd.f32 %v15346_v32, %v15345_v46  ;;  %v15326_v54 = vpop.f32.mrb[118].mxu0  ;;  %v15348_v28 = vpop.f32.mrb[226].mxu1  ;;  %v14147_v46 = vld [vmem:[%s20292_s7 + $0x4] ss:$0 sm:$0xff] }
0x114d   : > { %v15327_v12 = vpop.f32.mrb[119].mxu0  ;;  %v15349_v42 = vpop.f32.mrb[227].mxu1  ;;  %v17327_v54 = vld [vmem:[#allocation8 + $0x700] ss:$8 sps:$4 sm:$0xff]  }
0x116a   : > { %v9862_v20 = vpop.f32.mrb[120].mxu0  ;;  %v15376_v43 = vpop.f32.mrb[228].mxu1 }
0x116b   : > { %v15916_v10 = vpop.f32.mrb[121].mxu0  ;;  %v15377_v0 = vpop.f32.mrb[229].mxu1 }
0x116c   : > { %v15378_v5 = vadd.f32 %v15377_v0, %v15376_v43  ;;  %v9865_v19 = vpop.f32.mrb[122].mxu0  ;;  %v15379_v30 = vpop.f32.mrb[230].mxu1  ;;  %v17335_v43 = vld [vmem:[#allocation8 + $0x714] ss:$8 sps:$4 sm:$0xff]  }
0x116d   : > { %v15917_v45 = vpop.f32.mrb[123].mxu0  ;;  %v15380_v35 = vpop.f32.mrb[231].mxu1  ;;  %v17333_v19 = vld [vmem:[#allocation8 + $0x710] ss:$8 sps:$4 sm:$0xff]  }
0x116e   : > { %v10002_v49 = vadd.f32 %v15378_v5, %v9862_v20  ;;  %v17338_v35 = vld [vmem:[#allocation8 + $0x724] ss:$8 sps:$4 sm:$0xff]  }
0x1170   : > { %15919 = vmatpush3.msra.mxu0 %v10002_v49 }
0x1171   : > { %15921 = vmatmul.mubr.msk.f32.vlgmr.msra.gmra.mrb[110].mxu0 %vm10007_vm7, %v9869_v59  ;;  %15923 = vmatprep.subr.mxu0 %v17770_v2  ;;  %v17336_v59 = vld [vmem:[#allocation8 + $0x720] ss:$8 sps:$4 sm:$0xff]  }
0x1172   : > { %15924 = vmatpush3.msra.mxu0 %v15325_v58  ;;  %15925 = vmatprep.mubr.msk.f32.mxu0 %vm17772_vm5, %v17770_v2 }
0x1173   : > { %15928 = vmatprep.subr.mxu0 %v17770_v2 }
0x1175   : > { %15926 = vmatmul.mubr.msk.f32.vlgmr.msra.gmra.mrb[124].mxu0 %vm10007_vm7, %v9868_v51  ;;  %v17341_v51 = vld [vmem:[#allocation8 + $0x734] ss:$8 sps:$4 sm:$0xff]  }
0x1176   : > { %15929 = vmatpush3.msra.mxu0 %v15347_v48  ;;  %15930 = vmatprep.mubr.msk.f32.mxu0 %vm17772_vm5, %v17770_v2 }
0x1177   : > { %10394 = vmatprep.subr.bf16.mxu0 %v17284_v13  ;;  %v17339_v13 = vld [vmem:[#allocation8 + $0x730] ss:$8 sps:$4 sm:$0xff]  }
0x1179   : > { %15931 = vmatmul.mubr.msk.f32.vlgmr.msra.gmra.mrb[126].mxu0 %vm10007_vm7, %v9870_v1  ;;  %v17344_v1 = vld [vmem:[#allocation8 + $0x744] ss:$8 sps:$4 sm:$0xff]  }
0x117a   : > { %10395 = vmatpush1.bf16.msra.mxu0 %v17282_v63  ;;  %10426 = vmatprep.mubr.bf16.mxu0 %v17771_v44  ;;  %v17342_v63 = vld [vmem:[#allocation8 + $0x740] ss:$8 sps:$4 sm:$0xff]  }
0x117b   : > { %10396 = vmatprep.subr.bf16.mxu0 %v17287_v34  ;;  %v17347_v34 = vld [vmem:[#allocation8 + $0x754] ss:$8 sps:$4 sm:$0xff]  }
0x117e   : > { %10397 = vmatpush1.bf16.msra.mxu0 %v17285_v11  ;;  %v17345_v11 = vld [vmem:[#allocation8 + $0x750] ss:$8 sps:$4 sm:$0xff]  }
0x117f   : > { %10398 = vmatprep.subr.bf16.mxu0 %v17293_v62  ;;  %v17350_v62 = vld [vmem:[#allocation8 + $0x764] ss:$8 sps:$4 sm:$0xff]  }
0x1182   : > { %10399 = vmatpush1.bf16.msra.mxu0 %v17291_v56 }
0x1183   : > { %10400 = vmatprep.subr.bf16.mxu0 %v17299_v57 }
0x1186   : > { %10401 = vmatpush1.bf16.msra.mxu0 %v17297_v6  ;;  %v17351_v6 = vld [vmem:[#allocation8 + $0x770] ss:$8 sps:$4 sm:$0xff]  }
0x1187   : > { %10402 = vmatprep.subr.bf16.mxu0 %v17305_v40 }
0x118a   : > { %10403 = vmatpush1.bf16.msra.mxu0 %v17303_v9  ;;  %v17354_v9 = vld [vmem:[%s20290_s5 + $0x7c0] sm:$0xff]  }
0x118b   : > { %10404 = vmatprep.subr.bf16.mxu0 %v17311_v55  ;;  %v17357_v55 = vld [vmem:[%s20290_s5 + $0x880] sm:$0xff]   ;;  %15388 = vmatprep.subr.bf16.mxu1 %v17354_v9 }
0x118e   : > { %10405 = vmatpush1.bf16.msra.mxu0 %v17309_v7  ;;  %v17358_v7 = vld [vmem:[%s20290_s5 + $0x7c8] sm:$0xff]  }
0x118f   : > { %10406 = vmatprep.subr.bf16.mxu0 %v17317_v23  ;;  %v17362_v23 = vld [vmem:[%s20290_s5 + $0x7d0] sm:$0xff]  }
0x1192   : > { %10407 = vmatpush1.bf16.msra.mxu0 %v17315_v8  ;;  %v17361_v8 = vld [vmem:[%s20290_s5 + $0x888] sm:$0xff]  }
0x1193   : > { %10408 = vmatprep.subr.bf16.mxu0 %v17323_v33  ;;  %v17365_v33 = vld [vmem:[%s20290_s5 + $0x890] sm:$0xff]  }
0x1196   : > { %10409 = vmatpush1.bf16.msra.mxu0 %v17321_v38  ;;  %v17366_v38 = vld [vmem:[%s20290_s5 + $0x7d8] sm:$0xff]  }
0x1197   : > { %10655 = vmatprep.subr.bf16.mxu0 %v17329_v61  ;;  %v17368_v61 = vld [vmem:[%s20290_s5 + $0x798] sm:$0xff]  }
0x1244   : > { %v10077_v22 = vpop.f32.mrb[110].mxu0 }
0x1245   : > { %v15922_v29 = vpop.f32.mrb[111].mxu0 }
0x1246   : > { %v17374_v29 = vld [vmem:[%s20290_s5 + $0x7e8] sm:$0xff]  }
0x1248   : > { %v10150_v39 = vpop.f32.mrb[124].mxu0 }
0x1249   : > { %v10151_v25 = vadd.f32 %v10150_v39, %v10077_v22  ;;  %v15927_v24 = vpop.f32.mrb[125].mxu0  ;;  %v17373_v22 = vld [vmem:[%s20290_s5 + $0x8a0] sm:$0xff]   ;;  %v17375_v39 = vld [vmem:[%s20290_s5 + $0x8e8] sm:$0xff]  }
0x124a   : > { %v17377_v24 = vld [vmem:[%s20290_s5 + $0x8a8] sm:$0xff]  }
0x124c   : > { %v10223_v21 = vpop.f32.mrb[126].mxu0 }
0x124d   : > { %v10227_v4 = vadd.f32 %v10223_v21, %v10151_v25  ;;  %v15932_v32 = vpop.f32.mrb[127].mxu0  ;;  %v17376_v25 = vld [vmem:[%s20290_s5 + $0x7a8] sm:$0xff]   ;;  %v17378_v21 = vld [vmem:[%s20290_s5 + $0x7f0] sm:$0xff]  }
0x124e   : > { %v17381_v32 = vld [vmem:[%s20290_s5 + $0x8b0] sm:$0xff]  }
0x124f   : > { %v19867_v58 = vadd.f32 %v14147_v46, %v10227_v4  ;;  %v17379_v46 = vld [vmem:[%s20290_s5 + $0x8f0] sm:$0xff]  }
0x1250   : > { %v17380_v4 = vld [vmem:[%s20290_s5 + $0x7b0] sm:$0xff]  }
0x1251   : > { %v10237_v48 = vmax.f32 %v19867_v58, 0.0 }
0x1253   : > { %10308 = vst [vmem:[#allocation2 + $0x18] sm:$0xf] %v10237_v48  ;;  %v17382_v48 = vld [vmem:[%s20290_s5 + $0x7f8] sm:$0xff]  }
0x125a   : > { %v10312_v28 = vld [vmem:[#allocation2 + $0x18] sm:$0xf] }
0x125b   : > { %v10310_v12 = vld [vmem:[#allocation2 + $0x18] sm:$0x7]  ;;  %v10313_v20 = vpack.c.bf16 %v10312_v28, %v10312_v28 }
0x125c   : > { %v10565_v42 = vld [vmem:[#allocation2 + $0x18] sm:$0x1e]  ;;  %v10311_v10 = vpack.c.bf16 %v10310_v12, %v10309_v36  ;;  %v17370_v36 = vld [vmem:[%s20290_s5 + $0x7e0] sm:$0xff]  }
0x125d   : > { %11626 = vst [vmem:[#allocation2 + $0x1a] sm:$0x1] %v17770_v2  ;;  %10427 = vmatmul.mubr.bf16.vlgmr.msra.gmra.mrb[128].mxu0 %v10313_v20  ;;  %v10566_v56 = vpack.c.bf16 %v10565_v42, %v10565_v42  ;;  %v17384_v28 = vld [vmem:[%s20290_s5 + $0x7b8] sm:$0xff]   ;;  %v17386_v42 = vld [vmem:[%s20290_s5 + $0x840] sm:$0xff]  }
0x125e   : > { %v10436_v0 = vshrl.u32 %v10311_v10, 16  ;;  %v10439_v5 = vshll.u32 %v10311_v10, 16  ;;  %10656 = vmatpush1.bf16.msra.mxu0 %v17327_v54  ;;  %10687 = vmatprep.mubr.bf16.mxu0 %v17771_v44  ;;  %v17383_v54 = vld [vmem:[%s20290_s5 + $0x8f8] sm:$0xff]  }
0x125f   : > { %10657 = vmatprep.subr.bf16.mxu0 %v17335_v43  ;;  %v10570_v57 = vshll.u32 %v10566_v56, 16  ;;  %v10568_v52 = vshrl.u32 %v10566_v56, 16  ;;  %v17385_v12 = vld [vmem:[%s20290_s5 + $0x8b8] sm:$0xff]  }
0x1260   : > { %v10438_v30 = vrot.slane %v10436_v0, 3  ;;  %v10441_v45 = vrot.slane %v10439_v5, 4 }
0x1261   : > { %v10572_v15 = vrot.slane %v10570_v57, 1 }
0x1262   : > { %v10442_v49 = vor.u32 %v10441_v45, %v10438_v30  ;;  %10658 = vmatpush1.bf16.msra.mxu0 %v17333_v19 }
0x1263   : > { %10659 = vmatprep.subr.bf16.mxu0 %v17338_v35  ;;  %v10573_v40 = vor.u32 %v10572_v15, %v10568_v52  ;;  %v17387_v52 = vld [vmem:[%s20289_s4 + $0x100] sm:$0xff]  }
0x1264   : > { %10557 = vmatmul.mubr.bf16.vlgmr.msra.gmra.mrb[232].mxu1 %v10442_v49 }
0x1265   : > { %15389 = vmatpush3.bf16.msra.mxu1 %v17356_v37  ;;  %v17390_v37 = vld [vmem:[%s20289_s4 + $0x108] sm:$0xff]  }
0x1266   : > { %10660 = vmatpush1.bf16.msra.mxu0 %v17336_v59  ;;  %15390 = vmatprep.subr.bf16.mxu1 %v17358_v7  ;;  %v14212_v59 = vld [vmem:[%s20291_s6 + $0xa] sm:$0x3]  ;;  %v17392_v7 = vld [vmem:[%s20290_s5 + $0x850] sm:$0xff]  }
0x1267   : > { %10661 = vmatprep.subr.bf16.mxu0 %v17341_v51  ;;  %v10704_v51 = vrot.slane %v14212_v59, %v18504_v27 }
0x1269   : > { %15391 = vmatpush3.bf16.msra.mxu1 %v17360_v50  ;;  %v17394_v50 = vld [vmem:[%s20290_s5 + $0x810] sm:$0xff]  }
0x126a   : > { %10662 = vmatpush1.bf16.msra.mxu0 %v17339_v13  ;;  %15392 = vmatprep.subr.bf16.mxu1 %v17362_v23  ;;  %v17396_v23 = vld [vmem:[%s20289_s4 + $0x118] sm:$0xff]  }
0x126b   : > { %10663 = vmatprep.subr.bf16.mxu0 %v17344_v1  ;;  %v10708_v1 = vrot.slane %v14212_v59, %v18509_v31 }
0x126d   : > { %15393 = vmatpush3.bf16.msra.mxu1 %v17364_v41  ;;  %v17398_v41 = vld [vmem:[%s20290_s5 + $0x860] sm:$0xff]  }
0x126e   : > { %10664 = vmatpush1.bf16.msra.mxu0 %v17342_v63  ;;  %15394 = vmatprep.subr.bf16.mxu1 %v17366_v38  ;;  %v17400_v38 = vld [vmem:[%s20290_s5 + $0x820] sm:$0xff]  }
0x126f   : > { %10665 = vmatprep.subr.bf16.mxu0 %v17347_v34 }
0x1271   : > { %15395 = vmatpush3.bf16.msra.mxu1 %v17368_v61  ;;  %v17402_v61 = vld [vmem:[%s20289_s4 + $0x128] sm:$0xff]  }
0x1272   : > { %10666 = vmatpush1.bf16.msra.mxu0 %v17345_v11  ;;  %15396 = vmatprep.subr.bf16.mxu1 %v17370_v36  ;;  %v17404_v36 = vld [vmem:[%s20290_s5 + $0x870] sm:$0xff]  }
0x1273   : > { %10667 = vmatprep.subr.bf16.mxu0 %v17350_v62 }
0x1275   : > { %15397 = vmatpush3.bf16.msra.mxu1 %v17372_v3  ;;  %v17406_v3 = vld [vmem:[%s20290_s5 + $0x830] sm:$0xff]  }
0x1276   : > { %10668 = vmatpush1.bf16.msra.mxu0 %v17348_v60  ;;  %15398 = vmatprep.subr.bf16.mxu1 %v17374_v29  ;;  %v17408_v29 = vld [vmem:[%s20289_s4 + $0x138] sm:$0xff]  }
0x1277   : > { %10669 = vmatprep.subr.bf16.mxu0 %v17353_v18 }
0x1279   : > { %15399 = vmatpush3.bf16.msra.mxu1 %v17376_v25  ;;  %v11088_v25 = vpack.c.bf16 %v19867_v58, %v19867_v58 }
0x127a   : > { %10670 = vmatpush1.bf16.msra.mxu0 %v17351_v6  ;;  %15400 = vmatprep.subr.bf16.mxu1 %v17378_v21  ;;  %v17418_v21 = vld [vmem:[#allocation8 + $0x784] ss:$8 sps:$4 sm:$0xff]  }
0x127b   : > { %15410 = vmatprep.subr.bf16.mxu0 %v17355_v47  ;;  %v17389_v47 = vld [vmem:[%s20290_s5 + $0x848] sm:$0xff]  }
0x127d   : > { %10688 = vmatmul.mubr.bf16.vlgmr.msra.gmra.mrb[132].mxu0 %v10573_v40  ;;  %15401 = vmatpush3.bf16.msra.mxu1 %v17380_v4  ;;  %v17388_v40 = vld [vmem:[%s20290_s5 + $0x800] sm:$0xff]  }
0x127e   : > { %15411 = vmatpush3.bf16.msra.mxu0 %v17357_v55  ;;  %15402 = vmatprep.subr.bf16.mxu1 %v17382_v48  ;;  %v17391_v55 = vld [vmem:[%s20290_s5 + $0x808] sm:$0xff]  }
0x127f   : > { %15412 = vmatprep.subr.bf16.mxu0 %v17359_v26  ;;  %v17393_v26 = vld [vmem:[%s20289_s4 + $0x110] sm:$0xff]  }
0x1281   : > { %15403 = vmatpush3.bf16.msra.mxu1 %v17384_v28 }
0x1282   : > { %15413 = vmatpush3.bf16.msra.mxu0 %v17361_v8  ;;  %15933 = vmatprep.subr.bf16.mxu1 %v17770_v2  ;;  %v17395_v8 = vld [vmem:[%s20290_s5 + $0x858] sm:$0xff]  }
0x1283   : > { %15414 = vmatprep.subr.bf16.mxu0 %v17363_v16  ;;  %v17397_v16 = vld [vmem:[%s20290_s5 + $0x818] sm:$0xff]  }
0x1286   : > { %15415 = vmatpush3.bf16.msra.mxu0 %v17365_v33  ;;  %v17399_v33 = vld [vmem:[%s20289_s4 + $0x120] sm:$0xff]  }
0x1287   : > { %15416 = vmatprep.subr.bf16.mxu0 %v17367_v14  ;;  %v17401_v14 = vld [vmem:[%s20290_s5 + $0x868] sm:$0xff]  }
0x128a   : > { %15417 = vmatpush3.bf16.msra.mxu0 %v17369_v53  ;;  %v17403_v53 = vld [vmem:[%s20290_s5 + $0x828] sm:$0xff]  }
0x128b   : > { %15418 = vmatprep.subr.bf16.mxu0 %v17371_v17  ;;  %v17405_v17 = vld [vmem:[%s20289_s4 + $0x130] sm:$0xff]  }
0x128e   : > { %15419 = vmatpush3.bf16.msra.mxu0 %v17373_v22  ;;  %v17407_v22 = vld [vmem:[%s20290_s5 + $0x878] sm:$0xff]  }
0x128f   : > { %15420 = vmatprep.subr.bf16.mxu0 %v17375_v39  ;;  %v17409_v39 = vld [vmem:[%s20290_s5 + $0x838] sm:$0xff]  }
0x1292   : > { %15421 = vmatpush3.bf16.msra.mxu0 %v17377_v24  ;;  %v17416_v24 = vld [vmem:[#allocation8 + $0x780] ss:$8 sps:$4 sm:$0xff]  }
0x1293   : > { %15422 = vmatprep.subr.bf16.mxu0 %v17379_v46 }
0x1296   : > { %15423 = vmatpush3.bf16.msra.mxu0 %v17381_v32 }
0x1297   : > { %15424 = vmatprep.subr.bf16.mxu0 %v17383_v54 }
0x129a   : > { %15425 = vmatpush3.bf16.msra.mxu0 %v17385_v12 }
0x129b   : > { %15441 = vmatprep.subr.bf16.mxu0 %v17386_v42 }
0x1330   : > { %v10428_v20 = vpop.f32.mrb[128].mxu0 }
0x1331   : > { %v10430_v43 = vpop.f32.mrb[129].mxu0 }
0x1332   : > { %v10432_v10 = vpop.f32.mrb[130].mxu0 }
0x1333   : > { %v10433_v0 = vpop.f32.mrb[131].mxu0 }
0x1337   : > { %v10558_v5 = vpop.f32.mrb[232].mxu1 }
0x1338   : > { %v10559_v19 = vadd.f32 %v10558_v5, %v10428_v20  ;;  %v10560_v30 = vpop.f32.mrb[233].mxu1 }
0x1339   : > { %v10561_v45 = vadd.f32 %v10560_v30, %v10430_v43  ;;  %v10562_v35 = vpop.f32.mrb[234].mxu1 }
0x133a   : > { %v10563_v49 = vpop.f32.mrb[235].mxu1 }
0x1350   : > { %v10689_v13 = vpop.f32.mrb[132].mxu0 }
0x1351   : > { %v10696_v63 = vadd.f32 %v10689_v13, %v10559_v19  ;;  %v10691_v34 = vpop.f32.mrb[133].mxu0  ;;  %v11177_v13 = vld [vmem:[#allocation9] sm:$0x3] }
0x1352   : > { %v10697_v11 = vadd.f32 %v10691_v34, %v10561_v45  ;;  %v10693_v62 = vpop.f32.mrb[134].mxu0  ;;  %v17410_v34 = vld [vmem:[#allocation8 + $0x800] ss:$8 sps:$4 sm:$0xff]  }
0x1353   : > { %v10711_v56 = vadd.f32 %v10704_v51, %v10696_v63  ;;  %v10694_v60 = vpop.f32.mrb[135].mxu0  ;;  %v11178_v51 = vld [vmem:[#allocation9 + $0x40] sm:$0x3]  ;;  %v17413_v62 = vld [vmem:[#allocation8 + $0x810] ss:$8 sps:$4 sm:$0xff]  }
0x1354   : > { %v10712_v18 = vadd.f32 %v10708_v1, %v10697_v11  ;;  %v17412_v1 = vld [vmem:[#allocation8 + $0x804] ss:$8 sps:$4 sm:$0xff]   ;;  %v11179_v63 = vld [vmem:[#allocation9 + $0x80] sm:$0x3]  ;;  %v17415_v11 = vld [vmem:[#allocation8 + $0x814] ss:$8 sps:$4 sm:$0xff]  }
0x1355   : > { %v10713_v57 = vmax.f32 %v10711_v56, 0.0  ;;  %v17421_v56 = vld [vmem:[#allocation8 + $0x824] ss:$8 sps:$4 sm:$0xff]   ;;  %v17419_v60 = vld [vmem:[#allocation8 + $0x820] ss:$8 sps:$4 sm:$0xff]  }
0x1356   : > { %v10714_v6 = vmax.f32 %v10712_v18, 0.0  ;;  %v17422_v18 = vld [vmem:[#allocation8 + $0x790] ss:$8 sps:$4 sm:$0xff]  }
0x1357   : > { %v10715_v9 = vpack.c.bf16 %v10713_v57, %v10713_v57  ;;  %v17424_v57 = vld [vmem:[#allocation8 + $0x794] ss:$8 sps:$4 sm:$0xff]  }
0x1358   : > { %v10716_v15 = vpack.c.bf16 %v10714_v6, %v10714_v6  ;;  %v17427_v6 = vld [vmem:[#allocation8 + $0x834] ss:$8 sps:$4 sm:$0xff]  }
0x135a   : > { %10878 = vmatprep.mubr.bf16.mxu1 %v10716_v15  ;;  %11080 = vmatprep.mubr.bf16.mxu0 %v10716_v15 }
0x135b   : > { %10879 = vmatmul.mubr.bf16.vlgmr.msra.gmra.mrb[236].mxu1 %v10715_v9  ;;  %11081 = vmatmul.mubr.bf16.vlgmr.msra.gmra.mrb[136].mxu0 %v10715_v9 }
0x135c   : > { %15934 = vmatpush3.bf16.msra.mxu1 %v17387_v52  ;;  %15442 = vmatpush3.bf16.msra.mxu0 %v17388_v40  ;;  %v17428_v52 = vld [vmem:[#allocation8 + $0x7a0] ss:$8 sps:$4 sm:$0xff]   ;;  %v17430_v40 = vld [vmem:[#allocation8 + $0x7a4] ss:$8 sps:$4 sm:$0xff]  }
0x135d   : > { %11308 = vmatprep.mubr.bf16.mxu0 %v10716_v15  ;;  %15935 = vmatprep.subr.bf16.mxu1 %v17770_v2  ;;  %v17425_v15 = vld [vmem:[#allocation8 + $0x830] ss:$8 sps:$4 sm:$0xff]  }
0x135e   : > { %15443 = vmatprep.subr.bf16.mxu0 %v17389_v47  ;;  %15949 = vmatprep.mubr.msk.bf16.mxu1 %vm17772_vm5, %v17770_v2  ;;  %v17431_v47 = vld [vmem:[#allocation8 + $0x840] ss:$8 sps:$4 sm:$0xff]  }
0x1360   : > { %15936 = vmatpush3.bf16.msra.mxu1 %v17390_v37  ;;  %15444 = vmatpush3.bf16.msra.mxu0 %v17391_v55  ;;  %v17436_v37 = vld [vmem:[#allocation8 + $0x7b4] ss:$8 sps:$4 sm:$0xff]   ;;  %v17434_v55 = vld [vmem:[#allocation8 + $0x7b0] ss:$8 sps:$4 sm:$0xff]  }
0x1361   : > { %15937 = vmatprep.subr.bf16.mxu1 %v17770_v2  ;;  %15445 = vmatprep.subr.bf16.mxu0 %v17392_v7  ;;  %v17439_v7 = vld [vmem:[#allocation8 + $0x854] ss:$8 sps:$4 sm:$0xff]  }
0x1364   : > { %15938 = vmatpush3.bf16.msra.mxu1 %v17393_v26  ;;  %15446 = vmatpush3.bf16.msra.mxu0 %v17394_v50  ;;  %v17437_v26 = vld [vmem:[#allocation8 + $0x850] ss:$8 sps:$4 sm:$0xff]   ;;  %v17442_v50 = vld [vmem:[#allocation8 + $0x7c4] ss:$8 sps:$4 sm:$0xff]  }
0x1365   : > { %15939 = vmatprep.subr.bf16.mxu1 %v17770_v2  ;;  %15447 = vmatprep.subr.bf16.mxu0 %v17395_v8  ;;  %v17440_v8 = vld [vmem:[#allocation8 + $0x7c0] ss:$8 sps:$4 sm:$0xff]  }
0x1368   : > { %15940 = vmatpush3.bf16.msra.mxu1 %v17396_v23  ;;  %15448 = vmatpush3.bf16.msra.mxu0 %v17397_v16  ;;  %v17443_v23 = vld [vmem:[#allocation8 + $0x860] ss:$8 sps:$4 sm:$0xff]   ;;  %v17445_v16 = vld [vmem:[#allocation8 + $0x864] ss:$8 sps:$4 sm:$0xff]  }
0x1369   : > { %15941 = vmatprep.subr.bf16.mxu1 %v17770_v2  ;;  %15449 = vmatprep.subr.bf16.mxu0 %v17398_v41  ;;  %v17448_v41 = vld [vmem:[#allocation8 + $0x7d4] ss:$8 sps:$4 sm:$0xff]  }
0x136c   : > { %15942 = vmatpush3.bf16.msra.mxu1 %v17399_v33  ;;  %15450 = vmatpush3.bf16.msra.mxu0 %v17400_v38  ;;  %v17446_v33 = vld [vmem:[#allocation8 + $0x7d0] ss:$8 sps:$4 sm:$0xff]   ;;  %v17451_v38 = vld [vmem:[#allocation8 + $0x874] ss:$8 sps:$4 sm:$0xff]  }
0x136d   : > { %15943 = vmatprep.subr.bf16.mxu1 %v17770_v2  ;;  %15451 = vmatprep.subr.bf16.mxu0 %v17401_v14  ;;  %v17449_v14 = vld [vmem:[#allocation8 + $0x870] ss:$8 sps:$4 sm:$0xff]  }
0x1370   : > { %15944 = vmatpush3.bf16.msra.mxu1 %v17402_v61  ;;  %15452 = vmatpush3.bf16.msra.mxu0 %v17403_v53  ;;  %v17454_v61 = vld [vmem:[#allocation8 + $0x7e4] ss:$8 sps:$4 sm:$0xff]  }
0x1371   : > { %15945 = vmatprep.subr.bf16.mxu1 %v17770_v2  ;;  %15453 = vmatprep.subr.bf16.mxu0 %v17404_v36  ;;  %v17457_v53 = vld [vmem:[#allocation8 + $0x884] ss:$8 sps:$4 sm:$0xff]   ;;  %v17452_v36 = vld [vmem:[#allocation8 + $0x7e0] ss:$8 sps:$4 sm:$0xff]  }
0x1374   : > { %15946 = vmatpush3.bf16.msra.mxu1 %v17405_v17  ;;  %15454 = vmatpush3.bf16.msra.mxu0 %v17406_v3  ;;  %v17458_v17 = vld [vmem:[#allocation8 + $0x7f0] ss:$8 sps:$4 sm:$0xff]   ;;  %v17460_v3 = vld [vmem:[#allocation8 + $0x7f4] ss:$8 sps:$4 sm:$0xff]  }
0x1375   : > { %15947 = vmatprep.subr.bf16.mxu1 %v17770_v2  ;;  %15455 = vmatprep.subr.bf16.mxu0 %v17407_v22 }
0x1378   : > { %15948 = vmatpush3.bf16.msra.mxu1 %v17408_v29  ;;  %15456 = vmatpush3.bf16.msra.mxu0 %v17409_v39 }
0x1379   : > { %15953 = vmatprep.subr.mxu1 %v17770_v2  ;;  %11843 = vmatprep.subr.bf16.mxu0 %v17418_v21 }
0x137b   : > { %15950 = vmatmul.mubr.bf16.vlgmr.msra.gmra.mrb[240].mxu1 %v11088_v25  ;;  %11309 = vmatmul.mubr.bf16.vlgmr.msra.gmra.mrb[140].mxu0 %v10715_v9  ;;  %v17433_v9 = vld [vmem:[#allocation8 + $0x844] ss:$8 sps:$4 sm:$0xff]  }
0x137c   : > { %15955 = vmatprep.mubr.msk.f32.mxu1 %vm17772_vm5, %v17770_v2  ;;  %11875 = vmatprep.mubr.bf16.mxu0 %v17771_v44 }
0x137d   : > { %11844 = vmatpush1.bf16.msra.mxu0 %v17416_v24 }
0x137e   : > { %11845 = vmatprep.subr.bf16.mxu0 %v17424_v57 }
0x1381   : > { %11846 = vmatpush1.bf16.msra.mxu0 %v17422_v18  ;;  %v17481_v18 = vld [vmem:[#allocation8 + $0x8f4] ss:$8 sps:$4 sm:$0xff]  }
0x1382   : > { %11847 = vmatprep.subr.bf16.mxu0 %v17430_v40 }
0x1385   : > { %11848 = vmatpush1.bf16.msra.mxu0 %v17428_v52 }
0x1386   : > { %11849 = vmatprep.subr.bf16.mxu0 %v17436_v37  ;;  %v17484_v37 = vld [vmem:[%s20290_s5 + $0x900] sm:$0xff]  }
0x1389   : > { %11850 = vmatpush1.bf16.msra.mxu0 %v17434_v55  ;;  %v17485_v55 = vld [vmem:[%s20290_s5 + $0xa00] sm:$0xff]  }
0x138a   : > { %11851 = vmatprep.subr.bf16.mxu0 %v17442_v50  ;;  %v17488_v50 = vld [vmem:[%s20290_s5 + $0x908] sm:$0xff]  }
0x138d   : > { %11852 = vmatpush1.bf16.msra.mxu0 %v17440_v8  ;;  %v17489_v8 = vld [vmem:[%s20290_s5 + $0xa08] sm:$0xff]  }
0x138e   : > { %11853 = vmatprep.subr.bf16.mxu0 %v17448_v41  ;;  %v17492_v41 = vld [vmem:[%s20290_s5 + $0x910] sm:$0xff]  }
0x1391   : > { %11854 = vmatpush1.bf16.msra.mxu0 %v17446_v33  ;;  %v17493_v33 = vld [vmem:[%s20290_s5 + $0xa10] sm:$0xff]  }
0x1392   : > { %11855 = vmatprep.subr.bf16.mxu0 %v17454_v61  ;;  %v17496_v61 = vld [vmem:[%s20290_s5 + $0x918] sm:$0xff]  }
0x1395   : > { %11856 = vmatpush1.bf16.msra.mxu0 %v17452_v36  ;;  %v17498_v36 = vld [vmem:[%s20290_s5 + $0x960] sm:$0xff]  }
0x1396   : > { %11857 = vmatprep.subr.bf16.mxu0 %v17460_v3  ;;  %v17500_v3 = vld [vmem:[%s20290_s5 + $0x920] sm:$0xff]  }
0x1399   : > { %11858 = vmatpush1.bf16.msra.mxu0 %v17458_v17  ;;  %v17499_v17 = vld [vmem:[%s20290_s5 + $0xa60] sm:$0xff]  }
0x142e   : > { %v15404_v46 = vpop.f32.mrb[236].mxu1  ;;  %v15426_v4 = vpop.f32.mrb[136].mxu0 }
0x142f   : > { %v15405_v32 = vpop.f32.mrb[237].mxu1  ;;  %v15427_v48 = vpop.f32.mrb[137].mxu0 }
0x1430   : > { %v15406_v54 = vadd.f32 %v15405_v32, %v15404_v46  ;;  %v15428_v28 = vadd.f32 %v15427_v48, %v15426_v4  ;;  %v15407_v58 = vpop.f32.mrb[238].mxu1  ;;  %v15429_v12 = vpop.f32.mrb[138].mxu0  ;;  %v14372_v46 = vld [vmem:[%s20292_s7 + $0x5] ss:$0 sm:$0xff] }
0x1431   : > { %v15408_v42 = vpop.f32.mrb[239].mxu1  ;;  %v15430_v20 = vpop.f32.mrb[139].mxu0  ;;  %v17455_v58 = vld [vmem:[#allocation8 + $0x880] ss:$8 sps:$4 sm:$0xff]  }
0x144e   : > { %v11171_v43 = vpop.f32.mrb[240].mxu1  ;;  %v15457_v10 = vpop.f32.mrb[140].mxu0 }
0x144f   : > { %v15951_v0 = vpop.f32.mrb[241].mxu1  ;;  %v15458_v5 = vpop.f32.mrb[141].mxu0 }
0x1450   : > { %v15459_v19 = vadd.f32 %v15458_v5, %v15457_v10  ;;  %v11174_v30 = vpop.f32.mrb[242].mxu1  ;;  %v15460_v45 = vpop.f32.mrb[142].mxu0 }
0x1451   : > { %v15952_v35 = vpop.f32.mrb[243].mxu1  ;;  %v15461_v49 = vpop.f32.mrb[143].mxu0 }
0x1452   : > { %v11311_v59 = vadd.f32 %v15459_v19, %v11171_v43  ;;  %v17463_v43 = vld [vmem:[#allocation8 + $0x894] ss:$8 sps:$4 sm:$0xff]   ;;  %v17461_v19 = vld [vmem:[#allocation8 + $0x890] ss:$8 sps:$4 sm:$0xff]   ;;  %v17466_v35 = vld [vmem:[#allocation8 + $0x8a4] ss:$8 sps:$4 sm:$0xff]  }
0x1454   : > { %15954 = vmatpush3.msk.msra.mxu1 %vm11320_vm8, %v11311_v59  ;;  %v17464_v59 = vld [vmem:[#allocation8 + $0x8a0] ss:$8 sps:$4 sm:$0xff]  }
0x1455   : > { %15956 = vmatmul.mubr.msk.f32.vlgmr.msra.gmra.mrb[214].mxu1 %vm11316_vm9, %v11178_v51  ;;  %15958 = vmatprep.subr.mxu1 %v17770_v2  ;;  %v17469_v51 = vld [vmem:[#allocation8 + $0x8b4] ss:$8 sps:$4 sm:$0xff]  }
0x1456   : > { %15959 = vmatpush3.msk.msra.mxu1 %vm11320_vm8, %v15406_v54  ;;  %15960 = vmatprep.mubr.msk.f32.mxu1 %vm17772_vm5, %v17770_v2 }
0x1457   : > { %15963 = vmatprep.subr.mxu1 %v17770_v2 }
0x1459   : > { %15961 = vmatmul.mubr.msk.f32.vlgmr.msra.gmra.mrb[244].mxu1 %vm11316_vm9, %v11177_v13  ;;  %v17467_v13 = vld [vmem:[#allocation8 + $0x8b0] ss:$8 sps:$4 sm:$0xff]  }
0x145a   : > { %15964 = vmatpush3.msk.msra.mxu1 %vm11320_vm8, %v15428_v28  ;;  %15965 = vmatprep.mubr.msk.f32.mxu1 %vm17772_vm5, %v17770_v2  ;;  %v11628_v28 = vld [vmem:[#allocation2] sm:$0x80] }
0x145b   : > { %11713 = vmatprep.subr.bf16.mxu1 %v17412_v1  ;;  %v17472_v1 = vld [vmem:[#allocation8 + $0x8c4] ss:$8 sps:$4 sm:$0xff]  }
0x145d   : > { %15966 = vmatmul.mubr.msk.f32.vlgmr.msra.gmra.mrb[246].mxu1 %vm11316_vm9, %v11179_v63  ;;  %v17470_v63 = vld [vmem:[#allocation8 + $0x8c0] ss:$8 sps:$4 sm:$0xff]  }
0x145e   : > { %11714 = vmatpush1.bf16.msra.mxu1 %v17410_v34  ;;  %11745 = vmatprep.mubr.bf16.mxu1 %v17771_v44  ;;  %v17475_v34 = vld [vmem:[#allocation8 + $0x8d4] ss:$8 sps:$4 sm:$0xff]  }
0x145f   : > { %11715 = vmatprep.subr.bf16.mxu1 %v17415_v11 }
0x1462   : > { %11716 = vmatpush1.bf16.msra.mxu1 %v17413_v62  ;;  %v17478_v62 = vld [vmem:[#allocation8 + $0x8e4] ss:$8 sps:$4 sm:$0xff]  }
0x1463   : > { %11717 = vmatprep.subr.bf16.mxu1 %v17421_v56 }
0x1466   : > { %11718 = vmatpush1.bf16.msra.mxu1 %v17419_v60  ;;  %v17476_v60 = vld [vmem:[#allocation8 + $0x8e0] ss:$8 sps:$4 sm:$0xff]  }
0x1467   : > { %11719 = vmatprep.subr.bf16.mxu1 %v17427_v6  ;;  %v17479_v6 = vld [vmem:[#allocation8 + $0x8f0] ss:$8 sps:$4 sm:$0xff]  }
0x146a   : > { %11720 = vmatpush1.bf16.msra.mxu1 %v17425_v15 }
0x146b   : > { %11721 = vmatprep.subr.bf16.mxu1 %v17433_v9  ;;  %v17482_v9 = vld [vmem:[%s20290_s5 + $0x940] sm:$0xff]  }
0x146c   : > { %15469 = vmatprep.subr.bf16.mxu0 %v17482_v9  ;;  %v17519_v9 = vld [vmem:[%s20290_s5 + $0x988] sm:$0xff]  }
0x146e   : > { %11722 = vmatpush1.bf16.msra.mxu1 %v17431_v47  ;;  %v17483_v47 = vld [vmem:[%s20290_s5 + $0xa40] sm:$0xff]  }
0x146f   : > { %11723 = vmatprep.subr.bf16.mxu1 %v17439_v7  ;;  %v17486_v7 = vld [vmem:[%s20290_s5 + $0x948] sm:$0xff]  }
0x1472   : > { %11724 = vmatpush1.bf16.msra.mxu1 %v17437_v26  ;;  %v17487_v26 = vld [vmem:[%s20290_s5 + $0xa48] sm:$0xff]  }
0x1473   : > { %11725 = vmatprep.subr.bf16.mxu1 %v17445_v16  ;;  %v17491_v16 = vld [vmem:[%s20290_s5 + $0xa50] sm:$0xff]  }
0x1476   : > { %11726 = vmatpush1.bf16.msra.mxu1 %v17443_v23  ;;  %v17490_v23 = vld [vmem:[%s20290_s5 + $0x950] sm:$0xff]  }
0x1477   : > { %11727 = vmatprep.subr.bf16.mxu1 %v17451_v38  ;;  %v17494_v38 = vld [vmem:[%s20290_s5 + $0x958] sm:$0xff]  }
0x147a   : > { %11728 = vmatpush1.bf16.msra.mxu1 %v17449_v14  ;;  %v17495_v14 = vld [vmem:[%s20290_s5 + $0xa58] sm:$0xff]  }
0x147b   : > { %11974 = vmatprep.subr.bf16.mxu1 %v17457_v53  ;;  %v17497_v53 = vld [vmem:[%s20290_s5 + $0xa18] sm:$0xff]  }
0x1528   : > { %v11390_v22 = vpop.f32.mrb[214].mxu1 }
0x1529   : > { %v15957_v29 = vpop.f32.mrb[215].mxu1 }
0x152a   : > { %v17502_v29 = vld [vmem:[%s20290_s5 + $0x968] sm:$0xff]  }
0x152c   : > { %v11466_v39 = vpop.f32.mrb[244].mxu1 }
0x152d   : > { %v11467_v25 = vadd.f32 %v11466_v39, %v11390_v22  ;;  %v15962_v24 = vpop.f32.mrb[245].mxu1  ;;  %v17501_v22 = vld [vmem:[%s20290_s5 + $0xa20] sm:$0xff]   ;;  %v17503_v39 = vld [vmem:[%s20290_s5 + $0xa68] sm:$0xff]  }
0x152e   : > { %v17505_v24 = vld [vmem:[%s20290_s5 + $0xa28] sm:$0xff]  }
0x1530   : > { %v11542_v21 = vpop.f32.mrb[246].mxu1 }
0x1531   : > { %v11546_v4 = vadd.f32 %v11542_v21, %v11467_v25  ;;  %v15967_v32 = vpop.f32.mrb[247].mxu1  ;;  %v17504_v25 = vld [vmem:[%s20290_s5 + $0x928] sm:$0xff]   ;;  %v17506_v21 = vld [vmem:[%s20290_s5 + $0x970] sm:$0xff]  }
0x1532   : > { %v17509_v32 = vld [vmem:[%s20290_s5 + $0xa30] sm:$0xff]  }
0x1533   : > { %v20074_v48 = vadd.f32 %v14372_v46, %v11546_v4  ;;  %v17507_v46 = vld [vmem:[%s20290_s5 + $0xa70] sm:$0xff]  }
0x1534   : > { %v17508_v4 = vld [vmem:[%s20290_s5 + $0x930] sm:$0xff]  }
0x1535   : > { %v11556_v54 = vmax.f32 %v20074_v48, 0.0 }
0x1537   : > { %11627 = vst [vmem:[#allocation2 + $0x18] sm:$0x3] %v11556_v54  ;;  %v17510_v54 = vld [vmem:[%s20290_s5 + $0x978] sm:$0xff]  }
0x153e   : > { %v11631_v12 = vld [vmem:[#allocation2 + $0x18] sm:$0x3] }
0x153f   : > { %v11629_v42 = vld [vmem:[#allocation2 + $0x18] sm:$0x1]  ;;  %v11632_v20 = vpack.c.bf16 %v11631_v12, %v11631_v12  ;;  %v11884_v11 = vld [vmem:[#allocation2 + $0x18] sm:$0x6] }
0x1540   : > { %v11630_v10 = vpack.c.bf16 %v11629_v42, %v11628_v28  ;;  %v11885_v56 = vpack.c.bf16 %v11884_v11, %v11884_v11  ;;  %v17511_v28 = vld [vmem:[%s20290_s5 + $0xa78] sm:$0xff]   ;;  %v17514_v42 = vld [vmem:[%s20290_s5 + $0x9c0] sm:$0xff]  }
0x1541   : > { %11746 = vmatmul.mubr.bf16.vlgmr.msra.gmra.mrb[248].mxu1 %v11632_v20  ;;  %v17513_v12 = vld [vmem:[%s20290_s5 + $0xa38] sm:$0xff]  }
0x1542   : > { %v11755_v0 = vshrl.u32 %v11630_v10, 16  ;;  %v11758_v5 = vshll.u32 %v11630_v10, 16  ;;  %11975 = vmatpush1.bf16.msra.mxu1 %v17455_v58  ;;  %12006 = vmatprep.mubr.bf16.mxu1 %v17771_v44  ;;  %v17473_v44 = vld [vmem:[#allocation8 + $0x8d0] ss:$8 sps:$4 sm:$0xff]   ;;  %v11889_v57 = vshll.u32 %v11885_v56, 16  ;;  %v11887_v52 = vshrl.u32 %v11885_v56, 16 }
0x1543   : > { %11976 = vmatprep.subr.bf16.mxu1 %v17463_v43  ;;  %v17512_v58 = vld [vmem:[%s20290_s5 + $0x938] sm:$0xff]  }
0x1544   : > { %v11757_v30 = vrot.slane %v11755_v0, 3  ;;  %v11760_v45 = vrot.slane %v11758_v5, 4  ;;  %v11891_v15 = vrot.slane %v11889_v57, 1 }
0x1546   : > { %v11761_v49 = vor.u32 %v11760_v45, %v11757_v30  ;;  %11977 = vmatpush1.bf16.msra.mxu1 %v17461_v19  ;;  %v11892_v40 = vor.u32 %v11891_v15, %v11887_v52  ;;  %v17515_v15 = vld [vmem:[%s20289_s4 + $0x140] sm:$0xff]  }
0x1547   : > { %11978 = vmatprep.subr.bf16.mxu1 %v17466_v35 }
0x1548   : > { %11876 = vmatmul.mubr.bf16.vlgmr.msra.gmra.mrb[144].mxu0 %v11761_v49 }
0x1549   : > { %15470 = vmatpush3.bf16.msra.mxu0 %v17484_v37  ;;  %v17521_v37 = vld [vmem:[%s20289_s4 + $0x150] sm:$0xff]  }
0x154a   : > { %11979 = vmatpush1.bf16.msra.mxu1 %v17464_v59  ;;  %15471 = vmatprep.subr.bf16.mxu0 %v17486_v7  ;;  %v14437_v59 = vld [vmem:[%s20291_s6 + $0xc] sm:$0x3]  ;;  %v17523_v7 = vld [vmem:[%s20290_s5 + $0x9d8] sm:$0xff]  }
0x154b   : > { %11980 = vmatprep.subr.bf16.mxu1 %v17469_v51  ;;  %v12023_v51 = vrot.slane %v14437_v59, %v18504_v27  ;;  %v17516_v27 = vld [vmem:[%s20290_s5 + $0x980] sm:$0xff]  }
0x154d   : > { %15472 = vmatpush3.bf16.msra.mxu0 %v17488_v50  ;;  %v17525_v50 = vld [vmem:[%s20290_s5 + $0x998] sm:$0xff]  }
0x154e   : > { %11981 = vmatpush1.bf16.msra.mxu1 %v17467_v13  ;;  %15473 = vmatprep.subr.bf16.mxu0 %v17490_v23  ;;  %v17527_v23 = vld [vmem:[%s20289_s4 + $0x160] sm:$0xff]  }
0x154f   : > { %11982 = vmatprep.subr.bf16.mxu1 %v17472_v1  ;;  %v12027_v1 = vrot.slane %v14437_v59, %v18509_v31  ;;  %v17517_v31 = vld [vmem:[%s20290_s5 + $0x9c8] sm:$0xff]  }
0x1551   : > { %15474 = vmatpush3.bf16.msra.mxu0 %v17492_v41  ;;  %v17529_v41 = vld [vmem:[%s20290_s5 + $0x9e8] sm:$0xff]  }
0x1552   : > { %11983 = vmatpush1.bf16.msra.mxu1 %v17470_v63  ;;  %15475 = vmatprep.subr.bf16.mxu0 %v17494_v38  ;;  %v17531_v38 = vld [vmem:[%s20290_s5 + $0x9a8] sm:$0xff]  }
0x1553   : > { %11984 = vmatprep.subr.bf16.mxu1 %v17475_v34 }
0x1555   : > { %15476 = vmatpush3.bf16.msra.mxu0 %v17496_v61  ;;  %v17533_v61 = vld [vmem:[%s20289_s4 + $0x170] sm:$0xff]  }
0x1556   : > { %11985 = vmatpush1.bf16.msra.mxu1 %v17473_v44  ;;  %15477 = vmatprep.subr.bf16.mxu0 %v17498_v36  ;;  %v17535_v36 = vld [vmem:[%s20290_s5 + $0x9f8] sm:$0xff]  }
0x1557   : > { %11986 = vmatprep.subr.bf16.mxu1 %v17478_v62 }
0x1559   : > { %15478 = vmatpush3.bf16.msra.mxu0 %v17500_v3  ;;  %v17537_v3 = vld [vmem:[%s20290_s5 + $0x9b8] sm:$0xff]  }
0x155a   : > { %11987 = vmatpush1.bf16.msra.mxu1 %v17476_v60  ;;  %15479 = vmatprep.subr.bf16.mxu0 %v17502_v29 }
0x155b   : > { %11988 = vmatprep.subr.bf16.mxu1 %v17481_v18 }
0x155d   : > { %15480 = vmatpush3.bf16.msra.mxu0 %v17504_v25 }
0x155e   : > { %11989 = vmatpush1.bf16.msra.mxu1 %v17479_v6  ;;  %15481 = vmatprep.subr.bf16.mxu0 %v17506_v21 }
0x155f   : > { %15491 = vmatprep.subr.bf16.mxu1 %v17483_v47  ;;  %v17520_v47 = vld [vmem:[%s20290_s5 + $0x9d0] sm:$0xff]  }
0x1561   : > { %12007 = vmatmul.mubr.bf16.vlgmr.msra.gmra.mrb[252].mxu1 %v11892_v40  ;;  %15482 = vmatpush3.bf16.msra.mxu0 %v17508_v4  ;;  %v17518_v40 = vld [vmem:[%s20289_s4 + $0x148] sm:$0xff]  }
0x1562   : > { %15492 = vmatpush3.bf16.msra.mxu1 %v17485_v55  ;;  %15483 = vmatprep.subr.bf16.mxu0 %v17510_v54  ;;  %v17522_v55 = vld [vmem:[%s20290_s5 + $0x990] sm:$0xff]  }
0x1563   : > { %15493 = vmatprep.subr.bf16.mxu1 %v17487_v26  ;;  %v17524_v26 = vld [vmem:[%s20289_s4 + $0x158] sm:$0xff]  }
0x1565   : > { %15484 = vmatpush3.bf16.msra.mxu0 %v17512_v58 }
0x1566   : > { %15494 = vmatpush3.bf16.msra.mxu1 %v17489_v8  ;;  %15968 = vmatprep.subr.bf16.mxu0 %v17770_v2  ;;  %v17526_v8 = vld [vmem:[%s20290_s5 + $0x9e0] sm:$0xff]  }
0x1567   : > { %15495 = vmatprep.subr.bf16.mxu1 %v17491_v16  ;;  %v17528_v16 = vld [vmem:[%s20290_s5 + $0x9a0] sm:$0xff]  }
0x156a   : > { %15496 = vmatpush3.bf16.msra.mxu1 %v17493_v33  ;;  %v17530_v33 = vld [vmem:[%s20289_s4 + $0x168] sm:$0xff]  }
0x156b   : > { %15497 = vmatprep.subr.bf16.mxu1 %v17495_v14  ;;  %v17532_v14 = vld [vmem:[%s20290_s5 + $0x9f0] sm:$0xff]  }
0x156e   : > { %15498 = vmatpush3.bf16.msra.mxu1 %v17497_v53  ;;  %v17534_v53 = vld [vmem:[%s20290_s5 + $0x9b0] sm:$0xff]  }
0x156f   : > { %15499 = vmatprep.subr.bf16.mxu1 %v17499_v17  ;;  %v17536_v17 = vld [vmem:[%s20289_s4 + $0x178] sm:$0xff]  }
0x1572   : > { %15500 = vmatpush3.bf16.msra.mxu1 %v17501_v22  ;;  %v12407_v22 = vpack.c.bf16 %v20074_v48, %v20074_v48 }
0x1573   : > { %15501 = vmatprep.subr.bf16.mxu1 %v17503_v39 }
0x1576   : > { %15502 = vmatpush3.bf16.msra.mxu1 %v17505_v24 }
0x1577   : > { %15503 = vmatprep.subr.bf16.mxu1 %v17507_v46 }
0x157a   : > { %15504 = vmatpush3.bf16.msra.mxu1 %v17509_v32 }
0x157b   : > { %15505 = vmatprep.subr.bf16.mxu1 %v17511_v28 }
0x157e   : > { %15506 = vmatpush3.bf16.msra.mxu1 %v17513_v12 }
0x157f   : > { %15522 = vmatprep.subr.bf16.mxu1 %v17514_v42 }
0x1614   : > { %v11747_v20 = vpop.f32.mrb[248].mxu1 }
0x1615   : > { %v11749_v43 = vpop.f32.mrb[249].mxu1 }
0x1616   : > { %v11751_v10 = vpop.f32.mrb[250].mxu1 }
0x1617   : > { %v11752_v0 = vpop.f32.mrb[251].mxu1 }
0x161b   : > { %v11877_v5 = vpop.f32.mrb[144].mxu0 }
0x161c   : > { %v11878_v19 = vadd.f32 %v11877_v5, %v11747_v20  ;;  %v11879_v30 = vpop.f32.mrb[145].mxu0 }
0x161d   : > { %v11880_v45 = vadd.f32 %v11879_v30, %v11749_v43  ;;  %v11881_v35 = vpop.f32.mrb[146].mxu0  ;;  %v12497_v30 = vld [vmem:[#allocation9 + $0x40] sm:$0x1] }
0x161e   : > { %v11882_v49 = vpop.f32.mrb[147].mxu0  ;;  %v12498_v35 = vld [vmem:[#allocation9 + $0x80] sm:$0x1] }
0x1634   : > { %v12008_v13 = vpop.f32.mrb[252].mxu1 }
0x1635   : > { %v12015_v63 = vadd.f32 %v12008_v13, %v11878_v19  ;;  %v12010_v34 = vpop.f32.mrb[253].mxu1 }
0x1636   : > { %v12016_v11 = vadd.f32 %v12010_v34, %v11880_v45  ;;  %v12012_v44 = vpop.f32.mrb[254].mxu1  ;;  %v12496_v45 = vld [vmem:[#allocation9] sm:$0x1]  ;;  %v14596_v34 = vld [vmem:[%s20292_s7 + $0x6] sm:$0x1] }
0x1637   : > { %v12030_v62 = vadd.f32 %v12023_v51, %v12015_v63  ;;  %v12013_v56 = vpop.f32.mrb[255].mxu1 }
0x1638   : > { %v12031_v60 = vadd.f32 %v12027_v1, %v12016_v11 }
0x1639   : > { %v12032_v18 = vmax.f32 %v12030_v62, 0.0 }
0x163a   : > { %v12033_v57 = vmax.f32 %v12031_v60, 0.0 }
0x163b   : > { %v12034_v52 = vpack.c.bf16 %v12032_v18, %v12032_v18 }
0x163c   : > { %v12035_v6 = vpack.c.bf16 %v12033_v57, %v12033_v57  ;;  %v12877_v57 = vld [vmem:[#allocation3] sm:$0x1] }
0x163e   : > { %12197 = vmatprep.mubr.bf16.mxu0 %v12035_v6  ;;  %12399 = vmatprep.mubr.bf16.mxu1 %v12035_v6 }
0x163f   : > { %12198 = vmatmul.mubr.bf16.vlgmr.msra.gmra.mrb[148].mxu0 %v12034_v52  ;;  %12400 = vmatmul.mubr.bf16.vlgmr.msra.gmra.mrb[0].mxu1 %v12034_v52 }
0x1640   : > { %15969 = vmatpush3.bf16.msra.mxu0 %v17515_v15  ;;  %15523 = vmatpush3.bf16.msra.mxu1 %v17516_v27 }
0x1641   : > { %12627 = vmatprep.mubr.bf16.mxu1 %v12035_v6  ;;  %15970 = vmatprep.subr.bf16.mxu0 %v17770_v2 }
0x1642   : > { %15524 = vmatprep.subr.bf16.mxu1 %v17517_v31  ;;  %15984 = vmatprep.mubr.msk.bf16.mxu0 %vm17772_vm5, %v17770_v2 }
0x1644   : > { %15971 = vmatpush3.bf16.msra.mxu0 %v17518_v40  ;;  %15525 = vmatpush3.bf16.msra.mxu1 %v17519_v9 }
0x1645   : > { %15972 = vmatprep.subr.bf16.mxu0 %v17770_v2  ;;  %15526 = vmatprep.subr.bf16.mxu1 %v17520_v47 }
0x1648   : > { %15973 = vmatpush3.bf16.msra.mxu0 %v17521_v37  ;;  %15527 = vmatpush3.bf16.msra.mxu1 %v17522_v55 }
0x1649   : > { %15974 = vmatprep.subr.bf16.mxu0 %v17770_v2  ;;  %15528 = vmatprep.subr.bf16.mxu1 %v17523_v7 }
0x164c   : > { %15975 = vmatpush3.bf16.msra.mxu0 %v17524_v26  ;;  %15529 = vmatpush3.bf16.msra.mxu1 %v17525_v50 }
0x164d   : > { %15976 = vmatprep.subr.bf16.mxu0 %v17770_v2  ;;  %15530 = vmatprep.subr.bf16.mxu1 %v17526_v8 }
0x1650   : > { %15977 = vmatpush3.bf16.msra.mxu0 %v17527_v23  ;;  %15531 = vmatpush3.bf16.msra.mxu1 %v17528_v16 }
0x1651   : > { %15978 = vmatprep.subr.bf16.mxu0 %v17770_v2  ;;  %15532 = vmatprep.subr.bf16.mxu1 %v17529_v41 }
0x1654   : > { %15979 = vmatpush3.bf16.msra.mxu0 %v17530_v33  ;;  %15533 = vmatpush3.bf16.msra.mxu1 %v17531_v38 }
0x1655   : > { %15980 = vmatprep.subr.bf16.mxu0 %v17770_v2  ;;  %15534 = vmatprep.subr.bf16.mxu1 %v17532_v14 }
0x1658   : > { %15981 = vmatpush3.bf16.msra.mxu0 %v17533_v61  ;;  %15535 = vmatpush3.bf16.msra.mxu1 %v17534_v53 }
0x1659   : > { %15982 = vmatprep.subr.bf16.mxu0 %v17770_v2  ;;  %15536 = vmatprep.subr.bf16.mxu1 %v17535_v36 }
0x165c   : > { %15983 = vmatpush3.bf16.msra.mxu0 %v17536_v17  ;;  %15537 = vmatpush3.bf16.msra.mxu1 %v17537_v3 }
0x165d   : > { %15988 = vmatprep.subr.mxu0 %v17770_v2 }
0x165f   : > { %15985 = vmatmul.mubr.bf16.vlgmr.msra.gmra.mrb[152].mxu0 %v12407_v22  ;;  %12628 = vmatmul.mubr.bf16.vlgmr.msra.gmra.mrb[4].mxu1 %v12034_v52 }
0x1660   : > { %15990 = vmatprep.mubr.msk.f32.mxu0 %vm17772_vm5, %v17770_v2 }
0x1712   : > { %v15485_v29 = vpop.f32.mrb[148].mxu0  ;;  %v15507_v39 = vpop.f32.mrb[0].mxu1 }
0x1713   : > { %v15486_v25 = vpop.f32.mrb[149].mxu0  ;;  %v15508_v24 = vpop.f32.mrb[1].mxu1 }
0x1714   : > { %v15487_v21 = vadd.f32 %v15486_v25, %v15485_v29  ;;  %v15509_v46 = vadd.f32 %v15508_v24, %v15507_v39  ;;  %v15488_v4 = vpop.f32.mrb[150].mxu0  ;;  %v15510_v32 = vpop.f32.mrb[2].mxu1 }
0x1715   : > { %v15489_v54 = vpop.f32.mrb[151].mxu0  ;;  %v15511_v28 = vpop.f32.mrb[3].mxu1 }
0x1732   : > { %v12490_v58 = vpop.f32.mrb[152].mxu0  ;;  %v15538_v12 = vpop.f32.mrb[4].mxu1 }
0x1733   : > { %v15986_v48 = vpop.f32.mrb[153].mxu0  ;;  %v15539_v42 = vpop.f32.mrb[5].mxu1 }
0x1734   : > { %v15540_v20 = vadd.f32 %v15539_v42, %v15538_v12  ;;  %v12493_v43 = vpop.f32.mrb[154].mxu0  ;;  %v15541_v10 = vpop.f32.mrb[6].mxu1 }
0x1735   : > { %v15987_v0 = vpop.f32.mrb[155].mxu0  ;;  %v15542_v5 = vpop.f32.mrb[7].mxu1 }
0x1736   : > { %v12630_v19 = vadd.f32 %v15540_v20, %v12490_v58 }
0x1738   : > { %15989 = vmatpush3.msk.msra.mxu0 %vm12639_vm10, %v12630_v19 }
0x1739   : > { %15991 = vmatmul.mubr.msk.f32.vlgmr.msra.gmra.mrb[156].mxu0 %vm12635_vm11, %v12497_v30  ;;  %15993 = vmatprep.subr.mxu0 %v17770_v2 }
0x173a   : > { %15994 = vmatpush3.msk.msra.mxu0 %vm12639_vm10, %v15487_v21  ;;  %15995 = vmatprep.mubr.msk.f32.mxu0 %vm17772_vm5, %v17770_v2 }
0x173b   : > { %15998 = vmatprep.subr.mxu0 %v17770_v2 }
0x173d   : > { %15996 = vmatmul.mubr.msk.f32.vlgmr.msra.gmra.mrb[158].mxu0 %vm12635_vm11, %v12496_v45 }
0x173e   : > { %15999 = vmatpush3.msk.msra.mxu0 %vm12639_vm10, %v15509_v46  ;;  %16000 = vmatprep.mubr.msk.f32.mxu0 %vm17772_vm5, %v17770_v2  ;;  %v12871_v2 = vld [vmem:[%s20294_s9] sm:$0x1] }
0x1741   : > { %16001 = vmatmul.mubr.msk.f32.vlgmr.msra.gmra.mrb[160].mxu0 %vm12635_vm11, %v12498_v35 }
0x180c   : > { %v12709_v49 = vpop.f32.mrb[156].mxu0 }
0x180d   : > { %v15992_v59 = vpop.f32.mrb[157].mxu0 }
0x1810   : > { %v12785_v51 = vpop.f32.mrb[158].mxu0 }
0x1811   : > { %v12786_v13 = vadd.f32 %v12785_v51, %v12709_v49  ;;  %v15997_v1 = vpop.f32.mrb[159].mxu0 }
0x1814   : > { %v12861_v63 = vpop.f32.mrb[160].mxu0 }
0x1815   : > { %v12865_v11 = vadd.f32 %v12861_v63, %v12786_v13  ;;  %v16002_v44 = vpop.f32.mrb[161].mxu0 }
0x1817   : > { %v12868_v62 = vadd.f32 %v14596_v34, %v12865_v11 }
0x1819   : > { %v12869_v56 = vmax.f32 %v12868_v62, 0.0 }
0x181b   : > { %v12872_v60 = vmul.f32 %v12871_v2, %v12869_v56 }
0x181d   : > { %v12874_v18 = vsel %vm12873_vm12, %v12872_v60, 0.0 }
0x181e   : > { %12875 = vadd.xlane.f32.xlu0 %v12874_v18 }
0x18ab   : > { %v12876_v6 = vpop.xlane.xlu0 %12875 }
0x18ac   : > { %v12878_v15 = vadd.f32 %v12877_v57, %v12876_v6 }
0x18ae   : > { %12880 = vst.msk [vmem:[%s443_s13] sm:$0x1] %vm12879_vm13, %v12878_v15 }
0x18af PF: > { %s26_s19 = sadd.s32 1, %s17760_s19  }
0x18b0   : > { %p23_p1 = scmp.ge.s32.totalorder %s26_s19, 4  }
0x18b2   :  { %25 = sbr.rel (!%p23_p1) target bundleno = 6 (0x6), region = 171 }
0x18b9   :  { %12898 = vsyncpa [#allocation5], 1 }
0x18ba   :  { %12900 = vsyncpa [#allocation5 + $0x1], 1 }
0x18bb   :  { %12901 = vsyncpa [#allocation7], 1 }
0x18bc   :  { %12902 = vsyncpa [#allocation10], 1 }

</bundles_post_ra>
